<compile_context>
chip_gen: v7x
topology: tpu7x:2x2x1
jax: 0.10.0
libtpu: 0.0.40
codegen_flags: <defaults>
</compile_context>

<pallas_src>
import functools
import math

import numpy as np
import jax
import jax.numpy as jnp
from jax import lax
from jax.experimental import pallas as pl
from jax.experimental.pallas import tpu as pltpu


# bf16 operands for every MXU matmul (f32 accumulation everywhere).
_MXU_DTYPE = jnp.bfloat16

_NEG_INF = -1e9


def _attn_vmem_limit():
    cap = 128 * 1024 * 1024
    try:
        info = pltpu.get_tpu_info()
        cap = int(getattr(info, "vmem_capacity_bytes", cap))
    except Exception:
        pass
    # <=0.75 of physical VMEM, never more than 64 MiB (v5e/v6e: 64 MiB, v7x: 48 MiB).
    return min(64 * 1024 * 1024, (cap * 3) // 4)


_ATTN_VMEM_LIMIT = _attn_vmem_limit()


def _tile_and_pad(dim, limit=512):
    """Pick a block size and padded extent for one matmul dimension.

    Small dims become a single full block; large dims prefer 512/256 (v6e/v7x MXU
    friendly) and fall back to padding up to a 256 multiple instead of a monolithic
    un-pipelined block."""
    if dim <= limit:
        return dim, dim
    for t in (512, 256, 128):
        if t <= limit and dim % t == 0:
            return t, dim
    t = min(256, limit)
    return t, ((dim + t - 1) // t) * t


def _pick_head_block(num_heads, seq_len, head_dim, embed):
    """Heads per attention grid step, budgeted against the total per-step VMEM footprint."""
    budget = max(_ATTN_VMEM_LIMIT // 4, 4 << 20)
    isz = jnp.dtype(_MXU_DTYPE).itemsize
    for hb in range(num_heads, 0, -1):
        if num_heads % hb:
            continue
        score = 6 * hb * seq_len * seq_len * 4              # scores/exp/prob/pos temporaries + prob dbl-buf
        qkv = 3 * 2 * hb * seq_len * head_dim * isz          # double-buffered q/k/v blocks
        wo = 2 * hb * head_dim * embed * isz
        out = 2 * seq_len * embed * 4 + 2 * seq_len * seq_len * 4 + hb * seq_len * head_dim * 4
        if score + qkv + wo + out <= budget:
            return hb
    return 1


# ----------------------------- Pallas kernels -----------------------------

def _linear_kernel(x_ref, w_ref, b_ref, o_ref, acc_ref, *, relu):
    @pl.when(pl.program_id(2) == 0)
    def _init():
        acc_ref[...] = jnp.zeros_like(acc_ref)

    acc_ref[...] += jnp.dot(x_ref[...], w_ref[...],
                            preferred_element_type=jnp.float32)

    @pl.when(pl.program_id(2) == pl.num_programs(2) - 1)
    def _finalize():
        y = acc_ref[...] + b_ref[...]
        if relu:
            y = jnp.maximum(y, 0.0)
        o_ref[...] = y.astype(o_ref.dtype)


def linear(x, w, b, relu=False, out_dtype=jnp.float32):
    """y = x @ w + b (optional ReLU).  Tiled/pipelined bf16 matmul, f32 accumulation."""
    lead = x.shape[:-1]
    K = x.shape[-1]
    N = w.shape[-1]
    M = int(np.prod(lead)) if lead else 1
    x2 = x.reshape(M, K).astype(_MXU_DTYPE)
    w2 = w.astype(_MXU_DTYPE)
    b2 = b.reshape(1, N).astype(jnp.float32)

    tm, Mp = _tile_and_pad(M)
    tn, Np = _tile_and_pad(N)
    tk, Kp = _tile_and_pad(K, limit=1024)   # keep K as one block when it fits
    if Mp != M:
        x2 = jnp.pad(x2, ((0, Mp - M), (0, 0)))
    if Kp != K:
        x2 = jnp.pad(x2, ((0, 0), (0, Kp - K)))
        w2 = jnp.pad(w2, ((0, Kp - K), (0, 0)))
    if Np != N:
        w2 = jnp.pad(w2, ((0, 0), (0, Np - N)))
        b2 = jnp.pad(b2, ((0, 0), (0, Np - N)))

    grid = (Mp // tm, Np // tn, Kp // tk)
    out = pl.pallas_call(
        functools.partial(_linear_kernel, relu=relu),
        out_shape=jax.ShapeDtypeStruct((Mp, Np), out_dtype),
        grid=grid,
        in_specs=[
            pl.BlockSpec((tm, tk), lambda i, j, k: (i, k)),
            pl.BlockSpec((tk, tn), lambda i, j, k: (k, j)),
            pl.BlockSpec((1, tn), lambda i, j, k: (0, j)),
        ],
        out_specs=pl.BlockSpec((tm, tn), lambda i, j, k: (i, j)),
        scratch_shapes=[pltpu.VMEM((tm, tn), jnp.float32)],
        compiler_params=pltpu.CompilerParams(
            dimension_semantics=("parallel", "parallel", "arbitrary")),
    )(x2, w2, b2)
    if Mp != M or Np != N:
        out = out[:M, :N]
    return out.reshape(lead + (N,))


def _lin_res_ln_kernel(x_ref, r_ref, w_ref, b_ref, g_ref, bb_ref, o_ref, acc_ref):
    @pl.when(pl.program_id(1) == 0)
    def _init():
        acc_ref[...] = jnp.zeros_like(acc_ref)

    acc_ref[...] += jnp.dot(x_ref[...], w_ref[...],
                            preferred_element_type=jnp.float32)

    @pl.when(pl.program_id(1) == pl.num_programs(1) - 1)
    def _finalize():
        h = r_ref[...] + acc_ref[...] + b_ref[...]
        mu = jnp.mean(h, axis=-1, keepdims=True)
        hc = h - mu
        var = jnp.mean(hc * hc, axis=-1, keepdims=True)
        o_ref[...] = hc * lax.rsqrt(var + 1e-5) * g_ref[...] + bb_ref[...]


def linear_res_ln(x, res, w, b, g, beta):
    """Fused LayerNorm(res + x @ w + b) with K tiling + f32 accumulator."""
    lead = x.shape[:-1]
    K = x.shape[-1]
    E = w.shape[-1]
    M = int(np.prod(lead)) if lead else 1
    x2 = x.reshape(M, K).astype(_MXU_DTYPE)
    r2 = res.reshape(M, E).astype(jnp.float32)
    w2 = w.astype(_MXU_DTYPE)

    tm, Mp = _tile_and_pad(M)
    tk, Kp = _tile_and_pad(K, limit=1024)
    if Mp != M:
        x2 = jnp.pad(x2, ((0, Mp - M), (0, 0)))
        r2 = jnp.pad(r2, ((0, Mp - M), (0, 0)))
    if Kp != K:
        x2 = jnp.pad(x2, ((0, 0), (0, Kp - K)))
        w2 = jnp.pad(w2, ((0, Kp - K), (0, 0)))

    grid = (Mp // tm, Kp // tk)
    out = pl.pallas_call(
        _lin_res_ln_kernel,
        out_shape=jax.ShapeDtypeStruct((Mp, E), jnp.float32),
        grid=grid,
        in_specs=[
            pl.BlockSpec((tm, tk), lambda i, k: (i, k)),
            pl.BlockSpec((tm, E), lambda i, k: (i, 0)),
            pl.BlockSpec((tk, E), lambda i, k: (k, 0)),
            pl.BlockSpec((1, E), lambda i, k: (0, 0)),
            pl.BlockSpec((1, E), lambda i, k: (0, 0)),
            pl.BlockSpec((1, E), lambda i, k: (0, 0)),
        ],
        out_specs=pl.BlockSpec((tm, E), lambda i, k: (i, 0)),
        scratch_shapes=[pltpu.VMEM((tm, E), jnp.float32)],
        compiler_params=pltpu.CompilerParams(
            dimension_semantics=("parallel", "arbitrary")),
    )(x2, r2, w2, b.reshape(1, E), g.reshape(1, E), beta.reshape(1, E))
    if Mp != M:
        out = out[:M]
    return out.reshape(lead + (E,))


def _causal_mask(seq_len):
    row = lax.broadcasted_iota(jnp.int32, (seq_len, seq_len), 0)
    col = lax.broadcasted_iota(jnp.int32, (seq_len, seq_len), 1)
    return col > row  # True = future position = masked


def _softmax_lastdim(s):
    s = s - jnp.max(s, axis=-1, keepdims=True)
    e = jnp.exp(s)
    return e * pl.reciprocal(jnp.sum(e, axis=-1, keepdims=True), approx=True)


def _attn_mix_kernel(*refs, scale, use_extra):
    """Masked softmax attention over a (Hb, S, Dh) head chunk, optionally mixed with a
    per-batch precomputed extra probability map, with the wo/bo output projection fused
    into a lane-dense (S, E) epilogue accumulated across head chunks:
        prob = (1 - l) * softmax(mask(QK^T/sqrt(d))) + l * eprob
        out += sum_h (prob_h @ V_h) @ Wo_h   (+ bo on the first head chunk)
    """
    if use_extra:
        q_ref, k_ref, v_ref, wo_ref, bo_ref, ep_ref, l_ref, o_ref = refs
    else:
        q_ref, k_ref, v_ref, wo_ref, bo_ref, o_ref = refs
    q = q_ref[0]          # (Hb, S, Dh) bf16
    k = k_ref[0]
    v = v_ref[0]
    Hb, S, Dh = q.shape
    E = wo_ref.shape[-1]

    s = jnp.einsum('hqd,hkd->hqk', q, k,
                   preferred_element_type=jnp.float32) * scale
    s = jnp.where(_causal_mask(S)[None], _NEG_INF, s)
    p = _softmax_lastdim(s)
    if use_extra:
        l = l_ref[0]                                  # scalar from SMEM
        p = (1.0 - l) * p + l * ep_ref[0]             # eprob (S,S) broadcasts over heads

    ctx = jnp.einsum('hqk,hkd->hqd', p.astype(q.dtype), v,
                     preferred_element_type=jnp.float32)
    ctx = ctx.astype(q.dtype)

    proj = jnp.zeros((S, E), jnp.float32)
    for hh in range(Hb):                               # fused output projection
        proj = proj + jnp.dot(ctx[hh], wo_ref[hh],
                              preferred_element_type=jnp.float32)

    @pl.when(pl.program_id(1) == 0)
    def _first():
        o_ref[0] = proj + bo_ref[...]

    @pl.when(pl.program_id(1) > 0)
    def _rest():
        o_ref[0] = o_ref[0] + proj


def attn_mix(q, k, v, wo, bo, eprob=None, lmix=None):
    B, H, S, Dh = q.shape
    E = H * Dh
    use_extra = eprob is not None
    Hb = _pick_head_block(H, S, Dh, E)
    grid = (B, H // Hb)

    wo_h = wo.reshape(H, Dh, E).astype(_MXU_DTYPE)
    bo2 = bo.reshape(1, E).astype(jnp.float32)

    in_specs = [pl.BlockSpec((1, Hb, S, Dh), lambda b, h: (b, h, 0, 0))] * 3 + [
        pl.BlockSpec((Hb, Dh, E), lambda b, h: (h, 0, 0)),
        pl.BlockSpec((1, E), lambda b, h: (0, 0)),
    ]
    args = [q, k, v, wo_h, bo2]
    if use_extra:
        in_specs = in_specs + [
            pl.BlockSpec((1, S, S), lambda b, h: (b, 0, 0)),
            pl.BlockSpec(memory_space=pltpu.MemorySpace.SMEM),
        ]
        args = args + [eprob.astype(jnp.float32),
                       lmix.reshape(1).astype(jnp.float32)]

    kern = functools.partial(_attn_mix_kernel,
                             scale=1.0 / math.sqrt(Dh), use_extra=use_extra)
    return pl.pallas_call(
        kern,
        out_shape=jax.ShapeDtypeStruct((B, S, E), jnp.float32),
        grid=grid,
        in_specs=in_specs,
        out_specs=pl.BlockSpec((1, S, E), lambda b, h: (b, 0, 0)),
        compiler_params=pltpu.CompilerParams(
            dimension_semantics=("parallel", "arbitrary"),
            vmem_limit_bytes=_ATTN_VMEM_LIMIT),
    )(*args)


def _rel_attn_kernel(*refs, scale, max_pos, need_prob):
    """Relative-position attention with both relative terms fused in-kernel:
        scores[i,j] = (q_i.k_j + q_i.pos_key[clip(i-j)]) / sqrt(d)   (masked softmax)
        out[i]      = sum_j prob[i,j] * (v_j + pos_value[clip(i-j)])
    The wo/bo output projection is fused into a lane-dense (S, E) epilogue.
    The small clip(i-j) re-indexing is done with select-accumulate over the (static,
    small) distance set -- no gathers, no (S,S,Dh) or extra (B,H,S,S) HBM tensors."""
    if need_prob:
        q_ref, k_ref, v_ref, pk_ref, pv_ref, wo_ref, bo_ref, o_ref, prob_ref = refs
    else:
        q_ref, k_ref, v_ref, pk_ref, pv_ref, wo_ref, bo_ref, o_ref = refs
    q = q_ref[0]          # (Hb, S, Dh) bf16
    k = k_ref[0]
    v = v_ref[0]
    Hb, S, Dh = q.shape
    E = wo_ref.shape[-1]
    P = pk_ref.shape[0]                       # max_pos
    nd = min(max_pos, S)                      # distances actually present

    row = lax.broadcasted_iota(jnp.int32, (S, S), 0)
    col = lax.broadcasted_iota(jnp.int32, (S, S), 1)
    dist = jnp.clip(row - col, 0, max_pos - 1)

    # content scores
    s = jnp.einsum('hqd,hkd->hqk', q, k, preferred_element_type=jnp.float32)

    # score-side relative term: q_i . pos_key[d], re-indexed by distance in-register
    qp = jnp.einsum('nd,pd->np', q.reshape(Hb * S, Dh), pk_ref[...],
                    preferred_element_type=jnp.float32).reshape(Hb, S, P)
    ps = jnp.zeros_like(s)
    for p in range(nd):
        ps = ps + jnp.where((dist == p)[None], qp[:, :, p:p + 1], 0.0)

    s = (s + ps) * scale
    s = jnp.where((col > row)[None], _NEG_INF, s)
    prob = _softmax_lastdim(s)

    ctx = jnp.einsum('hqk,hkd->hqd', prob.astype(q.dtype), v,
                     preferred_element_type=jnp.float32)

    # value-side relative term: sum_j prob[i,j] * pos_value[clip(i-j)]
    pvk = pv_ref[...].astype(jnp.float32)                    # (P, Dh)
    for p in range(nd):
        wcol = jnp.sum(jnp.where((dist == p)[None], prob, 0.0),
                       axis=-1, keepdims=True)               # (Hb, S, 1)
        ctx = ctx + wcol * pvk[p:p + 1, :].reshape(1, 1, Dh)

    ctx = ctx.astype(q.dtype)
    proj = jnp.zeros((S, E), jnp.float32)
    for hh in range(Hb):                                     # fused output projection
        proj = proj + jnp.dot(ctx[hh], wo_ref[hh],
                              preferred_element_type=jnp.float32)

    @pl.when(pl.program_id(1) == 0)
    def _first():
        o_ref[0] = proj + bo_ref[...]

    @pl.when(pl.program_id(1) > 0)
    def _rest():
        o_ref[0] = o_ref[0] + proj

    if need_prob:
        prob_ref[0] = prob


def rel_attention(q, k, v, pos_key_tab, pos_value_tab, wo, bo, *, max_pos, need_prob):
    B, H, S, Dh = q.shape
    E = H * Dh
    Hb = _pick_head_block(H, S, Dh, E)
    grid = (B, H // Hb)

    wo_h = wo.reshape(H, Dh, E).astype(_MXU_DTYPE)
    bo2 = bo.reshape(1, E).astype(jnp.float32)
    pk2 = pos_key_tab.astype(_MXU_DTYPE)
    pv2 = pos_value_tab.astype(jnp.float32)

    in_specs = [pl.BlockSpec((1, Hb, S, Dh), lambda b, h: (b, h, 0, 0))] * 3 + [
        pl.BlockSpec((max_pos, Dh), lambda b, h: (0, 0)),
        pl.BlockSpec((max_pos, Dh), lambda b, h: (0, 0)),
        pl.BlockSpec((Hb, Dh, E), lambda b, h: (h, 0, 0)),
        pl.BlockSpec((1, E), lambda b, h: (0, 0)),
    ]
    if need_prob:
        out_shape = (jax.ShapeDtypeStruct((B, S, E), jnp.float32),
                     jax.ShapeDtypeStruct((B, H, S, S), jnp.float32))
        out_specs = (pl.BlockSpec((1, S, E), lambda b, h: (b, 0, 0)),
                     pl.BlockSpec((1, Hb, S, S), lambda b, h: (b, h, 0, 0)))
    else:
        out_shape = jax.ShapeDtypeStruct((B, S, E), jnp.float32)
        out_specs = pl.BlockSpec((1, S, E), lambda b, h: (b, 0, 0))

    kern = functools.partial(_rel_attn_kernel, scale=1.0 / math.sqrt(Dh),
                             max_pos=max_pos, need_prob=need_prob)
    res = pl.pallas_call(
        kern,
        out_shape=out_shape,
        grid=grid,
        in_specs=in_specs,
        out_specs=out_specs,
        compiler_params=pltpu.CompilerParams(
            dimension_semantics=("parallel", "arbitrary"),
            vmem_limit_bytes=_ATTN_VMEM_LIMIT),
    )(q, k, v, pk2, pv2, wo_h, bo2)
    if need_prob:
        return res[0], res[1]
    return res, None


# ----------------------------- model glue (plain JAX) -----------------------------

def _to_heads(x, num_heads):
    B, S, E = x.shape
    Dh = E // num_heads
    return x.reshape(B, S, num_heads, Dh).transpose(0, 2, 1, 3).astype(_MXU_DTYPE)


def _project_qkv(p, q_in, kv_in, num_heads):
    """Fused projections: Q|K|V in one matmul when q/k/v share the input, else Q and K|V.
    Projections are emitted directly in bf16 (next consumer is a bf16 MXU matmul)."""
    E = p['wq'].shape[0]
    if q_in is kv_in:
        w = jnp.concatenate([p['wq'], p['wkv']], axis=1)
        bb = jnp.concatenate([p['bq'], p['bkv']], axis=0)
        qkv = linear(q_in, w, bb, out_dtype=_MXU_DTYPE)      # (B, S, 3E)
        q_p, k_p, v_p = qkv[..., :E], qkv[..., E:2 * E], qkv[..., 2 * E:]
    else:
        q_p = linear(q_in, p['wq'], p['bq'], out_dtype=_MXU_DTYPE)
        kv = linear(kv_in, p['wkv'], p['bkv'], out_dtype=_MXU_DTYPE)   # (B, S, 2E)
        k_p, v_p = kv[..., :E], kv[..., E:]
    return (_to_heads(q_p, num_heads), _to_heads(k_p, num_heads),
            _to_heads(v_p, num_heads))


def mha_mix(p, x, num_heads, eprob=None, lmix=None):
    """MultiHeadedAttention with (optional) memory/relation probability mixing.
    The wo/bo output projection is fused into the attention kernel."""
    q, k, v = _project_qkv(p, x, x, num_heads)
    return attn_mix(q, k, v, p['wo'], p['bo'], eprob=eprob, lmix=lmix)


def mha_rel(p, q_in, kv_in, num_heads, pos_key_tab, pos_value_tab, max_pos, need_prob):
    """MultiHeadedAttention with Shaw-style relative position embeddings (fully fused)."""
    q, k, v = _project_qkv(p, q_in, kv_in, num_heads)
    return rel_attention(q, k, v, pos_key_tab, pos_value_tab, p['wo'], p['bo'],
                         max_pos=max_pos, need_prob=need_prob)


def ykt_forward(params, item_ids, skill_ids, labels, rel, ren_mat, timestamp,
                *, num_heads, max_pos):
    B, S = item_ids.shape
    E = params['item_embeds'].shape[1]

    # ----- get_query -----
    item_embed = params['item_embeds'][item_ids]                 # (B,S,E)
    skill_embed = params['skill_embeds'][skill_ids]
    skill_diff = params['skill_embed_diff'][skill_ids]
    difficult = params['difficult_param'][item_ids]              # (B,S,1), zero-init (reset())
    query = item_embed
    skill_query = skill_embed + difficult * skill_diff

    # ----- get_inputs ----- (dropout = identity)
    lab = labels[..., None].astype(jnp.float32)
    pe = params['pe'][:, :S, :]
    item_in = item_embed + pe
    skill_in = skill_query + pe
    item_inputs = jnp.concatenate([item_in * lab, item_in * (1.0 - lab)], axis=-1)
    skill_inputs = jnp.concatenate([skill_in * lab, skill_in * (1.0 - lab)], axis=-1)

    inputs = linear(item_inputs, params['lin_in'][0]['w'], params['lin_in'][0]['b'],
                    relu=True, out_dtype=_MXU_DTYPE)
    skill_inputs = linear(skill_inputs, params['lin_in'][1]['w'], params['lin_in'][1]['b'],
                          relu=True, out_dtype=_MXU_DTYPE)

    fmask = jnp.triu(jnp.ones((S, S), jnp.float32), k=1) > 0.5   # True = future / masked

    # ----- shared "extra" attention probabilities: computed ONCE per batch, reused by all heads -----
    # NOTE: SMFE.gammas passes through softplus in the reference but is never used in the
    # attention arithmetic, so it does not influence the output.
    ren_feat = jnp.where(fmask, _NEG_INF, jnp.log10(ren_mat + 1.0))
    ts_feat = jnp.where(fmask, _NEG_INF, jnp.exp(-jnp.abs(timestamp.astype(jnp.float32))))
    mem_prob = jax.nn.softmax(ren_feat + ts_feat, axis=-1)       # (B,S,S)

    rel_feat = jnp.where(fmask, _NEG_INF, rel)
    rel_feat = jnp.where(rel_feat == 0.0, _NEG_INF, rel_feat)
    rel_prob = jax.nn.softmax(rel_feat, axis=-1)                 # (B,S,S)

    # ----- SMFE -----
    p_smfe = params['smfe']
    smfe_o = mha_mix(p_smfe['attn'], inputs, num_heads, eprob=mem_prob, lmix=p_smfe['l1'])
    smfe = linear_res_ln(smfe_o, smfe_o, p_smfe['lin_out1']['w'], p_smfe['lin_out1']['b'],
                         p_smfe['ln']['g'], p_smfe['ln']['b'])

    # ----- ERFE -----
    p_erfe = params['erfe']
    erfe_o = mha_mix(p_erfe['attn'], inputs, num_heads, eprob=rel_prob, lmix=p_erfe['l2'])
    erfe = linear_res_ln(erfe_o, erfe_o, p_erfe['lin_out']['w'], p_erfe['lin_out']['b'],
                         p_erfe['ln']['g'], p_erfe['ln']['b'])

    # ----- KRFE ----- (plain masked attention)
    p_krfe = params['krfe']
    krfe_o = mha_mix(p_krfe['attn'], skill_inputs, num_heads)
    krfe = linear_res_ln(krfe_o, krfe_o, p_krfe['lin_out']['w'], p_krfe['lin_out']['b'],
                         p_krfe['ln']['g'], p_krfe['ln']['b'])

    # ----- combine -----
    query2 = linear(jnp.concatenate([query, skill_query], axis=-1),
                    params['lin_in'][2]['w'], params['lin_in'][2]['b'],
                    out_dtype=_MXU_DTYPE)
    inputs2 = linear(jnp.concatenate([smfe, erfe, krfe], axis=-1),
                     params['lin_in2']['w'], params['lin_in2']['b'],
                     out_dtype=_MXU_DTYPE)
    inputs2 = jnp.concatenate([jnp.zeros((B, 1, E), inputs2.dtype), inputs2],
                              axis=1)[:, :-1, :]

    # ----- relative-position attention stack -----
    pos_key_tab = params['pos_key']
    pos_value_tab = params['pos_value']
    n_layers = len(params['attn_layers'])

    outputs, attn = mha_rel(params['attn_layers'][0], query2, inputs2, num_heads,
                            pos_key_tab, pos_value_tab, max_pos,
                            need_prob=(n_layers == 1))
    for li, lp in enumerate(params['attn_layers'][1:], start=1):
        residual, a = mha_rel(lp, query2, outputs, num_heads,
                              pos_key_tab, pos_value_tab, max_pos,
                              need_prob=(li == n_layers - 1))
        if a is not None:
            attn = a
        h = linear(residual, params['ffn']['lin1']['w'], params['ffn']['lin1']['b'],
                   relu=True, out_dtype=_MXU_DTYPE)
        # fused: LayerNorm(outputs + h @ W2 + b2)
        outputs = linear_res_ln(h, outputs,
                                params['ffn']['lin2']['w'], params['ffn']['lin2']['b'],
                                params['layer_norm']['g'], params['layer_norm']['b'])

    # final E -> 1 projection: N=1 output is not lane-dense; plain XLA handles it best.
    pred = outputs @ params['lin_out']['w'] + params['lin_out']['b']
    return pred, attn


# ----------------------------- deterministic parameters -----------------------------

def init_params(key, *, num_items, num_skills, embed_size, num_heads,
                max_pos, num_attn_layers, max_len=512):
    E = embed_size
    Dh = E // num_heads
    kit = iter(jax.random.split(key, 256))

    def nrm(shape, scale=0.1):
        return (scale * jax.random.normal(next(kit), shape)).astype(jnp.float32)

    def lin_p(din, dout):
        return {'w': nrm((din, dout)), 'b': nrm((dout,))}

    def mha_p():
        # Q kept separate (query input may differ from key/value input); K|V fused.
        return {'wq': nrm((E, E)), 'bq': nrm((E,)),
                'wkv': nrm((E, 2 * E)), 'bkv': nrm((2 * E,)),
                'wo': nrm((E, E)), 'bo': nrm((E,))}

    def ln_p():
        return {'g': jnp.ones((E,), jnp.float32), 'b': jnp.zeros((E,), jnp.float32)}

    # Cosine positional embedding table (sin/cos, fully deterministic).
    pos = np.arange(max_len)[:, None].astype(np.float32)
    div = np.exp(np.arange(0, E, 2).astype(np.float32) * -(math.log(10000.0) / E))
    pe = np.zeros((max_len, E), np.float32)
    pe[:, 0::2] = np.sin(pos * div)
    pe[:, 1::2] = np.cos(pos * div)

    return {
        'item_embeds': nrm((num_items + 1, E)).at[0].set(0.0),       # padding_idx=0
        'skill_embeds': nrm((num_skills + 1, E)).at[0].set(0.0),
        'skill_embed_diff': nrm((num_skills + 1, E)).at[0].set(0.0),
        'difficult_param': jnp.zeros((num_items + 1, 1), jnp.float32),  # reset() -> 0
        'pe': jnp.asarray(pe)[None],                                  # (1, max_len, E)
        'pos_key': nrm((max_pos, Dh)),
        'pos_value': nrm((max_pos, Dh)),
        'smfe': {'attn': mha_p(), 'lin_out1': lin_p(E, E), 'ln': ln_p(),
                 'l1': jax.random.uniform(next(kit), (1,), jnp.float32),
                 'gammas': nrm((num_heads, 1, 1))},                   # unused in math
        'erfe': {'attn': mha_p(), 'lin_out': lin_p(E, E), 'ln': ln_p(),
                 'l2': jax.random.uniform(next(kit), (1,), jnp.float32)},
        'krfe': {'attn': mha_p(), 'lin_out': lin_p(E, E), 'ln': ln_p()},
        'attn_layers': [mha_p() for _ in range(num_attn_layers)],
        'lin_in': [lin_p(2 * E, E) for _ in range(4)],
        'lin_in2': lin_p(3 * E, E),
        'ffn': {'lin1': lin_p(E, 2 * E), 'lin2': lin_p(2 * E, E)},
        'lin_out': lin_p(E, 1),
        'layer_norm': ln_p(),
    }


# ----------------------------- main -----------------------------

if __name__ == "__main__":
    B, S, E, H = 2, 8, 32, 4
    num_items, num_skills, max_pos, num_attn_layers = 20, 10, 10, 2

    key = jax.random.PRNGKey(0)
    kp, k1, k2, k3, k4, k5, k6 = jax.random.split(key, 7)

    params = init_params(kp, num_items=num_items, num_skills=num_skills,
                         embed_size=E, num_heads=H, max_pos=max_pos,
                         num_attn_layers=num_attn_layers)

    # (the reference forward also takes item_inputs/skill_inputs/label_inputs, which it never uses)
    item_ids = jax.random.randint(k1, (B, S), 1, num_items + 1)
    skill_ids = jax.random.randint(k2, (B, S), 1, num_skills + 1)
    labels = jax.random.randint(k3, (B, S), 0, 2)
    rel = jax.random.uniform(k4, (B, S, S), jnp.float32)
    rel = jnp.where(rel < 0.3, 0.0, rel)                 # exact zeros exercised (rel==0 mask)
    ren_mat = jax.random.uniform(k5, (B, S, S), jnp.float32) * 5.0
    timestamp = jax.random.normal(k6, (B, S, S), jnp.float32) * 2.0

    fwd = jax.jit(functools.partial(ykt_forward, num_heads=H, max_pos=max_pos))
    pred, attn = fwd(params, item_ids, skill_ids, labels, rel, ren_mat, timestamp)
    jax.block_until_ready((pred, attn))

    assert pred.shape == (B, S, 1)
    assert attn.shape == (B, H, S, S)
    print("KERNEL_OK")
</pallas_src>

<mosaic_0001>
module attributes {stable_mosaic.version = 11 : i64} {
  func.func @_linear_kernel(%arg0: i32, %arg1: i32, %arg2: i32, %arg3: memref<16x64xbf16, #tpu.memory_space<vmem>>, %arg4: memref<64x32xbf16, #tpu.memory_space<vmem>>, %arg5: memref<1x32xf32, #tpu.memory_space<vmem>>, %arg6: memref<16x32xbf16, #tpu.memory_space<vmem>>, %arg7: memref<16x32xf32, #tpu.memory_space<vmem>>) attributes {dimension_semantics = [#tpu.dimension_semantics<parallel>, #tpu.dimension_semantics<parallel>, #tpu.dimension_semantics<arbitrary>], iteration_bounds = array<i64: 1, 1, 1>, scalar_prefetch = 0 : i64, scratch_operands = 1 : i64, tpu.core_type = #tpu.core_type<tc>, window_params = [{transform_indices = @transform_0, window_bounds = array<i64: 16, 64>}, {transform_indices = @transform_1, window_bounds = array<i64: 64, 32>}, {transform_indices = @transform_2, window_bounds = array<i64: 1, 32>}, {transform_indices = @transform_3, window_bounds = array<i64: 16, 32>}]} {
    %c0_i32 = arith.constant 0 : i32
    %0 = arith.cmpi eq, %arg2, %c0_i32 : i32
    %1 = arith.extui %0 : i1 to i32
    %c0_i32_0 = arith.constant 0 : i32
    %2 = arith.cmpi ne, %1, %c0_i32_0 : i32
    scf.if %2 {
      %cst_10 = arith.constant 0.000000e+00 : f32
      %12 = vector.broadcast %cst_10 : f32 to vector<16x32xf32>
      %c0_11 = arith.constant 0 : index
      %c0_12 = arith.constant 0 : index
      %13 = vector.load %arg7[%c0_11, %c0_12] : memref<16x32xf32, #tpu.memory_space<vmem>>, vector<16x32xf32>
      tpu.vector_store %arg7[%c0_11, %c0_12], %12 {strides = array<i32>} : memref<16x32xf32, #tpu.memory_space<vmem>>, vector<16x32xf32>,
    } else {
    }
    %c0 = arith.constant 0 : index
    %c0_1 = arith.constant 0 : index
    %3 = vector.load %arg7[%c0, %c0_1] : memref<16x32xf32, #tpu.memory_space<vmem>>, vector<16x32xf32>
    %c0_2 = arith.constant 0 : index
    %c0_3 = arith.constant 0 : index
    %4 = vector.load %arg3[%c0_2, %c0_3] : memref<16x64xbf16, #tpu.memory_space<vmem>>, vector<16x64xbf16>
    %c0_4 = arith.constant 0 : index
    %c0_5 = arith.constant 0 : index
    %5 = vector.load %arg4[%c0_4, %c0_5] : memref<64x32xbf16, #tpu.memory_space<vmem>>, vector<64x32xbf16>
    %cst = arith.constant dense<0.000000e+00> : vector<16x32xf32>
    %6 = tpu.matmul %4, %5, %cst {dimension_numbers = #tpu.dot_dimension_numbers<[1], [0], [0], [1], [0, 0, 1, 1], [], []>} : vector<16x64xbf16>, vector<64x32xbf16>, vector<16x32xf32> -> vector<16x32xf32>
    %7 = arith.addf %3, %6 : vector<16x32xf32>
    %c0_6 = arith.constant 0 : index
    %c0_7 = arith.constant 0 : index
    %8 = vector.load %arg7[%c0_6, %c0_7] : memref<16x32xf32, #tpu.memory_space<vmem>>, vector<16x32xf32>
    tpu.vector_store %arg7[%c0_6, %c0_7], %7 {strides = array<i32>} : memref<16x32xf32, #tpu.memory_space<vmem>>, vector<16x32xf32>,
    %c0_i32_8 = arith.constant 0 : i32
    %9 = arith.cmpi eq, %arg2, %c0_i32_8 : i32
    %10 = arith.extui %9 : i1 to i32
    %c0_i32_9 = arith.constant 0 : i32
    %11 = arith.cmpi ne, %10, %c0_i32_9 : i32
    scf.if %11 {
      %c0_10 = arith.constant 0 : index
      %c0_11 = arith.constant 0 : index
      %12 = vector.load %arg7[%c0_10, %c0_11] : memref<16x32xf32, #tpu.memory_space<vmem>>, vector<16x32xf32>
      %c0_12 = arith.constant 0 : index
      %c0_13 = arith.constant 0 : index
      %13 = vector.load %arg5[%c0_12, %c0_13] : memref<1x32xf32, #tpu.memory_space<vmem>>, vector<1x32xf32>
      %14 = vector.broadcast %13 : vector<1x32xf32> to vector<16x32xf32>
      %15 = arith.addf %12, %14 : vector<16x32xf32>
      %cst_14 = arith.constant 0.000000e+00 : f32
      %16 = vector.broadcast %cst_14 : f32 to vector<16x32xf32>
      %17 = arith.maximumf %15, %16 : vector<16x32xf32>
      %18 = arith.truncf %17 : vector<16x32xf32> to vector<16x32xbf16>
      %c0_15 = arith.constant 0 : index
      %c0_16 = arith.constant 0 : index
      %19 = vector.load %arg6[%c0_15, %c0_16] : memref<16x32xbf16, #tpu.memory_space<vmem>>, vector<16x32xbf16>
      tpu.vector_store %arg6[%c0_15, %c0_16], %18 {strides = array<i32>} : memref<16x32xbf16, #tpu.memory_space<vmem>>, vector<16x32xbf16>,
    } else {
    }
    return
  }
  func.func @transform_0(%arg0: i32, %arg1: i32, %arg2: i32) -> (i32, i32) {
    %c0_i32 = arith.constant 0 : i32
    return %arg0, %arg2 : i32, i32
  }
  func.func @transform_1(%arg0: i32, %arg1: i32, %arg2: i32) -> (i32, i32) {
    %c0_i32 = arith.constant 0 : i32
    return %arg2, %arg1 : i32, i32
  }
  func.func @transform_2(%arg0: i32, %arg1: i32, %arg2: i32) -> (i32, i32) {
    %c0_i32 = arith.constant 0 : i32
    %c0_i32_0 = arith.constant 0 : i32
    return %c0_i32, %arg1 : i32, i32
  }
  func.func @transform_3(%arg0: i32, %arg1: i32, %arg2: i32) -> (i32, i32) {
    %c0_i32 = arith.constant 0 : i32
    return %arg0, %arg1 : i32, i32
  }
}

module attributes {stable_mosaic.version = 11 : i64} {
  func.func @_linear_kernel(%arg0: i32, %arg1: i32, %arg2: i32, %arg3: memref<16x32xbf16, #tpu.memory_space<vmem>>, %arg4: memref<32x96xbf16, #tpu.memory_space<vmem>>, %arg5: memref<1x96xf32, #tpu.memory_space<vmem>>, %arg6: memref<16x96xbf16, #tpu.memory_space<vmem>>, %arg7: memref<16x96xf32, #tpu.memory_space<vmem>>) attributes {dimension_semantics = [#tpu.dimension_semantics<parallel>, #tpu.dimension_semantics<parallel>, #tpu.dimension_semantics<arbitrary>], iteration_bounds = array<i64: 1, 1, 1>, scalar_prefetch = 0 : i64, scratch_operands = 1 : i64, tpu.core_type = #tpu.core_type<tc>, window_params = [{transform_indices = @transform_0, window_bounds = array<i64: 16, 32>}, {transform_indices = @transform_1, window_bounds = array<i64: 32, 96>}, {transform_indices = @transform_2, window_bounds = array<i64: 1, 96>}, {transform_indices = @transform_3, window_bounds = array<i64: 16, 96>}]} {
    %c0_i32 = arith.constant 0 : i32
    %0 = arith.cmpi eq, %arg2, %c0_i32 : i32
    %1 = arith.extui %0 : i1 to i32
    %c0_i32_0 = arith.constant 0 : i32
    %2 = arith.cmpi ne, %1, %c0_i32_0 : i32
    scf.if %2 {
      %cst_10 = arith.constant 0.000000e+00 : f32
      %12 = vector.broadcast %cst_10 : f32 to vector<16x96xf32>
      %c0_11 = arith.constant 0 : index
      %c0_12 = arith.constant 0 : index
      %13 = vector.load %arg7[%c0_11, %c0_12] : memref<16x96xf32, #tpu.memory_space<vmem>>, vector<16x96xf32>
      tpu.vector_store %arg7[%c0_11, %c0_12], %12 {strides = array<i32>} : memref<16x96xf32, #tpu.memory_space<vmem>>, vector<16x96xf32>,
    } else {
    }
    %c0 = arith.constant 0 : index
    %c0_1 = arith.constant 0 : index
    %3 = vector.load %arg7[%c0, %c0_1] : memref<16x96xf32, #tpu.memory_space<vmem>>, vector<16x96xf32>
    %c0_2 = arith.constant 0 : index
    %c0_3 = arith.constant 0 : index
    %4 = vector.load %arg3[%c0_2, %c0_3] : memref<16x32xbf16, #tpu.memory_space<vmem>>, vector<16x32xbf16>
    %c0_4 = arith.constant 0 : index
    %c0_5 = arith.constant 0 : index
    %5 = vector.load %arg4[%c0_4, %c0_5] : memref<32x96xbf16, #tpu.memory_space<vmem>>, vector<32x96xbf16>
    %cst = arith.constant dense<0.000000e+00> : vector<16x96xf32>
    %6 = tpu.matmul %4, %5, %cst {dimension_numbers = #tpu.dot_dimension_numbers<[1], [0], [0], [1], [0, 0, 1, 1], [], []>} : vector<16x32xbf16>, vector<32x96xbf16>, vector<16x96xf32> -> vector<16x96xf32>
    %7 = arith.addf %3, %6 : vector<16x96xf32>
    %c0_6 = arith.constant 0 : index
    %c0_7 = arith.constant 0 : index
    %8 = vector.load %arg7[%c0_6, %c0_7] : memref<16x96xf32, #tpu.memory_space<vmem>>, vector<16x96xf32>
    tpu.vector_store %arg7[%c0_6, %c0_7], %7 {strides = array<i32>} : memref<16x96xf32, #tpu.memory_space<vmem>>, vector<16x96xf32>,
    %c0_i32_8 = arith.constant 0 : i32
    %9 = arith.cmpi eq, %arg2, %c0_i32_8 : i32
    %10 = arith.extui %9 : i1 to i32
    %c0_i32_9 = arith.constant 0 : i32
    %11 = arith.cmpi ne, %10, %c0_i32_9 : i32
    scf.if %11 {
      %c0_10 = arith.constant 0 : index
      %c0_11 = arith.constant 0 : index
      %12 = vector.load %arg7[%c0_10, %c0_11] : memref<16x96xf32, #tpu.memory_space<vmem>>, vector<16x96xf32>
      %c0_12 = arith.constant 0 : index
      %c0_13 = arith.constant 0 : index
      %13 = vector.load %arg5[%c0_12, %c0_13] : memref<1x96xf32, #tpu.memory_space<vmem>>, vector<1x96xf32>
      %14 = vector.broadcast %13 : vector<1x96xf32> to vector<16x96xf32>
      %15 = arith.addf %12, %14 : vector<16x96xf32>
      %16 = arith.truncf %15 : vector<16x96xf32> to vector<16x96xbf16>
      %c0_14 = arith.constant 0 : index
      %c0_15 = arith.constant 0 : index
      %17 = vector.load %arg6[%c0_14, %c0_15] : memref<16x96xbf16, #tpu.memory_space<vmem>>, vector<16x96xbf16>
      tpu.vector_store %arg6[%c0_14, %c0_15], %16 {strides = array<i32>} : memref<16x96xbf16, #tpu.memory_space<vmem>>, vector<16x96xbf16>,
    } else {
    }
    return
  }
  func.func @transform_0(%arg0: i32, %arg1: i32, %arg2: i32) -> (i32, i32) {
    %c0_i32 = arith.constant 0 : i32
    return %arg0, %arg2 : i32, i32
  }
  func.func @transform_1(%arg0: i32, %arg1: i32, %arg2: i32) -> (i32, i32) {
    %c0_i32 = arith.constant 0 : i32
    return %arg2, %arg1 : i32, i32
  }
  func.func @transform_2(%arg0: i32, %arg1: i32, %arg2: i32) -> (i32, i32) {
    %c0_i32 = arith.constant 0 : i32
    %c0_i32_0 = arith.constant 0 : i32
    return %c0_i32, %arg1 : i32, i32
  }
  func.func @transform_3(%arg0: i32, %arg1: i32, %arg2: i32) -> (i32, i32) {
    %c0_i32 = arith.constant 0 : i32
    return %arg0, %arg1 : i32, i32
  }
}

module attributes {stable_mosaic.version = 11 : i64} {
  func.func @_attn_mix_kernel(%arg0: i32, %arg1: i32, %arg2: memref<1x4x8x8xbf16, #tpu.memory_space<vmem>>, %arg3: memref<1x4x8x8xbf16, #tpu.memory_space<vmem>>, %arg4: memref<1x4x8x8xbf16, #tpu.memory_space<vmem>>, %arg5: memref<4x8x32xbf16, #tpu.memory_space<vmem>>, %arg6: memref<1x32xf32, #tpu.memory_space<vmem>>, %arg7: memref<1x8x8xf32, #tpu.memory_space<vmem>>, %arg8: memref<1xf32, #tpu.memory_space<smem>>, %arg9: memref<1x8x32xf32, #tpu.memory_space<vmem>>) attributes {dimension_semantics = [#tpu.dimension_semantics<parallel>, #tpu.dimension_semantics<arbitrary>], iteration_bounds = array<i64: 2, 1>, scalar_prefetch = 0 : i64, scratch_operands = 0 : i64, tpu.core_type = #tpu.core_type<tc>, window_params = [{transform_indices = @transform_0, window_bounds = array<i64: 1, 4, 8, 8>}, {transform_indices = @transform_1, window_bounds = array<i64: 1, 4, 8, 8>}, {transform_indices = @transform_2, window_bounds = array<i64: 1, 4, 8, 8>}, {transform_indices = @transform_3, window_bounds = array<i64: 4, 8, 32>}, {pipeline_mode = #tpu.pipeline_mode<synchronous>, transform_indices = @transform_4, window_bounds = array<i64: 1, 32>}, {transform_indices = @transform_5, window_bounds = array<i64: 1, 8, 8>}, {transform_indices = @transform_6, window_bounds = array<i64: 1>}, {transform_indices = @transform_7, window_bounds = array<i64: 1, 8, 32>}]} {
    %c0 = arith.constant 0 : index
    %c0_0 = arith.constant 0 : index
    %c0_1 = arith.constant 0 : index
    %c0_2 = arith.constant 0 : index
    %0 = vector.load %arg2[%c0, %c0_0, %c0_1, %c0_2] : memref<1x4x8x8xbf16, #tpu.memory_space<vmem>>, vector<1x4x8x8xbf16>
    %1 = vector.shape_cast %0 : vector<1x4x8x8xbf16> to vector<4x8x8xbf16>
    %c0_3 = arith.constant 0 : index
    %c0_4 = arith.constant 0 : index
    %c0_5 = arith.constant 0 : index
    %c0_6 = arith.constant 0 : index
    %2 = vector.load %arg3[%c0_3, %c0_4, %c0_5, %c0_6] : memref<1x4x8x8xbf16, #tpu.memory_space<vmem>>, vector<1x4x8x8xbf16>
    %3 = vector.shape_cast %2 : vector<1x4x8x8xbf16> to vector<4x8x8xbf16>
    %c0_7 = arith.constant 0 : index
    %c0_8 = arith.constant 0 : index
    %c0_9 = arith.constant 0 : index
    %c0_10 = arith.constant 0 : index
    %4 = vector.load %arg4[%c0_7, %c0_8, %c0_9, %c0_10] : memref<1x4x8x8xbf16, #tpu.memory_space<vmem>>, vector<1x4x8x8xbf16>
    %5 = vector.shape_cast %4 : vector<1x4x8x8xbf16> to vector<4x8x8xbf16>
    "tpu.trace_start"() <{level = 10 : i32, message = "hqd,hkd->hqk"}> : () -> ()
    %cst = arith.constant dense<0.000000e+00> : vector<4x8x8xf32>
    %6 = tpu.matmul %1, %3, %cst {dimension_numbers = #tpu.dot_dimension_numbers<[2], [2], [1], [1], [0, 0, 0, 1, 1, 1], [0], [0]>} : vector<4x8x8xbf16>, vector<4x8x8xbf16>, vector<4x8x8xf32> -> vector<4x8x8xf32>
    "tpu.trace_stop"() : () -> ()
    %cst_11 = arith.constant 0.353553385 : f32
    %7 = vector.broadcast %cst_11 : f32 to vector<4x8x8xf32>
    %8 = arith.mulf %6, %7 : vector<4x8x8xf32>
    %9 = tpu.iota {dimensions = array<i32: 0>} : vector<8x8xi32>
    %10 = tpu.iota {dimensions = array<i32: 1>} : vector<8x8xi32>
    %11 = arith.cmpi sgt, %10, %9 : vector<8x8xi32>
    %12 = vector.shape_cast %11 : vector<8x8xi1> to vector<1x8x8xi1>
    %cst_12 = arith.constant -1.000000e+09 : f32
    %13 = vector.shape_cast %12 : vector<1x8x8xi1> to vector<1x8x8xi1>
    %14 = vector.broadcast %13 : vector<1x8x8xi1> to vector<4x8x8xi1>
    %15 = vector.broadcast %cst_12 : f32 to vector<4x8x8xf32>
    %16 = arith.select %14, %15, %8 : vector<4x8x8xi1>, vector<4x8x8xf32>
    %cst_13 = arith.constant dense<0xFF800000> : vector<4x8xf32>
    %17 = vector.multi_reduction <maximumf>, %16, %cst_13 [2] : vector<4x8x8xf32> to vector<4x8xf32>
    %18 = vector.shape_cast %17 : vector<4x8xf32> to vector<4x8x1xf32>
    %19 = vector.broadcast %18 : vector<4x8x1xf32> to vector<4x8x8xf32>
    %20 = arith.subf %16, %19 : vector<4x8x8xf32>
    %21 = math.exp %20 : vector<4x8x8xf32>
    %cst_14 = arith.constant dense<0.000000e+00> : vector<4x8xf32>
    %22 = vector.multi_reduction <add>, %21, %cst_14 [2] : vector<4x8x8xf32> to vector<4x8xf32>
    %23 = vector.shape_cast %22 : vector<4x8xf32> to vector<4x8x1xf32>
    %24 = tpu.reciprocal %23 {approx = true} : vector<4x8x1xf32> -> vector<4x8x1xf32>
    %25 = vector.broadcast %24 : vector<4x8x1xf32> to vector<4x8x8xf32>
    %26 = arith.mulf %21, %25 : vector<4x8x8xf32>
    %c0_15 = arith.constant 0 : index
    %27 = memref.load %arg8[%c0_15] : memref<1xf32, #tpu.memory_space<smem>>
    %cst_16 = arith.constant 1.000000e+00 : f32
    %28 = arith.subf %cst_16, %27 : f32
    %29 = vector.broadcast %28 : f32 to vector<4x8x8xf32>
    %30 = arith.mulf %29, %26 : vector<4x8x8xf32>
    %c0_17 = arith.constant 0 : index
    %c0_18 = arith.constant 0 : index
    %c0_19 = arith.constant 0 : index
    %31 = vector.load %arg7[%c0_17, %c0_18, %c0_19] : memref<1x8x8xf32, #tpu.memory_space<vmem>>, vector<1x8x8xf32>
    %32 = vector.shape_cast %31 : vector<1x8x8xf32> to vector<8x8xf32>
    %33 = vector.broadcast %27 : f32 to vector<8x8xf32>
    %34 = arith.mulf %33, %32 : vector<8x8xf32>
    %35 = vector.shape_cast %34 : vector<8x8xf32> to vector<1x8x8xf32>
    %36 = vector.broadcast %35 : vector<1x8x8xf32> to vector<4x8x8xf32>
    %37 = arith.addf %30, %36 : vector<4x8x8xf32>
    %38 = arith.truncf %37 : vector<4x8x8xf32> to vector<4x8x8xbf16>
    "tpu.trace_start"() <{level = 10 : i32, message = "hqk,hkd->hqd"}> : () -> ()
    %cst_20 = arith.constant dense<0.000000e+00> : vector<4x8x8xf32>
    %39 = tpu.matmul %38, %5, %cst_20 {dimension_numbers = #tpu.dot_dimension_numbers<[2], [1], [1], [2], [0, 0, 0, 1, 1, 2], [0], [0]>} : vector<4x8x8xbf16>, vector<4x8x8xbf16>, vector<4x8x8xf32> -> vector<4x8x8xf32>
    "tpu.trace_stop"() : () -> ()
    %40 = arith.truncf %39 : vector<4x8x8xf32> to vector<4x8x8xbf16>
    %cst_21 = arith.constant 0.000000e+00 : f32
    %41 = vector.broadcast %cst_21 : f32 to vector<8x32xf32>
    %42 = vector.extract_strided_slice %40 {offsets = [0, 0, 0], sizes = [1, 8, 8], strides = [1, 1, 1]} : vector<4x8x8xbf16> to vector<1x8x8xbf16>
    %43 = vector.shape_cast %42 : vector<1x8x8xbf16> to vector<8x8xbf16>
    %c0_22 = arith.constant 0 : index
    %c0_23 = arith.constant 0 : index
    %c0_24 = arith.constant 0 : index
    %44 = vector.load %arg5[%c0_22, %c0_23, %c0_24] : memref<4x8x32xbf16, #tpu.memory_space<vmem>>, vector<1x8x32xbf16>
    %45 = vector.shape_cast %44 : vector<1x8x32xbf16> to vector<8x32xbf16>
    %cst_25 = arith.constant dense<0.000000e+00> : vector<8x32xf32>
    %46 = tpu.matmul %43, %45, %cst_25 {dimension_numbers = #tpu.dot_dimension_numbers<[1], [0], [0], [1], [0, 0, 1, 1], [], []>} : vector<8x8xbf16>, vector<8x32xbf16>, vector<8x32xf32> -> vector<8x32xf32>
    %47 = arith.addf %41, %46 : vector<8x32xf32>
    %48 = vector.extract_strided_slice %40 {offsets = [1, 0, 0], sizes = [1, 8, 8], strides = [1, 1, 1]} : vector<4x8x8xbf16> to vector<1x8x8xbf16>
    %49 = vector.shape_cast %48 : vector<1x8x8xbf16> to vector<8x8xbf16>
    %c1 = arith.constant 1 : index
    %c0_26 = arith.constant 0 : index
    %c0_27 = arith.constant 0 : index
    %50 = vector.load %arg5[%c1, %c0_26, %c0_27] : memref<4x8x32xbf16, #tpu.memory_space<vmem>>, vector<1x8x32xbf16>
    %51 = vector.shape_cast %50 : vector<1x8x32xbf16> to vector<8x32xbf16>
    %cst_28 = arith.constant dense<0.000000e+00> : vector<8x32xf32>
    %52 = tpu.matmul %49, %51, %cst_28 {dimension_numbers = #tpu.dot_dimension_numbers<[1], [0], [0], [1], [0, 0, 1, 1], [], []>} : vector<8x8xbf16>, vector<8x32xbf16>, vector<8x32xf32> -> vector<8x32xf32>
    %53 = arith.addf %47, %52 : vector<8x32xf32>
    %54 = vector.extract_strided_slice %40 {offsets = [2, 0, 0], sizes = [1, 8, 8], strides = [1, 1, 1]} : vector<4x8x8xbf16> to vector<1x8x8xbf16>
    %55 = vector.shape_cast %54 : vector<1x8x8xbf16> to vector<8x8xbf16>
    %c2 = arith.constant 2 : index
    %c0_29 = arith.constant 0 : index
    %c0_30 = arith.constant 0 : index
    %56 = vector.load %arg5[%c2, %c0_29, %c0_30] : memref<4x8x32xbf16, #tpu.memory_space<vmem>>, vector<1x8x32xbf16>
    %57 = vector.shape_cast %56 : vector<1x8x32xbf16> to vector<8x32xbf16>
    %cst_31 = arith.constant dense<0.000000e+00> : vector<8x32xf32>
    %58 = tpu.matmul %55, %57, %cst_31 {dimension_numbers = #tpu.dot_dimension_numbers<[1], [0], [0], [1], [0, 0, 1, 1], [], []>} : vector<8x8xbf16>, vector<8x32xbf16>, vector<8x32xf32> -> vector<8x32xf32>
    %59 = arith.addf %53, %58 : vector<8x32xf32>
    %60 = vector.extract_strided_slice %40 {offsets = [3, 0, 0], sizes = [1, 8, 8], strides = [1, 1, 1]} : vector<4x8x8xbf16> to vector<1x8x8xbf16>
    %61 = vector.shape_cast %60 : vector<1x8x8xbf16> to vector<8x8xbf16>
    %c3 = arith.constant 3 : index
    %c0_32 = arith.constant 0 : index
    %c0_33 = arith.constant 0 : index
    %62 = vector.load %arg5[%c3, %c0_32, %c0_33] : memref<4x8x32xbf16, #tpu.memory_space<vmem>>, vector<1x8x32xbf16>
    %63 = vector.shape_cast %62 : vector<1x8x32xbf16> to vector<8x32xbf16>
    %cst_34 = arith.constant dense<0.000000e+00> : vector<8x32xf32>
    %64 = tpu.matmul %61, %63, %cst_34 {dimension_numbers = #tpu.dot_dimension_numbers<[1], [0], [0], [1], [0, 0, 1, 1], [], []>} : vector<8x8xbf16>, vector<8x32xbf16>, vector<8x32xf32> -> vector<8x32xf32>
    %65 = arith.addf %59, %64 : vector<8x32xf32>
    %c0_i32 = arith.constant 0 : i32
    %66 = arith.cmpi eq, %arg1, %c0_i32 : i32
    %67 = arith.extui %66 : i1 to i32
    %c0_i32_35 = arith.constant 0 : i32
    %68 = arith.cmpi ne, %67, %c0_i32_35 : i32
    scf.if %68 {
      %c0_38 = arith.constant 0 : index
      %c0_39 = arith.constant 0 : index
      %72 = vector.load %arg6[%c0_38, %c0_39] : memref<1x32xf32, #tpu.memory_space<vmem>>, vector<1x32xf32>
      %73 = vector.broadcast %72 : vector<1x32xf32> to vector<8x32xf32>
      %74 = arith.addf %65, %73 : vector<8x32xf32>
      %c0_40 = arith.constant 0 : index
      %c0_41 = arith.constant 0 : index
      %c0_42 = arith.constant 0 : index
      %75 = vector.load %arg9[%c0_40, %c0_41, %c0_42] : memref<1x8x32xf32, #tpu.memory_space<vmem>>, vector<1x8x32xf32>
      %76 = vector.shape_cast %75 : vector<1x8x32xf32> to vector<8x32xf32>
      %77 = vector.shape_cast %74 : vector<8x32xf32> to vector<1x8x32xf32>
      tpu.vector_store %arg9[%c0_40, %c0_41, %c0_42], %77 {strides = array<i32>} : memref<1x8x32xf32, #tpu.memory_space<vmem>>, vector<1x8x32xf32>,
    } else {
    }
    %c0_i32_36 = arith.constant 0 : i32
    %69 = arith.cmpi sgt, %arg1, %c0_i32_36 : i32
    %70 = arith.extui %69 : i1 to i32
    %c0_i32_37 = arith.constant 0 : i32
    %71 = arith.cmpi ne, %70, %c0_i32_37 : i32
    scf.if %71 {
      %c0_38 = arith.constant 0 : index
      %c0_39 = arith.constant 0 : index
      %c0_40 = arith.constant 0 : index
      %72 = vector.load %arg9[%c0_38, %c0_39, %c0_40] : memref<1x8x32xf32, #tpu.memory_space<vmem>>, vector<1x8x32xf32>
      %73 = vector.shape_cast %72 : vector<1x8x32xf32> to vector<8x32xf32>
      %74 = arith.addf %73, %65 : vector<8x32xf32>
      %c0_41 = arith.constant 0 : index
      %c0_42 = arith.constant 0 : index
      %c0_43 = arith.constant 0 : index
      %75 = vector.load %arg9[%c0_41, %c0_42, %c0_43] : memref<1x8x32xf32, #tpu.memory_space<vmem>>, vector<1x8x32xf32>
      %76 = vector.shape_cast %75 : vector<1x8x32xf32> to vector<8x32xf32>
      %77 = vector.shape_cast %74 : vector<8x32xf32> to vector<1x8x32xf32>
      tpu.vector_store %arg9[%c0_41, %c0_42, %c0_43], %77 {strides = array<i32>} : memref<1x8x32xf32, #tpu.memory_space<vmem>>, vector<1x8x32xf32>,
    } else {
    }
    return
  }
  func.func @transform_0(%arg0: i32, %arg1: i32) -> (i32, i32, i32, i32) {
    %c0_i32 = arith.constant 0 : i32
    %c0_i32_0 = arith.constant 0 : i32
    %c0_i32_1 = arith.constant 0 : i32
    return %arg0, %arg1, %c0_i32, %c0_i32_0 : i32, i32, i32, i32
  }
  func.func @transform_1(%arg0: i32, %arg1: i32) -> (i32, i32, i32, i32) {
    %c0_i32 = arith.constant 0 : i32
    %c0_i32_0 = arith.constant 0 : i32
    %c0_i32_1 = arith.constant 0 : i32
    return %arg0, %arg1, %c0_i32, %c0_i32_0 : i32, i32, i32, i32
  }
  func.func @transform_2(%arg0: i32, %arg1: i32) -> (i32, i32, i32, i32) {
    %c0_i32 = arith.constant 0 : i32
    %c0_i32_0 = arith.constant 0 : i32
    %c0_i32_1 = arith.constant 0 : i32
    return %arg0, %arg1, %c0_i32, %c0_i32_0 : i32, i32, i32, i32
  }
  func.func @transform_3(%arg0: i32, %arg1: i32) -> (i32, i32, i32) {
    %c0_i32 = arith.constant 0 : i32
    %c0_i32_0 = arith.constant 0 : i32
    %c0_i32_1 = arith.constant 0 : i32
    return %arg1, %c0_i32, %c0_i32_0 : i32, i32, i32
  }
  func.func @transform_4(%arg0: i32, %arg1: i32) -> (i32, i32) {
    %c0_i32 = arith.constant 0 : i32
    %c0_i32_0 = arith.constant 0 : i32
    %c0_i32_1 = arith.constant 0 : i32
    return %c0_i32, %c0_i32_0 : i32, i32
  }
  func.func @transform_5(%arg0: i32, %arg1: i32) -> (i32, i32, i32) {
    %c0_i32 = arith.constant 0 : i32
    %c0_i32_0 = arith.constant 0 : i32
    %c0_i32_1 = arith.constant 0 : i32
    return %arg0, %c0_i32, %c0_i32_0 : i32, i32, i32
  }
  func.func @transform_6(%arg0: i32, %arg1: i32) -> i32 {
    %c0_i32 = arith.constant 0 : i32
    %c0_i32_0 = arith.constant 0 : i32
    return %c0_i32 : i32
  }
  func.func @transform_7(%arg0: i32, %arg1: i32) -> (i32, i32, i32) {
    %c0_i32 = arith.constant 0 : i32
    %c0_i32_0 = arith.constant 0 : i32
    %c0_i32_1 = arith.constant 0 : i32
    return %arg0, %c0_i32, %c0_i32_0 : i32, i32, i32
  }
}

module attributes {stable_mosaic.version = 11 : i64} {
  func.func @_lin_res_ln_kernel(%arg0: i32, %arg1: i32, %arg2: memref<16x32xbf16, #tpu.memory_space<vmem>>, %arg3: memref<16x32xf32, #tpu.memory_space<vmem>>, %arg4: memref<32x32xbf16, #tpu.memory_space<vmem>>, %arg5: memref<1x32xf32, #tpu.memory_space<vmem>>, %arg6: memref<1x32xf32, #tpu.memory_space<vmem>>, %arg7: memref<1x32xf32, #tpu.memory_space<vmem>>, %arg8: memref<16x32xf32, #tpu.memory_space<vmem>>, %arg9: memref<16x32xf32, #tpu.memory_space<vmem>>) attributes {dimension_semantics = [#tpu.dimension_semantics<parallel>, #tpu.dimension_semantics<arbitrary>], iteration_bounds = array<i64: 1, 1>, scalar_prefetch = 0 : i64, scratch_operands = 1 : i64, tpu.core_type = #tpu.core_type<tc>, window_params = [{transform_indices = @transform_0, window_bounds = array<i64: 16, 32>}, {transform_indices = @transform_1, window_bounds = array<i64: 16, 32>}, {transform_indices = @transform_2, window_bounds = array<i64: 32, 32>}, {pipeline_mode = #tpu.pipeline_mode<synchronous>, transform_indices = @transform_3, window_bounds = array<i64: 1, 32>}, {pipeline_mode = #tpu.pipeline_mode<synchronous>, transform_indices = @transform_4, window_bounds = array<i64: 1, 32>}, {pipeline_mode = #tpu.pipeline_mode<synchronous>, transform_indices = @transform_5, window_bounds = array<i64: 1, 32>}, {transform_indices = @transform_6, window_bounds = array<i64: 16, 32>}]} {
    %c0_i32 = arith.constant 0 : i32
    %0 = arith.cmpi eq, %arg1, %c0_i32 : i32
    %1 = arith.extui %0 : i1 to i32
    %c0_i32_0 = arith.constant 0 : i32
    %2 = arith.cmpi ne, %1, %c0_i32_0 : i32
    scf.if %2 {
      %cst_10 = arith.constant 0.000000e+00 : f32
      %12 = vector.broadcast %cst_10 : f32 to vector<16x32xf32>
      %c0_11 = arith.constant 0 : index
      %c0_12 = arith.constant 0 : index
      %13 = vector.load %arg9[%c0_11, %c0_12] : memref<16x32xf32, #tpu.memory_space<vmem>>, vector<16x32xf32>
      tpu.vector_store %arg9[%c0_11, %c0_12], %12 {strides = array<i32>} : memref<16x32xf32, #tpu.memory_space<vmem>>, vector<16x32xf32>,
    } else {
    }
    %c0 = arith.constant 0 : index
    %c0_1 = arith.constant 0 : index
    %3 = vector.load %arg9[%c0, %c0_1] : memref<16x32xf32, #tpu.memory_space<vmem>>, vector<16x32xf32>
    %c0_2 = arith.constant 0 : index
    %c0_3 = arith.constant 0 : index
    %4 = vector.load %arg2[%c0_2, %c0_3] : memref<16x32xbf16, #tpu.memory_space<vmem>>, vector<16x32xbf16>
    %c0_4 = arith.constant 0 : index
    %c0_5 = arith.constant 0 : index
    %5 = vector.load %arg4[%c0_4, %c0_5] : memref<32x32xbf16, #tpu.memory_space<vmem>>, vector<32x32xbf16>
    %cst = arith.constant dense<0.000000e+00> : vector<16x32xf32>
    %6 = tpu.matmul %4, %5, %cst {dimension_numbers = #tpu.dot_dimension_numbers<[1], [0], [0], [1], [0, 0, 1, 1], [], []>} : vector<16x32xbf16>, vector<32x32xbf16>, vector<16x32xf32> -> vector<16x32xf32>
    %7 = arith.addf %3, %6 : vector<16x32xf32>
    %c0_6 = arith.constant 0 : index
    %c0_7 = arith.constant 0 : index
    %8 = vector.load %arg9[%c0_6, %c0_7] : memref<16x32xf32, #tpu.memory_space<vmem>>, vector<16x32xf32>
    tpu.vector_store %arg9[%c0_6, %c0_7], %7 {strides = array<i32>} : memref<16x32xf32, #tpu.memory_space<vmem>>, vector<16x32xf32>,
    %c0_i32_8 = arith.constant 0 : i32
    %9 = arith.cmpi eq, %arg1, %c0_i32_8 : i32
    %10 = arith.extui %9 : i1 to i32
    %c0_i32_9 = arith.constant 0 : i32
    %11 = arith.cmpi ne, %10, %c0_i32_9 : i32
    scf.if %11 {
      %c0_10 = arith.constant 0 : index
      %c0_11 = arith.constant 0 : index
      %12 = vector.load %arg3[%c0_10, %c0_11] : memref<16x32xf32, #tpu.memory_space<vmem>>, vector<16x32xf32>
      %c0_12 = arith.constant 0 : index
      %c0_13 = arith.constant 0 : index
      %13 = vector.load %arg9[%c0_12, %c0_13] : memref<16x32xf32, #tpu.memory_space<vmem>>, vector<16x32xf32>
      %14 = arith.addf %12, %13 : vector<16x32xf32>
      %c0_14 = arith.constant 0 : index
      %c0_15 = arith.constant 0 : index
      %15 = vector.load %arg5[%c0_14, %c0_15] : memref<1x32xf32, #tpu.memory_space<vmem>>, vector<1x32xf32>
      %16 = vector.broadcast %15 : vector<1x32xf32> to vector<16x32xf32>
      %17 = arith.addf %14, %16 : vector<16x32xf32>
      %cst_16 = arith.constant dense<0.000000e+00> : vector<16xf32>
      %18 = vector.multi_reduction <add>, %17, %cst_16 [1] : vector<16x32xf32> to vector<16xf32>
      %19 = vector.shape_cast %18 : vector<16xf32> to vector<16x1xf32>
      %cst_17 = arith.constant 3.200000e+01 : f32
      %20 = vector.broadcast %cst_17 : f32 to vector<16x1xf32>
      %21 = arith.divf %19, %20 : vector<16x1xf32>
      %22 = vector.broadcast %21 : vector<16x1xf32> to vector<16x32xf32>
      %23 = arith.subf %17, %22 : vector<16x32xf32>
      %24 = arith.mulf %23, %23 : vector<16x32xf32>
      %cst_18 = arith.constant dense<0.000000e+00> : vector<16xf32>
      %25 = vector.multi_reduction <add>, %24, %cst_18 [1] : vector<16x32xf32> to vector<16xf32>
      %26 = vector.shape_cast %25 : vector<16xf32> to vector<16x1xf32>
      %cst_19 = arith.constant 3.200000e+01 : f32
      %27 = vector.broadcast %cst_19 : f32 to vector<16x1xf32>
      %28 = arith.divf %26, %27 : vector<16x1xf32>
      %cst_20 = arith.constant 9.99999974E-6 : f32
      %29 = vector.broadcast %cst_20 : f32 to vector<16x1xf32>
      %30 = arith.addf %28, %29 : vector<16x1xf32>
      %31 = math.rsqrt %30 : vector<16x1xf32>
      %32 = vector.broadcast %31 : vector<16x1xf32> to vector<16x32xf32>
      %33 = arith.mulf %23, %32 : vector<16x32xf32>
      %c0_21 = arith.constant 0 : index
      %c0_22 = arith.constant 0 : index
      %34 = vector.load %arg6[%c0_21, %c0_22] : memref<1x32xf32, #tpu.memory_space<vmem>>, vector<1x32xf32>
      %35 = vector.broadcast %34 : vector<1x32xf32> to vector<16x32xf32>
      %36 = arith.mulf %33, %35 : vector<16x32xf32>
      %c0_23 = arith.constant 0 : index
      %c0_24 = arith.constant 0 : index
      %37 = vector.load %arg7[%c0_23, %c0_24] : memref<1x32xf32, #tpu.memory_space<vmem>>, vector<1x32xf32>
      %38 = vector.broadcast %37 : vector<1x32xf32> to vector<16x32xf32>
      %39 = arith.addf %36, %38 : vector<16x32xf32>
      %c0_25 = arith.constant 0 : index
      %c0_26 = arith.constant 0 : index
      %40 = vector.load %arg8[%c0_25, %c0_26] : memref<16x32xf32, #tpu.memory_space<vmem>>, vector<16x32xf32>
      tpu.vector_store %arg8[%c0_25, %c0_26], %39 {strides = array<i32>} : memref<16x32xf32, #tpu.memory_space<vmem>>, vector<16x32xf32>,
    } else {
    }
    return
  }
  func.func @transform_0(%arg0: i32, %arg1: i32) -> (i32, i32) {
    %c0_i32 = arith.constant 0 : i32
    return %arg0, %arg1 : i32, i32
  }
  func.func @transform_1(%arg0: i32, %arg1: i32) -> (i32, i32) {
    %c0_i32 = arith.constant 0 : i32
    %c0_i32_0 = arith.constant 0 : i32
    return %arg0, %c0_i32 : i32, i32
  }
  func.func @transform_2(%arg0: i32, %arg1: i32) -> (i32, i32) {
    %c0_i32 = arith.constant 0 : i32
    %c0_i32_0 = arith.constant 0 : i32
    return %arg1, %c0_i32 : i32, i32
  }
  func.func @transform_3(%arg0: i32, %arg1: i32) -> (i32, i32) {
    %c0_i32 = arith.constant 0 : i32
    %c0_i32_0 = arith.constant 0 : i32
    %c0_i32_1 = arith.constant 0 : i32
    return %c0_i32, %c0_i32_0 : i32, i32
  }
  func.func @transform_4(%arg0: i32, %arg1: i32) -> (i32, i32) {
    %c0_i32 = arith.constant 0 : i32
    %c0_i32_0 = arith.constant 0 : i32
    %c0_i32_1 = arith.constant 0 : i32
    return %c0_i32, %c0_i32_0 : i32, i32
  }
  func.func @transform_5(%arg0: i32, %arg1: i32) -> (i32, i32) {
    %c0_i32 = arith.constant 0 : i32
    %c0_i32_0 = arith.constant 0 : i32
    %c0_i32_1 = arith.constant 0 : i32
    return %c0_i32, %c0_i32_0 : i32, i32
  }
  func.func @transform_6(%arg0: i32, %arg1: i32) -> (i32, i32) {
    %c0_i32 = arith.constant 0 : i32
    %c0_i32_0 = arith.constant 0 : i32
    return %arg0, %c0_i32 : i32, i32
  }
}

module attributes {stable_mosaic.version = 11 : i64} {
  func.func @_attn_mix_kernel(%arg0: i32, %arg1: i32, %arg2: memref<1x4x8x8xbf16, #tpu.memory_space<vmem>>, %arg3: memref<1x4x8x8xbf16, #tpu.memory_space<vmem>>, %arg4: memref<1x4x8x8xbf16, #tpu.memory_space<vmem>>, %arg5: memref<4x8x32xbf16, #tpu.memory_space<vmem>>, %arg6: memref<1x32xf32, #tpu.memory_space<vmem>>, %arg7: memref<1x8x32xf32, #tpu.memory_space<vmem>>) attributes {dimension_semantics = [#tpu.dimension_semantics<parallel>, #tpu.dimension_semantics<arbitrary>], iteration_bounds = array<i64: 2, 1>, scalar_prefetch = 0 : i64, scratch_operands = 0 : i64, tpu.core_type = #tpu.core_type<tc>, window_params = [{transform_indices = @transform_0, window_bounds = array<i64: 1, 4, 8, 8>}, {transform_indices = @transform_1, window_bounds = array<i64: 1, 4, 8, 8>}, {transform_indices = @transform_2, window_bounds = array<i64: 1, 4, 8, 8>}, {transform_indices = @transform_3, window_bounds = array<i64: 4, 8, 32>}, {pipeline_mode = #tpu.pipeline_mode<synchronous>, transform_indices = @transform_4, window_bounds = array<i64: 1, 32>}, {transform_indices = @transform_5, window_bounds = array<i64: 1, 8, 32>}]} {
    %c0 = arith.constant 0 : index
    %c0_0 = arith.constant 0 : index
    %c0_1 = arith.constant 0 : index
    %c0_2 = arith.constant 0 : index
    %0 = vector.load %arg2[%c0, %c0_0, %c0_1, %c0_2] : memref<1x4x8x8xbf16, #tpu.memory_space<vmem>>, vector<1x4x8x8xbf16>
    %1 = vector.shape_cast %0 : vector<1x4x8x8xbf16> to vector<4x8x8xbf16>
    %c0_3 = arith.constant 0 : index
    %c0_4 = arith.constant 0 : index
    %c0_5 = arith.constant 0 : index
    %c0_6 = arith.constant 0 : index
    %2 = vector.load %arg3[%c0_3, %c0_4, %c0_5, %c0_6] : memref<1x4x8x8xbf16, #tpu.memory_space<vmem>>, vector<1x4x8x8xbf16>
    %3 = vector.shape_cast %2 : vector<1x4x8x8xbf16> to vector<4x8x8xbf16>
    %c0_7 = arith.constant 0 : index
    %c0_8 = arith.constant 0 : index
    %c0_9 = arith.constant 0 : index
    %c0_10 = arith.constant 0 : index
    %4 = vector.load %arg4[%c0_7, %c0_8, %c0_9, %c0_10] : memref<1x4x8x8xbf16, #tpu.memory_space<vmem>>, vector<1x4x8x8xbf16>
    %5 = vector.shape_cast %4 : vector<1x4x8x8xbf16> to vector<4x8x8xbf16>
    "tpu.trace_start"() <{level = 10 : i32, message = "hqd,hkd->hqk"}> : () -> ()
    %cst = arith.constant dense<0.000000e+00> : vector<4x8x8xf32>
    %6 = tpu.matmul %1, %3, %cst {dimension_numbers = #tpu.dot_dimension_numbers<[2], [2], [1], [1], [0, 0, 0, 1, 1, 1], [0], [0]>} : vector<4x8x8xbf16>, vector<4x8x8xbf16>, vector<4x8x8xf32> -> vector<4x8x8xf32>
    "tpu.trace_stop"() : () -> ()
    %cst_11 = arith.constant 0.353553385 : f32
    %7 = vector.broadcast %cst_11 : f32 to vector<4x8x8xf32>
    %8 = arith.mulf %6, %7 : vector<4x8x8xf32>
    %9 = tpu.iota {dimensions = array<i32: 0>} : vector<8x8xi32>
    %10 = tpu.iota {dimensions = array<i32: 1>} : vector<8x8xi32>
    %11 = arith.cmpi sgt, %10, %9 : vector<8x8xi32>
    %12 = vector.shape_cast %11 : vector<8x8xi1> to vector<1x8x8xi1>
    %cst_12 = arith.constant -1.000000e+09 : f32
    %13 = vector.shape_cast %12 : vector<1x8x8xi1> to vector<1x8x8xi1>
    %14 = vector.broadcast %13 : vector<1x8x8xi1> to vector<4x8x8xi1>
    %15 = vector.broadcast %cst_12 : f32 to vector<4x8x8xf32>
    %16 = arith.select %14, %15, %8 : vector<4x8x8xi1>, vector<4x8x8xf32>
    %cst_13 = arith.constant dense<0xFF800000> : vector<4x8xf32>
    %17 = vector.multi_reduction <maximumf>, %16, %cst_13 [2] : vector<4x8x8xf32> to vector<4x8xf32>
    %18 = vector.shape_cast %17 : vector<4x8xf32> to vector<4x8x1xf32>
    %19 = vector.broadcast %18 : vector<4x8x1xf32> to vector<4x8x8xf32>
    %20 = arith.subf %16, %19 : vector<4x8x8xf32>
    %21 = math.exp %20 : vector<4x8x8xf32>
    %cst_14 = arith.constant dense<0.000000e+00> : vector<4x8xf32>
    %22 = vector.multi_reduction <add>, %21, %cst_14 [2] : vector<4x8x8xf32> to vector<4x8xf32>
    %23 = vector.shape_cast %22 : vector<4x8xf32> to vector<4x8x1xf32>
    %24 = tpu.reciprocal %23 {approx = true} : vector<4x8x1xf32> -> vector<4x8x1xf32>
    %25 = vector.broadcast %24 : vector<4x8x1xf32> to vector<4x8x8xf32>
    %26 = arith.mulf %21, %25 : vector<4x8x8xf32>
    %27 = arith.truncf %26 : vector<4x8x8xf32> to vector<4x8x8xbf16>
    "tpu.trace_start"() <{level = 10 : i32, message = "hqk,hkd->hqd"}> : () -> ()
    %cst_15 = arith.constant dense<0.000000e+00> : vector<4x8x8xf32>
    %28 = tpu.matmul %27, %5, %cst_15 {dimension_numbers = #tpu.dot_dimension_numbers<[2], [1], [1], [2], [0, 0, 0, 1, 1, 2], [0], [0]>} : vector<4x8x8xbf16>, vector<4x8x8xbf16>, vector<4x8x8xf32> -> vector<4x8x8xf32>
    "tpu.trace_stop"() : () -> ()
    %29 = arith.truncf %28 : vector<4x8x8xf32> to vector<4x8x8xbf16>
    %cst_16 = arith.constant 0.000000e+00 : f32
    %30 = vector.broadcast %cst_16 : f32 to vector<8x32xf32>
    %31 = vector.extract_strided_slice %29 {offsets = [0, 0, 0], sizes = [1, 8, 8], strides = [1, 1, 1]} : vector<4x8x8xbf16> to vector<1x8x8xbf16>
    %32 = vector.shape_cast %31 : vector<1x8x8xbf16> to vector<8x8xbf16>
    %c0_17 = arith.constant 0 : index
    %c0_18 = arith.constant 0 : index
    %c0_19 = arith.constant 0 : index
    %33 = vector.load %arg5[%c0_17, %c0_18, %c0_19] : memref<4x8x32xbf16, #tpu.memory_space<vmem>>, vector<1x8x32xbf16>
    %34 = vector.shape_cast %33 : vector<1x8x32xbf16> to vector<8x32xbf16>
    %cst_20 = arith.constant dense<0.000000e+00> : vector<8x32xf32>
    %35 = tpu.matmul %32, %34, %cst_20 {dimension_numbers = #tpu.dot_dimension_numbers<[1], [0], [0], [1], [0, 0, 1, 1], [], []>} : vector<8x8xbf16>, vector<8x32xbf16>, vector<8x32xf32> -> vector<8x32xf32>
    %36 = arith.addf %30, %35 : vector<8x32xf32>
    %37 = vector.extract_strided_slice %29 {offsets = [1, 0, 0], sizes = [1, 8, 8], strides = [1, 1, 1]} : vector<4x8x8xbf16> to vector<1x8x8xbf16>
    %38 = vector.shape_cast %37 : vector<1x8x8xbf16> to vector<8x8xbf16>
    %c1 = arith.constant 1 : index
    %c0_21 = arith.constant 0 : index
    %c0_22 = arith.constant 0 : index
    %39 = vector.load %arg5[%c1, %c0_21, %c0_22] : memref<4x8x32xbf16, #tpu.memory_space<vmem>>, vector<1x8x32xbf16>
    %40 = vector.shape_cast %39 : vector<1x8x32xbf16> to vector<8x32xbf16>
    %cst_23 = arith.constant dense<0.000000e+00> : vector<8x32xf32>
    %41 = tpu.matmul %38, %40, %cst_23 {dimension_numbers = #tpu.dot_dimension_numbers<[1], [0], [0], [1], [0, 0, 1, 1], [], []>} : vector<8x8xbf16>, vector<8x32xbf16>, vector<8x32xf32> -> vector<8x32xf32>
    %42 = arith.addf %36, %41 : vector<8x32xf32>
    %43 = vector.extract_strided_slice %29 {offsets = [2, 0, 0], sizes = [1, 8, 8], strides = [1, 1, 1]} : vector<4x8x8xbf16> to vector<1x8x8xbf16>
    %44 = vector.shape_cast %43 : vector<1x8x8xbf16> to vector<8x8xbf16>
    %c2 = arith.constant 2 : index
    %c0_24 = arith.constant 0 : index
    %c0_25 = arith.constant 0 : index
    %45 = vector.load %arg5[%c2, %c0_24, %c0_25] : memref<4x8x32xbf16, #tpu.memory_space<vmem>>, vector<1x8x32xbf16>
    %46 = vector.shape_cast %45 : vector<1x8x32xbf16> to vector<8x32xbf16>
    %cst_26 = arith.constant dense<0.000000e+00> : vector<8x32xf32>
    %47 = tpu.matmul %44, %46, %cst_26 {dimension_numbers = #tpu.dot_dimension_numbers<[1], [0], [0], [1], [0, 0, 1, 1], [], []>} : vector<8x8xbf16>, vector<8x32xbf16>, vector<8x32xf32> -> vector<8x32xf32>
    %48 = arith.addf %42, %47 : vector<8x32xf32>
    %49 = vector.extract_strided_slice %29 {offsets = [3, 0, 0], sizes = [1, 8, 8], strides = [1, 1, 1]} : vector<4x8x8xbf16> to vector<1x8x8xbf16>
    %50 = vector.shape_cast %49 : vector<1x8x8xbf16> to vector<8x8xbf16>
    %c3 = arith.constant 3 : index
    %c0_27 = arith.constant 0 : index
    %c0_28 = arith.constant 0 : index
    %51 = vector.load %arg5[%c3, %c0_27, %c0_28] : memref<4x8x32xbf16, #tpu.memory_space<vmem>>, vector<1x8x32xbf16>
    %52 = vector.shape_cast %51 : vector<1x8x32xbf16> to vector<8x32xbf16>
    %cst_29 = arith.constant dense<0.000000e+00> : vector<8x32xf32>
    %53 = tpu.matmul %50, %52, %cst_29 {dimension_numbers = #tpu.dot_dimension_numbers<[1], [0], [0], [1], [0, 0, 1, 1], [], []>} : vector<8x8xbf16>, vector<8x32xbf16>, vector<8x32xf32> -> vector<8x32xf32>
    %54 = arith.addf %48, %53 : vector<8x32xf32>
    %c0_i32 = arith.constant 0 : i32
    %55 = arith.cmpi eq, %arg1, %c0_i32 : i32
    %56 = arith.extui %55 : i1 to i32
    %c0_i32_30 = arith.constant 0 : i32
    %57 = arith.cmpi ne, %56, %c0_i32_30 : i32
    scf.if %57 {
      %c0_33 = arith.constant 0 : index
      %c0_34 = arith.constant 0 : index
      %61 = vector.load %arg6[%c0_33, %c0_34] : memref<1x32xf32, #tpu.memory_space<vmem>>, vector<1x32xf32>
      %62 = vector.broadcast %61 : vector<1x32xf32> to vector<8x32xf32>
      %63 = arith.addf %54, %62 : vector<8x32xf32>
      %c0_35 = arith.constant 0 : index
      %c0_36 = arith.constant 0 : index
      %c0_37 = arith.constant 0 : index
      %64 = vector.load %arg7[%c0_35, %c0_36, %c0_37] : memref<1x8x32xf32, #tpu.memory_space<vmem>>, vector<1x8x32xf32>
      %65 = vector.shape_cast %64 : vector<1x8x32xf32> to vector<8x32xf32>
      %66 = vector.shape_cast %63 : vector<8x32xf32> to vector<1x8x32xf32>
      tpu.vector_store %arg7[%c0_35, %c0_36, %c0_37], %66 {strides = array<i32>} : memref<1x8x32xf32, #tpu.memory_space<vmem>>, vector<1x8x32xf32>,
    } else {
    }
    %c0_i32_31 = arith.constant 0 : i32
    %58 = arith.cmpi sgt, %arg1, %c0_i32_31 : i32
    %59 = arith.extui %58 : i1 to i32
    %c0_i32_32 = arith.constant 0 : i32
    %60 = arith.cmpi ne, %59, %c0_i32_32 : i32
    scf.if %60 {
      %c0_33 = arith.constant 0 : index
      %c0_34 = arith.constant 0 : index
      %c0_35 = arith.constant 0 : index
      %61 = vector.load %arg7[%c0_33, %c0_34, %c0_35] : memref<1x8x32xf32, #tpu.memory_space<vmem>>, vector<1x8x32xf32>
      %62 = vector.shape_cast %61 : vector<1x8x32xf32> to vector<8x32xf32>
      %63 = arith.addf %62, %54 : vector<8x32xf32>
      %c0_36 = arith.constant 0 : index
      %c0_37 = arith.constant 0 : index
      %c0_38 = arith.constant 0 : index
      %64 = vector.load %arg7[%c0_36, %c0_37, %c0_38] : memref<1x8x32xf32, #tpu.memory_space<vmem>>, vector<1x8x32xf32>
      %65 = vector.shape_cast %64 : vector<1x8x32xf32> to vector<8x32xf32>
      %66 = vector.shape_cast %63 : vector<8x32xf32> to vector<1x8x32xf32>
      tpu.vector_store %arg7[%c0_36, %c0_37, %c0_38], %66 {strides = array<i32>} : memref<1x8x32xf32, #tpu.memory_space<vmem>>, vector<1x8x32xf32>,
    } else {
    }
    return
  }
  func.func @transform_0(%arg0: i32, %arg1: i32) -> (i32, i32, i32, i32) {
    %c0_i32 = arith.constant 0 : i32
    %c0_i32_0 = arith.constant 0 : i32
    %c0_i32_1 = arith.constant 0 : i32
    return %arg0, %arg1, %c0_i32, %c0_i32_0 : i32, i32, i32, i32
  }
  func.func @transform_1(%arg0: i32, %arg1: i32) -> (i32, i32, i32, i32) {
    %c0_i32 = arith.constant 0 : i32
    %c0_i32_0 = arith.constant 0 : i32
    %c0_i32_1 = arith.constant 0 : i32
    return %arg0, %arg1, %c0_i32, %c0_i32_0 : i32, i32, i32, i32
  }
  func.func @transform_2(%arg0: i32, %arg1: i32) -> (i32, i32, i32, i32) {
    %c0_i32 = arith.constant 0 : i32
    %c0_i32_0 = arith.constant 0 : i32
    %c0_i32_1 = arith.constant 0 : i32
    return %arg0, %arg1, %c0_i32, %c0_i32_0 : i32, i32, i32, i32
  }
  func.func @transform_3(%arg0: i32, %arg1: i32) -> (i32, i32, i32) {
    %c0_i32 = arith.constant 0 : i32
    %c0_i32_0 = arith.constant 0 : i32
    %c0_i32_1 = arith.constant 0 : i32
    return %arg1, %c0_i32, %c0_i32_0 : i32, i32, i32
  }
  func.func @transform_4(%arg0: i32, %arg1: i32) -> (i32, i32) {
    %c0_i32 = arith.constant 0 : i32
    %c0_i32_0 = arith.constant 0 : i32
    %c0_i32_1 = arith.constant 0 : i32
    return %c0_i32, %c0_i32_0 : i32, i32
  }
  func.func @transform_5(%arg0: i32, %arg1: i32) -> (i32, i32, i32) {
    %c0_i32 = arith.constant 0 : i32
    %c0_i32_0 = arith.constant 0 : i32
    %c0_i32_1 = arith.constant 0 : i32
    return %arg0, %c0_i32, %c0_i32_0 : i32, i32, i32
  }
}

module attributes {stable_mosaic.version = 11 : i64} {
  func.func @_linear_kernel(%arg0: i32, %arg1: i32, %arg2: i32, %arg3: memref<16x96xbf16, #tpu.memory_space<vmem>>, %arg4: memref<96x32xbf16, #tpu.memory_space<vmem>>, %arg5: memref<1x32xf32, #tpu.memory_space<vmem>>, %arg6: memref<16x32xbf16, #tpu.memory_space<vmem>>, %arg7: memref<16x32xf32, #tpu.memory_space<vmem>>) attributes {dimension_semantics = [#tpu.dimension_semantics<parallel>, #tpu.dimension_semantics<parallel>, #tpu.dimension_semantics<arbitrary>], iteration_bounds = array<i64: 1, 1, 1>, scalar_prefetch = 0 : i64, scratch_operands = 1 : i64, tpu.core_type = #tpu.core_type<tc>, window_params = [{transform_indices = @transform_0, window_bounds = array<i64: 16, 96>}, {transform_indices = @transform_1, window_bounds = array<i64: 96, 32>}, {transform_indices = @transform_2, window_bounds = array<i64: 1, 32>}, {transform_indices = @transform_3, window_bounds = array<i64: 16, 32>}]} {
    %c0_i32 = arith.constant 0 : i32
    %0 = arith.cmpi eq, %arg2, %c0_i32 : i32
    %1 = arith.extui %0 : i1 to i32
    %c0_i32_0 = arith.constant 0 : i32
    %2 = arith.cmpi ne, %1, %c0_i32_0 : i32
    scf.if %2 {
      %cst_10 = arith.constant 0.000000e+00 : f32
      %12 = vector.broadcast %cst_10 : f32 to vector<16x32xf32>
      %c0_11 = arith.constant 0 : index
      %c0_12 = arith.constant 0 : index
      %13 = vector.load %arg7[%c0_11, %c0_12] : memref<16x32xf32, #tpu.memory_space<vmem>>, vector<16x32xf32>
      tpu.vector_store %arg7[%c0_11, %c0_12], %12 {strides = array<i32>} : memref<16x32xf32, #tpu.memory_space<vmem>>, vector<16x32xf32>,
    } else {
    }
    %c0 = arith.constant 0 : index
    %c0_1 = arith.constant 0 : index
    %3 = vector.load %arg7[%c0, %c0_1] : memref<16x32xf32, #tpu.memory_space<vmem>>, vector<16x32xf32>
    %c0_2 = arith.constant 0 : index
    %c0_3 = arith.constant 0 : index
    %4 = vector.load %arg3[%c0_2, %c0_3] : memref<16x96xbf16, #tpu.memory_space<vmem>>, vector<16x96xbf16>
    %c0_4 = arith.constant 0 : index
    %c0_5 = arith.constant 0 : index
    %5 = vector.load %arg4[%c0_4, %c0_5] : memref<96x32xbf16, #tpu.memory_space<vmem>>, vector<96x32xbf16>
    %cst = arith.constant dense<0.000000e+00> : vector<16x32xf32>
    %6 = tpu.matmul %4, %5, %cst {dimension_numbers = #tpu.dot_dimension_numbers<[1], [0], [0], [1], [0, 0, 1, 1], [], []>} : vector<16x96xbf16>, vector<96x32xbf16>, vector<16x32xf32> -> vector<16x32xf32>
    %7 = arith.addf %3, %6 : vector<16x32xf32>
    %c0_6 = arith.constant 0 : index
    %c0_7 = arith.constant 0 : index
    %8 = vector.load %arg7[%c0_6, %c0_7] : memref<16x32xf32, #tpu.memory_space<vmem>>, vector<16x32xf32>
    tpu.vector_store %arg7[%c0_6, %c0_7], %7 {strides = array<i32>} : memref<16x32xf32, #tpu.memory_space<vmem>>, vector<16x32xf32>,
    %c0_i32_8 = arith.constant 0 : i32
    %9 = arith.cmpi eq, %arg2, %c0_i32_8 : i32
    %10 = arith.extui %9 : i1 to i32
    %c0_i32_9 = arith.constant 0 : i32
    %11 = arith.cmpi ne, %10, %c0_i32_9 : i32
    scf.if %11 {
      %c0_10 = arith.constant 0 : index
      %c0_11 = arith.constant 0 : index
      %12 = vector.load %arg7[%c0_10, %c0_11] : memref<16x32xf32, #tpu.memory_space<vmem>>, vector<16x32xf32>
      %c0_12 = arith.constant 0 : index
      %c0_13 = arith.constant 0 : index
      %13 = vector.load %arg5[%c0_12, %c0_13] : memref<1x32xf32, #tpu.memory_space<vmem>>, vector<1x32xf32>
      %14 = vector.broadcast %13 : vector<1x32xf32> to vector<16x32xf32>
      %15 = arith.addf %12, %14 : vector<16x32xf32>
      %16 = arith.truncf %15 : vector<16x32xf32> to vector<16x32xbf16>
      %c0_14 = arith.constant 0 : index
      %c0_15 = arith.constant 0 : index
      %17 = vector.load %arg6[%c0_14, %c0_15] : memref<16x32xbf16, #tpu.memory_space<vmem>>, vector<16x32xbf16>
      tpu.vector_store %arg6[%c0_14, %c0_15], %16 {strides = array<i32>} : memref<16x32xbf16, #tpu.memory_space<vmem>>, vector<16x32xbf16>,
    } else {
    }
    return
  }
  func.func @transform_0(%arg0: i32, %arg1: i32, %arg2: i32) -> (i32, i32) {
    %c0_i32 = arith.constant 0 : i32
    return %arg0, %arg2 : i32, i32
  }
  func.func @transform_1(%arg0: i32, %arg1: i32, %arg2: i32) -> (i32, i32) {
    %c0_i32 = arith.constant 0 : i32
    return %arg2, %arg1 : i32, i32
  }
  func.func @transform_2(%arg0: i32, %arg1: i32, %arg2: i32) -> (i32, i32) {
    %c0_i32 = arith.constant 0 : i32
    %c0_i32_0 = arith.constant 0 : i32
    return %c0_i32, %arg1 : i32, i32
  }
  func.func @transform_3(%arg0: i32, %arg1: i32, %arg2: i32) -> (i32, i32) {
    %c0_i32 = arith.constant 0 : i32
    return %arg0, %arg1 : i32, i32
  }
}

module attributes {stable_mosaic.version = 11 : i64} {
  func.func @_linear_kernel(%arg0: i32, %arg1: i32, %arg2: i32, %arg3: memref<16x32xbf16, #tpu.memory_space<vmem>>, %arg4: memref<32x64xbf16, #tpu.memory_space<vmem>>, %arg5: memref<1x64xf32, #tpu.memory_space<vmem>>, %arg6: memref<16x64xbf16, #tpu.memory_space<vmem>>, %arg7: memref<16x64xf32, #tpu.memory_space<vmem>>) attributes {dimension_semantics = [#tpu.dimension_semantics<parallel>, #tpu.dimension_semantics<parallel>, #tpu.dimension_semantics<arbitrary>], iteration_bounds = array<i64: 1, 1, 1>, scalar_prefetch = 0 : i64, scratch_operands = 1 : i64, tpu.core_type = #tpu.core_type<tc>, window_params = [{transform_indices = @transform_0, window_bounds = array<i64: 16, 32>}, {transform_indices = @transform_1, window_bounds = array<i64: 32, 64>}, {transform_indices = @transform_2, window_bounds = array<i64: 1, 64>}, {transform_indices = @transform_3, window_bounds = array<i64: 16, 64>}]} {
    %c0_i32 = arith.constant 0 : i32
    %0 = arith.cmpi eq, %arg2, %c0_i32 : i32
    %1 = arith.extui %0 : i1 to i32
    %c0_i32_0 = arith.constant 0 : i32
    %2 = arith.cmpi ne, %1, %c0_i32_0 : i32
    scf.if %2 {
      %cst_10 = arith.constant 0.000000e+00 : f32
      %12 = vector.broadcast %cst_10 : f32 to vector<16x64xf32>
      %c0_11 = arith.constant 0 : index
      %c0_12 = arith.constant 0 : index
      %13 = vector.load %arg7[%c0_11, %c0_12] : memref<16x64xf32, #tpu.memory_space<vmem>>, vector<16x64xf32>
      tpu.vector_store %arg7[%c0_11, %c0_12], %12 {strides = array<i32>} : memref<16x64xf32, #tpu.memory_space<vmem>>, vector<16x64xf32>,
    } else {
    }
    %c0 = arith.constant 0 : index
    %c0_1 = arith.constant 0 : index
    %3 = vector.load %arg7[%c0, %c0_1] : memref<16x64xf32, #tpu.memory_space<vmem>>, vector<16x64xf32>
    %c0_2 = arith.constant 0 : index
    %c0_3 = arith.constant 0 : index
    %4 = vector.load %arg3[%c0_2, %c0_3] : memref<16x32xbf16, #tpu.memory_space<vmem>>, vector<16x32xbf16>
    %c0_4 = arith.constant 0 : index
    %c0_5 = arith.constant 0 : index
    %5 = vector.load %arg4[%c0_4, %c0_5] : memref<32x64xbf16, #tpu.memory_space<vmem>>, vector<32x64xbf16>
    %cst = arith.constant dense<0.000000e+00> : vector<16x64xf32>
    %6 = tpu.matmul %4, %5, %cst {dimension_numbers = #tpu.dot_dimension_numbers<[1], [0], [0], [1], [0, 0, 1, 1], [], []>} : vector<16x32xbf16>, vector<32x64xbf16>, vector<16x64xf32> -> vector<16x64xf32>
    %7 = arith.addf %3, %6 : vector<16x64xf32>
    %c0_6 = arith.constant 0 : index
    %c0_7 = arith.constant 0 : index
    %8 = vector.load %arg7[%c0_6, %c0_7] : memref<16x64xf32, #tpu.memory_space<vmem>>, vector<16x64xf32>
    tpu.vector_store %arg7[%c0_6, %c0_7], %7 {strides = array<i32>} : memref<16x64xf32, #tpu.memory_space<vmem>>, vector<16x64xf32>,
    %c0_i32_8 = arith.constant 0 : i32
    %9 = arith.cmpi eq, %arg2, %c0_i32_8 : i32
    %10 = arith.extui %9 : i1 to i32
    %c0_i32_9 = arith.constant 0 : i32
    %11 = arith.cmpi ne, %10, %c0_i32_9 : i32
    scf.if %11 {
      %c0_10 = arith.constant 0 : index
      %c0_11 = arith.constant 0 : index
      %12 = vector.load %arg7[%c0_10, %c0_11] : memref<16x64xf32, #tpu.memory_space<vmem>>, vector<16x64xf32>
      %c0_12 = arith.constant 0 : index
      %c0_13 = arith.constant 0 : index
      %13 = vector.load %arg5[%c0_12, %c0_13] : memref<1x64xf32, #tpu.memory_space<vmem>>, vector<1x64xf32>
      %14 = vector.broadcast %13 : vector<1x64xf32> to vector<16x64xf32>
      %15 = arith.addf %12, %14 : vector<16x64xf32>
      %16 = arith.truncf %15 : vector<16x64xf32> to vector<16x64xbf16>
      %c0_14 = arith.constant 0 : index
      %c0_15 = arith.constant 0 : index
      %17 = vector.load %arg6[%c0_14, %c0_15] : memref<16x64xbf16, #tpu.memory_space<vmem>>, vector<16x64xbf16>
      tpu.vector_store %arg6[%c0_14, %c0_15], %16 {strides = array<i32>} : memref<16x64xbf16, #tpu.memory_space<vmem>>, vector<16x64xbf16>,
    } else {
    }
    return
  }
  func.func @transform_0(%arg0: i32, %arg1: i32, %arg2: i32) -> (i32, i32) {
    %c0_i32 = arith.constant 0 : i32
    return %arg0, %arg2 : i32, i32
  }
  func.func @transform_1(%arg0: i32, %arg1: i32, %arg2: i32) -> (i32, i32) {
    %c0_i32 = arith.constant 0 : i32
    return %arg2, %arg1 : i32, i32
  }
  func.func @transform_2(%arg0: i32, %arg1: i32, %arg2: i32) -> (i32, i32) {
    %c0_i32 = arith.constant 0 : i32
    %c0_i32_0 = arith.constant 0 : i32
    return %c0_i32, %arg1 : i32, i32
  }
  func.func @transform_3(%arg0: i32, %arg1: i32, %arg2: i32) -> (i32, i32) {
    %c0_i32 = arith.constant 0 : i32
    return %arg0, %arg1 : i32, i32
  }
}

module attributes {stable_mosaic.version = 11 : i64} {
  func.func @_linear_kernel(%arg0: i32, %arg1: i32, %arg2: i32, %arg3: memref<16x64xbf16, #tpu.memory_space<vmem>>, %arg4: memref<64x32xbf16, #tpu.memory_space<vmem>>, %arg5: memref<1x32xf32, #tpu.memory_space<vmem>>, %arg6: memref<16x32xbf16, #tpu.memory_space<vmem>>, %arg7: memref<16x32xf32, #tpu.memory_space<vmem>>) attributes {dimension_semantics = [#tpu.dimension_semantics<parallel>, #tpu.dimension_semantics<parallel>, #tpu.dimension_semantics<arbitrary>], iteration_bounds = array<i64: 1, 1, 1>, scalar_prefetch = 0 : i64, scratch_operands = 1 : i64, tpu.core_type = #tpu.core_type<tc>, window_params = [{transform_indices = @transform_0, window_bounds = array<i64: 16, 64>}, {transform_indices = @transform_1, window_bounds = array<i64: 64, 32>}, {transform_indices = @transform_2, window_bounds = array<i64: 1, 32>}, {transform_indices = @transform_3, window_bounds = array<i64: 16, 32>}]} {
    %c0_i32 = arith.constant 0 : i32
    %0 = arith.cmpi eq, %arg2, %c0_i32 : i32
    %1 = arith.extui %0 : i1 to i32
    %c0_i32_0 = arith.constant 0 : i32
    %2 = arith.cmpi ne, %1, %c0_i32_0 : i32
    scf.if %2 {
      %cst_10 = arith.constant 0.000000e+00 : f32
      %12 = vector.broadcast %cst_10 : f32 to vector<16x32xf32>
      %c0_11 = arith.constant 0 : index
      %c0_12 = arith.constant 0 : index
      %13 = vector.load %arg7[%c0_11, %c0_12] : memref<16x32xf32, #tpu.memory_space<vmem>>, vector<16x32xf32>
      tpu.vector_store %arg7[%c0_11, %c0_12], %12 {strides = array<i32>} : memref<16x32xf32, #tpu.memory_space<vmem>>, vector<16x32xf32>,
    } else {
    }
    %c0 = arith.constant 0 : index
    %c0_1 = arith.constant 0 : index
    %3 = vector.load %arg7[%c0, %c0_1] : memref<16x32xf32, #tpu.memory_space<vmem>>, vector<16x32xf32>
    %c0_2 = arith.constant 0 : index
    %c0_3 = arith.constant 0 : index
    %4 = vector.load %arg3[%c0_2, %c0_3] : memref<16x64xbf16, #tpu.memory_space<vmem>>, vector<16x64xbf16>
    %c0_4 = arith.constant 0 : index
    %c0_5 = arith.constant 0 : index
    %5 = vector.load %arg4[%c0_4, %c0_5] : memref<64x32xbf16, #tpu.memory_space<vmem>>, vector<64x32xbf16>
    %cst = arith.constant dense<0.000000e+00> : vector<16x32xf32>
    %6 = tpu.matmul %4, %5, %cst {dimension_numbers = #tpu.dot_dimension_numbers<[1], [0], [0], [1], [0, 0, 1, 1], [], []>} : vector<16x64xbf16>, vector<64x32xbf16>, vector<16x32xf32> -> vector<16x32xf32>
    %7 = arith.addf %3, %6 : vector<16x32xf32>
    %c0_6 = arith.constant 0 : index
    %c0_7 = arith.constant 0 : index
    %8 = vector.load %arg7[%c0_6, %c0_7] : memref<16x32xf32, #tpu.memory_space<vmem>>, vector<16x32xf32>
    tpu.vector_store %arg7[%c0_6, %c0_7], %7 {strides = array<i32>} : memref<16x32xf32, #tpu.memory_space<vmem>>, vector<16x32xf32>,
    %c0_i32_8 = arith.constant 0 : i32
    %9 = arith.cmpi eq, %arg2, %c0_i32_8 : i32
    %10 = arith.extui %9 : i1 to i32
    %c0_i32_9 = arith.constant 0 : i32
    %11 = arith.cmpi ne, %10, %c0_i32_9 : i32
    scf.if %11 {
      %c0_10 = arith.constant 0 : index
      %c0_11 = arith.constant 0 : index
      %12 = vector.load %arg7[%c0_10, %c0_11] : memref<16x32xf32, #tpu.memory_space<vmem>>, vector<16x32xf32>
      %c0_12 = arith.constant 0 : index
      %c0_13 = arith.constant 0 : index
      %13 = vector.load %arg5[%c0_12, %c0_13] : memref<1x32xf32, #tpu.memory_space<vmem>>, vector<1x32xf32>
      %14 = vector.broadcast %13 : vector<1x32xf32> to vector<16x32xf32>
      %15 = arith.addf %12, %14 : vector<16x32xf32>
      %16 = arith.truncf %15 : vector<16x32xf32> to vector<16x32xbf16>
      %c0_14 = arith.constant 0 : index
      %c0_15 = arith.constant 0 : index
      %17 = vector.load %arg6[%c0_14, %c0_15] : memref<16x32xbf16, #tpu.memory_space<vmem>>, vector<16x32xbf16>
      tpu.vector_store %arg6[%c0_14, %c0_15], %16 {strides = array<i32>} : memref<16x32xbf16, #tpu.memory_space<vmem>>, vector<16x32xbf16>,
    } else {
    }
    return
  }
  func.func @transform_0(%arg0: i32, %arg1: i32, %arg2: i32) -> (i32, i32) {
    %c0_i32 = arith.constant 0 : i32
    return %arg0, %arg2 : i32, i32
  }
  func.func @transform_1(%arg0: i32, %arg1: i32, %arg2: i32) -> (i32, i32) {
    %c0_i32 = arith.constant 0 : i32
    return %arg2, %arg1 : i32, i32
  }
  func.func @transform_2(%arg0: i32, %arg1: i32, %arg2: i32) -> (i32, i32) {
    %c0_i32 = arith.constant 0 : i32
    %c0_i32_0 = arith.constant 0 : i32
    return %c0_i32, %arg1 : i32, i32
  }
  func.func @transform_3(%arg0: i32, %arg1: i32, %arg2: i32) -> (i32, i32) {
    %c0_i32 = arith.constant 0 : i32
    return %arg0, %arg1 : i32, i32
  }
}

module attributes {stable_mosaic.version = 11 : i64} {
  func.func @_linear_kernel(%arg0: i32, %arg1: i32, %arg2: i32, %arg3: memref<16x32xbf16, #tpu.memory_space<vmem>>, %arg4: memref<32x32xbf16, #tpu.memory_space<vmem>>, %arg5: memref<1x32xf32, #tpu.memory_space<vmem>>, %arg6: memref<16x32xbf16, #tpu.memory_space<vmem>>, %arg7: memref<16x32xf32, #tpu.memory_space<vmem>>) attributes {dimension_semantics = [#tpu.dimension_semantics<parallel>, #tpu.dimension_semantics<parallel>, #tpu.dimension_semantics<arbitrary>], iteration_bounds = array<i64: 1, 1, 1>, scalar_prefetch = 0 : i64, scratch_operands = 1 : i64, tpu.core_type = #tpu.core_type<tc>, window_params = [{transform_indices = @transform_0, window_bounds = array<i64: 16, 32>}, {transform_indices = @transform_1, window_bounds = array<i64: 32, 32>}, {transform_indices = @transform_2, window_bounds = array<i64: 1, 32>}, {transform_indices = @transform_3, window_bounds = array<i64: 16, 32>}]} {
    %c0_i32 = arith.constant 0 : i32
    %0 = arith.cmpi eq, %arg2, %c0_i32 : i32
    %1 = arith.extui %0 : i1 to i32
    %c0_i32_0 = arith.constant 0 : i32
    %2 = arith.cmpi ne, %1, %c0_i32_0 : i32
    scf.if %2 {
      %cst_10 = arith.constant 0.000000e+00 : f32
      %12 = vector.broadcast %cst_10 : f32 to vector<16x32xf32>
      %c0_11 = arith.constant 0 : index
      %c0_12 = arith.constant 0 : index
      %13 = vector.load %arg7[%c0_11, %c0_12] : memref<16x32xf32, #tpu.memory_space<vmem>>, vector<16x32xf32>
      tpu.vector_store %arg7[%c0_11, %c0_12], %12 {strides = array<i32>} : memref<16x32xf32, #tpu.memory_space<vmem>>, vector<16x32xf32>,
    } else {
    }
    %c0 = arith.constant 0 : index
    %c0_1 = arith.constant 0 : index
    %3 = vector.load %arg7[%c0, %c0_1] : memref<16x32xf32, #tpu.memory_space<vmem>>, vector<16x32xf32>
    %c0_2 = arith.constant 0 : index
    %c0_3 = arith.constant 0 : index
    %4 = vector.load %arg3[%c0_2, %c0_3] : memref<16x32xbf16, #tpu.memory_space<vmem>>, vector<16x32xbf16>
    %c0_4 = arith.constant 0 : index
    %c0_5 = arith.constant 0 : index
    %5 = vector.load %arg4[%c0_4, %c0_5] : memref<32x32xbf16, #tpu.memory_space<vmem>>, vector<32x32xbf16>
    %cst = arith.constant dense<0.000000e+00> : vector<16x32xf32>
    %6 = tpu.matmul %4, %5, %cst {dimension_numbers = #tpu.dot_dimension_numbers<[1], [0], [0], [1], [0, 0, 1, 1], [], []>} : vector<16x32xbf16>, vector<32x32xbf16>, vector<16x32xf32> -> vector<16x32xf32>
    %7 = arith.addf %3, %6 : vector<16x32xf32>
    %c0_6 = arith.constant 0 : index
    %c0_7 = arith.constant 0 : index
    %8 = vector.load %arg7[%c0_6, %c0_7] : memref<16x32xf32, #tpu.memory_space<vmem>>, vector<16x32xf32>
    tpu.vector_store %arg7[%c0_6, %c0_7], %7 {strides = array<i32>} : memref<16x32xf32, #tpu.memory_space<vmem>>, vector<16x32xf32>,
    %c0_i32_8 = arith.constant 0 : i32
    %9 = arith.cmpi eq, %arg2, %c0_i32_8 : i32
    %10 = arith.extui %9 : i1 to i32
    %c0_i32_9 = arith.constant 0 : i32
    %11 = arith.cmpi ne, %10, %c0_i32_9 : i32
    scf.if %11 {
      %c0_10 = arith.constant 0 : index
      %c0_11 = arith.constant 0 : index
      %12 = vector.load %arg7[%c0_10, %c0_11] : memref<16x32xf32, #tpu.memory_space<vmem>>, vector<16x32xf32>
      %c0_12 = arith.constant 0 : index
      %c0_13 = arith.constant 0 : index
      %13 = vector.load %arg5[%c0_12, %c0_13] : memref<1x32xf32, #tpu.memory_space<vmem>>, vector<1x32xf32>
      %14 = vector.broadcast %13 : vector<1x32xf32> to vector<16x32xf32>
      %15 = arith.addf %12, %14 : vector<16x32xf32>
      %16 = arith.truncf %15 : vector<16x32xf32> to vector<16x32xbf16>
      %c0_14 = arith.constant 0 : index
      %c0_15 = arith.constant 0 : index
      %17 = vector.load %arg6[%c0_14, %c0_15] : memref<16x32xbf16, #tpu.memory_space<vmem>>, vector<16x32xbf16>
      tpu.vector_store %arg6[%c0_14, %c0_15], %16 {strides = array<i32>} : memref<16x32xbf16, #tpu.memory_space<vmem>>, vector<16x32xbf16>,
    } else {
    }
    return
  }
  func.func @transform_0(%arg0: i32, %arg1: i32, %arg2: i32) -> (i32, i32) {
    %c0_i32 = arith.constant 0 : i32
    return %arg0, %arg2 : i32, i32
  }
  func.func @transform_1(%arg0: i32, %arg1: i32, %arg2: i32) -> (i32, i32) {
    %c0_i32 = arith.constant 0 : i32
    return %arg2, %arg1 : i32, i32
  }
  func.func @transform_2(%arg0: i32, %arg1: i32, %arg2: i32) -> (i32, i32) {
    %c0_i32 = arith.constant 0 : i32
    %c0_i32_0 = arith.constant 0 : i32
    return %c0_i32, %arg1 : i32, i32
  }
  func.func @transform_3(%arg0: i32, %arg1: i32, %arg2: i32) -> (i32, i32) {
    %c0_i32 = arith.constant 0 : i32
    return %arg0, %arg1 : i32, i32
  }
}

module attributes {stable_mosaic.version = 11 : i64} {
  func.func @_rel_attn_kernel(%arg0: i32, %arg1: i32, %arg2: memref<1x4x8x8xbf16, #tpu.memory_space<vmem>>, %arg3: memref<1x4x8x8xbf16, #tpu.memory_space<vmem>>, %arg4: memref<1x4x8x8xbf16, #tpu.memory_space<vmem>>, %arg5: memref<10x8xbf16, #tpu.memory_space<vmem>>, %arg6: memref<10x8xf32, #tpu.memory_space<vmem>>, %arg7: memref<4x8x32xbf16, #tpu.memory_space<vmem>>, %arg8: memref<1x32xf32, #tpu.memory_space<vmem>>, %arg9: memref<1x8x32xf32, #tpu.memory_space<vmem>>) attributes {dimension_semantics = [#tpu.dimension_semantics<parallel>, #tpu.dimension_semantics<arbitrary>], iteration_bounds = array<i64: 2, 1>, scalar_prefetch = 0 : i64, scratch_operands = 0 : i64, tpu.core_type = #tpu.core_type<tc>, window_params = [{transform_indices = @transform_0, window_bounds = array<i64: 1, 4, 8, 8>}, {transform_indices = @transform_1, window_bounds = array<i64: 1, 4, 8, 8>}, {transform_indices = @transform_2, window_bounds = array<i64: 1, 4, 8, 8>}, {pipeline_mode = #tpu.pipeline_mode<synchronous>, transform_indices = @transform_3, window_bounds = array<i64: 10, 8>}, {pipeline_mode = #tpu.pipeline_mode<synchronous>, transform_indices = @transform_4, window_bounds = array<i64: 10, 8>}, {transform_indices = @transform_5, window_bounds = array<i64: 4, 8, 32>}, {pipeline_mode = #tpu.pipeline_mode<synchronous>, transform_indices = @transform_6, window_bounds = array<i64: 1, 32>}, {transform_indices = @transform_7, window_bounds = array<i64: 1, 8, 32>}]} {
    %c0 = arith.constant 0 : index
    %c0_0 = arith.constant 0 : index
    %c0_1 = arith.constant 0 : index
    %c0_2 = arith.constant 0 : index
    %0 = vector.load %arg2[%c0, %c0_0, %c0_1, %c0_2] : memref<1x4x8x8xbf16, #tpu.memory_space<vmem>>, vector<1x4x8x8xbf16>
    %1 = vector.shape_cast %0 : vector<1x4x8x8xbf16> to vector<4x8x8xbf16>
    %c0_3 = arith.constant 0 : index
    %c0_4 = arith.constant 0 : index
    %c0_5 = arith.constant 0 : index
    %c0_6 = arith.constant 0 : index
    %2 = vector.load %arg3[%c0_3, %c0_4, %c0_5, %c0_6] : memref<1x4x8x8xbf16, #tpu.memory_space<vmem>>, vector<1x4x8x8xbf16>
    %3 = vector.shape_cast %2 : vector<1x4x8x8xbf16> to vector<4x8x8xbf16>
    %c0_7 = arith.constant 0 : index
    %c0_8 = arith.constant 0 : index
    %c0_9 = arith.constant 0 : index
    %c0_10 = arith.constant 0 : index
    %4 = vector.load %arg4[%c0_7, %c0_8, %c0_9, %c0_10] : memref<1x4x8x8xbf16, #tpu.memory_space<vmem>>, vector<1x4x8x8xbf16>
    %5 = vector.shape_cast %4 : vector<1x4x8x8xbf16> to vector<4x8x8xbf16>
    %6 = tpu.iota {dimensions = array<i32: 0>} : vector<8x8xi32>
    %7 = tpu.iota {dimensions = array<i32: 1>} : vector<8x8xi32>
    %8 = arith.subi %6, %7 : vector<8x8xi32>
    %c0_i32 = arith.constant 0 : i32
    %c9_i32 = arith.constant 9 : i32
    %9 = vector.broadcast %c0_i32 : i32 to vector<8x8xi32>
    %10 = arith.maxsi %9, %8 : vector<8x8xi32>
    %11 = vector.broadcast %c9_i32 : i32 to vector<8x8xi32>
    %12 = arith.minsi %11, %10 : vector<8x8xi32>
    "tpu.trace_start"() <{level = 10 : i32, message = "hqd,hkd->hqk"}> : () -> ()
    %cst = arith.constant dense<0.000000e+00> : vector<4x8x8xf32>
    %13 = tpu.matmul %1, %3, %cst {dimension_numbers = #tpu.dot_dimension_numbers<[2], [2], [1], [1], [0, 0, 0, 1, 1, 1], [0], [0]>} : vector<4x8x8xbf16>, vector<4x8x8xbf16>, vector<4x8x8xf32> -> vector<4x8x8xf32>
    "tpu.trace_stop"() : () -> ()
    %14 = vector.shape_cast %1 : vector<4x8x8xbf16> to vector<32x8xbf16>
    %c0_11 = arith.constant 0 : index
    %c0_12 = arith.constant 0 : index
    %15 = vector.load %arg5[%c0_11, %c0_12] : memref<10x8xbf16, #tpu.memory_space<vmem>>, vector<10x8xbf16>
    "tpu.trace_start"() <{level = 10 : i32, message = "nd,pd->np"}> : () -> ()
    %cst_13 = arith.constant dense<0.000000e+00> : vector<32x10xf32>
    %16 = tpu.matmul %14, %15, %cst_13 {dimension_numbers = #tpu.dot_dimension_numbers<[1], [1], [0], [0], [0, 0, 1, 0], [], []>} : vector<32x8xbf16>, vector<10x8xbf16>, vector<32x10xf32> -> vector<32x10xf32>
    "tpu.trace_stop"() : () -> ()
    %17 = vector.shape_cast %16 : vector<32x10xf32> to vector<4x8x10xf32>
    %cst_14 = arith.constant 0.000000e+00 : f32
    %18 = vector.broadcast %cst_14 : f32 to vector<4x8x8xf32>
    %c0_i32_15 = arith.constant 0 : i32
    %19 = vector.broadcast %c0_i32_15 : i32 to vector<8x8xi32>
    %20 = arith.cmpi eq, %12, %19 : vector<8x8xi32>
    %21 = vector.shape_cast %20 : vector<8x8xi1> to vector<1x8x8xi1>
    %22 = vector.extract_strided_slice %17 {offsets = [0, 0, 0], sizes = [4, 8, 1], strides = [1, 1, 1]} : vector<4x8x10xf32> to vector<4x8x1xf32>
    %cst_16 = arith.constant 0.000000e+00 : f32
    %23 = vector.shape_cast %21 : vector<1x8x8xi1> to vector<1x8x8xi1>
    %24 = vector.broadcast %23 : vector<1x8x8xi1> to vector<4x8x8xi1>
    %25 = vector.shape_cast %22 : vector<4x8x1xf32> to vector<4x8x1xf32>
    %26 = vector.broadcast %25 : vector<4x8x1xf32> to vector<4x8x8xf32>
    %27 = vector.broadcast %cst_16 : f32 to vector<4x8x8xf32>
    %28 = arith.select %24, %26, %27 : vector<4x8x8xi1>, vector<4x8x8xf32>
    %29 = arith.addf %18, %28 : vector<4x8x8xf32>
    %c1_i32 = arith.constant 1 : i32
    %30 = vector.broadcast %c1_i32 : i32 to vector<8x8xi32>
    %31 = arith.cmpi eq, %12, %30 : vector<8x8xi32>
    %32 = vector.shape_cast %31 : vector<8x8xi1> to vector<1x8x8xi1>
    %33 = vector.extract_strided_slice %17 {offsets = [0, 0, 1], sizes = [4, 8, 1], strides = [1, 1, 1]} : vector<4x8x10xf32> to vector<4x8x1xf32>
    %cst_17 = arith.constant 0.000000e+00 : f32
    %34 = vector.shape_cast %32 : vector<1x8x8xi1> to vector<1x8x8xi1>
    %35 = vector.broadcast %34 : vector<1x8x8xi1> to vector<4x8x8xi1>
    %36 = vector.shape_cast %33 : vector<4x8x1xf32> to vector<4x8x1xf32>
    %37 = vector.broadcast %36 : vector<4x8x1xf32> to vector<4x8x8xf32>
    %38 = vector.broadcast %cst_17 : f32 to vector<4x8x8xf32>
    %39 = arith.select %35, %37, %38 : vector<4x8x8xi1>, vector<4x8x8xf32>
    %40 = arith.addf %29, %39 : vector<4x8x8xf32>
    %c2_i32 = arith.constant 2 : i32
    %41 = vector.broadcast %c2_i32 : i32 to vector<8x8xi32>
    %42 = arith.cmpi eq, %12, %41 : vector<8x8xi32>
    %43 = vector.shape_cast %42 : vector<8x8xi1> to vector<1x8x8xi1>
    %44 = vector.extract_strided_slice %17 {offsets = [0, 0, 2], sizes = [4, 8, 1], strides = [1, 1, 1]} : vector<4x8x10xf32> to vector<4x8x1xf32>
    %cst_18 = arith.constant 0.000000e+00 : f32
    %45 = vector.shape_cast %43 : vector<1x8x8xi1> to vector<1x8x8xi1>
    %46 = vector.broadcast %45 : vector<1x8x8xi1> to vector<4x8x8xi1>
    %47 = vector.shape_cast %44 : vector<4x8x1xf32> to vector<4x8x1xf32>
    %48 = vector.broadcast %47 : vector<4x8x1xf32> to vector<4x8x8xf32>
    %49 = vector.broadcast %cst_18 : f32 to vector<4x8x8xf32>
    %50 = arith.select %46, %48, %49 : vector<4x8x8xi1>, vector<4x8x8xf32>
    %51 = arith.addf %40, %50 : vector<4x8x8xf32>
    %c3_i32 = arith.constant 3 : i32
    %52 = vector.broadcast %c3_i32 : i32 to vector<8x8xi32>
    %53 = arith.cmpi eq, %12, %52 : vector<8x8xi32>
    %54 = vector.shape_cast %53 : vector<8x8xi1> to vector<1x8x8xi1>
    %55 = vector.extract_strided_slice %17 {offsets = [0, 0, 3], sizes = [4, 8, 1], strides = [1, 1, 1]} : vector<4x8x10xf32> to vector<4x8x1xf32>
    %cst_19 = arith.constant 0.000000e+00 : f32
    %56 = vector.shape_cast %54 : vector<1x8x8xi1> to vector<1x8x8xi1>
    %57 = vector.broadcast %56 : vector<1x8x8xi1> to vector<4x8x8xi1>
    %58 = vector.shape_cast %55 : vector<4x8x1xf32> to vector<4x8x1xf32>
    %59 = vector.broadcast %58 : vector<4x8x1xf32> to vector<4x8x8xf32>
    %60 = vector.broadcast %cst_19 : f32 to vector<4x8x8xf32>
    %61 = arith.select %57, %59, %60 : vector<4x8x8xi1>, vector<4x8x8xf32>
    %62 = arith.addf %51, %61 : vector<4x8x8xf32>
    %c4_i32 = arith.constant 4 : i32
    %63 = vector.broadcast %c4_i32 : i32 to vector<8x8xi32>
    %64 = arith.cmpi eq, %12, %63 : vector<8x8xi32>
    %65 = vector.shape_cast %64 : vector<8x8xi1> to vector<1x8x8xi1>
    %66 = vector.extract_strided_slice %17 {offsets = [0, 0, 4], sizes = [4, 8, 1], strides = [1, 1, 1]} : vector<4x8x10xf32> to vector<4x8x1xf32>
    %cst_20 = arith.constant 0.000000e+00 : f32
    %67 = vector.shape_cast %65 : vector<1x8x8xi1> to vector<1x8x8xi1>
    %68 = vector.broadcast %67 : vector<1x8x8xi1> to vector<4x8x8xi1>
    %69 = vector.shape_cast %66 : vector<4x8x1xf32> to vector<4x8x1xf32>
    %70 = vector.broadcast %69 : vector<4x8x1xf32> to vector<4x8x8xf32>
    %71 = vector.broadcast %cst_20 : f32 to vector<4x8x8xf32>
    %72 = arith.select %68, %70, %71 : vector<4x8x8xi1>, vector<4x8x8xf32>
    %73 = arith.addf %62, %72 : vector<4x8x8xf32>
    %c5_i32 = arith.constant 5 : i32
    %74 = vector.broadcast %c5_i32 : i32 to vector<8x8xi32>
    %75 = arith.cmpi eq, %12, %74 : vector<8x8xi32>
    %76 = vector.shape_cast %75 : vector<8x8xi1> to vector<1x8x8xi1>
    %77 = vector.extract_strided_slice %17 {offsets = [0, 0, 5], sizes = [4, 8, 1], strides = [1, 1, 1]} : vector<4x8x10xf32> to vector<4x8x1xf32>
    %cst_21 = arith.constant 0.000000e+00 : f32
    %78 = vector.shape_cast %76 : vector<1x8x8xi1> to vector<1x8x8xi1>
    %79 = vector.broadcast %78 : vector<1x8x8xi1> to vector<4x8x8xi1>
    %80 = vector.shape_cast %77 : vector<4x8x1xf32> to vector<4x8x1xf32>
    %81 = vector.broadcast %80 : vector<4x8x1xf32> to vector<4x8x8xf32>
    %82 = vector.broadcast %cst_21 : f32 to vector<4x8x8xf32>
    %83 = arith.select %79, %81, %82 : vector<4x8x8xi1>, vector<4x8x8xf32>
    %84 = arith.addf %73, %83 : vector<4x8x8xf32>
    %c6_i32 = arith.constant 6 : i32
    %85 = vector.broadcast %c6_i32 : i32 to vector<8x8xi32>
    %86 = arith.cmpi eq, %12, %85 : vector<8x8xi32>
    %87 = vector.shape_cast %86 : vector<8x8xi1> to vector<1x8x8xi1>
    %88 = vector.extract_strided_slice %17 {offsets = [0, 0, 6], sizes = [4, 8, 1], strides = [1, 1, 1]} : vector<4x8x10xf32> to vector<4x8x1xf32>
    %cst_22 = arith.constant 0.000000e+00 : f32
    %89 = vector.shape_cast %87 : vector<1x8x8xi1> to vector<1x8x8xi1>
    %90 = vector.broadcast %89 : vector<1x8x8xi1> to vector<4x8x8xi1>
    %91 = vector.shape_cast %88 : vector<4x8x1xf32> to vector<4x8x1xf32>
    %92 = vector.broadcast %91 : vector<4x8x1xf32> to vector<4x8x8xf32>
    %93 = vector.broadcast %cst_22 : f32 to vector<4x8x8xf32>
    %94 = arith.select %90, %92, %93 : vector<4x8x8xi1>, vector<4x8x8xf32>
    %95 = arith.addf %84, %94 : vector<4x8x8xf32>
    %c7_i32 = arith.constant 7 : i32
    %96 = vector.broadcast %c7_i32 : i32 to vector<8x8xi32>
    %97 = arith.cmpi eq, %12, %96 : vector<8x8xi32>
    %98 = vector.shape_cast %97 : vector<8x8xi1> to vector<1x8x8xi1>
    %99 = vector.extract_strided_slice %17 {offsets = [0, 0, 7], sizes = [4, 8, 1], strides = [1, 1, 1]} : vector<4x8x10xf32> to vector<4x8x1xf32>
    %cst_23 = arith.constant 0.000000e+00 : f32
    %100 = vector.shape_cast %98 : vector<1x8x8xi1> to vector<1x8x8xi1>
    %101 = vector.broadcast %100 : vector<1x8x8xi1> to vector<4x8x8xi1>
    %102 = vector.shape_cast %99 : vector<4x8x1xf32> to vector<4x8x1xf32>
    %103 = vector.broadcast %102 : vector<4x8x1xf32> to vector<4x8x8xf32>
    %104 = vector.broadcast %cst_23 : f32 to vector<4x8x8xf32>
    %105 = arith.select %101, %103, %104 : vector<4x8x8xi1>, vector<4x8x8xf32>
    %106 = arith.addf %95, %105 : vector<4x8x8xf32>
    %107 = arith.addf %13, %106 : vector<4x8x8xf32>
    %cst_24 = arith.constant 0.353553385 : f32
    %108 = vector.broadcast %cst_24 : f32 to vector<4x8x8xf32>
    %109 = arith.mulf %107, %108 : vector<4x8x8xf32>
    %110 = arith.cmpi sgt, %7, %6 : vector<8x8xi32>
    %111 = vector.shape_cast %110 : vector<8x8xi1> to vector<1x8x8xi1>
    %cst_25 = arith.constant -1.000000e+09 : f32
    %112 = vector.shape_cast %111 : vector<1x8x8xi1> to vector<1x8x8xi1>
    %113 = vector.broadcast %112 : vector<1x8x8xi1> to vector<4x8x8xi1>
    %114 = vector.broadcast %cst_25 : f32 to vector<4x8x8xf32>
    %115 = arith.select %113, %114, %109 : vector<4x8x8xi1>, vector<4x8x8xf32>
    %cst_26 = arith.constant dense<0xFF800000> : vector<4x8xf32>
    %116 = vector.multi_reduction <maximumf>, %115, %cst_26 [2] : vector<4x8x8xf32> to vector<4x8xf32>
    %117 = vector.shape_cast %116 : vector<4x8xf32> to vector<4x8x1xf32>
    %118 = vector.broadcast %117 : vector<4x8x1xf32> to vector<4x8x8xf32>
    %119 = arith.subf %115, %118 : vector<4x8x8xf32>
    %120 = math.exp %119 : vector<4x8x8xf32>
    %cst_27 = arith.constant dense<0.000000e+00> : vector<4x8xf32>
    %121 = vector.multi_reduction <add>, %120, %cst_27 [2] : vector<4x8x8xf32> to vector<4x8xf32>
    %122 = vector.shape_cast %121 : vector<4x8xf32> to vector<4x8x1xf32>
    %123 = tpu.reciprocal %122 {approx = true} : vector<4x8x1xf32> -> vector<4x8x1xf32>
    %124 = vector.broadcast %123 : vector<4x8x1xf32> to vector<4x8x8xf32>
    %125 = arith.mulf %120, %124 : vector<4x8x8xf32>
    %126 = arith.truncf %125 : vector<4x8x8xf32> to vector<4x8x8xbf16>
    "tpu.trace_start"() <{level = 10 : i32, message = "hqk,hkd->hqd"}> : () -> ()
    %cst_28 = arith.constant dense<0.000000e+00> : vector<4x8x8xf32>
    %127 = tpu.matmul %126, %5, %cst_28 {dimension_numbers = #tpu.dot_dimension_numbers<[2], [1], [1], [2], [0, 0, 0, 1, 1, 2], [0], [0]>} : vector<4x8x8xbf16>, vector<4x8x8xbf16>, vector<4x8x8xf32> -> vector<4x8x8xf32>
    "tpu.trace_stop"() : () -> ()
    %c0_29 = arith.constant 0 : index
    %c0_30 = arith.constant 0 : index
    %128 = vector.load %arg6[%c0_29, %c0_30] : memref<10x8xf32, #tpu.memory_space<vmem>>, vector<10x8xf32>
    %c0_i32_31 = arith.constant 0 : i32
    %129 = vector.broadcast %c0_i32_31 : i32 to vector<8x8xi32>
    %130 = arith.cmpi eq, %12, %129 : vector<8x8xi32>
    %131 = vector.shape_cast %130 : vector<8x8xi1> to vector<1x8x8xi1>
    %cst_32 = arith.constant 0.000000e+00 : f32
    %132 = vector.shape_cast %131 : vector<1x8x8xi1> to vector<1x8x8xi1>
    %133 = vector.broadcast %132 : vector<1x8x8xi1> to vector<4x8x8xi1>
    %134 = vector.broadcast %cst_32 : f32 to vector<4x8x8xf32>
    %135 = arith.select %133, %125, %134 : vector<4x8x8xi1>, vector<4x8x8xf32>
    %cst_33 = arith.constant dense<0.000000e+00> : vector<4x8xf32>
    %136 = vector.multi_reduction <add>, %135, %cst_33 [2] : vector<4x8x8xf32> to vector<4x8xf32>
    %137 = vector.shape_cast %136 : vector<4x8xf32> to vector<4x8x1xf32>
    %138 = vector.extract_strided_slice %128 {offsets = [0, 0], sizes = [1, 8], strides = [1, 1]} : vector<10x8xf32> to vector<1x8xf32>
    %139 = vector.shape_cast %138 : vector<1x8xf32> to vector<1x1x8xf32>
    %140 = vector.broadcast %137 : vector<4x8x1xf32> to vector<4x8x8xf32>
    %141 = vector.broadcast %139 : vector<1x1x8xf32> to vector<4x8x8xf32>
    %142 = arith.mulf %140, %141 : vector<4x8x8xf32>
    %143 = arith.addf %127, %142 : vector<4x8x8xf32>
    %c1_i32_34 = arith.constant 1 : i32
    %144 = vector.broadcast %c1_i32_34 : i32 to vector<8x8xi32>
    %145 = arith.cmpi eq, %12, %144 : vector<8x8xi32>
    %146 = vector.shape_cast %145 : vector<8x8xi1> to vector<1x8x8xi1>
    %cst_35 = arith.constant 0.000000e+00 : f32
    %147 = vector.shape_cast %146 : vector<1x8x8xi1> to vector<1x8x8xi1>
    %148 = vector.broadcast %147 : vector<1x8x8xi1> to vector<4x8x8xi1>
    %149 = vector.broadcast %cst_35 : f32 to vector<4x8x8xf32>
    %150 = arith.select %148, %125, %149 : vector<4x8x8xi1>, vector<4x8x8xf32>
    %cst_36 = arith.constant dense<0.000000e+00> : vector<4x8xf32>
    %151 = vector.multi_reduction <add>, %150, %cst_36 [2] : vector<4x8x8xf32> to vector<4x8xf32>
    %152 = vector.shape_cast %151 : vector<4x8xf32> to vector<4x8x1xf32>
    %153 = vector.extract_strided_slice %128 {offsets = [1, 0], sizes = [1, 8], strides = [1, 1]} : vector<10x8xf32> to vector<1x8xf32>
    %154 = vector.shape_cast %153 : vector<1x8xf32> to vector<1x1x8xf32>
    %155 = vector.broadcast %152 : vector<4x8x1xf32> to vector<4x8x8xf32>
    %156 = vector.broadcast %154 : vector<1x1x8xf32> to vector<4x8x8xf32>
    %157 = arith.mulf %155, %156 : vector<4x8x8xf32>
    %158 = arith.addf %143, %157 : vector<4x8x8xf32>
    %c2_i32_37 = arith.constant 2 : i32
    %159 = vector.broadcast %c2_i32_37 : i32 to vector<8x8xi32>
    %160 = arith.cmpi eq, %12, %159 : vector<8x8xi32>
    %161 = vector.shape_cast %160 : vector<8x8xi1> to vector<1x8x8xi1>
    %cst_38 = arith.constant 0.000000e+00 : f32
    %162 = vector.shape_cast %161 : vector<1x8x8xi1> to vector<1x8x8xi1>
    %163 = vector.broadcast %162 : vector<1x8x8xi1> to vector<4x8x8xi1>
    %164 = vector.broadcast %cst_38 : f32 to vector<4x8x8xf32>
    %165 = arith.select %163, %125, %164 : vector<4x8x8xi1>, vector<4x8x8xf32>
    %cst_39 = arith.constant dense<0.000000e+00> : vector<4x8xf32>
    %166 = vector.multi_reduction <add>, %165, %cst_39 [2] : vector<4x8x8xf32> to vector<4x8xf32>
    %167 = vector.shape_cast %166 : vector<4x8xf32> to vector<4x8x1xf32>
    %168 = vector.extract_strided_slice %128 {offsets = [2, 0], sizes = [1, 8], strides = [1, 1]} : vector<10x8xf32> to vector<1x8xf32>
    %169 = vector.shape_cast %168 : vector<1x8xf32> to vector<1x1x8xf32>
    %170 = vector.broadcast %167 : vector<4x8x1xf32> to vector<4x8x8xf32>
    %171 = vector.broadcast %169 : vector<1x1x8xf32> to vector<4x8x8xf32>
    %172 = arith.mulf %170, %171 : vector<4x8x8xf32>
    %173 = arith.addf %158, %172 : vector<4x8x8xf32>
    %c3_i32_40 = arith.constant 3 : i32
    %174 = vector.broadcast %c3_i32_40 : i32 to vector<8x8xi32>
    %175 = arith.cmpi eq, %12, %174 : vector<8x8xi32>
    %176 = vector.shape_cast %175 : vector<8x8xi1> to vector<1x8x8xi1>
    %cst_41 = arith.constant 0.000000e+00 : f32
    %177 = vector.shape_cast %176 : vector<1x8x8xi1> to vector<1x8x8xi1>
    %178 = vector.broadcast %177 : vector<1x8x8xi1> to vector<4x8x8xi1>
    %179 = vector.broadcast %cst_41 : f32 to vector<4x8x8xf32>
    %180 = arith.select %178, %125, %179 : vector<4x8x8xi1>, vector<4x8x8xf32>
    %cst_42 = arith.constant dense<0.000000e+00> : vector<4x8xf32>
    %181 = vector.multi_reduction <add>, %180, %cst_42 [2] : vector<4x8x8xf32> to vector<4x8xf32>
    %182 = vector.shape_cast %181 : vector<4x8xf32> to vector<4x8x1xf32>
    %183 = vector.extract_strided_slice %128 {offsets = [3, 0], sizes = [1, 8], strides = [1, 1]} : vector<10x8xf32> to vector<1x8xf32>
    %184 = vector.shape_cast %183 : vector<1x8xf32> to vector<1x1x8xf32>
    %185 = vector.broadcast %182 : vector<4x8x1xf32> to vector<4x8x8xf32>
    %186 = vector.broadcast %184 : vector<1x1x8xf32> to vector<4x8x8xf32>
    %187 = arith.mulf %185, %186 : vector<4x8x8xf32>
    %188 = arith.addf %173, %187 : vector<4x8x8xf32>
    %c4_i32_43 = arith.constant 4 : i32
    %189 = vector.broadcast %c4_i32_43 : i32 to vector<8x8xi32>
    %190 = arith.cmpi eq, %12, %189 : vector<8x8xi32>
    %191 = vector.shape_cast %190 : vector<8x8xi1> to vector<1x8x8xi1>
    %cst_44 = arith.constant 0.000000e+00 : f32
    %192 = vector.shape_cast %191 : vector<1x8x8xi1> to vector<1x8x8xi1>
    %193 = vector.broadcast %192 : vector<1x8x8xi1> to vector<4x8x8xi1>
    %194 = vector.broadcast %cst_44 : f32 to vector<4x8x8xf32>
    %195 = arith.select %193, %125, %194 : vector<4x8x8xi1>, vector<4x8x8xf32>
    %cst_45 = arith.constant dense<0.000000e+00> : vector<4x8xf32>
    %196 = vector.multi_reduction <add>, %195, %cst_45 [2] : vector<4x8x8xf32> to vector<4x8xf32>
    %197 = vector.shape_cast %196 : vector<4x8xf32> to vector<4x8x1xf32>
    %198 = vector.extract_strided_slice %128 {offsets = [4, 0], sizes = [1, 8], strides = [1, 1]} : vector<10x8xf32> to vector<1x8xf32>
    %199 = vector.shape_cast %198 : vector<1x8xf32> to vector<1x1x8xf32>
    %200 = vector.broadcast %197 : vector<4x8x1xf32> to vector<4x8x8xf32>
    %201 = vector.broadcast %199 : vector<1x1x8xf32> to vector<4x8x8xf32>
    %202 = arith.mulf %200, %201 : vector<4x8x8xf32>
    %203 = arith.addf %188, %202 : vector<4x8x8xf32>
    %c5_i32_46 = arith.constant 5 : i32
    %204 = vector.broadcast %c5_i32_46 : i32 to vector<8x8xi32>
    %205 = arith.cmpi eq, %12, %204 : vector<8x8xi32>
    %206 = vector.shape_cast %205 : vector<8x8xi1> to vector<1x8x8xi1>
    %cst_47 = arith.constant 0.000000e+00 : f32
    %207 = vector.shape_cast %206 : vector<1x8x8xi1> to vector<1x8x8xi1>
    %208 = vector.broadcast %207 : vector<1x8x8xi1> to vector<4x8x8xi1>
    %209 = vector.broadcast %cst_47 : f32 to vector<4x8x8xf32>
    %210 = arith.select %208, %125, %209 : vector<4x8x8xi1>, vector<4x8x8xf32>
    %cst_48 = arith.constant dense<0.000000e+00> : vector<4x8xf32>
    %211 = vector.multi_reduction <add>, %210, %cst_48 [2] : vector<4x8x8xf32> to vector<4x8xf32>
    %212 = vector.shape_cast %211 : vector<4x8xf32> to vector<4x8x1xf32>
    %213 = vector.extract_strided_slice %128 {offsets = [5, 0], sizes = [1, 8], strides = [1, 1]} : vector<10x8xf32> to vector<1x8xf32>
    %214 = vector.shape_cast %213 : vector<1x8xf32> to vector<1x1x8xf32>
    %215 = vector.broadcast %212 : vector<4x8x1xf32> to vector<4x8x8xf32>
    %216 = vector.broadcast %214 : vector<1x1x8xf32> to vector<4x8x8xf32>
    %217 = arith.mulf %215, %216 : vector<4x8x8xf32>
    %218 = arith.addf %203, %217 : vector<4x8x8xf32>
    %c6_i32_49 = arith.constant 6 : i32
    %219 = vector.broadcast %c6_i32_49 : i32 to vector<8x8xi32>
    %220 = arith.cmpi eq, %12, %219 : vector<8x8xi32>
    %221 = vector.shape_cast %220 : vector<8x8xi1> to vector<1x8x8xi1>
    %cst_50 = arith.constant 0.000000e+00 : f32
    %222 = vector.shape_cast %221 : vector<1x8x8xi1> to vector<1x8x8xi1>
    %223 = vector.broadcast %222 : vector<1x8x8xi1> to vector<4x8x8xi1>
    %224 = vector.broadcast %cst_50 : f32 to vector<4x8x8xf32>
    %225 = arith.select %223, %125, %224 : vector<4x8x8xi1>, vector<4x8x8xf32>
    %cst_51 = arith.constant dense<0.000000e+00> : vector<4x8xf32>
    %226 = vector.multi_reduction <add>, %225, %cst_51 [2] : vector<4x8x8xf32> to vector<4x8xf32>
    %227 = vector.shape_cast %226 : vector<4x8xf32> to vector<4x8x1xf32>
    %228 = vector.extract_strided_slice %128 {offsets = [6, 0], sizes = [1, 8], strides = [1, 1]} : vector<10x8xf32> to vector<1x8xf32>
    %229 = vector.shape_cast %228 : vector<1x8xf32> to vector<1x1x8xf32>
    %230 = vector.broadcast %227 : vector<4x8x1xf32> to vector<4x8x8xf32>
    %231 = vector.broadcast %229 : vector<1x1x8xf32> to vector<4x8x8xf32>
    %232 = arith.mulf %230, %231 : vector<4x8x8xf32>
    %233 = arith.addf %218, %232 : vector<4x8x8xf32>
    %c7_i32_52 = arith.constant 7 : i32
    %234 = vector.broadcast %c7_i32_52 : i32 to vector<8x8xi32>
    %235 = arith.cmpi eq, %12, %234 : vector<8x8xi32>
    %236 = vector.shape_cast %235 : vector<8x8xi1> to vector<1x8x8xi1>
    %cst_53 = arith.constant 0.000000e+00 : f32
    %237 = vector.shape_cast %236 : vector<1x8x8xi1> to vector<1x8x8xi1>
    %238 = vector.broadcast %237 : vector<1x8x8xi1> to vector<4x8x8xi1>
    %239 = vector.broadcast %cst_53 : f32 to vector<4x8x8xf32>
    %240 = arith.select %238, %125, %239 : vector<4x8x8xi1>, vector<4x8x8xf32>
    %cst_54 = arith.constant dense<0.000000e+00> : vector<4x8xf32>
    %241 = vector.multi_reduction <add>, %240, %cst_54 [2] : vector<4x8x8xf32> to vector<4x8xf32>
    %242 = vector.shape_cast %241 : vector<4x8xf32> to vector<4x8x1xf32>
    %243 = vector.extract_strided_slice %128 {offsets = [7, 0], sizes = [1, 8], strides = [1, 1]} : vector<10x8xf32> to vector<1x8xf32>
    %244 = vector.shape_cast %243 : vector<1x8xf32> to vector<1x1x8xf32>
    %245 = vector.broadcast %242 : vector<4x8x1xf32> to vector<4x8x8xf32>
    %246 = vector.broadcast %244 : vector<1x1x8xf32> to vector<4x8x8xf32>
    %247 = arith.mulf %245, %246 : vector<4x8x8xf32>
    %248 = arith.addf %233, %247 : vector<4x8x8xf32>
    %249 = arith.truncf %248 : vector<4x8x8xf32> to vector<4x8x8xbf16>
    %cst_55 = arith.constant 0.000000e+00 : f32
    %250 = vector.broadcast %cst_55 : f32 to vector<8x32xf32>
    %251 = vector.extract_strided_slice %249 {offsets = [0, 0, 0], sizes = [1, 8, 8], strides = [1, 1, 1]} : vector<4x8x8xbf16> to vector<1x8x8xbf16>
    %252 = vector.shape_cast %251 : vector<1x8x8xbf16> to vector<8x8xbf16>
    %c0_56 = arith.constant 0 : index
    %c0_57 = arith.constant 0 : index
    %c0_58 = arith.constant 0 : index
    %253 = vector.load %arg7[%c0_56, %c0_57, %c0_58] : memref<4x8x32xbf16, #tpu.memory_space<vmem>>, vector<1x8x32xbf16>
    %254 = vector.shape_cast %253 : vector<1x8x32xbf16> to vector<8x32xbf16>
    %cst_59 = arith.constant dense<0.000000e+00> : vector<8x32xf32>
    %255 = tpu.matmul %252, %254, %cst_59 {dimension_numbers = #tpu.dot_dimension_numbers<[1], [0], [0], [1], [0, 0, 1, 1], [], []>} : vector<8x8xbf16>, vector<8x32xbf16>, vector<8x32xf32> -> vector<8x32xf32>
    %256 = arith.addf %250, %255 : vector<8x32xf32>
    %257 = vector.extract_strided_slice %249 {offsets = [1, 0, 0], sizes = [1, 8, 8], strides = [1, 1, 1]} : vector<4x8x8xbf16> to vector<1x8x8xbf16>
    %258 = vector.shape_cast %257 : vector<1x8x8xbf16> to vector<8x8xbf16>
    %c1 = arith.constant 1 : index
    %c0_60 = arith.constant 0 : index
    %c0_61 = arith.constant 0 : index
    %259 = vector.load %arg7[%c1, %c0_60, %c0_61] : memref<4x8x32xbf16, #tpu.memory_space<vmem>>, vector<1x8x32xbf16>
    %260 = vector.shape_cast %259 : vector<1x8x32xbf16> to vector<8x32xbf16>
    %cst_62 = arith.constant dense<0.000000e+00> : vector<8x32xf32>
    %261 = tpu.matmul %258, %260, %cst_62 {dimension_numbers = #tpu.dot_dimension_numbers<[1], [0], [0], [1], [0, 0, 1, 1], [], []>} : vector<8x8xbf16>, vector<8x32xbf16>, vector<8x32xf32> -> vector<8x32xf32>
    %262 = arith.addf %256, %261 : vector<8x32xf32>
    %263 = vector.extract_strided_slice %249 {offsets = [2, 0, 0], sizes = [1, 8, 8], strides = [1, 1, 1]} : vector<4x8x8xbf16> to vector<1x8x8xbf16>
    %264 = vector.shape_cast %263 : vector<1x8x8xbf16> to vector<8x8xbf16>
    %c2 = arith.constant 2 : index
    %c0_63 = arith.constant 0 : index
    %c0_64 = arith.constant 0 : index
    %265 = vector.load %arg7[%c2, %c0_63, %c0_64] : memref<4x8x32xbf16, #tpu.memory_space<vmem>>, vector<1x8x32xbf16>
    %266 = vector.shape_cast %265 : vector<1x8x32xbf16> to vector<8x32xbf16>
    %cst_65 = arith.constant dense<0.000000e+00> : vector<8x32xf32>
    %267 = tpu.matmul %264, %266, %cst_65 {dimension_numbers = #tpu.dot_dimension_numbers<[1], [0], [0], [1], [0, 0, 1, 1], [], []>} : vector<8x8xbf16>, vector<8x32xbf16>, vector<8x32xf32> -> vector<8x32xf32>
    %268 = arith.addf %262, %267 : vector<8x32xf32>
    %269 = vector.extract_strided_slice %249 {offsets = [3, 0, 0], sizes = [1, 8, 8], strides = [1, 1, 1]} : vector<4x8x8xbf16> to vector<1x8x8xbf16>
    %270 = vector.shape_cast %269 : vector<1x8x8xbf16> to vector<8x8xbf16>
    %c3 = arith.constant 3 : index
    %c0_66 = arith.constant 0 : index
    %c0_67 = arith.constant 0 : index
    %271 = vector.load %arg7[%c3, %c0_66, %c0_67] : memref<4x8x32xbf16, #tpu.memory_space<vmem>>, vector<1x8x32xbf16>
    %272 = vector.shape_cast %271 : vector<1x8x32xbf16> to vector<8x32xbf16>
    %cst_68 = arith.constant dense<0.000000e+00> : vector<8x32xf32>
    %273 = tpu.matmul %270, %272, %cst_68 {dimension_numbers = #tpu.dot_dimension_numbers<[1], [0], [0], [1], [0, 0, 1, 1], [], []>} : vector<8x8xbf16>, vector<8x32xbf16>, vector<8x32xf32> -> vector<8x32xf32>
    %274 = arith.addf %268, %273 : vector<8x32xf32>
    %c0_i32_69 = arith.constant 0 : i32
    %275 = arith.cmpi eq, %arg1, %c0_i32_69 : i32
    %276 = arith.extui %275 : i1 to i32
    %c0_i32_70 = arith.constant 0 : i32
    %277 = arith.cmpi ne, %276, %c0_i32_70 : i32
    scf.if %277 {
      %c0_73 = arith.constant 0 : index
      %c0_74 = arith.constant 0 : index
      %281 = vector.load %arg8[%c0_73, %c0_74] : memref<1x32xf32, #tpu.memory_space<vmem>>, vector<1x32xf32>
      %282 = vector.broadcast %281 : vector<1x32xf32> to vector<8x32xf32>
      %283 = arith.addf %274, %282 : vector<8x32xf32>
      %c0_75 = arith.constant 0 : index
      %c0_76 = arith.constant 0 : index
      %c0_77 = arith.constant 0 : index
      %284 = vector.load %arg9[%c0_75, %c0_76, %c0_77] : memref<1x8x32xf32, #tpu.memory_space<vmem>>, vector<1x8x32xf32>
      %285 = vector.shape_cast %284 : vector<1x8x32xf32> to vector<8x32xf32>
      %286 = vector.shape_cast %283 : vector<8x32xf32> to vector<1x8x32xf32>
      tpu.vector_store %arg9[%c0_75, %c0_76, %c0_77], %286 {strides = array<i32>} : memref<1x8x32xf32, #tpu.memory_space<vmem>>, vector<1x8x32xf32>,
    } else {
    }
    %c0_i32_71 = arith.constant 0 : i32
    %278 = arith.cmpi sgt, %arg1, %c0_i32_71 : i32
    %279 = arith.extui %278 : i1 to i32
    %c0_i32_72 = arith.constant 0 : i32
    %280 = arith.cmpi ne, %279, %c0_i32_72 : i32
    scf.if %280 {
      %c0_73 = arith.constant 0 : index
      %c0_74 = arith.constant 0 : index
      %c0_75 = arith.constant 0 : index
      %281 = vector.load %arg9[%c0_73, %c0_74, %c0_75] : memref<1x8x32xf32, #tpu.memory_space<vmem>>, vector<1x8x32xf32>
      %282 = vector.shape_cast %281 : vector<1x8x32xf32> to vector<8x32xf32>
      %283 = arith.addf %282, %274 : vector<8x32xf32>
      %c0_76 = arith.constant 0 : index
      %c0_77 = arith.constant 0 : index
      %c0_78 = arith.constant 0 : index
      %284 = vector.load %arg9[%c0_76, %c0_77, %c0_78] : memref<1x8x32xf32, #tpu.memory_space<vmem>>, vector<1x8x32xf32>
      %285 = vector.shape_cast %284 : vector<1x8x32xf32> to vector<8x32xf32>
      %286 = vector.shape_cast %283 : vector<8x32xf32> to vector<1x8x32xf32>
      tpu.vector_store %arg9[%c0_76, %c0_77, %c0_78], %286 {strides = array<i32>} : memref<1x8x32xf32, #tpu.memory_space<vmem>>, vector<1x8x32xf32>,
    } else {
    }
    return
  }
  func.func @transform_0(%arg0: i32, %arg1: i32) -> (i32, i32, i32, i32) {
    %c0_i32 = arith.constant 0 : i32
    %c0_i32_0 = arith.constant 0 : i32
    %c0_i32_1 = arith.constant 0 : i32
    return %arg0, %arg1, %c0_i32, %c0_i32_0 : i32, i32, i32, i32
  }
  func.func @transform_1(%arg0: i32, %arg1: i32) -> (i32, i32, i32, i32) {
    %c0_i32 = arith.constant 0 : i32
    %c0_i32_0 = arith.constant 0 : i32
    %c0_i32_1 = arith.constant 0 : i32
    return %arg0, %arg1, %c0_i32, %c0_i32_0 : i32, i32, i32, i32
  }
  func.func @transform_2(%arg0: i32, %arg1: i32) -> (i32, i32, i32, i32) {
    %c0_i32 = arith.constant 0 : i32
    %c0_i32_0 = arith.constant 0 : i32
    %c0_i32_1 = arith.constant 0 : i32
    return %arg0, %arg1, %c0_i32, %c0_i32_0 : i32, i32, i32, i32
  }
  func.func @transform_3(%arg0: i32, %arg1: i32) -> (i32, i32) {
    %c0_i32 = arith.constant 0 : i32
    %c0_i32_0 = arith.constant 0 : i32
    %c0_i32_1 = arith.constant 0 : i32
    return %c0_i32, %c0_i32_0 : i32, i32
  }
  func.func @transform_4(%arg0: i32, %arg1: i32) -> (i32, i32) {
    %c0_i32 = arith.constant 0 : i32
    %c0_i32_0 = arith.constant 0 : i32
    %c0_i32_1 = arith.constant 0 : i32
    return %c0_i32, %c0_i32_0 : i32, i32
  }
  func.func @transform_5(%arg0: i32, %arg1: i32) -> (i32, i32, i32) {
    %c0_i32 = arith.constant 0 : i32
    %c0_i32_0 = arith.constant 0 : i32
    %c0_i32_1 = arith.constant 0 : i32
    return %arg1, %c0_i32, %c0_i32_0 : i32, i32, i32
  }
  func.func @transform_6(%arg0: i32, %arg1: i32) -> (i32, i32) {
    %c0_i32 = arith.constant 0 : i32
    %c0_i32_0 = arith.constant 0 : i32
    %c0_i32_1 = arith.constant 0 : i32
    return %c0_i32, %c0_i32_0 : i32, i32
  }
  func.func @transform_7(%arg0: i32, %arg1: i32) -> (i32, i32, i32) {
    %c0_i32 = arith.constant 0 : i32
    %c0_i32_0 = arith.constant 0 : i32
    %c0_i32_1 = arith.constant 0 : i32
    return %arg0, %c0_i32, %c0_i32_0 : i32, i32, i32
  }
}

module attributes {stable_mosaic.version = 11 : i64} {
  func.func @_linear_kernel(%arg0: i32, %arg1: i32, %arg2: i32, %arg3: memref<16x32xbf16, #tpu.memory_space<vmem>>, %arg4: memref<32x64xbf16, #tpu.memory_space<vmem>>, %arg5: memref<1x64xf32, #tpu.memory_space<vmem>>, %arg6: memref<16x64xbf16, #tpu.memory_space<vmem>>, %arg7: memref<16x64xf32, #tpu.memory_space<vmem>>) attributes {dimension_semantics = [#tpu.dimension_semantics<parallel>, #tpu.dimension_semantics<parallel>, #tpu.dimension_semantics<arbitrary>], iteration_bounds = array<i64: 1, 1, 1>, scalar_prefetch = 0 : i64, scratch_operands = 1 : i64, tpu.core_type = #tpu.core_type<tc>, window_params = [{transform_indices = @transform_0, window_bounds = array<i64: 16, 32>}, {transform_indices = @transform_1, window_bounds = array<i64: 32, 64>}, {transform_indices = @transform_2, window_bounds = array<i64: 1, 64>}, {transform_indices = @transform_3, window_bounds = array<i64: 16, 64>}]} {
    %c0_i32 = arith.constant 0 : i32
    %0 = arith.cmpi eq, %arg2, %c0_i32 : i32
    %1 = arith.extui %0 : i1 to i32
    %c0_i32_0 = arith.constant 0 : i32
    %2 = arith.cmpi ne, %1, %c0_i32_0 : i32
    scf.if %2 {
      %cst_10 = arith.constant 0.000000e+00 : f32
      %12 = vector.broadcast %cst_10 : f32 to vector<16x64xf32>
      %c0_11 = arith.constant 0 : index
      %c0_12 = arith.constant 0 : index
      %13 = vector.load %arg7[%c0_11, %c0_12] : memref<16x64xf32, #tpu.memory_space<vmem>>, vector<16x64xf32>
      tpu.vector_store %arg7[%c0_11, %c0_12], %12 {strides = array<i32>} : memref<16x64xf32, #tpu.memory_space<vmem>>, vector<16x64xf32>,
    } else {
    }
    %c0 = arith.constant 0 : index
    %c0_1 = arith.constant 0 : index
    %3 = vector.load %arg7[%c0, %c0_1] : memref<16x64xf32, #tpu.memory_space<vmem>>, vector<16x64xf32>
    %c0_2 = arith.constant 0 : index
    %c0_3 = arith.constant 0 : index
    %4 = vector.load %arg3[%c0_2, %c0_3] : memref<16x32xbf16, #tpu.memory_space<vmem>>, vector<16x32xbf16>
    %c0_4 = arith.constant 0 : index
    %c0_5 = arith.constant 0 : index
    %5 = vector.load %arg4[%c0_4, %c0_5] : memref<32x64xbf16, #tpu.memory_space<vmem>>, vector<32x64xbf16>
    %cst = arith.constant dense<0.000000e+00> : vector<16x64xf32>
    %6 = tpu.matmul %4, %5, %cst {dimension_numbers = #tpu.dot_dimension_numbers<[1], [0], [0], [1], [0, 0, 1, 1], [], []>} : vector<16x32xbf16>, vector<32x64xbf16>, vector<16x64xf32> -> vector<16x64xf32>
    %7 = arith.addf %3, %6 : vector<16x64xf32>
    %c0_6 = arith.constant 0 : index
    %c0_7 = arith.constant 0 : index
    %8 = vector.load %arg7[%c0_6, %c0_7] : memref<16x64xf32, #tpu.memory_space<vmem>>, vector<16x64xf32>
    tpu.vector_store %arg7[%c0_6, %c0_7], %7 {strides = array<i32>} : memref<16x64xf32, #tpu.memory_space<vmem>>, vector<16x64xf32>,
    %c0_i32_8 = arith.constant 0 : i32
    %9 = arith.cmpi eq, %arg2, %c0_i32_8 : i32
    %10 = arith.extui %9 : i1 to i32
    %c0_i32_9 = arith.constant 0 : i32
    %11 = arith.cmpi ne, %10, %c0_i32_9 : i32
    scf.if %11 {
      %c0_10 = arith.constant 0 : index
      %c0_11 = arith.constant 0 : index
      %12 = vector.load %arg7[%c0_10, %c0_11] : memref<16x64xf32, #tpu.memory_space<vmem>>, vector<16x64xf32>
      %c0_12 = arith.constant 0 : index
      %c0_13 = arith.constant 0 : index
      %13 = vector.load %arg5[%c0_12, %c0_13] : memref<1x64xf32, #tpu.memory_space<vmem>>, vector<1x64xf32>
      %14 = vector.broadcast %13 : vector<1x64xf32> to vector<16x64xf32>
      %15 = arith.addf %12, %14 : vector<16x64xf32>
      %cst_14 = arith.constant 0.000000e+00 : f32
      %16 = vector.broadcast %cst_14 : f32 to vector<16x64xf32>
      %17 = arith.maximumf %15, %16 : vector<16x64xf32>
      %18 = arith.truncf %17 : vector<16x64xf32> to vector<16x64xbf16>
      %c0_15 = arith.constant 0 : index
      %c0_16 = arith.constant 0 : index
      %19 = vector.load %arg6[%c0_15, %c0_16] : memref<16x64xbf16, #tpu.memory_space<vmem>>, vector<16x64xbf16>
      tpu.vector_store %arg6[%c0_15, %c0_16], %18 {strides = array<i32>} : memref<16x64xbf16, #tpu.memory_space<vmem>>, vector<16x64xbf16>,
    } else {
    }
    return
  }
  func.func @transform_0(%arg0: i32, %arg1: i32, %arg2: i32) -> (i32, i32) {
    %c0_i32 = arith.constant 0 : i32
    return %arg0, %arg2 : i32, i32
  }
  func.func @transform_1(%arg0: i32, %arg1: i32, %arg2: i32) -> (i32, i32) {
    %c0_i32 = arith.constant 0 : i32
    return %arg2, %arg1 : i32, i32
  }
  func.func @transform_2(%arg0: i32, %arg1: i32, %arg2: i32) -> (i32, i32) {
    %c0_i32 = arith.constant 0 : i32
    %c0_i32_0 = arith.constant 0 : i32
    return %c0_i32, %arg1 : i32, i32
  }
  func.func @transform_3(%arg0: i32, %arg1: i32, %arg2: i32) -> (i32, i32) {
    %c0_i32 = arith.constant 0 : i32
    return %arg0, %arg1 : i32, i32
  }
}

module attributes {stable_mosaic.version = 11 : i64} {
  func.func @_lin_res_ln_kernel(%arg0: i32, %arg1: i32, %arg2: memref<16x64xbf16, #tpu.memory_space<vmem>>, %arg3: memref<16x32xf32, #tpu.memory_space<vmem>>, %arg4: memref<64x32xbf16, #tpu.memory_space<vmem>>, %arg5: memref<1x32xf32, #tpu.memory_space<vmem>>, %arg6: memref<1x32xf32, #tpu.memory_space<vmem>>, %arg7: memref<1x32xf32, #tpu.memory_space<vmem>>, %arg8: memref<16x32xf32, #tpu.memory_space<vmem>>, %arg9: memref<16x32xf32, #tpu.memory_space<vmem>>) attributes {dimension_semantics = [#tpu.dimension_semantics<parallel>, #tpu.dimension_semantics<arbitrary>], iteration_bounds = array<i64: 1, 1>, scalar_prefetch = 0 : i64, scratch_operands = 1 : i64, tpu.core_type = #tpu.core_type<tc>, window_params = [{transform_indices = @transform_0, window_bounds = array<i64: 16, 64>}, {transform_indices = @transform_1, window_bounds = array<i64: 16, 32>}, {transform_indices = @transform_2, window_bounds = array<i64: 64, 32>}, {pipeline_mode = #tpu.pipeline_mode<synchronous>, transform_indices = @transform_3, window_bounds = array<i64: 1, 32>}, {pipeline_mode = #tpu.pipeline_mode<synchronous>, transform_indices = @transform_4, window_bounds = array<i64: 1, 32>}, {pipeline_mode = #tpu.pipeline_mode<synchronous>, transform_indices = @transform_5, window_bounds = array<i64: 1, 32>}, {transform_indices = @transform_6, window_bounds = array<i64: 16, 32>}]} {
    %c0_i32 = arith.constant 0 : i32
    %0 = arith.cmpi eq, %arg1, %c0_i32 : i32
    %1 = arith.extui %0 : i1 to i32
    %c0_i32_0 = arith.constant 0 : i32
    %2 = arith.cmpi ne, %1, %c0_i32_0 : i32
    scf.if %2 {
      %cst_10 = arith.constant 0.000000e+00 : f32
      %12 = vector.broadcast %cst_10 : f32 to vector<16x32xf32>
      %c0_11 = arith.constant 0 : index
      %c0_12 = arith.constant 0 : index
      %13 = vector.load %arg9[%c0_11, %c0_12] : memref<16x32xf32, #tpu.memory_space<vmem>>, vector<16x32xf32>
      tpu.vector_store %arg9[%c0_11, %c0_12], %12 {strides = array<i32>} : memref<16x32xf32, #tpu.memory_space<vmem>>, vector<16x32xf32>,
    } else {
    }
    %c0 = arith.constant 0 : index
    %c0_1 = arith.constant 0 : index
    %3 = vector.load %arg9[%c0, %c0_1] : memref<16x32xf32, #tpu.memory_space<vmem>>, vector<16x32xf32>
    %c0_2 = arith.constant 0 : index
    %c0_3 = arith.constant 0 : index
    %4 = vector.load %arg2[%c0_2, %c0_3] : memref<16x64xbf16, #tpu.memory_space<vmem>>, vector<16x64xbf16>
    %c0_4 = arith.constant 0 : index
    %c0_5 = arith.constant 0 : index
    %5 = vector.load %arg4[%c0_4, %c0_5] : memref<64x32xbf16, #tpu.memory_space<vmem>>, vector<64x32xbf16>
    %cst = arith.constant dense<0.000000e+00> : vector<16x32xf32>
    %6 = tpu.matmul %4, %5, %cst {dimension_numbers = #tpu.dot_dimension_numbers<[1], [0], [0], [1], [0, 0, 1, 1], [], []>} : vector<16x64xbf16>, vector<64x32xbf16>, vector<16x32xf32> -> vector<16x32xf32>
    %7 = arith.addf %3, %6 : vector<16x32xf32>
    %c0_6 = arith.constant 0 : index
    %c0_7 = arith.constant 0 : index
    %8 = vector.load %arg9[%c0_6, %c0_7] : memref<16x32xf32, #tpu.memory_space<vmem>>, vector<16x32xf32>
    tpu.vector_store %arg9[%c0_6, %c0_7], %7 {strides = array<i32>} : memref<16x32xf32, #tpu.memory_space<vmem>>, vector<16x32xf32>,
    %c0_i32_8 = arith.constant 0 : i32
    %9 = arith.cmpi eq, %arg1, %c0_i32_8 : i32
    %10 = arith.extui %9 : i1 to i32
    %c0_i32_9 = arith.constant 0 : i32
    %11 = arith.cmpi ne, %10, %c0_i32_9 : i32
    scf.if %11 {
      %c0_10 = arith.constant 0 : index
      %c0_11 = arith.constant 0 : index
      %12 = vector.load %arg3[%c0_10, %c0_11] : memref<16x32xf32, #tpu.memory_space<vmem>>, vector<16x32xf32>
      %c0_12 = arith.constant 0 : index
      %c0_13 = arith.constant 0 : index
      %13 = vector.load %arg9[%c0_12, %c0_13] : memref<16x32xf32, #tpu.memory_space<vmem>>, vector<16x32xf32>
      %14 = arith.addf %12, %13 : vector<16x32xf32>
      %c0_14 = arith.constant 0 : index
      %c0_15 = arith.constant 0 : index
      %15 = vector.load %arg5[%c0_14, %c0_15] : memref<1x32xf32, #tpu.memory_space<vmem>>, vector<1x32xf32>
      %16 = vector.broadcast %15 : vector<1x32xf32> to vector<16x32xf32>
      %17 = arith.addf %14, %16 : vector<16x32xf32>
      %cst_16 = arith.constant dense<0.000000e+00> : vector<16xf32>
      %18 = vector.multi_reduction <add>, %17, %cst_16 [1] : vector<16x32xf32> to vector<16xf32>
      %19 = vector.shape_cast %18 : vector<16xf32> to vector<16x1xf32>
      %cst_17 = arith.constant 3.200000e+01 : f32
      %20 = vector.broadcast %cst_17 : f32 to vector<16x1xf32>
      %21 = arith.divf %19, %20 : vector<16x1xf32>
      %22 = vector.broadcast %21 : vector<16x1xf32> to vector<16x32xf32>
      %23 = arith.subf %17, %22 : vector<16x32xf32>
      %24 = arith.mulf %23, %23 : vector<16x32xf32>
      %cst_18 = arith.constant dense<0.000000e+00> : vector<16xf32>
      %25 = vector.multi_reduction <add>, %24, %cst_18 [1] : vector<16x32xf32> to vector<16xf32>
      %26 = vector.shape_cast %25 : vector<16xf32> to vector<16x1xf32>
      %cst_19 = arith.constant 3.200000e+01 : f32
      %27 = vector.broadcast %cst_19 : f32 to vector<16x1xf32>
      %28 = arith.divf %26, %27 : vector<16x1xf32>
      %cst_20 = arith.constant 9.99999974E-6 : f32
      %29 = vector.broadcast %cst_20 : f32 to vector<16x1xf32>
      %30 = arith.addf %28, %29 : vector<16x1xf32>
      %31 = math.rsqrt %30 : vector<16x1xf32>
      %32 = vector.broadcast %31 : vector<16x1xf32> to vector<16x32xf32>
      %33 = arith.mulf %23, %32 : vector<16x32xf32>
      %c0_21 = arith.constant 0 : index
      %c0_22 = arith.constant 0 : index
      %34 = vector.load %arg6[%c0_21, %c0_22] : memref<1x32xf32, #tpu.memory_space<vmem>>, vector<1x32xf32>
      %35 = vector.broadcast %34 : vector<1x32xf32> to vector<16x32xf32>
      %36 = arith.mulf %33, %35 : vector<16x32xf32>
      %c0_23 = arith.constant 0 : index
      %c0_24 = arith.constant 0 : index
      %37 = vector.load %arg7[%c0_23, %c0_24] : memref<1x32xf32, #tpu.memory_space<vmem>>, vector<1x32xf32>
      %38 = vector.broadcast %37 : vector<1x32xf32> to vector<16x32xf32>
      %39 = arith.addf %36, %38 : vector<16x32xf32>
      %c0_25 = arith.constant 0 : index
      %c0_26 = arith.constant 0 : index
      %40 = vector.load %arg8[%c0_25, %c0_26] : memref<16x32xf32, #tpu.memory_space<vmem>>, vector<16x32xf32>
      tpu.vector_store %arg8[%c0_25, %c0_26], %39 {strides = array<i32>} : memref<16x32xf32, #tpu.memory_space<vmem>>, vector<16x32xf32>,
    } else {
    }
    return
  }
  func.func @transform_0(%arg0: i32, %arg1: i32) -> (i32, i32) {
    %c0_i32 = arith.constant 0 : i32
    return %arg0, %arg1 : i32, i32
  }
  func.func @transform_1(%arg0: i32, %arg1: i32) -> (i32, i32) {
    %c0_i32 = arith.constant 0 : i32
    %c0_i32_0 = arith.constant 0 : i32
    return %arg0, %c0_i32 : i32, i32
  }
  func.func @transform_2(%arg0: i32, %arg1: i32) -> (i32, i32) {
    %c0_i32 = arith.constant 0 : i32
    %c0_i32_0 = arith.constant 0 : i32
    return %arg1, %c0_i32 : i32, i32
  }
  func.func @transform_3(%arg0: i32, %arg1: i32) -> (i32, i32) {
    %c0_i32 = arith.constant 0 : i32
    %c0_i32_0 = arith.constant 0 : i32
    %c0_i32_1 = arith.constant 0 : i32
    return %c0_i32, %c0_i32_0 : i32, i32
  }
  func.func @transform_4(%arg0: i32, %arg1: i32) -> (i32, i32) {
    %c0_i32 = arith.constant 0 : i32
    %c0_i32_0 = arith.constant 0 : i32
    %c0_i32_1 = arith.constant 0 : i32
    return %c0_i32, %c0_i32_0 : i32, i32
  }
  func.func @transform_5(%arg0: i32, %arg1: i32) -> (i32, i32) {
    %c0_i32 = arith.constant 0 : i32
    %c0_i32_0 = arith.constant 0 : i32
    %c0_i32_1 = arith.constant 0 : i32
    return %c0_i32, %c0_i32_0 : i32, i32
  }
  func.func @transform_6(%arg0: i32, %arg1: i32) -> (i32, i32) {
    %c0_i32 = arith.constant 0 : i32
    %c0_i32_0 = arith.constant 0 : i32
    return %arg0, %c0_i32 : i32, i32
  }
}

module attributes {stable_mosaic.version = 11 : i64} {
  func.func @_rel_attn_kernel(%arg0: i32, %arg1: i32, %arg2: memref<1x4x8x8xbf16, #tpu.memory_space<vmem>>, %arg3: memref<1x4x8x8xbf16, #tpu.memory_space<vmem>>, %arg4: memref<1x4x8x8xbf16, #tpu.memory_space<vmem>>, %arg5: memref<10x8xbf16, #tpu.memory_space<vmem>>, %arg6: memref<10x8xf32, #tpu.memory_space<vmem>>, %arg7: memref<4x8x32xbf16, #tpu.memory_space<vmem>>, %arg8: memref<1x32xf32, #tpu.memory_space<vmem>>, %arg9: memref<1x8x32xf32, #tpu.memory_space<vmem>>, %arg10: memref<1x4x8x8xf32, #tpu.memory_space<vmem>>) attributes {dimension_semantics = [#tpu.dimension_semantics<parallel>, #tpu.dimension_semantics<arbitrary>], iteration_bounds = array<i64: 2, 1>, scalar_prefetch = 0 : i64, scratch_operands = 0 : i64, tpu.core_type = #tpu.core_type<tc>, window_params = [{transform_indices = @transform_0, window_bounds = array<i64: 1, 4, 8, 8>}, {transform_indices = @transform_1, window_bounds = array<i64: 1, 4, 8, 8>}, {transform_indices = @transform_2, window_bounds = array<i64: 1, 4, 8, 8>}, {pipeline_mode = #tpu.pipeline_mode<synchronous>, transform_indices = @transform_3, window_bounds = array<i64: 10, 8>}, {pipeline_mode = #tpu.pipeline_mode<synchronous>, transform_indices = @transform_4, window_bounds = array<i64: 10, 8>}, {transform_indices = @transform_5, window_bounds = array<i64: 4, 8, 32>}, {pipeline_mode = #tpu.pipeline_mode<synchronous>, transform_indices = @transform_6, window_bounds = array<i64: 1, 32>}, {transform_indices = @transform_7, window_bounds = array<i64: 1, 8, 32>}, {transform_indices = @transform_8, window_bounds = array<i64: 1, 4, 8, 8>}]} {
    %c0 = arith.constant 0 : index
    %c0_0 = arith.constant 0 : index
    %c0_1 = arith.constant 0 : index
    %c0_2 = arith.constant 0 : index
    %0 = vector.load %arg2[%c0, %c0_0, %c0_1, %c0_2] : memref<1x4x8x8xbf16, #tpu.memory_space<vmem>>, vector<1x4x8x8xbf16>
    %1 = vector.shape_cast %0 : vector<1x4x8x8xbf16> to vector<4x8x8xbf16>
    %c0_3 = arith.constant 0 : index
    %c0_4 = arith.constant 0 : index
    %c0_5 = arith.constant 0 : index
    %c0_6 = arith.constant 0 : index
    %2 = vector.load %arg3[%c0_3, %c0_4, %c0_5, %c0_6] : memref<1x4x8x8xbf16, #tpu.memory_space<vmem>>, vector<1x4x8x8xbf16>
    %3 = vector.shape_cast %2 : vector<1x4x8x8xbf16> to vector<4x8x8xbf16>
    %c0_7 = arith.constant 0 : index
    %c0_8 = arith.constant 0 : index
    %c0_9 = arith.constant 0 : index
    %c0_10 = arith.constant 0 : index
    %4 = vector.load %arg4[%c0_7, %c0_8, %c0_9, %c0_10] : memref<1x4x8x8xbf16, #tpu.memory_space<vmem>>, vector<1x4x8x8xbf16>
    %5 = vector.shape_cast %4 : vector<1x4x8x8xbf16> to vector<4x8x8xbf16>
    %6 = tpu.iota {dimensions = array<i32: 0>} : vector<8x8xi32>
    %7 = tpu.iota {dimensions = array<i32: 1>} : vector<8x8xi32>
    %8 = arith.subi %6, %7 : vector<8x8xi32>
    %c0_i32 = arith.constant 0 : i32
    %c9_i32 = arith.constant 9 : i32
    %9 = vector.broadcast %c0_i32 : i32 to vector<8x8xi32>
    %10 = arith.maxsi %9, %8 : vector<8x8xi32>
    %11 = vector.broadcast %c9_i32 : i32 to vector<8x8xi32>
    %12 = arith.minsi %11, %10 : vector<8x8xi32>
    "tpu.trace_start"() <{level = 10 : i32, message = "hqd,hkd->hqk"}> : () -> ()
    %cst = arith.constant dense<0.000000e+00> : vector<4x8x8xf32>
    %13 = tpu.matmul %1, %3, %cst {dimension_numbers = #tpu.dot_dimension_numbers<[2], [2], [1], [1], [0, 0, 0, 1, 1, 1], [0], [0]>} : vector<4x8x8xbf16>, vector<4x8x8xbf16>, vector<4x8x8xf32> -> vector<4x8x8xf32>
    "tpu.trace_stop"() : () -> ()
    %14 = vector.shape_cast %1 : vector<4x8x8xbf16> to vector<32x8xbf16>
    %c0_11 = arith.constant 0 : index
    %c0_12 = arith.constant 0 : index
    %15 = vector.load %arg5[%c0_11, %c0_12] : memref<10x8xbf16, #tpu.memory_space<vmem>>, vector<10x8xbf16>
    "tpu.trace_start"() <{level = 10 : i32, message = "nd,pd->np"}> : () -> ()
    %cst_13 = arith.constant dense<0.000000e+00> : vector<32x10xf32>
    %16 = tpu.matmul %14, %15, %cst_13 {dimension_numbers = #tpu.dot_dimension_numbers<[1], [1], [0], [0], [0, 0, 1, 0], [], []>} : vector<32x8xbf16>, vector<10x8xbf16>, vector<32x10xf32> -> vector<32x10xf32>
    "tpu.trace_stop"() : () -> ()
    %17 = vector.shape_cast %16 : vector<32x10xf32> to vector<4x8x10xf32>
    %cst_14 = arith.constant 0.000000e+00 : f32
    %18 = vector.broadcast %cst_14 : f32 to vector<4x8x8xf32>
    %c0_i32_15 = arith.constant 0 : i32
    %19 = vector.broadcast %c0_i32_15 : i32 to vector<8x8xi32>
    %20 = arith.cmpi eq, %12, %19 : vector<8x8xi32>
    %21 = vector.shape_cast %20 : vector<8x8xi1> to vector<1x8x8xi1>
    %22 = vector.extract_strided_slice %17 {offsets = [0, 0, 0], sizes = [4, 8, 1], strides = [1, 1, 1]} : vector<4x8x10xf32> to vector<4x8x1xf32>
    %cst_16 = arith.constant 0.000000e+00 : f32
    %23 = vector.shape_cast %21 : vector<1x8x8xi1> to vector<1x8x8xi1>
    %24 = vector.broadcast %23 : vector<1x8x8xi1> to vector<4x8x8xi1>
    %25 = vector.shape_cast %22 : vector<4x8x1xf32> to vector<4x8x1xf32>
    %26 = vector.broadcast %25 : vector<4x8x1xf32> to vector<4x8x8xf32>
    %27 = vector.broadcast %cst_16 : f32 to vector<4x8x8xf32>
    %28 = arith.select %24, %26, %27 : vector<4x8x8xi1>, vector<4x8x8xf32>
    %29 = arith.addf %18, %28 : vector<4x8x8xf32>
    %c1_i32 = arith.constant 1 : i32
    %30 = vector.broadcast %c1_i32 : i32 to vector<8x8xi32>
    %31 = arith.cmpi eq, %12, %30 : vector<8x8xi32>
    %32 = vector.shape_cast %31 : vector<8x8xi1> to vector<1x8x8xi1>
    %33 = vector.extract_strided_slice %17 {offsets = [0, 0, 1], sizes = [4, 8, 1], strides = [1, 1, 1]} : vector<4x8x10xf32> to vector<4x8x1xf32>
    %cst_17 = arith.constant 0.000000e+00 : f32
    %34 = vector.shape_cast %32 : vector<1x8x8xi1> to vector<1x8x8xi1>
    %35 = vector.broadcast %34 : vector<1x8x8xi1> to vector<4x8x8xi1>
    %36 = vector.shape_cast %33 : vector<4x8x1xf32> to vector<4x8x1xf32>
    %37 = vector.broadcast %36 : vector<4x8x1xf32> to vector<4x8x8xf32>
    %38 = vector.broadcast %cst_17 : f32 to vector<4x8x8xf32>
    %39 = arith.select %35, %37, %38 : vector<4x8x8xi1>, vector<4x8x8xf32>
    %40 = arith.addf %29, %39 : vector<4x8x8xf32>
    %c2_i32 = arith.constant 2 : i32
    %41 = vector.broadcast %c2_i32 : i32 to vector<8x8xi32>
    %42 = arith.cmpi eq, %12, %41 : vector<8x8xi32>
    %43 = vector.shape_cast %42 : vector<8x8xi1> to vector<1x8x8xi1>
    %44 = vector.extract_strided_slice %17 {offsets = [0, 0, 2], sizes = [4, 8, 1], strides = [1, 1, 1]} : vector<4x8x10xf32> to vector<4x8x1xf32>
    %cst_18 = arith.constant 0.000000e+00 : f32
    %45 = vector.shape_cast %43 : vector<1x8x8xi1> to vector<1x8x8xi1>
    %46 = vector.broadcast %45 : vector<1x8x8xi1> to vector<4x8x8xi1>
    %47 = vector.shape_cast %44 : vector<4x8x1xf32> to vector<4x8x1xf32>
    %48 = vector.broadcast %47 : vector<4x8x1xf32> to vector<4x8x8xf32>
    %49 = vector.broadcast %cst_18 : f32 to vector<4x8x8xf32>
    %50 = arith.select %46, %48, %49 : vector<4x8x8xi1>, vector<4x8x8xf32>
    %51 = arith.addf %40, %50 : vector<4x8x8xf32>
    %c3_i32 = arith.constant 3 : i32
    %52 = vector.broadcast %c3_i32 : i32 to vector<8x8xi32>
    %53 = arith.cmpi eq, %12, %52 : vector<8x8xi32>
    %54 = vector.shape_cast %53 : vector<8x8xi1> to vector<1x8x8xi1>
    %55 = vector.extract_strided_slice %17 {offsets = [0, 0, 3], sizes = [4, 8, 1], strides = [1, 1, 1]} : vector<4x8x10xf32> to vector<4x8x1xf32>
    %cst_19 = arith.constant 0.000000e+00 : f32
    %56 = vector.shape_cast %54 : vector<1x8x8xi1> to vector<1x8x8xi1>
    %57 = vector.broadcast %56 : vector<1x8x8xi1> to vector<4x8x8xi1>
    %58 = vector.shape_cast %55 : vector<4x8x1xf32> to vector<4x8x1xf32>
    %59 = vector.broadcast %58 : vector<4x8x1xf32> to vector<4x8x8xf32>
    %60 = vector.broadcast %cst_19 : f32 to vector<4x8x8xf32>
    %61 = arith.select %57, %59, %60 : vector<4x8x8xi1>, vector<4x8x8xf32>
    %62 = arith.addf %51, %61 : vector<4x8x8xf32>
    %c4_i32 = arith.constant 4 : i32
    %63 = vector.broadcast %c4_i32 : i32 to vector<8x8xi32>
    %64 = arith.cmpi eq, %12, %63 : vector<8x8xi32>
    %65 = vector.shape_cast %64 : vector<8x8xi1> to vector<1x8x8xi1>
    %66 = vector.extract_strided_slice %17 {offsets = [0, 0, 4], sizes = [4, 8, 1], strides = [1, 1, 1]} : vector<4x8x10xf32> to vector<4x8x1xf32>
    %cst_20 = arith.constant 0.000000e+00 : f32
    %67 = vector.shape_cast %65 : vector<1x8x8xi1> to vector<1x8x8xi1>
    %68 = vector.broadcast %67 : vector<1x8x8xi1> to vector<4x8x8xi1>
    %69 = vector.shape_cast %66 : vector<4x8x1xf32> to vector<4x8x1xf32>
    %70 = vector.broadcast %69 : vector<4x8x1xf32> to vector<4x8x8xf32>
    %71 = vector.broadcast %cst_20 : f32 to vector<4x8x8xf32>
    %72 = arith.select %68, %70, %71 : vector<4x8x8xi1>, vector<4x8x8xf32>
    %73 = arith.addf %62, %72 : vector<4x8x8xf32>
    %c5_i32 = arith.constant 5 : i32
    %74 = vector.broadcast %c5_i32 : i32 to vector<8x8xi32>
    %75 = arith.cmpi eq, %12, %74 : vector<8x8xi32>
    %76 = vector.shape_cast %75 : vector<8x8xi1> to vector<1x8x8xi1>
    %77 = vector.extract_strided_slice %17 {offsets = [0, 0, 5], sizes = [4, 8, 1], strides = [1, 1, 1]} : vector<4x8x10xf32> to vector<4x8x1xf32>
    %cst_21 = arith.constant 0.000000e+00 : f32
    %78 = vector.shape_cast %76 : vector<1x8x8xi1> to vector<1x8x8xi1>
    %79 = vector.broadcast %78 : vector<1x8x8xi1> to vector<4x8x8xi1>
    %80 = vector.shape_cast %77 : vector<4x8x1xf32> to vector<4x8x1xf32>
    %81 = vector.broadcast %80 : vector<4x8x1xf32> to vector<4x8x8xf32>
    %82 = vector.broadcast %cst_21 : f32 to vector<4x8x8xf32>
    %83 = arith.select %79, %81, %82 : vector<4x8x8xi1>, vector<4x8x8xf32>
    %84 = arith.addf %73, %83 : vector<4x8x8xf32>
    %c6_i32 = arith.constant 6 : i32
    %85 = vector.broadcast %c6_i32 : i32 to vector<8x8xi32>
    %86 = arith.cmpi eq, %12, %85 : vector<8x8xi32>
    %87 = vector.shape_cast %86 : vector<8x8xi1> to vector<1x8x8xi1>
    %88 = vector.extract_strided_slice %17 {offsets = [0, 0, 6], sizes = [4, 8, 1], strides = [1, 1, 1]} : vector<4x8x10xf32> to vector<4x8x1xf32>
    %cst_22 = arith.constant 0.000000e+00 : f32
    %89 = vector.shape_cast %87 : vector<1x8x8xi1> to vector<1x8x8xi1>
    %90 = vector.broadcast %89 : vector<1x8x8xi1> to vector<4x8x8xi1>
    %91 = vector.shape_cast %88 : vector<4x8x1xf32> to vector<4x8x1xf32>
    %92 = vector.broadcast %91 : vector<4x8x1xf32> to vector<4x8x8xf32>
    %93 = vector.broadcast %cst_22 : f32 to vector<4x8x8xf32>
    %94 = arith.select %90, %92, %93 : vector<4x8x8xi1>, vector<4x8x8xf32>
    %95 = arith.addf %84, %94 : vector<4x8x8xf32>
    %c7_i32 = arith.constant 7 : i32
    %96 = vector.broadcast %c7_i32 : i32 to vector<8x8xi32>
    %97 = arith.cmpi eq, %12, %96 : vector<8x8xi32>
    %98 = vector.shape_cast %97 : vector<8x8xi1> to vector<1x8x8xi1>
    %99 = vector.extract_strided_slice %17 {offsets = [0, 0, 7], sizes = [4, 8, 1], strides = [1, 1, 1]} : vector<4x8x10xf32> to vector<4x8x1xf32>
    %cst_23 = arith.constant 0.000000e+00 : f32
    %100 = vector.shape_cast %98 : vector<1x8x8xi1> to vector<1x8x8xi1>
    %101 = vector.broadcast %100 : vector<1x8x8xi1> to vector<4x8x8xi1>
    %102 = vector.shape_cast %99 : vector<4x8x1xf32> to vector<4x8x1xf32>
    %103 = vector.broadcast %102 : vector<4x8x1xf32> to vector<4x8x8xf32>
    %104 = vector.broadcast %cst_23 : f32 to vector<4x8x8xf32>
    %105 = arith.select %101, %103, %104 : vector<4x8x8xi1>, vector<4x8x8xf32>
    %106 = arith.addf %95, %105 : vector<4x8x8xf32>
    %107 = arith.addf %13, %106 : vector<4x8x8xf32>
    %cst_24 = arith.constant 0.353553385 : f32
    %108 = vector.broadcast %cst_24 : f32 to vector<4x8x8xf32>
    %109 = arith.mulf %107, %108 : vector<4x8x8xf32>
    %110 = arith.cmpi sgt, %7, %6 : vector<8x8xi32>
    %111 = vector.shape_cast %110 : vector<8x8xi1> to vector<1x8x8xi1>
    %cst_25 = arith.constant -1.000000e+09 : f32
    %112 = vector.shape_cast %111 : vector<1x8x8xi1> to vector<1x8x8xi1>
    %113 = vector.broadcast %112 : vector<1x8x8xi1> to vector<4x8x8xi1>
    %114 = vector.broadcast %cst_25 : f32 to vector<4x8x8xf32>
    %115 = arith.select %113, %114, %109 : vector<4x8x8xi1>, vector<4x8x8xf32>
    %cst_26 = arith.constant dense<0xFF800000> : vector<4x8xf32>
    %116 = vector.multi_reduction <maximumf>, %115, %cst_26 [2] : vector<4x8x8xf32> to vector<4x8xf32>
    %117 = vector.shape_cast %116 : vector<4x8xf32> to vector<4x8x1xf32>
    %118 = vector.broadcast %117 : vector<4x8x1xf32> to vector<4x8x8xf32>
    %119 = arith.subf %115, %118 : vector<4x8x8xf32>
    %120 = math.exp %119 : vector<4x8x8xf32>
    %cst_27 = arith.constant dense<0.000000e+00> : vector<4x8xf32>
    %121 = vector.multi_reduction <add>, %120, %cst_27 [2] : vector<4x8x8xf32> to vector<4x8xf32>
    %122 = vector.shape_cast %121 : vector<4x8xf32> to vector<4x8x1xf32>
    %123 = tpu.reciprocal %122 {approx = true} : vector<4x8x1xf32> -> vector<4x8x1xf32>
    %124 = vector.broadcast %123 : vector<4x8x1xf32> to vector<4x8x8xf32>
    %125 = arith.mulf %120, %124 : vector<4x8x8xf32>
    %126 = arith.truncf %125 : vector<4x8x8xf32> to vector<4x8x8xbf16>
    "tpu.trace_start"() <{level = 10 : i32, message = "hqk,hkd->hqd"}> : () -> ()
    %cst_28 = arith.constant dense<0.000000e+00> : vector<4x8x8xf32>
    %127 = tpu.matmul %126, %5, %cst_28 {dimension_numbers = #tpu.dot_dimension_numbers<[2], [1], [1], [2], [0, 0, 0, 1, 1, 2], [0], [0]>} : vector<4x8x8xbf16>, vector<4x8x8xbf16>, vector<4x8x8xf32> -> vector<4x8x8xf32>
    "tpu.trace_stop"() : () -> ()
    %c0_29 = arith.constant 0 : index
    %c0_30 = arith.constant 0 : index
    %128 = vector.load %arg6[%c0_29, %c0_30] : memref<10x8xf32, #tpu.memory_space<vmem>>, vector<10x8xf32>
    %c0_i32_31 = arith.constant 0 : i32
    %129 = vector.broadcast %c0_i32_31 : i32 to vector<8x8xi32>
    %130 = arith.cmpi eq, %12, %129 : vector<8x8xi32>
    %131 = vector.shape_cast %130 : vector<8x8xi1> to vector<1x8x8xi1>
    %cst_32 = arith.constant 0.000000e+00 : f32
    %132 = vector.shape_cast %131 : vector<1x8x8xi1> to vector<1x8x8xi1>
    %133 = vector.broadcast %132 : vector<1x8x8xi1> to vector<4x8x8xi1>
    %134 = vector.broadcast %cst_32 : f32 to vector<4x8x8xf32>
    %135 = arith.select %133, %125, %134 : vector<4x8x8xi1>, vector<4x8x8xf32>
    %cst_33 = arith.constant dense<0.000000e+00> : vector<4x8xf32>
    %136 = vector.multi_reduction <add>, %135, %cst_33 [2] : vector<4x8x8xf32> to vector<4x8xf32>
    %137 = vector.shape_cast %136 : vector<4x8xf32> to vector<4x8x1xf32>
    %138 = vector.extract_strided_slice %128 {offsets = [0, 0], sizes = [1, 8], strides = [1, 1]} : vector<10x8xf32> to vector<1x8xf32>
    %139 = vector.shape_cast %138 : vector<1x8xf32> to vector<1x1x8xf32>
    %140 = vector.broadcast %137 : vector<4x8x1xf32> to vector<4x8x8xf32>
    %141 = vector.broadcast %139 : vector<1x1x8xf32> to vector<4x8x8xf32>
    %142 = arith.mulf %140, %141 : vector<4x8x8xf32>
    %143 = arith.addf %127, %142 : vector<4x8x8xf32>
    %c1_i32_34 = arith.constant 1 : i32
    %144 = vector.broadcast %c1_i32_34 : i32 to vector<8x8xi32>
    %145 = arith.cmpi eq, %12, %144 : vector<8x8xi32>
    %146 = vector.shape_cast %145 : vector<8x8xi1> to vector<1x8x8xi1>
    %cst_35 = arith.constant 0.000000e+00 : f32
    %147 = vector.shape_cast %146 : vector<1x8x8xi1> to vector<1x8x8xi1>
    %148 = vector.broadcast %147 : vector<1x8x8xi1> to vector<4x8x8xi1>
    %149 = vector.broadcast %cst_35 : f32 to vector<4x8x8xf32>
    %150 = arith.select %148, %125, %149 : vector<4x8x8xi1>, vector<4x8x8xf32>
    %cst_36 = arith.constant dense<0.000000e+00> : vector<4x8xf32>
    %151 = vector.multi_reduction <add>, %150, %cst_36 [2] : vector<4x8x8xf32> to vector<4x8xf32>
    %152 = vector.shape_cast %151 : vector<4x8xf32> to vector<4x8x1xf32>
    %153 = vector.extract_strided_slice %128 {offsets = [1, 0], sizes = [1, 8], strides = [1, 1]} : vector<10x8xf32> to vector<1x8xf32>
    %154 = vector.shape_cast %153 : vector<1x8xf32> to vector<1x1x8xf32>
    %155 = vector.broadcast %152 : vector<4x8x1xf32> to vector<4x8x8xf32>
    %156 = vector.broadcast %154 : vector<1x1x8xf32> to vector<4x8x8xf32>
    %157 = arith.mulf %155, %156 : vector<4x8x8xf32>
    %158 = arith.addf %143, %157 : vector<4x8x8xf32>
    %c2_i32_37 = arith.constant 2 : i32
    %159 = vector.broadcast %c2_i32_37 : i32 to vector<8x8xi32>
    %160 = arith.cmpi eq, %12, %159 : vector<8x8xi32>
    %161 = vector.shape_cast %160 : vector<8x8xi1> to vector<1x8x8xi1>
    %cst_38 = arith.constant 0.000000e+00 : f32
    %162 = vector.shape_cast %161 : vector<1x8x8xi1> to vector<1x8x8xi1>
    %163 = vector.broadcast %162 : vector<1x8x8xi1> to vector<4x8x8xi1>
    %164 = vector.broadcast %cst_38 : f32 to vector<4x8x8xf32>
    %165 = arith.select %163, %125, %164 : vector<4x8x8xi1>, vector<4x8x8xf32>
    %cst_39 = arith.constant dense<0.000000e+00> : vector<4x8xf32>
    %166 = vector.multi_reduction <add>, %165, %cst_39 [2] : vector<4x8x8xf32> to vector<4x8xf32>
    %167 = vector.shape_cast %166 : vector<4x8xf32> to vector<4x8x1xf32>
    %168 = vector.extract_strided_slice %128 {offsets = [2, 0], sizes = [1, 8], strides = [1, 1]} : vector<10x8xf32> to vector<1x8xf32>
    %169 = vector.shape_cast %168 : vector<1x8xf32> to vector<1x1x8xf32>
    %170 = vector.broadcast %167 : vector<4x8x1xf32> to vector<4x8x8xf32>
    %171 = vector.broadcast %169 : vector<1x1x8xf32> to vector<4x8x8xf32>
    %172 = arith.mulf %170, %171 : vector<4x8x8xf32>
    %173 = arith.addf %158, %172 : vector<4x8x8xf32>
    %c3_i32_40 = arith.constant 3 : i32
    %174 = vector.broadcast %c3_i32_40 : i32 to vector<8x8xi32>
    %175 = arith.cmpi eq, %12, %174 : vector<8x8xi32>
    %176 = vector.shape_cast %175 : vector<8x8xi1> to vector<1x8x8xi1>
    %cst_41 = arith.constant 0.000000e+00 : f32
    %177 = vector.shape_cast %176 : vector<1x8x8xi1> to vector<1x8x8xi1>
    %178 = vector.broadcast %177 : vector<1x8x8xi1> to vector<4x8x8xi1>
    %179 = vector.broadcast %cst_41 : f32 to vector<4x8x8xf32>
    %180 = arith.select %178, %125, %179 : vector<4x8x8xi1>, vector<4x8x8xf32>
    %cst_42 = arith.constant dense<0.000000e+00> : vector<4x8xf32>
    %181 = vector.multi_reduction <add>, %180, %cst_42 [2] : vector<4x8x8xf32> to vector<4x8xf32>
    %182 = vector.shape_cast %181 : vector<4x8xf32> to vector<4x8x1xf32>
    %183 = vector.extract_strided_slice %128 {offsets = [3, 0], sizes = [1, 8], strides = [1, 1]} : vector<10x8xf32> to vector<1x8xf32>
    %184 = vector.shape_cast %183 : vector<1x8xf32> to vector<1x1x8xf32>
    %185 = vector.broadcast %182 : vector<4x8x1xf32> to vector<4x8x8xf32>
    %186 = vector.broadcast %184 : vector<1x1x8xf32> to vector<4x8x8xf32>
    %187 = arith.mulf %185, %186 : vector<4x8x8xf32>
    %188 = arith.addf %173, %187 : vector<4x8x8xf32>
    %c4_i32_43 = arith.constant 4 : i32
    %189 = vector.broadcast %c4_i32_43 : i32 to vector<8x8xi32>
    %190 = arith.cmpi eq, %12, %189 : vector<8x8xi32>
    %191 = vector.shape_cast %190 : vector<8x8xi1> to vector<1x8x8xi1>
    %cst_44 = arith.constant 0.000000e+00 : f32
    %192 = vector.shape_cast %191 : vector<1x8x8xi1> to vector<1x8x8xi1>
    %193 = vector.broadcast %192 : vector<1x8x8xi1> to vector<4x8x8xi1>
    %194 = vector.broadcast %cst_44 : f32 to vector<4x8x8xf32>
    %195 = arith.select %193, %125, %194 : vector<4x8x8xi1>, vector<4x8x8xf32>
    %cst_45 = arith.constant dense<0.000000e+00> : vector<4x8xf32>
    %196 = vector.multi_reduction <add>, %195, %cst_45 [2] : vector<4x8x8xf32> to vector<4x8xf32>
    %197 = vector.shape_cast %196 : vector<4x8xf32> to vector<4x8x1xf32>
    %198 = vector.extract_strided_slice %128 {offsets = [4, 0], sizes = [1, 8], strides = [1, 1]} : vector<10x8xf32> to vector<1x8xf32>
    %199 = vector.shape_cast %198 : vector<1x8xf32> to vector<1x1x8xf32>
    %200 = vector.broadcast %197 : vector<4x8x1xf32> to vector<4x8x8xf32>
    %201 = vector.broadcast %199 : vector<1x1x8xf32> to vector<4x8x8xf32>
    %202 = arith.mulf %200, %201 : vector<4x8x8xf32>
    %203 = arith.addf %188, %202 : vector<4x8x8xf32>
    %c5_i32_46 = arith.constant 5 : i32
    %204 = vector.broadcast %c5_i32_46 : i32 to vector<8x8xi32>
    %205 = arith.cmpi eq, %12, %204 : vector<8x8xi32>
    %206 = vector.shape_cast %205 : vector<8x8xi1> to vector<1x8x8xi1>
    %cst_47 = arith.constant 0.000000e+00 : f32
    %207 = vector.shape_cast %206 : vector<1x8x8xi1> to vector<1x8x8xi1>
    %208 = vector.broadcast %207 : vector<1x8x8xi1> to vector<4x8x8xi1>
    %209 = vector.broadcast %cst_47 : f32 to vector<4x8x8xf32>
    %210 = arith.select %208, %125, %209 : vector<4x8x8xi1>, vector<4x8x8xf32>
    %cst_48 = arith.constant dense<0.000000e+00> : vector<4x8xf32>
    %211 = vector.multi_reduction <add>, %210, %cst_48 [2] : vector<4x8x8xf32> to vector<4x8xf32>
    %212 = vector.shape_cast %211 : vector<4x8xf32> to vector<4x8x1xf32>
    %213 = vector.extract_strided_slice %128 {offsets = [5, 0], sizes = [1, 8], strides = [1, 1]} : vector<10x8xf32> to vector<1x8xf32>
    %214 = vector.shape_cast %213 : vector<1x8xf32> to vector<1x1x8xf32>
    %215 = vector.broadcast %212 : vector<4x8x1xf32> to vector<4x8x8xf32>
    %216 = vector.broadcast %214 : vector<1x1x8xf32> to vector<4x8x8xf32>
    %217 = arith.mulf %215, %216 : vector<4x8x8xf32>
    %218 = arith.addf %203, %217 : vector<4x8x8xf32>
    %c6_i32_49 = arith.constant 6 : i32
    %219 = vector.broadcast %c6_i32_49 : i32 to vector<8x8xi32>
    %220 = arith.cmpi eq, %12, %219 : vector<8x8xi32>
    %221 = vector.shape_cast %220 : vector<8x8xi1> to vector<1x8x8xi1>
    %cst_50 = arith.constant 0.000000e+00 : f32
    %222 = vector.shape_cast %221 : vector<1x8x8xi1> to vector<1x8x8xi1>
    %223 = vector.broadcast %222 : vector<1x8x8xi1> to vector<4x8x8xi1>
    %224 = vector.broadcast %cst_50 : f32 to vector<4x8x8xf32>
    %225 = arith.select %223, %125, %224 : vector<4x8x8xi1>, vector<4x8x8xf32>
    %cst_51 = arith.constant dense<0.000000e+00> : vector<4x8xf32>
    %226 = vector.multi_reduction <add>, %225, %cst_51 [2] : vector<4x8x8xf32> to vector<4x8xf32>
    %227 = vector.shape_cast %226 : vector<4x8xf32> to vector<4x8x1xf32>
    %228 = vector.extract_strided_slice %128 {offsets = [6, 0], sizes = [1, 8], strides = [1, 1]} : vector<10x8xf32> to vector<1x8xf32>
    %229 = vector.shape_cast %228 : vector<1x8xf32> to vector<1x1x8xf32>
    %230 = vector.broadcast %227 : vector<4x8x1xf32> to vector<4x8x8xf32>
    %231 = vector.broadcast %229 : vector<1x1x8xf32> to vector<4x8x8xf32>
    %232 = arith.mulf %230, %231 : vector<4x8x8xf32>
    %233 = arith.addf %218, %232 : vector<4x8x8xf32>
    %c7_i32_52 = arith.constant 7 : i32
    %234 = vector.broadcast %c7_i32_52 : i32 to vector<8x8xi32>
    %235 = arith.cmpi eq, %12, %234 : vector<8x8xi32>
    %236 = vector.shape_cast %235 : vector<8x8xi1> to vector<1x8x8xi1>
    %cst_53 = arith.constant 0.000000e+00 : f32
    %237 = vector.shape_cast %236 : vector<1x8x8xi1> to vector<1x8x8xi1>
    %238 = vector.broadcast %237 : vector<1x8x8xi1> to vector<4x8x8xi1>
    %239 = vector.broadcast %cst_53 : f32 to vector<4x8x8xf32>
    %240 = arith.select %238, %125, %239 : vector<4x8x8xi1>, vector<4x8x8xf32>
    %cst_54 = arith.constant dense<0.000000e+00> : vector<4x8xf32>
    %241 = vector.multi_reduction <add>, %240, %cst_54 [2] : vector<4x8x8xf32> to vector<4x8xf32>
    %242 = vector.shape_cast %241 : vector<4x8xf32> to vector<4x8x1xf32>
    %243 = vector.extract_strided_slice %128 {offsets = [7, 0], sizes = [1, 8], strides = [1, 1]} : vector<10x8xf32> to vector<1x8xf32>
    %244 = vector.shape_cast %243 : vector<1x8xf32> to vector<1x1x8xf32>
    %245 = vector.broadcast %242 : vector<4x8x1xf32> to vector<4x8x8xf32>
    %246 = vector.broadcast %244 : vector<1x1x8xf32> to vector<4x8x8xf32>
    %247 = arith.mulf %245, %246 : vector<4x8x8xf32>
    %248 = arith.addf %233, %247 : vector<4x8x8xf32>
    %249 = arith.truncf %248 : vector<4x8x8xf32> to vector<4x8x8xbf16>
    %cst_55 = arith.constant 0.000000e+00 : f32
    %250 = vector.broadcast %cst_55 : f32 to vector<8x32xf32>
    %251 = vector.extract_strided_slice %249 {offsets = [0, 0, 0], sizes = [1, 8, 8], strides = [1, 1, 1]} : vector<4x8x8xbf16> to vector<1x8x8xbf16>
    %252 = vector.shape_cast %251 : vector<1x8x8xbf16> to vector<8x8xbf16>
    %c0_56 = arith.constant 0 : index
    %c0_57 = arith.constant 0 : index
    %c0_58 = arith.constant 0 : index
    %253 = vector.load %arg7[%c0_56, %c0_57, %c0_58] : memref<4x8x32xbf16, #tpu.memory_space<vmem>>, vector<1x8x32xbf16>
    %254 = vector.shape_cast %253 : vector<1x8x32xbf16> to vector<8x32xbf16>
    %cst_59 = arith.constant dense<0.000000e+00> : vector<8x32xf32>
    %255 = tpu.matmul %252, %254, %cst_59 {dimension_numbers = #tpu.dot_dimension_numbers<[1], [0], [0], [1], [0, 0, 1, 1], [], []>} : vector<8x8xbf16>, vector<8x32xbf16>, vector<8x32xf32> -> vector<8x32xf32>
    %256 = arith.addf %250, %255 : vector<8x32xf32>
    %257 = vector.extract_strided_slice %249 {offsets = [1, 0, 0], sizes = [1, 8, 8], strides = [1, 1, 1]} : vector<4x8x8xbf16> to vector<1x8x8xbf16>
    %258 = vector.shape_cast %257 : vector<1x8x8xbf16> to vector<8x8xbf16>
    %c1 = arith.constant 1 : index
    %c0_60 = arith.constant 0 : index
    %c0_61 = arith.constant 0 : index
    %259 = vector.load %arg7[%c1, %c0_60, %c0_61] : memref<4x8x32xbf16, #tpu.memory_space<vmem>>, vector<1x8x32xbf16>
    %260 = vector.shape_cast %259 : vector<1x8x32xbf16> to vector<8x32xbf16>
    %cst_62 = arith.constant dense<0.000000e+00> : vector<8x32xf32>
    %261 = tpu.matmul %258, %260, %cst_62 {dimension_numbers = #tpu.dot_dimension_numbers<[1], [0], [0], [1], [0, 0, 1, 1], [], []>} : vector<8x8xbf16>, vector<8x32xbf16>, vector<8x32xf32> -> vector<8x32xf32>
    %262 = arith.addf %256, %261 : vector<8x32xf32>
    %263 = vector.extract_strided_slice %249 {offsets = [2, 0, 0], sizes = [1, 8, 8], strides = [1, 1, 1]} : vector<4x8x8xbf16> to vector<1x8x8xbf16>
    %264 = vector.shape_cast %263 : vector<1x8x8xbf16> to vector<8x8xbf16>
    %c2 = arith.constant 2 : index
    %c0_63 = arith.constant 0 : index
    %c0_64 = arith.constant 0 : index
    %265 = vector.load %arg7[%c2, %c0_63, %c0_64] : memref<4x8x32xbf16, #tpu.memory_space<vmem>>, vector<1x8x32xbf16>
    %266 = vector.shape_cast %265 : vector<1x8x32xbf16> to vector<8x32xbf16>
    %cst_65 = arith.constant dense<0.000000e+00> : vector<8x32xf32>
    %267 = tpu.matmul %264, %266, %cst_65 {dimension_numbers = #tpu.dot_dimension_numbers<[1], [0], [0], [1], [0, 0, 1, 1], [], []>} : vector<8x8xbf16>, vector<8x32xbf16>, vector<8x32xf32> -> vector<8x32xf32>
    %268 = arith.addf %262, %267 : vector<8x32xf32>
    %269 = vector.extract_strided_slice %249 {offsets = [3, 0, 0], sizes = [1, 8, 8], strides = [1, 1, 1]} : vector<4x8x8xbf16> to vector<1x8x8xbf16>
    %270 = vector.shape_cast %269 : vector<1x8x8xbf16> to vector<8x8xbf16>
    %c3 = arith.constant 3 : index
    %c0_66 = arith.constant 0 : index
    %c0_67 = arith.constant 0 : index
    %271 = vector.load %arg7[%c3, %c0_66, %c0_67] : memref<4x8x32xbf16, #tpu.memory_space<vmem>>, vector<1x8x32xbf16>
    %272 = vector.shape_cast %271 : vector<1x8x32xbf16> to vector<8x32xbf16>
    %cst_68 = arith.constant dense<0.000000e+00> : vector<8x32xf32>
    %273 = tpu.matmul %270, %272, %cst_68 {dimension_numbers = #tpu.dot_dimension_numbers<[1], [0], [0], [1], [0, 0, 1, 1], [], []>} : vector<8x8xbf16>, vector<8x32xbf16>, vector<8x32xf32> -> vector<8x32xf32>
    %274 = arith.addf %268, %273 : vector<8x32xf32>
    %c0_i32_69 = arith.constant 0 : i32
    %275 = arith.cmpi eq, %arg1, %c0_i32_69 : i32
    %276 = arith.extui %275 : i1 to i32
    %c0_i32_70 = arith.constant 0 : i32
    %277 = arith.cmpi ne, %276, %c0_i32_70 : i32
    scf.if %277 {
      %c0_77 = arith.constant 0 : index
      %c0_78 = arith.constant 0 : index
      %284 = vector.load %arg8[%c0_77, %c0_78] : memref<1x32xf32, #tpu.memory_space<vmem>>, vector<1x32xf32>
      %285 = vector.broadcast %284 : vector<1x32xf32> to vector<8x32xf32>
      %286 = arith.addf %274, %285 : vector<8x32xf32>
      %c0_79 = arith.constant 0 : index
      %c0_80 = arith.constant 0 : index
      %c0_81 = arith.constant 0 : index
      %287 = vector.load %arg9[%c0_79, %c0_80, %c0_81] : memref<1x8x32xf32, #tpu.memory_space<vmem>>, vector<1x8x32xf32>
      %288 = vector.shape_cast %287 : vector<1x8x32xf32> to vector<8x32xf32>
      %289 = vector.shape_cast %286 : vector<8x32xf32> to vector<1x8x32xf32>
      tpu.vector_store %arg9[%c0_79, %c0_80, %c0_81], %289 {strides = array<i32>} : memref<1x8x32xf32, #tpu.memory_space<vmem>>, vector<1x8x32xf32>,
    } else {
    }
    %c0_i32_71 = arith.constant 0 : i32
    %278 = arith.cmpi sgt, %arg1, %c0_i32_71 : i32
    %279 = arith.extui %278 : i1 to i32
    %c0_i32_72 = arith.constant 0 : i32
    %280 = arith.cmpi ne, %279, %c0_i32_72 : i32
    scf.if %280 {
      %c0_77 = arith.constant 0 : index
      %c0_78 = arith.constant 0 : index
      %c0_79 = arith.constant 0 : index
      %284 = vector.load %arg9[%c0_77, %c0_78, %c0_79] : memref<1x8x32xf32, #tpu.memory_space<vmem>>, vector<1x8x32xf32>
      %285 = vector.shape_cast %284 : vector<1x8x32xf32> to vector<8x32xf32>
      %286 = arith.addf %285, %274 : vector<8x32xf32>
      %c0_80 = arith.constant 0 : index
      %c0_81 = arith.constant 0 : index
      %c0_82 = arith.constant 0 : index
      %287 = vector.load %arg9[%c0_80, %c0_81, %c0_82] : memref<1x8x32xf32, #tpu.memory_space<vmem>>, vector<1x8x32xf32>
      %288 = vector.shape_cast %287 : vector<1x8x32xf32> to vector<8x32xf32>
      %289 = vector.shape_cast %286 : vector<8x32xf32> to vector<1x8x32xf32>
      tpu.vector_store %arg9[%c0_80, %c0_81, %c0_82], %289 {strides = array<i32>} : memref<1x8x32xf32, #tpu.memory_space<vmem>>, vector<1x8x32xf32>,
    } else {
    }
    %c0_73 = arith.constant 0 : index
    %c0_74 = arith.constant 0 : index
    %c0_75 = arith.constant 0 : index
    %c0_76 = arith.constant 0 : index
    %281 = vector.load %arg10[%c0_73, %c0_74, %c0_75, %c0_76] : memref<1x4x8x8xf32, #tpu.memory_space<vmem>>, vector<1x4x8x8xf32>
    %282 = vector.shape_cast %281 : vector<1x4x8x8xf32> to vector<4x8x8xf32>
    %283 = vector.shape_cast %125 : vector<4x8x8xf32> to vector<1x4x8x8xf32>
    tpu.vector_store %arg10[%c0_73, %c0_74, %c0_75, %c0_76], %283 {strides = array<i32>} : memref<1x4x8x8xf32, #tpu.memory_space<vmem>>, vector<1x4x8x8xf32>,
    return
  }
  func.func @transform_0(%arg0: i32, %arg1: i32) -> (i32, i32, i32, i32) {
    %c0_i32 = arith.constant 0 : i32
    %c0_i32_0 = arith.constant 0 : i32
    %c0_i32_1 = arith.constant 0 : i32
    return %arg0, %arg1, %c0_i32, %c0_i32_0 : i32, i32, i32, i32
  }
  func.func @transform_1(%arg0: i32, %arg1: i32) -> (i32, i32, i32, i32) {
    %c0_i32 = arith.constant 0 : i32
    %c0_i32_0 = arith.constant 0 : i32
    %c0_i32_1 = arith.constant 0 : i32
    return %arg0, %arg1, %c0_i32, %c0_i32_0 : i32, i32, i32, i32
  }
  func.func @transform_2(%arg0: i32, %arg1: i32) -> (i32, i32, i32, i32) {
    %c0_i32 = arith.constant 0 : i32
    %c0_i32_0 = arith.constant 0 : i32
    %c0_i32_1 = arith.constant 0 : i32
    return %arg0, %arg1, %c0_i32, %c0_i32_0 : i32, i32, i32, i32
  }
  func.func @transform_3(%arg0: i32, %arg1: i32) -> (i32, i32) {
    %c0_i32 = arith.constant 0 : i32
    %c0_i32_0 = arith.constant 0 : i32
    %c0_i32_1 = arith.constant 0 : i32
    return %c0_i32, %c0_i32_0 : i32, i32
  }
  func.func @transform_4(%arg0: i32, %arg1: i32) -> (i32, i32) {
    %c0_i32 = arith.constant 0 : i32
    %c0_i32_0 = arith.constant 0 : i32
    %c0_i32_1 = arith.constant 0 : i32
    return %c0_i32, %c0_i32_0 : i32, i32
  }
  func.func @transform_5(%arg0: i32, %arg1: i32) -> (i32, i32, i32) {
    %c0_i32 = arith.constant 0 : i32
    %c0_i32_0 = arith.constant 0 : i32
    %c0_i32_1 = arith.constant 0 : i32
    return %arg1, %c0_i32, %c0_i32_0 : i32, i32, i32
  }
  func.func @transform_6(%arg0: i32, %arg1: i32) -> (i32, i32) {
    %c0_i32 = arith.constant 0 : i32
    %c0_i32_0 = arith.constant 0 : i32
    %c0_i32_1 = arith.constant 0 : i32
    return %c0_i32, %c0_i32_0 : i32, i32
  }
  func.func @transform_7(%arg0: i32, %arg1: i32) -> (i32, i32, i32) {
    %c0_i32 = arith.constant 0 : i32
    %c0_i32_0 = arith.constant 0 : i32
    %c0_i32_1 = arith.constant 0 : i32
    return %arg0, %c0_i32, %c0_i32_0 : i32, i32, i32
  }
  func.func @transform_8(%arg0: i32, %arg1: i32) -> (i32, i32, i32, i32) {
    %c0_i32 = arith.constant 0 : i32
    %c0_i32_0 = arith.constant 0 : i32
    %c0_i32_1 = arith.constant 0 : i32
    return %arg0, %arg1, %c0_i32, %c0_i32_0 : i32, i32, i32, i32
  }
}

</mosaic_0001>

<bundles_post_ra>
// kernel: ykt_forward.21
= control target key start
LH: loop header
LB: loop body
LE: loop exit
PB: predicated region body
PF: predicated region fallthrough
CT: control target
= control target key end

     0   :  { %vm19_vm0 = vcmask 261120   ;;  %v179_v0 = vmov 0.0   ;;  %vm180_vm1 = vmmov 0   ;;  %vm63_vm2 = vcmask 523264   ;;  %s229_s1 = inlined_call_operand.vmem [shape: bf16[64,32], index: 1, kind: input, shape index: {}]   ;;  %s230_s0 = inlined_call_operand.vmem [shape: bf16[16,64], index: 0, kind: input, shape index: {}]   ;;  %s231_s2 = inlined_call_operand.vmem [shape: f32[1,32], index: 2, kind: input, shape index: {}]   ;;  %s232_s3 = inlined_call_operand.vmem [shape: bf16[16,32], index: 3, kind: output, shape index: {}]  }
   0x1   :  { %160 = vmatprep.subr.bf16.mxu0 %v179_v0  ;;  %v174_v1 = vld [vmem:[%s229_s1] sm:$0xff]   ;;  %168 = vmatprep.mubr.msk.bf16.mxu0 %vm180_vm1, %v179_v0  ;;  %20 = vst.msk [vmem:[#allocation2] sm:$0xff] %vm19_vm0, %v179_v0  ;;  %21 = vst.msk [vmem:[#allocation2 + $0x8] sm:$0xff] %vm19_vm0, %v179_v0  ;;  %v175_v2 = vld [vmem:[%s229_s1 + $0x8] sm:$0xff]   ;;  %vm137_vm3 = vcmask 257024  }
   0x2   :  { %161 = vmatpush3.bf16.msra.mxu0 %v174_v1  ;;  %v176_v3 = vld [vmem:[%s229_s1 + $0x10] sm:$0xff]   ;;  %v177_v4 = vld [vmem:[%s229_s1 + $0x18] sm:$0xff]   ;;  %v178_v5 = vld [vmem:[%s230_s0] sm:$0xff]  }
   0x3   :  { %162 = vmatprep.subr.bf16.mxu0 %v179_v0  ;;  %v150_v14 = vld [vmem:[%s231_s2] ss:$0 sm:$0xff] }
   0x6   :  { %163 = vmatpush3.bf16.msra.mxu0 %v175_v2 }
   0x7   :  { %164 = vmatprep.subr.bf16.mxu0 %v179_v0 }
   0x8   :  { %v22_v6 = vld [vmem:[#allocation2] sm:$0xff]  ;;  %v23_v8 = vld [vmem:[#allocation2 + $0x8] sm:$0xff] }
   0xa   :  { %165 = vmatpush3.bf16.msra.mxu0 %v176_v3 }
   0xb   :  { %166 = vmatprep.subr.bf16.mxu0 %v179_v0 }
   0xe   :  { %167 = vmatpush3.bf16.msra.mxu0 %v177_v4 }
  0x11   :  { %169 = vmatmul.mubr.msk.bf16.vlgmr.msra.gmra.mrb[0].mxu0 %vm63_vm2, %v178_v5 }
  0xe4   :  { %v101_v7 = vpop.f32.mrb[0].mxu0 }
  0xe5   :  { %v108_v9 = vadd.f32 %v101_v7, %v22_v6  ;;  %v170_v10 = vpop.f32.mrb[1].mxu0 }
  0xe6   :  { %v104_v11 = vpop.f32.mrb[2].mxu0 }
  0xe7   :  { %111 = vst.msk [vmem:[#allocation2] sm:$0xff] %vm19_vm0, %v108_v9  ;;  %v109_v12 = vadd.f32 %v104_v11, %v23_v8  ;;  %v171_v13 = vpop.f32.mrb[3].mxu0 }
  0xe9   :  { %112 = vst.msk [vmem:[#allocation2 + $0x8] sm:$0xff] %vm19_vm0, %v109_v12 }
  0xee   :  { %v116_v15 = vld [vmem:[#allocation2] sm:$0xff] }
  0xef   :  { %v125_v16 = vadd.f32 %v150_v14, %v116_v15 }
  0xf0   :  { %v117_v17 = vld [vmem:[#allocation2 + $0x8] sm:$0xff] }
  0xf1   :  { %v127_v18 = vmax.f32 %v125_v16, 0.0  ;;  %v126_v19 = vadd.f32 %v150_v14, %v117_v17 }
  0xf3   :  { %v153_v20 = vpack.c.bf16 %v127_v18, %v127_v18  ;;  %v128_v21 = vmax.f32 %v126_v19, 0.0 }
  0xf5   :  { %138 = vst.msk [vmem:[%s232_s3] sm:$0xf] %vm137_vm3, %v153_v20  ;;  %v154_v22 = vpack.c.bf16 %v128_v21, %v128_v21 }
  0xf7   :  { %139 = vst.msk [vmem:[%s232_s3 + $0x4] sm:$0xf] %vm137_vm3, %v154_v22 }

// kernel: ykt_forward.23
= control target key start
LH: loop header
LB: loop body
LE: loop exit
PB: predicated region body
PF: predicated region fallthrough
CT: control target
= control target key end

     0   :  { %vm19_vm0 = vcmask 785408   ;;  %v151_v0 = vmov 0.0   ;;  %vm152_vm1 = vmmov 0   ;;  %vm47_vm2 = vcmask 261120   ;;  %s195_s1 = inlined_call_operand.vmem [shape: bf16[32,96], index: 1, kind: input, shape index: {}]   ;;  %s196_s0 = inlined_call_operand.vmem [shape: bf16[16,32], index: 0, kind: input, shape index: {}]   ;;  %s197_s2 = inlined_call_operand.vmem [shape: f32[1,96], index: 2, kind: input, shape index: {}]   ;;  %s198_s3 = inlined_call_operand.vmem [shape: bf16[16,96], index: 3, kind: output, shape index: {}]  }
   0x1   :  { %138 = vmatprep.subr.bf16.mxu0 %v151_v0  ;;  %v148_v1 = vld [vmem:[%s195_s1] sm:$0xff]   ;;  %142 = vmatprep.mubr.msk.bf16.mxu0 %vm152_vm1, %v151_v0  ;;  %20 = vst.msk [vmem:[#allocation2] sm:$0xff] %vm19_vm0, %v151_v0  ;;  %21 = vst.msk [vmem:[#allocation2 + $0x8] sm:$0xff] %vm19_vm0, %v151_v0  ;;  %v149_v2 = vld [vmem:[%s195_s1 + $0x8] sm:$0xff]   ;;  %vm119_vm3 = vcmask 781312  }
   0x2   :  { %139 = vmatpush3.bf16.msra.mxu0 %v148_v1  ;;  %v150_v3 = vld [vmem:[%s196_s0] sm:$0xff]  }
   0x3   :  { %140 = vmatprep.subr.bf16.mxu0 %v151_v0  ;;  %v130_v12 = vld [vmem:[%s197_s2] ss:$0 sm:$0xff] }
   0x6   :  { %141 = vmatpush3.bf16.msra.mxu0 %v149_v2 }
   0x8   :  { %v22_v4 = vld [vmem:[#allocation2] sm:$0xff]  ;;  %v23_v6 = vld [vmem:[#allocation2 + $0x8] sm:$0xff] }
   0x9   :  { %143 = vmatmul.mubr.msk.bf16.vlgmr.msra.gmra.mrb[0].mxu0 %vm47_vm2, %v150_v3 }
  0xdc   :  { %v85_v5 = vpop.f32.mrb[0].mxu0 }
  0xdd   :  { %v92_v7 = vadd.f32 %v85_v5, %v22_v4  ;;  %v144_v8 = vpop.f32.mrb[1].mxu0 }
  0xde   :  { %v88_v9 = vpop.f32.mrb[2].mxu0 }
  0xdf   :  { %95 = vst.msk [vmem:[#allocation2] sm:$0xff] %vm19_vm0, %v92_v7  ;;  %v93_v10 = vadd.f32 %v88_v9, %v23_v6  ;;  %v145_v11 = vpop.f32.mrb[3].mxu0 }
  0xe1   :  { %96 = vst.msk [vmem:[#allocation2 + $0x8] sm:$0xff] %vm19_vm0, %v93_v10 }
  0xe6   :  { %v100_v13 = vld [vmem:[#allocation2] sm:$0xff] }
  0xe7   :  { %v109_v14 = vadd.f32 %v130_v12, %v100_v13 }
  0xe8   :  { %v101_v15 = vld [vmem:[#allocation2 + $0x8] sm:$0xff] }
  0xe9   :  { %v133_v16 = vpack.c.bf16 %v109_v14, %v109_v14  ;;  %v110_v17 = vadd.f32 %v130_v12, %v101_v15 }
  0xeb   :  { %120 = vst.msk [vmem:[%s198_s3] sm:$0xf] %vm119_vm3, %v133_v16  ;;  %v134_v18 = vpack.c.bf16 %v110_v17, %v110_v17 }
  0xed   :  { %121 = vst.msk [vmem:[%s198_s3 + $0x4] sm:$0xf] %vm119_vm3, %v134_v18 }

// kernel: ykt_forward.25
= control target key start
LH: loop header
LB: loop body
LE: loop exit
PB: predicated region body
PF: predicated region fallthrough
CT: control target
= control target key end

     0   :  { %vm28_vm0 = vcmask 261120   ;;  %v201_v0 = vmov 0.0   ;;  %vm202_vm1 = vmmov 0   ;;  %s279_s2 = inlined_call_operand.vmem [shape: bf16[32,32], index: 2, kind: input, shape index: {}]   ;;  %s280_s0 = inlined_call_operand.vmem [shape: bf16[16,32], index: 0, kind: input, shape index: {}]   ;;  %s281_s1 = inlined_call_operand.vmem [shape: f32[16,32], index: 1, kind: input, shape index: {}]   ;;  %s282_s3 = inlined_call_operand.vmem [shape: f32[1,32], index: 3, kind: input, shape index: {}]   ;;  %s283_s4 = inlined_call_operand.vmem [shape: f32[1,32], index: 4, kind: input, shape index: {}]   ;;  %s284_s5 = inlined_call_operand.vmem [shape: f32[1,32], index: 5, kind: input, shape index: {}]   ;;  %s285_s6 = inlined_call_operand.vmem [shape: f32[16,32], index: 6, kind: output, shape index: {}]  }
   0x1   :  { %184 = vmatprep.subr.bf16.mxu0 %v201_v0  ;;  %v194_v1 = vld [vmem:[%s279_s2] sm:$0xff]   ;;  %188 = vmatprep.mubr.msk.bf16.mxu0 %vm202_vm1, %v201_v0  ;;  %29 = vst.msk [vmem:[#allocation2] sm:$0xff] %vm28_vm0, %v201_v0  ;;  %30 = vst.msk [vmem:[#allocation2 + $0x8] sm:$0xff] %vm28_vm0, %v201_v0  ;;  %v195_v2 = vld [vmem:[%s279_s2 + $0x8] sm:$0xff]  }
   0x2   :  { %185 = vmatpush3.bf16.msra.mxu0 %v194_v1  ;;  %v196_v3 = vld [vmem:[%s280_s0] sm:$0xff]   ;;  %v109_v15 = vld [vmem:[%s281_s1 + $0x8] sm:$0xff] }
   0x3   :  { %186 = vmatprep.subr.bf16.mxu0 %v201_v0  ;;  %v108_v12 = vld [vmem:[%s281_s1] sm:$0xff] }
   0x4   :  { %v178_v14 = vld [vmem:[%s282_s3] ss:$0 sm:$0xff] }
   0x5   :  { %v179_v40 = vld [vmem:[%s283_s4] ss:$0 sm:$0xff] }
   0x6   :  { %187 = vmatpush3.bf16.msra.mxu0 %v195_v2  ;;  %v180_v42 = vld [vmem:[%s284_s5] ss:$0 sm:$0xff] }
   0x8   :  { %v31_v4 = vld [vmem:[#allocation2] sm:$0xff]  ;;  %v32_v6 = vld [vmem:[#allocation2 + $0x8] sm:$0xff] }
   0x9   :  { %189 = vmatmul.mubr.msk.bf16.vlgmr.msra.gmra.mrb[0].mxu0 %vm28_vm0, %v196_v3 }
  0xdc   :  { %v94_v5 = vpop.f32.mrb[0].mxu0 }
  0xdd   :  { %v101_v7 = vadd.f32 %v94_v5, %v31_v4  ;;  %v190_v8 = vpop.f32.mrb[1].mxu0 }
  0xde   :  { %v97_v9 = vpop.f32.mrb[2].mxu0 }
  0xdf   :  { %103 = vst.msk [vmem:[#allocation2] sm:$0xff] %vm28_vm0, %v101_v7  ;;  %v102_v10 = vadd.f32 %v97_v9, %v32_v6  ;;  %v191_v11 = vpop.f32.mrb[3].mxu0 }
  0xe1   :  { %104 = vst.msk [vmem:[#allocation2 + $0x8] sm:$0xff] %vm28_vm0, %v102_v10 }
  0xe6   :  { %v110_v13 = vld [vmem:[#allocation2] sm:$0xff] }
  0xe7   :  { %v112_v16 = vadd.f32 %v110_v13, %v108_v12 }
  0xe8   :  { %v111_v17 = vld [vmem:[#allocation2 + $0x8] sm:$0xff] }
  0xe9   :  { %v121_v18 = vadd.f32 %v178_v14, %v112_v16  ;;  %v113_v19 = vadd.f32 %v111_v17, %v109_v15 }
  0xeb   :  { %v123_v20 = vsel %vm28_vm0, %v121_v18, 0.0  ;;  %v122_v21 = vadd.f32 %v178_v14, %v113_v19 }
  0xec   :  { %124 = vadd.xlane.f32.xlu0 %v123_v20 }
  0xed   :  { %v126_v22 = vsel %vm28_vm0, %v122_v21, 0.0 }
  0xf0   :  { %127 = vadd.xlane.f32.xlu0 %v126_v22 }
 0x179   :  { %v125_v23 = vpop.xlane.xlu0 %124 }
 0x17a   :  { %v130_v24 = vmul.f32 0.03125, %v125_v23 }
 0x17c   :  { %v132_v25 = vsub.f32 %v121_v18, %v130_v24 }
 0x17d   :  { %v128_v26 = vpop.xlane.xlu0 %127 }
 0x17e   :  { %v131_v27 = vmul.f32 0.03125, %v128_v26  ;;  %v134_v28 = vmul.f32 %v132_v25, %v132_v25 }
 0x180   :  { %v133_v29 = vsub.f32 %v122_v21, %v131_v27  ;;  %v136_v30 = vsel %vm28_vm0, %v134_v28, 0.0 }
 0x181   :  { %137 = vadd.xlane.f32.xlu1 %v136_v30 }
 0x182   :  { %v135_v31 = vmul.f32 %v133_v29, %v133_v29 }
 0x184   :  { %v139_v32 = vsel %vm28_vm0, %v135_v31, 0.0 }
 0x185   :  { %140 = vadd.xlane.f32.xlu1 %v139_v32 }
 0x20e   :  { %v138_v33 = vpop.xlane.xlu1 %137 }
 0x20f   :  { %v142_v34 = vmul.f32 0.03125, %v138_v33 }
 0x211   :  { %v144_v35 = vadd.f32 1e-05, %v142_v34 }
 0x212   :  { %v141_v36 = vpop.xlane.xlu1 %140 }
 0x213   :  { %197 = vrsqrt.f32 %v144_v35  ;;  %v143_v37 = vmul.f32 0.03125, %v141_v36 }
 0x215   :  { %v145_v38 = vadd.f32 1e-05, %v143_v37 }
 0x217   :  { %199 = vrsqrt.f32 %v145_v38 }
 0x21d   :  { %v198_v39 = vpop.eup %197 }
 0x21e   :  { %v148_v41 = vmul.f32 %v198_v39, %v132_v25 }
 0x220   :  { %v157_v43 = vmul.f32 %v179_v40, %v148_v41 }
 0x221   :  { %v200_v44 = vpop.eup %199 }
 0x222   :  { %v166_v45 = vadd.f32 %v180_v42, %v157_v43  ;;  %v149_v46 = vmul.f32 %v200_v44, %v133_v29 }
 0x224   :  { %168 = vst.msk [vmem:[%s285_s6] sm:$0xff] %vm28_vm0, %v166_v45  ;;  %v158_v47 = vmul.f32 %v179_v40, %v149_v46 }
 0x226   :  { %v167_v48 = vadd.f32 %v180_v42, %v158_v47 }
 0x228   :  { %169 = vst.msk [vmem:[%s285_s6 + $0x8] sm:$0xff] %vm28_vm0, %v167_v48 }

// kernel: ykt_forward.24
= control target key start
LH: loop header
LB: loop body
LE: loop exit
PB: predicated region body
PF: predicated region fallthrough
CT: control target
= control target key end

     0   :  { %s2401_s0 = inlined_call_operand.hbm [shape: bf16[2,4,8,8], index: 0, kind: input, shape index: {}]   ;;  %s2402_s1 = inlined_call_operand.hbm [shape: bf16[2,4,8,8], index: 1, kind: input, shape index: {}]   ;;  %s2403_s2 = inlined_call_operand.hbm [shape: bf16[2,4,8,8], index: 2, kind: input, shape index: {}]   ;;  %s2404_s3 = inlined_call_operand.hbm [shape: bf16[4,8,32], index: 3, kind: input, shape index: {}]   ;;  %s2405_s4 = inlined_call_operand.hbm [shape: f32[1,32], index: 4, kind: input, shape index: {}]   ;;  %s2406_s5 = inlined_call_operand.hbm [shape: f32[2,8,8], index: 5, kind: input, shape index: {}]   ;;  %s2407_s6 = inlined_call_operand.<no memory space> [shape: f32[1], index: 6, kind: input, shape index: {}]   ;;  %s2408_s7 = inlined_call_operand.hbm [shape: f32[2,8,32], index: 7, kind: output, shape index: {}]  }
   0x1   :  { %2432 = sst [smem:[#allocation26_spill]] %s2402_s1 }
   0x2   :  { %2433 = sst [smem:[#allocation27_spill]] %s2404_s3 }
   0x3   :  { %2434 = sst [smem:[#allocation28_spill]] %s2405_s4 }
   0x4   :  { %2435 = sst [smem:[#allocation29_spill]] %s2408_s7 }
   0x5   :  { %12 = sst [smem:[#allocation2]] %s2407_s6 }
   0x6   :  { %13 = vsyncpa [#allocation4], 0 }
   0x7   :  { %15 = vsyncpa [#allocation4 + $0x1], 0 }
   0x8   :  { %16 = vsyncpa [#allocation7], 0 }
   0x9   :  { %18 = vsyncpa [#allocation7 + $0x1], 0 }
   0xa   :  { %19 = vsyncpa [#allocation10], 0 }
   0xb   :  { %20 = vsyncpa [#allocation13], 0 }
   0xc   :  { %22 = vsyncpa [#allocation13 + $0x1], 0 }
   0xd   :  { %23 = vsyncpa [#allocation5], 0 }
   0xe   :  { %25 = vsyncpa [#allocation5 + $0x1], 0  ;;  %s1927_s26 = smov 0   ;;  %s1929_s27 = smov 0  }
   0xf   :  { %s1931_s28 = smov 0   ;;  %s1933_s29 = smov 0  }
  0x10   :  { %s1935_s30 = smov 0   ;;  %s1937_s6 = smov 0  }
  0x11 LB: > { %2436 = sst [smem:[#allocation20_spill]] %s1851_s26  ;;  %s1958_s8 = sadd.s32 4294967295, %s1871_s6   ;;  %s1871_s6 = sphi %s1937_s6, %s31_s6   ;;  %s1867_s30 = sphi %s1935_s30, %s2481_s30   ;;  %s1863_s29 = sphi %s1933_s29, %s2480_s29   ;;  %s1859_s28 = sphi %s1931_s28, %s2476_s28   ;;  %s1855_s27 = sphi %s1929_s27, %s2479_s27   ;;  %s1851_s26 = sphi %s1927_s26, %s2478_s26  }
  0x12   : > { %2437 = sst [smem:[#allocation21_spill]] %s1859_s28  ;;  %s1343_s9 = sadd.s32 4294967294, %s1871_s6  }
  0x13   : > { %2438 = sst [smem:[#allocation22_spill]] %s1871_s6  ;;  %p59_p0 = scmp.ne.s32.totalorder %s1859_s28, %s1855_s27 }
  0x14   : > { %p60_p1 = scmp.eq.s32.totalorder %s1871_s6, 0  ;;  %p65_p2 = scmp.ne.s32.totalorder %s1855_s27, %s1851_s26 }
  0x15   : > { %p2409_p3 = scmp.eq.s32.totalorder %s1958_s8, 0  ;;  %p239_p4 = scmp.eq.s32.totalorder %s1958_s8, 1 }
  0x16   : > { %p1969_p5 = por %p60_p1, %p59_p0  ;;  %p245_p6 = scmp.eq.s32.totalorder %s1343_s9, 1 }
  0x17   : > { %p1975_p7 = por %p2409_p3, %p65_p2  ;;  %p1979_p8 = por %p239_p4, %p59_p0 }
  0x18   : > { %p1983_p9 = por %p245_p6, %p65_p2  ;;  %p1344_p10 = scmp.ge.s32.totalorder %s1871_s6, 1 }
  0x19   : > { %s2440_s12 = scalar_select %p1975_p7, 1, 0 }
  0x1a   : > { %s2441_s13 = scalar_select %p1979_p8, 1, 0 }
  0x1b   : > { %s2442_s14 = scalar_select %p1983_p9, 1, 0 }
  0x1c   : > { %p252_p11 = scmp.lt.s32.totalorder %s1871_s6, 3  ;;  %s1873_s16 = smov [#allocation9]  }
  0x1d   : > { %2443 = sst [smem:[#allocation23_spill]] %s2442_s14  ;;  %s267_s17 = sshll.u32 %s1873_s16, 4  ;;  %s1993_s17 = int_to_ptr.vmem [resolvable:$true] %s267_s17 }
  0x1e   : > { %p1989_p12 = pnand %p1344_p10, %p252_p11  ;;  %s43_s19 = sadd.s32 1, %s1867_s30 }
  0x1f   : > { %s2007_s20 = sand.u32 1, %s1859_s28   ;;  %p2009_p4 = scmp.ge.s32.totalorder %s43_s19, 2 }
  0x20   : > { %s2444_s15 = scalar_select %p1989_p12, 1, 0 }
  0x21   : > { %p1501_p13 = pneg %p1989_p12  ;;  %s2447_s3 = sld [smem:[#allocation27_spill]] }
  0x23   : > { %p2001_p2 = pnand %p1501_p13, %p2409_p3 }
  0x25   : > { %s2445_s18 = scalar_select %p2001_p2, 1, 0 }
  0x26   : > { %p2421_p10 = pneg %p2001_p2 }
  0x27   : > { %s1601_s24 = scalar_lea.hbm %s2447_s3, 256 }
  0x28   : > { %p1602_p6 = scmp.ne.s32.totalorder %s2447_s3, %s1601_s24  ;;  %p1608_p0 = scmp.lt.u32.totalorder %s1601_s24, %s2447_s3 }
  0x2a   : > { %p1604_p11 = pnand %p2421_p10, %p1602_p6 }
  0x2c   : > { %p1605_p13 = pneg %p1604_p11 }
  0x2e   : > { %p1610_p3 = pnand %p1608_p0, %p1605_p13 }
  0x30   : > { %1613 = shalt.err (!%p1610_p3)
}
  0x31   : > { %s1614_s22 = scalar_lea.vmem %s1993_s17, 256  ;;  %p1622_p7 = scmp.lt.s32.totalorder %s1993_s17, %s1993_s17 }
  0x32   : > { %p1615_p1 = scmp.ne.s32.totalorder %s1993_s17, %s1614_s22  ;;  %p1623_p6 = scmp.lt.s32.totalorder %s1614_s22, %s1614_s22 }
  0x34   : > { %p1617_p9 = pnand %p1615_p1, %p2421_p10  ;;  %p1624_p11 = por %p1623_p6, %p1622_p7 }
  0x36   : > { %p1618_p8 = pneg %p1617_p9 }
  0x38   : > { %p1625_p12 = pnand %p1624_p11, %p1618_p8 }
  0x3a   : > { %1628 = shalt.err (!%p1625_p12)
}
  0x3b   : > { %s2414_s10 = smov 64   ;;  %s2416_s23 = smov 4  }
  0x3c   : > { %1504 = dma.hbm_to_vmem [thread:$0]  (!%p2001_p2), %s2447_s3, 256, %s1993_s17, [#allocation10], %s2414_s10, %s2414_s10, %s2416_s23  }
  0x3d   : > { %s2483_s19 = smov (%p2009_p4, %s43_s19), 0  ;;  %s2048_s9 = sshll.u32 %s2007_s20, 4 }
  0x3e   : > { %2448 = sst [smem:[#allocation24_spill]] %s2483_s19  ;;  %s2051_s16 = sshll.u32 %s1867_s30, 8 }
  0x3f   : > { %s47_s22 = ssub.s32 %s1867_s30, %s2483_s19  ;;  %p2449_p3 = scmp.lt.s32.totalorder %s1871_s6, 2 }
  0x40   : > { %p50_p8 = scmp.eq.s32.totalorder %s47_s22, 0  ;;  %s318_s17 = sand.u32 1, %s1871_s6  }
  0x41   : > { %p2059_p7 = pnand %p2449_p3, %p1969_p5  ;;  %s2451_s21 = sadd.s32 1, %s1859_s28 }
  0x42   : > { %s2067_s24 = scalar_select %p50_p8, %s1859_s28, %s2451_s21  }
  0x43   : > { %s2450_s14 = scalar_select %p2059_p7, 1, 0 }
  0x44   : > { %2452 = sst [smem:[#allocation25_spill]] %s2067_s24  ;;  %s2453_s1 = sld [smem:[#allocation26_spill]] }
  0x45   : > { %s322_s11 = scalar_lea.vmem [#allocation6], %s2048_s9  ;;  %s1876_s19 = smov [#allocation11]  }
  0x46   : > { %s331_s3 = sshll.u32 %s322_s11, 4  ;;  %s2078_s26 = sshll.u32 %s1876_s19, 4  ;;  %s2076_s3 = int_to_ptr.vmem [resolvable:$true] %s331_s3  ;;  %s282_s26 = int_to_ptr.vmem [resolvable:$true] %s2078_s26 }
  0x47   : > { %s2080_s22 = scalar_lea.sflag [#allocation7], %s318_s17  ;;  %p2086_p9 = pneg %p2059_p7 }
  0x49   : > { %s2454_s10 = scalar_select %p2086_p9, 1, 0 }
  0x4a   : > { %s2073_s23 = scalar_lea.hbm %s2453_s1, %s2051_s16  ;;  %s1634_s24 = scalar_lea.hbm %s2453_s1, 512 }
  0x4b   : > { %s1629_s21 = scalar_lea.hbm %s2073_s23, 256  ;;  %p1635_p1 = scmp.lt.u32.totalorder %s2073_s23, %s2453_s1 }
  0x4c   : > { %p1630_p5 = scmp.ne.s32.totalorder %s2073_s23, %s1629_s21  ;;  %p1636_p4 = scmp.lt.u32.totalorder %s1634_s24, %s1629_s21 }
  0x4d   : > { %p1638_p6 = scmp.lt.u32.totalorder %s1629_s21, %s2073_s23 }
  0x4e   : > { %p1632_p12 = pnand %p2086_p9, %p1630_p5  ;;  %p1637_p13 = por %p1636_p4, %p1635_p1 }
  0x50   : > { %p1633_p0 = pneg %p1632_p12  ;;  %p1639_p11 = por %p1638_p6, %p1637_p13 }
  0x52   : > { %p1640_p3 = pnand %p1639_p11, %p1633_p0 }
  0x54   : > { %1643 = shalt.err (!%p1640_p3)
}
  0x55   : > { %s1644_s17 = scalar_lea.vmem %s2076_s3, 256  ;;  %s1877_s25 = smov [#allocation6]  }
  0x56   : > { %p1645_p8 = scmp.ne.s32.totalorder %s2076_s3, %s1644_s17  ;;  %s1649_s11 = sshll.u32 %s1877_s25, 4  ;;  %s1650_s11 = int_to_ptr.vmem [resolvable:$false] %s1649_s11 }
  0x57   : > { %s1651_s28 = scalar_lea.vmem %s1650_s11, 512  ;;  %p1652_p10 = scmp.lt.s32.totalorder %s2076_s3, %s1650_s11 }
  0x58   : > { %p1647_p5 = pnand %p1645_p8, %p2086_p9  ;;  %p1653_p2 = scmp.lt.s32.totalorder %s1651_s28, %s1644_s17 }
  0x5a   : > { %p1648_p12 = pneg %p1647_p5  ;;  %p1654_p1 = por %p1653_p2, %p1652_p10 }
  0x5c   : > { %p1655_p4 = pnand %p1654_p1, %p1648_p12 }
  0x5e   : > { %1658 = shalt.err (!%p1655_p4)
}
  0x5f   : > { %s2455_s24 = smov 4   ;;  %s2456_s21 = smov 64  }
  0x60   : > { %1514 = dma.hbm_to_vmem [thread:$0]  (!%p2059_p7), %s2073_s23, 256, %s2076_s3, %s2080_s22, %s2456_s21, %s2456_s21, %s2455_s24  }
  0x61   : > { %s2457_s4 = sld [smem:[#allocation28_spill]]  ;;  %p2458_p10 = scmp.ne.s32.totalorder %s2445_s18, 0 }
  0x63   : > { %p2459_p0 = pneg %p2458_p10 }
  0x67   : > { %s1659_s11 = scalar_lea.hbm %s2457_s4, 16 }
  0x68   : > { %p1660_p2 = scmp.ne.s32.totalorder %s2457_s4, %s1659_s11  ;;  %p1666_p11 = scmp.lt.u32.totalorder %s1659_s11, %s2457_s4 }
  0x6a   : > { %p1662_p13 = pnand %p1660_p2, %p2459_p0 }
  0x6c   : > { %p1663_p6 = pneg %p1662_p13 }
  0x6e   : > { %p1668_p3 = pnand %p1666_p11, %p1663_p6 }
  0x70   : > { %1671 = shalt.err (!%p1668_p3)
}
  0x71   : > { %s1672_s3 = scalar_lea.vmem %s282_s26, 16  ;;  %p2460_p5 = pmov %p2459_p0 }
  0x72   : > { %p1673_p8 = scmp.ne.s32.totalorder %s282_s26, %s1672_s3  ;;  %s1679_s23 = scalar_lea.vmem %s282_s26, 32 }
  0x73   : > { %p1680_p4 = scmp.lt.s32.totalorder %s282_s26, %s282_s26  ;;  %p1681_p7 = scmp.lt.s32.totalorder %s1679_s23, %s1672_s3 }
  0x74   : > { %p1675_p12 = pnand %p1673_p8, %p2460_p5 }
  0x75   : > { %p1682_p9 = por %p1681_p7, %p1680_p4 }
  0x76   : > { %p1676_p1 = pneg %p1675_p12 }
  0x78   : > { %p1683_p0 = pnand %p1682_p9, %p1676_p1 }
  0x7a   : > { %1686 = shalt.err (!%p1683_p0)
}
  0x7b   : > { %1507 = dma.hbm_to_vmem [thread:$0]  (!%p2458_p10), %s2457_s4, 16, %s282_s26, [#allocation10]  }
  0x7c   : > { %s2138_s11 = scalar_lea.hbm %s2401_s0, %s2051_s16  ;;  %s299_s17 = scalar_lea.vmem [#allocation3], %s2048_s9 }
  0x7d   : > { %s308_s18 = sshll.u32 %s299_s17, 4  ;;  %s2147_s23 = scalar_lea.hbm %s2403_s2, %s2051_s16  ;;  %s2141_s18 = int_to_ptr.vmem [resolvable:$true] %s308_s18 }
  0x7e   : > { %s296_s19 = scalar_lea.sflag [#allocation4], %s2007_s20  ;;  %s1687_s26 = scalar_lea.hbm %s2138_s11, 256 }
  0x7f   : > { %p1688_p7 = scmp.ne.s32.totalorder %s2138_s11, %s1687_s26  ;;  %p2461_p9 = scmp.ne.s32.totalorder %s2454_s10, 0 }
  0x80   : > { %s1692_s25 = scalar_lea.hbm %s2401_s0, 512  ;;  %p1693_p13 = scmp.lt.u32.totalorder %s2138_s11, %s2401_s0 }
  0x81   : > { %p1690_p2 = pnand %p1688_p7, %p2461_p9  ;;  %p1694_p6 = scmp.lt.u32.totalorder %s1692_s25, %s1687_s26 }
  0x82   : > { %p1696_p3 = scmp.lt.u32.totalorder %s1687_s26, %s2138_s11 }
  0x83   : > { %p1691_p10 = pneg %p1690_p2  ;;  %p1695_p11 = por %p1694_p6, %p1693_p13 }
  0x85   : > { %p1697_p8 = por %p1696_p3, %p1695_p11 }
  0x87   : > { %p1698_p5 = pnand %p1697_p8, %p1691_p10 }
  0x89   : > { %1701 = shalt.err (!%p1698_p5)
}
  0x8a   : > { %s1702_s16 = scalar_lea.vmem %s2141_s18, 256  ;;  %s1878_s17 = smov [#allocation3]  }
  0x8b   : > { %p1703_p12 = scmp.ne.s32.totalorder %s2141_s18, %s1702_s16  ;;  %s1707_s28 = sshll.u32 %s1878_s17, 4  ;;  %s1708_s28 = int_to_ptr.vmem [resolvable:$false] %s1707_s28 }
  0x8c   : > { %s1709_s4 = scalar_lea.vmem %s1708_s28, 512  ;;  %p1710_p0 = scmp.lt.s32.totalorder %s2141_s18, %s1708_s28 }
  0x8d   : > { %p1705_p1 = pnand %p1703_p12, %p2461_p9  ;;  %p1711_p7 = scmp.lt.s32.totalorder %s1709_s4, %s1702_s16 }
  0x8f   : > { %p1706_p4 = pneg %p1705_p1  ;;  %p1712_p2 = por %p1711_p7, %p1710_p0 }
  0x91   : > { %p1713_p13 = pnand %p1712_p2, %p1706_p4 }
  0x93   : > { %1716 = shalt.err (!%p1713_p13)
}
  0x94   : > { %p2462_p10 = scmp.ne.s32.totalorder %s2450_s14, 0  ;;  %s345_s7 = scalar_lea.vmem [#allocation8], %s2048_s9 }
  0x95   : > { %s354_s3 = sshll.u32 %s345_s7, 4  ;;  %s1357_s26 = sshll.u32 %s2007_s20, 3  ;;  %s2177_s3 = int_to_ptr.vmem [resolvable:$true] %s354_s3 }
  0x96   : > { %1511 = dma.hbm_to_vmem [thread:$0]  (!%p2462_p10), %s2138_s11, 256, %s2141_s18, %s296_s19, %s2456_s21, %s2456_s21, %s2455_s24  }
  0x97   : > { %s1717_s1 = scalar_lea.hbm %s2147_s23, 256  ;;  %s1722_s16 = scalar_lea.hbm %s2403_s2, 512 }
  0x98   : > { %p1718_p6 = scmp.ne.s32.totalorder %s2147_s23, %s1717_s1  ;;  %p1723_p8 = scmp.lt.u32.totalorder %s2147_s23, %s2403_s2 }
  0x99   : > { %p1724_p5 = scmp.lt.u32.totalorder %s1722_s16, %s1717_s1  ;;  %p1726_p1 = scmp.lt.u32.totalorder %s1717_s1, %s2147_s23 }
  0x9a   : > { %p1720_p11 = pnand %p1718_p6, %p2461_p9 }
  0x9b   : > { %p1725_p12 = por %p1724_p5, %p1723_p8 }
  0x9c   : > { %p1721_p3 = pneg %p1720_p11 }
  0x9d   : > { %p1727_p4 = por %p1726_p1, %p1725_p12 }
  0x9f   : > { %p1728_p0 = pnand %p1727_p4, %p1721_p3 }
  0xa1   : > { %1731 = shalt.err (!%p1728_p0)
}
  0xa2   : > { %s1732_s9 = scalar_lea.vmem %s2177_s3, 256  ;;  %s1879_s11 = smov [#allocation8]  }
  0xa3   : > { %p1733_p7 = scmp.ne.s32.totalorder %s2177_s3, %s1732_s9  ;;  %s1737_s18 = sshll.u32 %s1879_s11, 4  ;;  %s1738_s18 = int_to_ptr.vmem [resolvable:$false] %s1737_s18 }
  0xa4   : > { %s1739_s19 = scalar_lea.vmem %s1738_s18, 512  ;;  %p1740_p6 = scmp.lt.s32.totalorder %s2177_s3, %s1738_s18 }
  0xa5   : > { %p1735_p2 = pnand %p1733_p7, %p2461_p9  ;;  %p1741_p11 = scmp.lt.s32.totalorder %s1739_s19, %s1732_s9 }
  0xa7   : > { %p1736_p13 = pneg %p1735_p2  ;;  %p1742_p8 = por %p1741_p11, %p1740_p6 }
  0xa9   : > { %p1743_p5 = pnand %p1742_p8, %p1736_p13 }
  0xab   : > { %1746 = shalt.err (!%p1743_p5)
}
  0xac   : > { %1517 = dma.hbm_to_vmem [thread:$0]  (!%p2462_p10), %s2147_s23, 256, %s2177_s3, %s2080_s22, %s2456_s21, %s2456_s21, %s2455_s24  }
  0xad   : > { %s1358_s4 = sshll.u32 %s1867_s30, 7  ;;  %s368_s25 = scalar_lea.vmem [#allocation12], %s1357_s26 }
  0xae   : > { %s2209_s6 = scalar_lea.hbm %s2406_s5, %s1358_s4  ;;  %s375_s16 = sshll.u32 %s368_s25, 4  ;;  %s376_s16 = int_to_ptr.vmem [resolvable:$true] %s375_s16 }
  0xaf   : > { %s365_s17 = scalar_lea.sflag [#allocation13], %s2007_s20  ;;  %s1747_s28 = scalar_lea.hbm %s2209_s6, 128 }
  0xb0   : > { %p1748_p3 = scmp.ne.s32.totalorder %s2209_s6, %s1747_s28  ;;  %s1752_s21 = scalar_lea.hbm %s2406_s5, 256 }
  0xb1   : > { %p1753_p4 = scmp.lt.u32.totalorder %s2209_s6, %s2406_s5  ;;  %p1754_p0 = scmp.lt.u32.totalorder %s1752_s21, %s1747_s28 }
  0xb2   : > { %p1750_p12 = pnand %p1748_p3, %p2461_p9  ;;  %p1756_p2 = scmp.lt.u32.totalorder %s1747_s28, %s2209_s6 }
  0xb3   : > { %p1755_p7 = por %p1754_p0, %p1753_p4 }
  0xb4   : > { %p1751_p1 = pneg %p1750_p12 }
  0xb5   : > { %p1757_p13 = por %p1756_p2, %p1755_p7 }
  0xb7   : > { %p1758_p6 = pnand %p1757_p13, %p1751_p1 }
  0xb9   : > { %1761 = shalt.err (!%p1758_p6)
}
  0xba   : > { %s1762_s20 = scalar_lea.vmem %s376_s16, 128  ;;  %s1880_s26 = smov [#allocation12]  }
  0xbb   : > { %p1763_p11 = scmp.ne.s32.totalorder %s376_s16, %s1762_s20  ;;  %s1767_s9 = sshll.u32 %s1880_s26, 4  ;;  %s1768_s9 = int_to_ptr.vmem [resolvable:$false] %s1767_s9 }
  0xbc   : > { %s1769_s11 = scalar_lea.vmem %s1768_s9, 256  ;;  %p1770_p3 = scmp.lt.s32.totalorder %s376_s16, %s1768_s9 }
  0xbd   : > { %p1765_p8 = pnand %p1763_p11, %p2461_p9  ;;  %p1771_p12 = scmp.lt.s32.totalorder %s1769_s11, %s1762_s20 }
  0xbf   : > { %p1766_p5 = pneg %p1765_p8  ;;  %p1772_p10 = por %p1771_p12, %p1770_p3 }
  0xc1   : > { %p1773_p0 = pnand %p1772_p10, %p1766_p5 }
  0xc3   : > { %1776 = shalt.err (!%p1773_p0)
}
  0xc4   : > { %p2463_p4 = scmp.ne.s32.totalorder %s2450_s14, 0  ;;  %p2464_p1 = scmp.ne.s32.totalorder %s2444_s15, 0 }
  0xc5   : > { %s2234_s10 = sand.u32 (!%p2464_p1), 1, %s1855_s27   ;;  %p2465_p9 = scmp.ne.s32.totalorder (!%p2464_p1), %s2440_s12, 0 }
  0xc6   : > { %1520 = dma.hbm_to_vmem [thread:$0]  (!%p2463_p4), %s2209_s6, 128, %s376_s16, %s365_s17  }
  0xc7   : > { %384 = sbr.rel (%p2464_p1) target bundleno = 1219 (0x4c3), region = 48  ;;  %s1360_s18 = sshll.u32 (!%p2464_p1), %s2234_s10, 4 }
  0xc8   : > { %s387_s19 = scalar_lea.sflag (!%p2464_p1), [#allocation4], %s2234_s10  ;;  %s2238_s4 = scalar_lea.vmem (!%p2464_p1), [#allocation3], %s1360_s18 }
  0xce   : > { %1830 = dma.done.wait (%p2465_p9), %s387_s19, 256  }
  0xcf   : > { %1832 = vsyncadd (%p2465_p9), %s387_s19, 4294967040  ;;  %s395_s14 = sand.u32 1, %s1958_s8   ;;  %s399_s7 = scalar_lea.vmem [#allocation6], %s1360_s18 }
  0xd0   : > { %s396_s15 = scalar_lea.sflag [#allocation7], %s395_s14 }
  0xd1   : > { %1834 = dma.done.wait (%p2465_p9), %s396_s15, 512  }
  0xd2   : > { %1836 = vsyncadd (%p2465_p9), %s396_s15, 4294966784  ;;  %s2249_s1 = scalar_lea.vmem [#allocation8], %s1360_s18  ;;  %p2466_p10 = scmp.eq.s32.totalorder %s1958_s8, 0 }
  0xd4   : > { %1838 = dma.done.wait (%p2466_p10), [#allocation10], 272   ;;  %p2467_p7 = pmov %p2466_p10 }
  0xd5   : > { %s1365_s6 = sshll.u32 %s2234_s10, 3  ;;  %s422_s25 = scalar_lea.sflag [#allocation13], %s2234_s10 }
  0xd6   : > { %1840 = vsyncadd (%p2467_p7), [#allocation10], 4294967024  ;;  %s2259_s16 = scalar_lea.vmem [#allocation12], %s1365_s6 }
  0xd7   : > { %1842 = dma.done.wait (%p2465_p9), %s422_s25, 128  }
  0xd8   : > { %1844 = vsyncadd (%p2465_p9), %s422_s25, 4294967168  ;;  %v1881_v0 = vmov 0.0   ;;  %vm1882_vm0 = vmmov 0   ;;  %vm488_vm1 = vcmask 64512   ;;  %v480_v1 = vld [vmem:[%s399_s7] sm:$0xf]  ;;  %v677_v13 = vlaneseq }
  0xd9   : > { %1411 = vmatprep.subr.bf16.mxu0 %v1881_v0  ;;  %1417 = vmatprep.subr.bf16.mxu1 %v1881_v0  ;;  %v481_v2 = vld [vmem:[%s399_s7 + $0x4] sm:$0xf]  ;;  %v493_v3 = vsel %vm488_vm1, %v480_v1, 0  ;;  %v482_v5 = vld [vmem:[%s399_s7 + $0x8] sm:$0xf]  ;;  %vm753_vm3 = vcmask 1043456  }
  0xda   : > { %1413 = vmatprep.mubr.msk.bf16.mxu0 %vm1882_vm0, %v1881_v0  ;;  %1419 = vmatprep.mubr.msk.bf16.mxu1 %vm1882_vm0, %v1881_v0  ;;  %v539_v4 = vsel %vm488_vm1, %v481_v2, 0  ;;  %v483_v6 = vld [vmem:[%s399_s7 + $0xc] sm:$0xf]  ;;  %v476_v7 = vld [vmem:[%s2238_s4] sm:$0xf]  ;;  %v585_v9 = vsel %vm488_vm1, %v482_v5, 0 }
  0xdb   : > { %1412 = vmatpush3.bf16.xpose.msra.mxu0 %v493_v3  ;;  %1418 = vmatpush3.bf16.xpose.msra.mxu1 %v539_v4  ;;  %v477_v8 = vld [vmem:[%s2238_s4 + $0x4] sm:$0xf]  ;;  %v631_v10 = vsel %vm488_vm1, %v483_v6, 0  ;;  %v478_v11 = vld [vmem:[%s2238_s4 + $0x8] sm:$0xf]  ;;  %v678_v14 = vshrl.u32 %v677_v13, 7 }
  0xdc   : > { %1423 = vmatprep.subr.bf16.mxu0 %v1881_v0  ;;  %1429 = vmatprep.subr.bf16.mxu1 %v1881_v0  ;;  %v479_v12 = vld [vmem:[%s2238_s4 + $0xc] sm:$0xf]  ;;  %v680_v15 = vand.u32 127, %v677_v13  ;;  %v484_v1 = vld [vmem:[%s2249_s1] sm:$0xf]  ;;  %s732_s8 = sld [smem:[#allocation2]] }
  0xdd   : > { %v755_v2 = vsel %vm753_vm3, %v484_v1, 0  ;;  %v485_v3 = vld [vmem:[%s2249_s1 + $0x4] sm:$0xf]  ;;  %s1381_s17 = sshll.u32 %s1863_s29, 7  ;;  %s470_s28 = scalar_lea.vmem [#allocation14], %s1365_s6  ;;  %vm1144_vm4 = vcmask 261120  }
  0xde   : > { %vm681_vm2 = vcmp.gt.s32.totalorder %v680_v15, %v678_v14  ;;  %v801_v4 = vsel %vm753_vm3, %v485_v3, 0  ;;  %s1168_s22 = sshll.u32 %s470_s28, 4  ;;  %s2468_s23 = sld [smem:[#allocation29_spill]]  ;;  %s2354_s22 = int_to_ptr.vmem [resolvable:$true] %s1168_s22 }
  0xdf   : > { %s1155_s29 = scalar_lea.sflag [#allocation5], %s2234_s10  ;;  %s1777_s20 = scalar_lea.vmem %s2354_s22, 128 }
  0xe0   : > { %p1778_p2 = scmp.ne.s32.totalorder %s2354_s22, %s1777_s20  ;;  %p2469_p13 = scmp.ne.s32.totalorder %s2441_s13, 0 }
  0xe1   : > { %s1883_s26 = smov [#allocation14]  }
  0xe2   : > { %1414 = vmatmul.mubr.msk.bf16.vlgmr.msra.gmra.mrb[0].mxu0 %vm488_vm1, %v476_v7  ;;  %1420 = vmatmul.mubr.msk.bf16.vlgmr.msra.gmra.mrb[0].mxu1 %vm488_vm1, %v477_v8  ;;  %s733_s12 = ssub.f32 1.0, %s732_s8  ;;  %v739_v8 = vld [vmem:[%s2259_s16] sm:$0xff]  ;;  %p1779_p6 = pnand %p1778_p2, %p2469_p13 }
  0xe3   : > { %1424 = vmatpush3.bf16.xpose.msra.mxu0 %v585_v9  ;;  %1430 = vmatpush3.bf16.xpose.msra.mxu1 %v631_v10  ;;  %v740_v9 = vstv %s732_s8  ;;  %s1781_s9 = sshll.u32 %s1883_s26, 4  ;;  %s1782_s9 = int_to_ptr.vmem [resolvable:$false] %s1781_s9 }
  0xe4   : > { %1425 = vmatprep.mubr.msk.bf16.mxu0 %vm1882_vm0, %v1881_v0  ;;  %1431 = vmatprep.mubr.msk.bf16.mxu1 %vm1882_vm0, %v1881_v0  ;;  %v741_v14 = vmul.f32 %v740_v9, %v739_v8  ;;  %s2352_s3 = scalar_lea.hbm %s2468_s23, %s1381_s17  ;;  %p1780_p11 = pneg %p1779_p6 }
  0xe5   : > { %1435 = vmatprep.subr.bf16.mxu0 %v1881_v0  ;;  %1441 = vmatprep.subr.bf16.mxu1 %v1881_v0  ;;  %s1783_s11 = scalar_lea.vmem %s1782_s9, 256  ;;  %p1784_p8 = scmp.lt.s32.totalorder %s2354_s22, %s1782_s9 }
  0xe6   : > { %p1785_p5 = scmp.lt.s32.totalorder %s1783_s11, %s1777_s20 }
  0xe8   : > { %p1786_p3 = por %p1785_p5, %p1784_p8 }
  0xea   : > { %1426 = vmatmul.mubr.msk.bf16.vlgmr.msra.gmra.mrb[4].mxu0 %vm488_vm1, %v478_v11  ;;  %1432 = vmatmul.mubr.msk.bf16.vlgmr.msra.gmra.mrb[4].mxu1 %vm488_vm1, %v479_v12  ;;  %v734_v11 = vstv %s733_s12  ;;  %p1787_p12 = pnand %p1786_p3, %p1780_p11 }
  0xeb   : > { %1437 = vmatprep.mubr.msk.bf16.mxu0 %vm1882_vm0, %v1881_v0  ;;  %1443 = vmatprep.mubr.msk.bf16.mxu1 %vm1882_vm0, %v1881_v0 }
  0xec   : > { %1436 = vmatpush3.bf16.msra.mxu0 %v755_v2  ;;  %1442 = vmatpush3.bf16.msra.mxu1 %v801_v4 }
  0xed   : > { %1447 = vmatprep.subr.bf16.mxu0 %v1881_v0  ;;  %1453 = vmatprep.subr.bf16.mxu1 %v1881_v0 }
 0x1b5   : > { %v529_v16 = vpop.f32.mrb[0].mxu0  ;;  %v575_v17 = vpop.f32.mrb[0].mxu1 }
 0x1b6   : > { %v673_v18 = vmul.f32 0.35355338, %v529_v16  ;;  %v1415_v19 = vpop.f32.mrb[1].mxu0  ;;  %v674_v20 = vmul.f32 0.35355338, %v575_v17  ;;  %v1421_v21 = vpop.f32.mrb[1].mxu1 }
 0x1b7   : > { %v532_v22 = vpop.f32.mrb[2].mxu0  ;;  %v578_v23 = vpop.f32.mrb[2].mxu1  ;;  %v486_v17 = vld [vmem:[%s2249_s1 + $0x8] sm:$0xf] }
 0x1b8   : > { %v1416_v24 = vpop.f32.mrb[3].mxu0  ;;  %v1422_v25 = vpop.f32.mrb[3].mxu1  ;;  %v684_v26 = vsel %vm681_vm2, -1e+09, %v673_v18  ;;  %v685_v27 = vsel %vm681_vm2, -1e+09, %v674_v20 }
 0x1b9   : > { %v688_v28 = vsel %vm488_vm1, %v684_v26, -inf  ;;  %v691_v29 = vsel %vm488_vm1, %v685_v27, -inf  ;;  %v847_v22 = vsel %vm753_vm3, %v486_v17, 0  ;;  %v487_v24 = vld [vmem:[%s2249_s1 + $0xc] sm:$0xf] }
 0x1ba   : > { %689 = vmax.xlane.f32.xlu0 %v688_v28 }
 0x1bd   : > { %v621_v30 = vpop.f32.mrb[4].mxu0  ;;  %v667_v31 = vpop.f32.mrb[4].mxu1 }
 0x1be   : > { %v675_v32 = vmul.f32 0.35355338, %v621_v30  ;;  %692 = vmax.xlane.f32.xlu0 %v691_v29  ;;  %v1427_v33 = vpop.f32.mrb[5].mxu0  ;;  %v676_v34 = vmul.f32 0.35355338, %v667_v31  ;;  %v1433_v35 = vpop.f32.mrb[5].mxu1 }
 0x1bf   : > { %v624_v36 = vpop.f32.mrb[6].mxu0  ;;  %v670_v37 = vpop.f32.mrb[6].mxu1  ;;  %v893_v29 = vsel %vm753_vm3, %v487_v24, 0  ;;  %v941_v31 = vld [vmem:[#allocation9 + $0x4] sm:$0xf] }
 0x1c0   : > { %v1428_v38 = vpop.f32.mrb[7].mxu0  ;;  %v686_v39 = vsel %vm681_vm2, -1e+09, %v675_v32  ;;  %v1434_v40 = vpop.f32.mrb[7].mxu1  ;;  %v687_v41 = vsel %vm681_vm2, -1e+09, %v676_v34 }
 0x1c1   : > { %v694_v42 = vsel %vm488_vm1, %v686_v39, -inf  ;;  %v697_v43 = vsel %vm488_vm1, %v687_v41, -inf  ;;  %v946_v36 = vsel %vm753_vm3, %v941_v31, 0 }
 0x1c2   : > { %695 = vmax.xlane.f32.xlu1 %v694_v42 }
 0x1c6   : > { %698 = vmax.xlane.f32.xlu1 %v697_v43 }
 0x247   : > { %v690_v44 = vpop.xlane.xlu0 %689 }
 0x248   : > { %v700_v45 = vsub.f32 %v684_v26, %v690_v44 }
 0x24a   : > { %v704_v46 = vmul.f32 1.442695, %v700_v45 }
 0x24b   : > { %v693_v47 = vpop.xlane.xlu0 %692 }
 0x24c   : > { %1585 = vpow2.f32 %v704_v46  ;;  %v701_v48 = vsub.f32 %v685_v27, %v693_v47  ;;  %v1035_v47 = vld [vmem:[#allocation9 + $0x8] sm:$0xf] }
 0x24e   : > { %v706_v49 = vmul.f32 1.442695, %v701_v48 }
 0x24f   : > { %v696_v50 = vpop.xlane.xlu1 %695 }
 0x250   : > { %1587 = vpow2.f32 %v706_v49  ;;  %v702_v51 = vsub.f32 %v686_v39, %v696_v50  ;;  %v939_v39 = vld [vmem:[#allocation9] sm:$0xf] }
 0x251   : > { %v992_v40 = vsel %vm753_vm3, %v939_v39, 0 }
 0x252   : > { %v708_v52 = vmul.f32 1.442695, %v702_v51 }
 0x253   : > { %v699_v53 = vpop.xlane.xlu1 %698 }
 0x254   : > { %1589 = vpow2.f32 %v708_v52  ;;  %v703_v54 = vsub.f32 %v687_v41, %v699_v53  ;;  %v1084_v41 = vld [vmem:[#allocation9 + $0xc] sm:$0xf]  ;;  %v1040_v52 = vsel %vm753_vm3, %v1035_v47, 0 }
 0x255   : > { %v1089_v45 = vsel %vm753_vm3, %v1084_v41, 0 }
 0x256   : > { %v1586_v55 = vpop.eup %1585  ;;  %v710_v56 = vmul.f32 1.442695, %v703_v54 }
 0x257   : > { %v712_v57 = vsel %vm488_vm1, %v1586_v55, 0.0 }
 0x258   : > { %1591 = vpow2.f32 %v710_v56  ;;  %713 = vadd.xlane.f32.xlu0 %v712_v57 }
 0x25a   : > { %v1588_v58 = vpop.eup %1587 }
 0x25b   : > { %v715_v59 = vsel %vm488_vm1, %v1588_v58, 0.0 }
 0x25c   : > { %716 = vadd.xlane.f32.xlu1 %v715_v59 }
 0x25e   : > { %v1590_v60 = vpop.eup %1589 }
 0x25f   : > { %v718_v61 = vsel %vm488_vm1, %v1590_v60, 0.0 }
 0x260   : > { %719 = vadd.xlane.f32.xlu0 %v718_v61 }
 0x262   : > { %v1592_v62 = vpop.eup %1591 }
 0x263   : > { %v721_v63 = vsel %vm488_vm1, %v1592_v62, 0.0 }
 0x264   : > { %722 = vadd.xlane.f32.xlu1 %v721_v63 }
 0x2e5   : > { %v714_v5 = vpop.xlane.xlu0 %713 }
 0x2e6   : > { %1593 = vrcp.f32 %v714_v5 }
 0x2e9   : > { %v717_v6 = vpop.xlane.xlu1 %716 }
 0x2ea   : > { %1595 = vrcp.f32 %v717_v6 }
 0x2ed   : > { %v720_v7 = vpop.xlane.xlu0 %719 }
 0x2ee   : > { %1597 = vrcp.f32 %v720_v7 }
 0x2f0   : > { %v1594_v10 = vpop.eup %1593 }
 0x2f1   : > { %v728_v12 = vmul.f32 %v1594_v10, %v1586_v55  ;;  %v723_v13 = vpop.xlane.xlu1 %722 }
 0x2f2   : > { %1599 = vrcp.f32 %v723_v13 }
 0x2f3   : > { %v735_v15 = vmul.f32 %v734_v11, %v728_v12 }
 0x2f4   : > { %v1596_v16 = vpop.eup %1595 }
 0x2f5   : > { %v729_v18 = vmul.f32 %v1596_v16, %v1588_v58  ;;  %v742_v19 = vadd.f32 %v741_v14, %v735_v15  ;;  %v1379_v15 = vld [vmem:[#allocation11] ss:$0 sm:$0xff] }
 0x2f7   : > { %v736_v20 = vmul.f32 %v734_v11, %v729_v18  ;;  %v746_v21 = vpack.c.bf16 %v742_v19, %v742_v19 }
 0x2f8   : > { %v1598_v23 = vpop.eup %1597 }
 0x2f9   : > { %v730_v25 = vmul.f32 %v1598_v23, %v1590_v60  ;;  %1438 = vmatmul.mubr.msk.bf16.vlgmr.msra.gmra.mrb[8].mxu0 %vm488_vm1, %v746_v21  ;;  %v743_v26 = vadd.f32 %v741_v14, %v736_v20 }
 0x2fa   : > { %1448 = vmatpush3.bf16.msra.mxu0 %v847_v22  ;;  %1449 = vmatprep.mubr.msk.bf16.mxu0 %vm1882_vm0, %v1881_v0 }
 0x2fb   : > { %v737_v27 = vmul.f32 %v734_v11, %v730_v25  ;;  %v747_v28 = vpack.c.bf16 %v743_v26, %v743_v26  ;;  %1459 = vmatprep.subr.bf16.mxu0 %v1881_v0 }
 0x2fc   : > { %v1600_v30 = vpop.eup %1599 }
 0x2fd   : > { %v731_v32 = vmul.f32 %v1600_v30, %v1592_v62  ;;  %1444 = vmatmul.mubr.msk.bf16.vlgmr.msra.gmra.mrb[8].mxu1 %vm488_vm1, %v747_v28  ;;  %v744_v33 = vadd.f32 %v741_v14, %v737_v27 }
 0x2fe   : > { %1454 = vmatpush3.bf16.msra.mxu1 %v893_v29  ;;  %1455 = vmatprep.mubr.msk.bf16.mxu1 %vm1882_vm0, %v1881_v0 }
 0x2ff   : > { %v738_v34 = vmul.f32 %v734_v11, %v731_v32  ;;  %v748_v35 = vpack.c.bf16 %v744_v33, %v744_v33  ;;  %1465 = vmatprep.subr.bf16.mxu1 %v1881_v0 }
 0x301   : > { %1450 = vmatmul.mubr.msk.bf16.vlgmr.msra.gmra.mrb[12].mxu0 %vm488_vm1, %v748_v35  ;;  %v745_v37 = vadd.f32 %v741_v14, %v738_v34 }
 0x302   : > { %1460 = vmatpush3.bf16.msra.mxu0 %v946_v36  ;;  %1461 = vmatprep.mubr.msk.bf16.mxu0 %vm1882_vm0, %v1881_v0 }
 0x303   : > { %v749_v38 = vpack.c.bf16 %v745_v37, %v745_v37  ;;  %1471 = vmatprep.subr.bf16.mxu0 %v1881_v0 }
 0x305   : > { %1456 = vmatmul.mubr.msk.bf16.vlgmr.msra.gmra.mrb[12].mxu1 %vm488_vm1, %v749_v38 }
 0x306   : > { %1467 = vmatprep.mubr.msk.bf16.mxu1 %vm1882_vm0, %v1881_v0  ;;  %1466 = vmatpush3.bf16.msra.mxu1 %v992_v40 }
 0x307   : > { %1477 = vmatprep.subr.bf16.mxu1 %v1881_v0 }
 0x3cc   : > { %v791_v42 = vpop.f32.mrb[8].mxu0 }
 0x3cd   : > { %v935_v43 = vpack.c.bf16 %v791_v42, %v791_v42  ;;  %v1439_v44 = vpop.f32.mrb[9].mxu0 }
 0x3ce   : > { %v794_v46 = vpop.f32.mrb[10].mxu0 }
 0x3cf   : > { %v1440_v48 = vpop.f32.mrb[11].mxu0  ;;  %1468 = vmatmul.mubr.msk.bf16.vlgmr.msra.gmra.mrb[16].mxu1 %vm488_vm1, %v935_v43 }
 0x3d0   : > { %v837_v49 = vpop.f32.mrb[8].mxu1  ;;  %1478 = vmatpush3.bf16.msra.mxu1 %v1089_v45  ;;  %1479 = vmatprep.mubr.msk.bf16.mxu1 %vm1882_vm0, %v1881_v0 }
 0x3d1   : > { %v936_v50 = vpack.c.bf16 %v837_v49, %v837_v49  ;;  %v1445_v51 = vpop.f32.mrb[9].mxu1 }
 0x3d2   : > { %v840_v53 = vpop.f32.mrb[10].mxu1 }
 0x3d3   : > { %v1446_v54 = vpop.f32.mrb[11].mxu1  ;;  %1462 = vmatmul.mubr.msk.bf16.vlgmr.msra.gmra.mrb[16].mxu0 %vm488_vm1, %v936_v50 }
 0x3d4   : > { %1472 = vmatpush3.bf16.msra.mxu0 %v1040_v52  ;;  %v883_v55 = vpop.f32.mrb[12].mxu0  ;;  %1473 = vmatprep.mubr.msk.bf16.mxu0 %vm1882_vm0, %v1881_v0 }
 0x3d5   : > { %v1451_v56 = vpop.f32.mrb[13].mxu0  ;;  %v937_v60 = vpack.c.bf16 %v883_v55, %v883_v55 }
 0x3d6   : > { %v886_v57 = vpop.f32.mrb[14].mxu0 }
 0x3d7   : > { %v1452_v58 = vpop.f32.mrb[15].mxu0 }
 0x3d8   : > { %v929_v59 = vpop.f32.mrb[12].mxu1 }
 0x3d9   : > { %v938_v61 = vpack.c.bf16 %v929_v59, %v929_v59  ;;  %v1457_v62 = vpop.f32.mrb[13].mxu1 }
 0x3da   : > { %v932_v63 = vpop.f32.mrb[14].mxu1 }
 0x3db   : > { %v1458_v1 = vpop.f32.mrb[15].mxu1  ;;  %1474 = vmatmul.mubr.msk.bf16.vlgmr.msra.gmra.mrb[20].mxu0 %vm488_vm1, %v937_v60  ;;  %1480 = vmatmul.mubr.msk.bf16.vlgmr.msra.gmra.mrb[20].mxu1 %vm488_vm1, %v938_v61 }
 0x4a2   : > { %v1028_v2 = vpop.f32.mrb[16].mxu1 }
 0x4a3   : > { %v1469_v3 = vpop.f32.mrb[17].mxu1 }
 0x4a4   : > { %v1031_v4 = vpop.f32.mrb[18].mxu1 }
 0x4a5   : > { %v1470_v5 = vpop.f32.mrb[19].mxu1 }
 0x4a6   : > { %v982_v0 = vpop.f32.mrb[16].mxu0 }
 0x4a7   : > { %v1029_v6 = vadd.f32 %v1028_v2, %v982_v0  ;;  %v1463_v7 = vpop.f32.mrb[17].mxu0 }
 0x4a8   : > { %v985_v8 = vpop.f32.mrb[18].mxu0 }
 0x4a9   : > { %v1464_v9 = vpop.f32.mrb[19].mxu0 }
 0x4ae   : > { %v1076_v10 = vpop.f32.mrb[20].mxu0  ;;  %v1125_v11 = vpop.f32.mrb[20].mxu1 }
 0x4af   : > { %v1082_v12 = vadd.f32 %v1076_v10, %v1029_v6  ;;  %v1475_v13 = vpop.f32.mrb[21].mxu0  ;;  %v1481_v14 = vpop.f32.mrb[21].mxu1 }
 0x4b0   : > { %v1079_v16 = vpop.f32.mrb[22].mxu0  ;;  %v1128_v17 = vpop.f32.mrb[22].mxu1 }
 0x4b1   : > { %v1131_v18 = vadd.f32 %v1125_v11, %v1082_v12  ;;  %v1476_v19 = vpop.f32.mrb[23].mxu0  ;;  %v1482_v20 = vpop.f32.mrb[23].mxu1 }
 0x4b3   : > { %v1143_v21 = vadd.f32 %v1379_v15, %v1131_v18 }
 0x4b5   : > { %1145 = vst.msk [vmem:[%s470_s28] sm:$0xff] %vm1144_vm4, %v1143_v21 }
 0x4b6   : > { %1790 = shalt.err (!%p1787_p12)
}
 0x4b7   : > { %s1791_s10 = scalar_lea.hbm %s2352_s3, 128  ;;  %s1795_s4 = scalar_lea.hbm %s2468_s23, 256 }
 0x4b8   : > { %p1792_p0 = scmp.ne.s32.totalorder %s2352_s3, %s1791_s10  ;;  %p1796_p9 = scmp.lt.u32.totalorder %s2352_s3, %s2468_s23 }
 0x4b9   : > { %p1797_p10 = scmp.lt.u32.totalorder %s1795_s4, %s1791_s10  ;;  %p1799_p2 = scmp.lt.u32.totalorder %s1791_s10, %s2352_s3 }
 0x4ba   : > { %p1793_p4 = pnand %p1792_p0, %p2469_p13 }
 0x4bb   : > { %p1798_p7 = por %p1797_p10, %p1796_p9 }
 0x4bc   : > { %p1794_p1 = pneg %p1793_p4 }
 0x4bd   : > { %p1800_p6 = por %p1799_p2, %p1798_p7 }
 0x4bf   : > { %p1801_p11 = pnand %p1800_p6, %p1794_p1 }
 0x4c1   : > { %1804 = shalt.err (!%p1801_p11)
}
 0x4c2   : > { %1499 = dma.vmem_to_hbm [thread:$0]  (%p2469_p13), %s2354_s22, 128, %s2352_s3, %s1155_s29  }
 0x4c3 PF: > { %s2470_s7 = sld [smem:[#allocation20_spill]]  ;;  %s2471_s1 = sld [smem:[#allocation23_spill]] }
 0x4c4   : > { %s2472_s6 = sld [smem:[#allocation22_spill]] }
 0x4c9   : > { %s1180_s25 = sand.u32 1, %s2470_s7   ;;  %p2473_p8 = scmp.ne.s32.totalorder %s2471_s1, 0 }
 0x4ca   : > { %p2474_p5 = scmp.ge.s32.totalorder %s2472_s6, 2  ;;  %s1181_s16 = scalar_lea.sflag [#allocation5], %s1180_s25 }
 0x4cc   : > { %p1522_p3 = pnand %p2474_p5, %p2473_p8 }
 0x4ce   : > { %1846 = dma.done.wait (!%p1522_p3), %s1181_s16, 128  }
 0x4cf   : > { %1848 = vsyncadd (!%p1522_p3), %s1181_s16, 4294967168  ;;  %s31_s6 = sadd.s32 1, %s2472_s6   ;;  %s2475_s8 = sld [smem:[#allocation21_spill]] }
 0x4d0   : > { %p28_p12 = scmp.ge.s32.totalorder %s31_s6, 4   ;;  %s2476_s28 = sld [smem:[#allocation25_spill]] }
 0x4d1   : > { %s2477_s13 = sld [smem:[#allocation24_spill]]  ;;  %s2478_s26 = smov %s1855_s27 }
 0x4d2   : > { %s2480_s29 = smov %s1867_s30  ;;  %30 = sbr.rel (!%p28_p12) target bundleno = 17 (0x11), region = 150 }
 0x4d5   : > { %s2479_s27 = smov %s2475_s8 }
 0x4d7   : > { %s2481_s30 = smov %s2477_s13 }
 0x4d9   :  { %1186 = vsyncpa [#allocation4], 1 }
 0x4da   :  { %1188 = vsyncpa [#allocation4 + $0x1], 1 }
 0x4db   :  { %1189 = vsyncpa [#allocation7], 1 }
 0x4dc   :  { %1191 = vsyncpa [#allocation7 + $0x1], 1 }
 0x4dd   :  { %1192 = vsyncpa [#allocation10], 1 }
 0x4de   :  { %1193 = vsyncpa [#allocation13], 1 }
 0x4df   :  { %1195 = vsyncpa [#allocation13 + $0x1], 1 }
 0x4e0   :  { %1196 = vsyncpa [#allocation5], 1 }
 0x4e1   :  { %1198 = vsyncpa [#allocation5 + $0x1], 1 }

// kernel: ykt_forward.33
= control target key start
LH: loop header
LB: loop body
LE: loop exit
PB: predicated region body
PF: predicated region fallthrough
CT: control target
= control target key end

     0   :  { %vm19_vm0 = vcmask 261120   ;;  %v203_v0 = vmov 0.0   ;;  %vm204_vm1 = vmmov 0   ;;  %vm79_vm2 = vcmask 785408   ;;  %s259_s1 = inlined_call_operand.vmem [shape: bf16[96,32], index: 1, kind: input, shape index: {}]   ;;  %s260_s0 = inlined_call_operand.vmem [shape: bf16[16,96], index: 0, kind: input, shape index: {}]   ;;  %s261_s2 = inlined_call_operand.vmem [shape: f32[1,32], index: 2, kind: input, shape index: {}]   ;;  %s262_s3 = inlined_call_operand.vmem [shape: bf16[16,32], index: 3, kind: output, shape index: {}]  }
   0x1   :  { %178 = vmatprep.subr.bf16.mxu0 %v203_v0  ;;  %v196_v1 = vld [vmem:[%s259_s1] sm:$0xff]   ;;  %190 = vmatprep.mubr.msk.bf16.mxu0 %vm204_vm1, %v203_v0  ;;  %20 = vst.msk [vmem:[#allocation2] sm:$0xff] %vm19_vm0, %v203_v0  ;;  %21 = vst.msk [vmem:[#allocation2 + $0x8] sm:$0xff] %vm19_vm0, %v203_v0  ;;  %v197_v2 = vld [vmem:[%s259_s1 + $0x8] sm:$0xff]   ;;  %vm151_vm3 = vcmask 257024  }
   0x2   :  { %179 = vmatpush3.bf16.msra.mxu0 %v196_v1  ;;  %v198_v3 = vld [vmem:[%s259_s1 + $0x10] sm:$0xff]   ;;  %v199_v4 = vld [vmem:[%s259_s1 + $0x18] sm:$0xff]   ;;  %v200_v5 = vld [vmem:[%s259_s1 + $0x20] sm:$0xff]  }
   0x3   :  { %180 = vmatprep.subr.bf16.mxu0 %v203_v0  ;;  %v201_v6 = vld [vmem:[%s259_s1 + $0x28] sm:$0xff]   ;;  %v202_v7 = vld [vmem:[%s260_s0] sm:$0xff]  }
   0x4   :  { %v166_v16 = vld [vmem:[%s261_s2] ss:$0 sm:$0xff] }
   0x6   :  { %181 = vmatpush3.bf16.msra.mxu0 %v197_v2 }
   0x7   :  { %182 = vmatprep.subr.bf16.mxu0 %v203_v0 }
   0x8   :  { %v22_v8 = vld [vmem:[#allocation2] sm:$0xff]  ;;  %v23_v10 = vld [vmem:[#allocation2 + $0x8] sm:$0xff] }
   0xa   :  { %183 = vmatpush3.bf16.msra.mxu0 %v198_v3 }
   0xb   :  { %184 = vmatprep.subr.bf16.mxu0 %v203_v0 }
   0xe   :  { %185 = vmatpush3.bf16.msra.mxu0 %v199_v4 }
   0xf   :  { %186 = vmatprep.subr.bf16.mxu0 %v203_v0 }
  0x12   :  { %187 = vmatpush3.bf16.msra.mxu0 %v200_v5 }
  0x13   :  { %188 = vmatprep.subr.bf16.mxu0 %v203_v0 }
  0x16   :  { %189 = vmatpush3.bf16.msra.mxu0 %v201_v6 }
  0x19   :  { %191 = vmatmul.mubr.msk.bf16.vlgmr.msra.gmra.mrb[0].mxu0 %vm79_vm2, %v202_v7 }
  0xec   :  { %v117_v9 = vpop.f32.mrb[0].mxu0 }
  0xed   :  { %v124_v11 = vadd.f32 %v117_v9, %v22_v8  ;;  %v192_v12 = vpop.f32.mrb[1].mxu0 }
  0xee   :  { %v120_v13 = vpop.f32.mrb[2].mxu0 }
  0xef   :  { %127 = vst.msk [vmem:[#allocation2] sm:$0xff] %vm19_vm0, %v124_v11  ;;  %v125_v14 = vadd.f32 %v120_v13, %v23_v10  ;;  %v193_v15 = vpop.f32.mrb[3].mxu0 }
  0xf1   :  { %128 = vst.msk [vmem:[#allocation2 + $0x8] sm:$0xff] %vm19_vm0, %v125_v14 }
  0xf6   :  { %v132_v17 = vld [vmem:[#allocation2] sm:$0xff] }
  0xf7   :  { %v141_v18 = vadd.f32 %v166_v16, %v132_v17 }
  0xf8   :  { %v133_v19 = vld [vmem:[#allocation2 + $0x8] sm:$0xff] }
  0xf9   :  { %v169_v20 = vpack.c.bf16 %v141_v18, %v141_v18  ;;  %v142_v21 = vadd.f32 %v166_v16, %v133_v19 }
  0xfb   :  { %152 = vst.msk [vmem:[%s262_s3] sm:$0xf] %vm151_vm3, %v169_v20  ;;  %v170_v22 = vpack.c.bf16 %v142_v21, %v142_v21 }
  0xfd   :  { %153 = vst.msk [vmem:[%s262_s3 + $0x4] sm:$0xf] %vm151_vm3, %v170_v22 }

// kernel: ykt_forward.35
= control target key start
LH: loop header
LB: loop body
LE: loop exit
PB: predicated region body
PF: predicated region fallthrough
CT: control target
= control target key end

     0   :  { %vm19_vm0 = vcmask 523264   ;;  %v151_v0 = vmov 0.0   ;;  %vm152_vm1 = vmmov 0   ;;  %vm47_vm2 = vcmask 261120   ;;  %s195_s1 = inlined_call_operand.vmem [shape: bf16[32,64], index: 1, kind: input, shape index: {}]   ;;  %s196_s0 = inlined_call_operand.vmem [shape: bf16[16,32], index: 0, kind: input, shape index: {}]   ;;  %s197_s2 = inlined_call_operand.vmem [shape: f32[1,64], index: 2, kind: input, shape index: {}]   ;;  %s198_s3 = inlined_call_operand.vmem [shape: bf16[16,64], index: 3, kind: output, shape index: {}]  }
   0x1   :  { %138 = vmatprep.subr.bf16.mxu0 %v151_v0  ;;  %v148_v1 = vld [vmem:[%s195_s1] sm:$0xff]   ;;  %142 = vmatprep.mubr.msk.bf16.mxu0 %vm152_vm1, %v151_v0  ;;  %20 = vst.msk [vmem:[#allocation2] sm:$0xff] %vm19_vm0, %v151_v0  ;;  %21 = vst.msk [vmem:[#allocation2 + $0x8] sm:$0xff] %vm19_vm0, %v151_v0  ;;  %v149_v2 = vld [vmem:[%s195_s1 + $0x8] sm:$0xff]   ;;  %vm119_vm3 = vcmask 519168  }
   0x2   :  { %139 = vmatpush3.bf16.msra.mxu0 %v148_v1  ;;  %v150_v3 = vld [vmem:[%s196_s0] sm:$0xff]  }
   0x3   :  { %140 = vmatprep.subr.bf16.mxu0 %v151_v0  ;;  %v130_v12 = vld [vmem:[%s197_s2] ss:$0 sm:$0xff] }
   0x6   :  { %141 = vmatpush3.bf16.msra.mxu0 %v149_v2 }
   0x8   :  { %v22_v4 = vld [vmem:[#allocation2] sm:$0xff]  ;;  %v23_v6 = vld [vmem:[#allocation2 + $0x8] sm:$0xff] }
   0x9   :  { %143 = vmatmul.mubr.msk.bf16.vlgmr.msra.gmra.mrb[0].mxu0 %vm47_vm2, %v150_v3 }
  0xdc   :  { %v85_v5 = vpop.f32.mrb[0].mxu0 }
  0xdd   :  { %v92_v7 = vadd.f32 %v85_v5, %v22_v4  ;;  %v144_v8 = vpop.f32.mrb[1].mxu0 }
  0xde   :  { %v88_v9 = vpop.f32.mrb[2].mxu0 }
  0xdf   :  { %95 = vst.msk [vmem:[#allocation2] sm:$0xff] %vm19_vm0, %v92_v7  ;;  %v93_v10 = vadd.f32 %v88_v9, %v23_v6  ;;  %v145_v11 = vpop.f32.mrb[3].mxu0 }
  0xe1   :  { %96 = vst.msk [vmem:[#allocation2 + $0x8] sm:$0xff] %vm19_vm0, %v93_v10 }
  0xe6   :  { %v100_v13 = vld [vmem:[#allocation2] sm:$0xff] }
  0xe7   :  { %v109_v14 = vadd.f32 %v130_v12, %v100_v13 }
  0xe8   :  { %v101_v15 = vld [vmem:[#allocation2 + $0x8] sm:$0xff] }
  0xe9   :  { %v133_v16 = vpack.c.bf16 %v109_v14, %v109_v14  ;;  %v110_v17 = vadd.f32 %v130_v12, %v101_v15 }
  0xeb   :  { %120 = vst.msk [vmem:[%s198_s3] sm:$0xf] %vm119_vm3, %v133_v16  ;;  %v134_v18 = vpack.c.bf16 %v110_v17, %v110_v17 }
  0xed   :  { %121 = vst.msk [vmem:[%s198_s3 + $0x4] sm:$0xf] %vm119_vm3, %v134_v18 }

// kernel: ykt_forward.30
= control target key start
LH: loop header
LB: loop body
LE: loop exit
PB: predicated region body
PF: predicated region fallthrough
CT: control target
= control target key end

     0   :  { %s2176_s0 = inlined_call_operand.hbm [shape: bf16[2,4,8,8], index: 0, kind: input, shape index: {}]   ;;  %s2177_s1 = inlined_call_operand.hbm [shape: bf16[2,4,8,8], index: 1, kind: input, shape index: {}]   ;;  %s2178_s2 = inlined_call_operand.hbm [shape: bf16[2,4,8,8], index: 2, kind: input, shape index: {}]   ;;  %s2179_s3 = inlined_call_operand.hbm [shape: bf16[4,8,32], index: 3, kind: input, shape index: {}]   ;;  %s2180_s4 = inlined_call_operand.hbm [shape: f32[1,32], index: 4, kind: input, shape index: {}]   ;;  %s2181_s5 = inlined_call_operand.hbm [shape: f32[2,8,32], index: 5, kind: output, shape index: {}]  }
   0x1   :  { %2203 = sst [smem:[#allocation21_spill]] %s2177_s1 }
   0x2   :  { %2204 = sst [smem:[#allocation22_spill]] %s2179_s3 }
   0x3   :  { %2205 = sst [smem:[#allocation23_spill]] %s2180_s4 }
   0x4   :  { %10 = vsyncpa [#allocation3], 0 }
   0x5   :  { %12 = vsyncpa [#allocation3 + $0x1], 0 }
   0x6   :  { %13 = vsyncpa [#allocation6], 0 }
   0x7   :  { %15 = vsyncpa [#allocation6 + $0x1], 0 }
   0x8   :  { %16 = vsyncpa [#allocation9], 0 }
   0x9   :  { %17 = vsyncpa [#allocation4], 0 }
   0xa   :  { %19 = vsyncpa [#allocation4 + $0x1], 0  ;;  %s1742_s18 = smov 0   ;;  %s1744_s19 = smov 0  }
   0xb   :  { %s1746_s20 = smov 0   ;;  %s1748_s21 = smov 0  }
   0xc   :  { %s1750_s22 = smov 0   ;;  %s1752_s23 = smov 0  }
   0xd LB: > { %2206 = sst [smem:[#allocation16_spill]] %s1696_s22  ;;  %s1773_s24 = sadd.s32 4294967295, %s1700_s23   ;;  %s1700_s23 = sphi %s1752_s23, %s25_s23   ;;  %s1696_s22 = sphi %s1750_s22, %s2243_s22   ;;  %s1692_s21 = sphi %s1748_s21, %s2242_s21   ;;  %s1688_s20 = sphi %s1746_s20, %s2246_s20   ;;  %s1684_s19 = sphi %s1744_s19, %s2245_s19   ;;  %s1680_s18 = sphi %s1742_s18, %s2244_s18  }
   0xe   : > { %2207 = sst [smem:[#allocation17_spill]] %s1700_s23  ;;  %s1214_s25 = sadd.s32 4294967294, %s1700_s23  }
   0xf   : > { %p53_p0 = scmp.ne.s32.totalorder %s1688_s20, %s1684_s19  ;;  %p54_p1 = scmp.eq.s32.totalorder %s1700_s23, 0 }
  0x10   : > { %p59_p2 = scmp.ne.s32.totalorder %s1684_s19, %s1680_s18  ;;  %p2182_p3 = scmp.eq.s32.totalorder %s1773_s24, 0 }
  0x11   : > { %p1782_p4 = por %p54_p1, %p53_p0  ;;  %p186_p5 = scmp.eq.s32.totalorder %s1773_s24, 1 }
  0x12   : > { %p1789_p6 = por %p2182_p3, %p59_p2  ;;  %p192_p7 = scmp.eq.s32.totalorder %s1214_s25, 1 }
  0x13   : > { %p1793_p8 = por %p186_p5, %p53_p0  ;;  %p1215_p9 = scmp.ge.s32.totalorder %s1700_s23, 1 }
  0x14   : > { %s2209_s27 = scalar_select %p1789_p6, 1, 0 }
  0x15   : > { %s2210_s28 = scalar_select %p1793_p8, 1, 0 }
  0x16   : > { %p1798_p10 = por %p192_p7, %p59_p2  ;;  %p199_p11 = scmp.lt.s32.totalorder %s1700_s23, 3 }
  0x17   : > { %s1702_s6 = smov [#allocation8]   ;;  %s37_s9 = sadd.s32 1, %s1696_s22 }
  0x18   : > { %s2211_s29 = scalar_select %p1798_p10, 1, 0 }
  0x19   : > { %p1803_p12 = pnand %p1215_p9, %p199_p11  ;;  %s214_s7 = sshll.u32 %s1702_s6, 4  ;;  %s1807_s7 = int_to_ptr.vmem [resolvable:$true] %s214_s7 }
  0x1a   : > { %2212 = sst [smem:[#allocation18_spill]] %s2211_s29  ;;  %p1820_p2 = scmp.ge.s32.totalorder %s37_s9, 2 }
  0x1b   : > { %s2213_s30 = scalar_select %p1803_p12, 1, 0 }
  0x1c   : > { %p1367_p13 = pneg %p1803_p12  ;;  %s2216_s3 = sld [smem:[#allocation22_spill]] }
  0x1e   : > { %p1814_p1 = pnand %p1367_p13, %p2182_p3 }
  0x20   : > { %s2214_s8 = scalar_select %p1814_p1, 1, 0 }
  0x21   : > { %p2193_p7 = pneg %p1814_p1 }
  0x22   : > { %s1464_s14 = scalar_lea.hbm %s2216_s3, 256 }
  0x23   : > { %p1465_p5 = scmp.ne.s32.totalorder %s2216_s3, %s1464_s14  ;;  %p1471_p13 = scmp.lt.u32.totalorder %s1464_s14, %s2216_s3 }
  0x25   : > { %p1467_p9 = pnand %p2193_p7, %p1465_p5 }
  0x27   : > { %p1468_p11 = pneg %p1467_p9 }
  0x29   : > { %p1473_p0 = pnand %p1471_p13, %p1468_p11 }
  0x2b   : > { %1476 = shalt.err (!%p1473_p0)
}
  0x2c   : > { %s1477_s6 = scalar_lea.vmem %s1807_s7, 256  ;;  %p1485_p6 = scmp.lt.s32.totalorder %s1807_s7, %s1807_s7 }
  0x2d   : > { %p1478_p3 = scmp.ne.s32.totalorder %s1807_s7, %s1477_s6  ;;  %p1486_p5 = scmp.lt.s32.totalorder %s1477_s6, %s1477_s6 }
  0x2f   : > { %p1480_p10 = pnand %p1478_p3, %p2193_p7  ;;  %p1487_p9 = por %p1486_p5, %p1485_p6 }
  0x31   : > { %p1481_p8 = pneg %p1480_p10 }
  0x33   : > { %p1488_p12 = pnand %p1487_p9, %p1481_p8 }
  0x35   : > { %1491 = shalt.err (!%p1488_p12)
}
  0x36   : > { %s2186_s12 = smov 64   ;;  %s2189_s13 = smov 4  }
  0x37   : > { %1370 = dma.hbm_to_vmem [thread:$0]  (!%p1814_p1), %s2216_s3, 256, %s1807_s7, [#allocation9], %s2186_s12, %s2186_s12, %s2189_s13  }
  0x38   : > { %s2248_s9 = smov (%p1820_p2, %s37_s9), 0  ;;  %p1390_p3 = scmp.lt.s32.totalorder %s1700_s23, 2 }
  0x39   : > { %2217 = sst [smem:[#allocation19_spill]] %s2248_s9  ;;  %s2188_s16 = sand.u32 1, %s1688_s20  }
  0x3a   : > { %s41_s17 = ssub.s32 %s1696_s22, %s2248_s9  ;;  %s1864_s25 = sshll.u32 %s2188_s16, 4 }
  0x3b   : > { %p44_p6 = scmp.eq.s32.totalorder %s41_s17, 0  ;;  %s1867_s6 = sshll.u32 %s1696_s22, 8 }
  0x3c   : > { %p1871_p8 = pnand %p1390_p3, %p1782_p4  ;;  %s262_s7 = sand.u32 1, %s1700_s23  }
  0x3d   : > { %s2219_s11 = sadd.s32 1, %s1688_s20  ;;  %s2221_s1 = sld [smem:[#allocation21_spill]] }
  0x3e   : > { %s2218_s10 = scalar_select %p1871_p8, 1, 0 }
  0x3f   : > { %s1879_s14 = scalar_select %p44_p6, %s1688_s20, %s2219_s11  }
  0x40   : > { %s266_s26 = scalar_lea.vmem [#allocation5], %s1864_s25  ;;  %s1705_s13 = smov [#allocation10]  }
  0x41   : > { %2220 = sst [smem:[#allocation20_spill]] %s1879_s14  ;;  %s275_s17 = sshll.u32 %s266_s26, 4  ;;  %s1888_s17 = int_to_ptr.vmem [resolvable:$true] %s275_s17 }
  0x42   : > { %s1890_s3 = sshll.u32 %s1705_s13, 4  ;;  %s1892_s9 = scalar_lea.sflag [#allocation6], %s262_s7  ;;  %s229_s3 = int_to_ptr.vmem [resolvable:$true] %s1890_s3 }
  0x43   : > { %s1885_s16 = scalar_lea.hbm %s2221_s1, %s1867_s6  ;;  %p1898_p10 = pneg %p1871_p8 }
  0x44   : > { %s1492_s11 = scalar_lea.hbm %s1885_s16, 256  ;;  %s1497_s22 = scalar_lea.hbm %s2221_s1, 512 }
  0x45   : > { %p1493_p4 = scmp.ne.s32.totalorder %s1885_s16, %s1492_s11  ;;  %p1498_p2 = scmp.lt.u32.totalorder %s1885_s16, %s2221_s1 }
  0x46   : > { %s2222_s12 = scalar_select %p1898_p10, 1, 0 }
  0x47   : > { %p1495_p12 = pnand %p1898_p10, %p1493_p4  ;;  %p1499_p11 = scmp.lt.u32.totalorder %s1497_s22, %s1492_s11 }
  0x48   : > { %p1501_p5 = scmp.lt.u32.totalorder %s1492_s11, %s1885_s16 }
  0x49   : > { %p1496_p0 = pneg %p1495_p12  ;;  %p1500_p13 = por %p1499_p11, %p1498_p2 }
  0x4b   : > { %p1502_p9 = por %p1501_p5, %p1500_p13 }
  0x4d   : > { %p1503_p3 = pnand %p1502_p9, %p1496_p0 }
  0x4f   : > { %1506 = shalt.err (!%p1503_p3)
}
  0x50   : > { %s1507_s7 = scalar_lea.vmem %s1888_s17, 256  ;;  %s1706_s15 = smov [#allocation5]  }
  0x51   : > { %p1508_p6 = scmp.ne.s32.totalorder %s1888_s17, %s1507_s7  ;;  %s1512_s26 = sshll.u32 %s1706_s15, 4  ;;  %s1513_s26 = int_to_ptr.vmem [resolvable:$false] %s1512_s26 }
  0x52   : > { %s1514_s14 = scalar_lea.vmem %s1513_s26, 512  ;;  %p1515_p7 = scmp.lt.s32.totalorder %s1888_s17, %s1513_s26 }
  0x53   : > { %p1510_p4 = pnand %p1508_p6, %p1898_p10  ;;  %p1516_p1 = scmp.lt.s32.totalorder %s1514_s14, %s1507_s7 }
  0x55   : > { %p1511_p12 = pneg %p1510_p4  ;;  %p1517_p2 = por %p1516_p1, %p1515_p7 }
  0x57   : > { %p1518_p11 = pnand %p1517_p2, %p1511_p12 }
  0x59   : > { %1521 = shalt.err (!%p1518_p11)
}
  0x5a   : > { %s2223_s22 = smov 4   ;;  %s2224_s11 = smov 64  }
  0x5b   : > { %1380 = dma.hbm_to_vmem [thread:$0]  (!%p1871_p8), %s1885_s16, 256, %s1888_s17, %s1892_s9, %s2224_s11, %s2224_s11, %s2223_s22  }
  0x5c   : > { %s2225_s4 = sld [smem:[#allocation23_spill]]  ;;  %p2226_p7 = scmp.ne.s32.totalorder %s2214_s8, 0 }
  0x5e   : > { %p2227_p0 = pneg %p2226_p7 }
  0x62   : > { %s1522_s26 = scalar_lea.hbm %s2225_s4, 16 }
  0x63   : > { %p1523_p1 = scmp.ne.s32.totalorder %s2225_s4, %s1522_s26  ;;  %p1529_p9 = scmp.lt.u32.totalorder %s1522_s26, %s2225_s4 }
  0x65   : > { %p1525_p13 = pnand %p1523_p1, %p2227_p0 }
  0x67   : > { %p1526_p5 = pneg %p1525_p13 }
  0x69   : > { %p1531_p3 = pnand %p1529_p9, %p1526_p5 }
  0x6b   : > { %1534 = shalt.err (!%p1531_p3)
}
  0x6c   : > { %s1535_s16 = scalar_lea.vmem %s229_s3, 16  ;;  %p2228_p4 = pmov %p2227_p0 }
  0x6d   : > { %p1536_p6 = scmp.ne.s32.totalorder %s229_s3, %s1535_s16  ;;  %s1542_s17 = scalar_lea.vmem %s229_s3, 32 }
  0x6e   : > { %p1543_p11 = scmp.lt.s32.totalorder %s229_s3, %s229_s3  ;;  %p1544_p8 = scmp.lt.s32.totalorder %s1542_s17, %s1535_s16 }
  0x6f   : > { %p1538_p12 = pnand %p1536_p6, %p2228_p4 }
  0x70   : > { %p1545_p10 = por %p1544_p8, %p1543_p11 }
  0x71   : > { %p1539_p2 = pneg %p1538_p12 }
  0x73   : > { %p1546_p0 = pnand %p1545_p10, %p1539_p2 }
  0x75   : > { %1549 = shalt.err (!%p1546_p0)
}
  0x76   : > { %1373 = dma.hbm_to_vmem [thread:$0]  (!%p2226_p7), %s2225_s4, 16, %s229_s3, [#allocation9]  }
  0x77   : > { %s1950_s26 = scalar_lea.hbm %s2176_s0, %s1867_s6  ;;  %s243_s7 = scalar_lea.vmem [#allocation2], %s1864_s25 }
  0x78   : > { %s252_s8 = sshll.u32 %s243_s7, 4  ;;  %s1959_s17 = scalar_lea.hbm %s2178_s2, %s1867_s6  ;;  %s1953_s8 = int_to_ptr.vmem [resolvable:$true] %s252_s8 }
  0x79   : > { %s2229_s13 = sand.u32 1, %s1688_s20   ;;  %s1550_s1 = scalar_lea.hbm %s1950_s26, 256 }
  0x7a   : > { %s1963_s3 = scalar_lea.sflag [#allocation3], %s2229_s13  ;;  %p1551_p8 = scmp.ne.s32.totalorder %s1950_s26, %s1550_s1 }
  0x7b   : > { %p2230_p10 = scmp.ne.s32.totalorder %s2222_s12, 0  ;;  %s1555_s4 = scalar_lea.hbm %s2176_s0, 512 }
  0x7c   : > { %p1556_p13 = scmp.lt.u32.totalorder %s1950_s26, %s2176_s0  ;;  %p1557_p5 = scmp.lt.u32.totalorder %s1555_s4, %s1550_s1 }
  0x7d   : > { %p1553_p1 = pnand %p1551_p8, %p2230_p10  ;;  %p1559_p3 = scmp.lt.u32.totalorder %s1550_s1, %s1950_s26 }
  0x7e   : > { %p1558_p9 = por %p1557_p5, %p1556_p13 }
  0x7f   : > { %p1554_p7 = pneg %p1553_p1 }
  0x80   : > { %p1560_p6 = por %p1559_p3, %p1558_p9 }
  0x82   : > { %p1561_p4 = pnand %p1560_p6, %p1554_p7 }
  0x84   : > { %1564 = shalt.err (!%p1561_p4)
}
  0x85   : > { %s1565_s6 = scalar_lea.vmem %s1953_s8, 256  ;;  %s1707_s14 = smov [#allocation2]  }
  0x86   : > { %p1566_p12 = scmp.ne.s32.totalorder %s1953_s8, %s1565_s6  ;;  %s1570_s16 = sshll.u32 %s1707_s14, 4  ;;  %s1571_s16 = int_to_ptr.vmem [resolvable:$false] %s1570_s16 }
  0x87   : > { %s1572_s29 = scalar_lea.vmem %s1571_s16, 512  ;;  %p1573_p0 = scmp.lt.s32.totalorder %s1953_s8, %s1571_s16 }
  0x88   : > { %p1568_p2 = pnand %p1566_p12, %p2230_p10  ;;  %p1574_p8 = scmp.lt.s32.totalorder %s1572_s29, %s1565_s6 }
  0x8a   : > { %p1569_p11 = pneg %p1568_p2  ;;  %p1575_p1 = por %p1574_p8, %p1573_p0 }
  0x8c   : > { %p1576_p13 = pnand %p1575_p1, %p1569_p11 }
  0x8e   : > { %1579 = shalt.err (!%p1576_p13)
}
  0x8f   : > { %p2231_p7 = scmp.ne.s32.totalorder %s2218_s10, 0  ;;  %s289_s4 = scalar_lea.vmem [#allocation7], %s1864_s25 }
  0x90   : > { %s298_s13 = sshll.u32 %s289_s4, 4  ;;  %s1580_s1 = scalar_lea.hbm %s1959_s17, 256  ;;  %s1991_s13 = int_to_ptr.vmem [resolvable:$true] %s298_s13 }
  0x91   : > { %1377 = dma.hbm_to_vmem [thread:$0]  (!%p2231_p7), %s1950_s26, 256, %s1953_s8, %s1963_s3, %s2224_s11, %s2224_s11, %s2223_s22  }
  0x92   : > { %p1581_p5 = scmp.ne.s32.totalorder %s1959_s17, %s1580_s1  ;;  %s1585_s7 = scalar_lea.hbm %s2178_s2, 512 }
  0x93   : > { %p1586_p6 = scmp.lt.u32.totalorder %s1959_s17, %s2178_s2  ;;  %p1587_p4 = scmp.lt.u32.totalorder %s1585_s7, %s1580_s1 }
  0x94   : > { %p1583_p9 = pnand %p1581_p5, %p2230_p10  ;;  %p1589_p2 = scmp.lt.u32.totalorder %s1580_s1, %s1959_s17 }
  0x95   : > { %p1588_p12 = por %p1587_p4, %p1586_p6 }
  0x96   : > { %p1584_p3 = pneg %p1583_p9 }
  0x97   : > { %p1590_p11 = por %p1589_p2, %p1588_p12 }
  0x99   : > { %p1591_p0 = pnand %p1590_p11, %p1584_p3 }
  0x9b   : > { %1594 = shalt.err (!%p1591_p0)
}
  0x9c   : > { %s1595_s25 = scalar_lea.vmem %s1991_s13, 256  ;;  %s1708_s26 = smov [#allocation7]  }
  0x9d   : > { %p1596_p8 = scmp.ne.s32.totalorder %s1991_s13, %s1595_s25  ;;  %s1600_s8 = sshll.u32 %s1708_s26, 4  ;;  %s1601_s8 = int_to_ptr.vmem [resolvable:$false] %s1600_s8 }
  0x9e   : > { %s1602_s3 = scalar_lea.vmem %s1601_s8, 512  ;;  %p1603_p5 = scmp.lt.s32.totalorder %s1991_s13, %s1601_s8 }
  0x9f   : > { %p1598_p1 = pnand %p1596_p8, %p2230_p10  ;;  %p1604_p9 = scmp.lt.s32.totalorder %s1602_s3, %s1595_s25 }
  0xa1   : > { %p1599_p13 = pneg %p1598_p1  ;;  %p1605_p6 = por %p1604_p9, %p1603_p5 }
  0xa3   : > { %p1606_p4 = pnand %p1605_p6, %p1599_p13 }
  0xa5   : > { %1609 = shalt.err (!%p1606_p4)
}
  0xa6   : > { %1383 = dma.hbm_to_vmem [thread:$0]  (!%p2231_p7), %s1959_s17, 256, %s1991_s13, %s1892_s9, %s2224_s11, %s2224_s11, %s2223_s22  }
  0xa7   : > { %p2232_p10 = scmp.ne.s32.totalorder %s2213_s30, 0 }
  0xa8   : > { %s2021_s12 = sand.u32 (!%p2232_p10), 1, %s1684_s19   ;;  %p2233_p3 = scmp.ne.s32.totalorder (!%p2232_p10), %s2209_s27, 0 }
  0xa9   : > { %310 = sbr.rel (%p2232_p10) target bundleno = 1182 (0x49e), region = 40  ;;  %s1229_s16 = sshll.u32 (!%p2232_p10), %s2021_s12, 4 }
  0xaa   : > { %s313_s29 = scalar_lea.sflag (!%p2232_p10), [#allocation3], %s2021_s12  ;;  %s2025_s4 = scalar_lea.vmem (!%p2232_p10), [#allocation2], %s1229_s16 }
  0xb0   : > { %1663 = dma.done.wait (%p2233_p3), %s313_s29, 256  }
  0xb1   : > { %1665 = vsyncadd (%p2233_p3), %s313_s29, 4294967040  ;;  %s321_s9 = sand.u32 1, %s1773_s24   ;;  %s325_s10 = scalar_lea.vmem [#allocation5], %s1229_s16 }
  0xb2   : > { %s322_s30 = scalar_lea.sflag [#allocation6], %s321_s9 }
  0xb3   : > { %1667 = dma.done.wait (%p2233_p3), %s322_s30, 512  }
  0xb4   : > { %1669 = vsyncadd (%p2233_p3), %s322_s30, 4294966784  ;;  %s2036_s22 = scalar_lea.vmem [#allocation7], %s1229_s16  ;;  %p2234_p7 = scmp.eq.s32.totalorder %s1773_s24, 0 }
  0xb6   : > { %1671 = dma.done.wait (%p2234_p7), [#allocation9], 272   ;;  %p2235_p12 = pmov %p2234_p7 }
  0xb7   : > { %v1709_v0 = vmov 0.0   ;;  %vm1710_vm0 = vmmov 0   ;;  %vm396_vm1 = vcmask 64512   ;;  %v388_v1 = vld [vmem:[%s325_s10] sm:$0xf]  ;;  %v585_v13 = vlaneseq  ;;  %s1234_s24 = sshll.u32 %s2021_s12, 3 }
  0xb8   : > { %1673 = vsyncadd (%p2235_p12), [#allocation9], 4294967024  ;;  %1279 = vmatprep.subr.bf16.mxu0 %v1709_v0  ;;  %1285 = vmatprep.subr.bf16.mxu1 %v1709_v0  ;;  %v389_v2 = vld [vmem:[%s325_s10 + $0x4] sm:$0xf]  ;;  %v401_v3 = vsel %vm396_vm1, %v388_v1, 0  ;;  %vm647_vm3 = vcmask 1043456  }
  0xb9   : > { %1281 = vmatprep.mubr.msk.bf16.mxu0 %vm1710_vm0, %v1709_v0  ;;  %1287 = vmatprep.mubr.msk.bf16.mxu1 %vm1710_vm0, %v1709_v0  ;;  %v447_v4 = vsel %vm396_vm1, %v389_v2, 0  ;;  %v390_v5 = vld [vmem:[%s325_s10 + $0x8] sm:$0xf]  ;;  %v391_v6 = vld [vmem:[%s325_s10 + $0xc] sm:$0xf]  ;;  %v586_v14 = vshrl.u32 %v585_v13, 7 }
  0xba   : > { %1280 = vmatpush3.bf16.xpose.msra.mxu0 %v401_v3  ;;  %1286 = vmatpush3.bf16.xpose.msra.mxu1 %v447_v4  ;;  %v384_v7 = vld [vmem:[%s2025_s4] sm:$0xf]  ;;  %v385_v8 = vld [vmem:[%s2025_s4 + $0x4] sm:$0xf]  ;;  %v493_v9 = vsel %vm396_vm1, %v390_v5, 0  ;;  %v539_v10 = vsel %vm396_vm1, %v391_v6, 0 }
  0xbb   : > { %1291 = vmatprep.subr.bf16.mxu0 %v1709_v0  ;;  %1297 = vmatprep.subr.bf16.mxu1 %v1709_v0  ;;  %v386_v11 = vld [vmem:[%s2025_s4 + $0x8] sm:$0xf]  ;;  %v387_v12 = vld [vmem:[%s2025_s4 + $0xc] sm:$0xf]  ;;  %v588_v15 = vand.u32 127, %v585_v13  ;;  %s1249_s27 = sshll.u32 %s1692_s21, 7 }
  0xbc   : > { %v392_v1 = vld [vmem:[%s2036_s22] sm:$0xf]  ;;  %v393_v3 = vld [vmem:[%s2036_s22 + $0x4] sm:$0xf]  ;;  %s378_s11 = scalar_lea.vmem [#allocation11], %s1234_s24  ;;  %vm1038_vm4 = vcmask 261120   ;;  %s2127_s23 = scalar_lea.hbm %s2181_s5, %s1249_s27 }
  0xbd   : > { %vm589_vm2 = vcmp.gt.s32.totalorder %v588_v15, %v586_v14  ;;  %v649_v2 = vsel %vm647_vm3, %v392_v1, 0  ;;  %v695_v4 = vsel %vm647_vm3, %v393_v3, 0  ;;  %v395_v15 = vld [vmem:[%s2036_s22 + $0xc] sm:$0xf]  ;;  %v1247_v3 = vld [vmem:[#allocation10] ss:$0 sm:$0xff] }
  0xbe   : > { %s1062_s17 = sshll.u32 %s378_s11, 4  ;;  %s1049_s15 = scalar_lea.sflag [#allocation4], %s2021_s12  ;;  %s2129_s17 = int_to_ptr.vmem [resolvable:$true] %s1062_s17 }
  0xbf   : > { %s1610_s21 = scalar_lea.vmem %s2129_s17, 128  ;;  %p2236_p11 = scmp.ne.s32.totalorder %s2210_s28, 0 }
  0xc0   : > { %p1611_p2 = scmp.ne.s32.totalorder %s2129_s17, %s1610_s21  ;;  %s1711_s7 = smov [#allocation11]  }
  0xc1   : > { %1282 = vmatmul.mubr.msk.bf16.vlgmr.msra.gmra.mrb[0].mxu0 %vm396_vm1, %v384_v7  ;;  %1288 = vmatmul.mubr.msk.bf16.vlgmr.msra.gmra.mrb[0].mxu1 %vm396_vm1, %v385_v8  ;;  %s1614_s6 = sshll.u32 %s1711_s7, 4  ;;  %s1615_s6 = int_to_ptr.vmem [resolvable:$false] %s1614_s6 }
  0xc2   : > { %1292 = vmatpush3.bf16.xpose.msra.mxu0 %v493_v9  ;;  %1298 = vmatpush3.bf16.xpose.msra.mxu1 %v539_v10  ;;  %v394_v9 = vld [vmem:[%s2036_s22 + $0x8] sm:$0xf]  ;;  %p1612_p0 = pnand %p1611_p2, %p2236_p11  ;;  %s1616_s14 = scalar_lea.vmem %s1615_s6, 256 }
  0xc3   : > { %1293 = vmatprep.mubr.msk.bf16.mxu0 %vm1710_vm0, %v1709_v0  ;;  %1299 = vmatprep.mubr.msk.bf16.mxu1 %vm1710_vm0, %v1709_v0  ;;  %v741_v13 = vsel %vm647_vm3, %v394_v9, 0  ;;  %p1617_p1 = scmp.lt.s32.totalorder %s2129_s17, %s1615_s6  ;;  %p1618_p13 = scmp.lt.s32.totalorder %s1616_s14, %s1610_s21 }
  0xc4   : > { %1303 = vmatprep.subr.bf16.mxu0 %v1709_v0  ;;  %1309 = vmatprep.subr.bf16.mxu1 %v1709_v0  ;;  %p1613_p8 = pneg %p1612_p0 }
  0xc5   : > { %p1619_p5 = por %p1618_p13, %p1617_p1 }
  0xc7   : > { %p1620_p9 = pnand %p1619_p5, %p1613_p8 }
  0xc9   : > { %1294 = vmatmul.mubr.msk.bf16.vlgmr.msra.gmra.mrb[4].mxu0 %vm396_vm1, %v386_v11  ;;  %1300 = vmatmul.mubr.msk.bf16.vlgmr.msra.gmra.mrb[4].mxu1 %vm396_vm1, %v387_v12 }
  0xca   : > { %1305 = vmatprep.mubr.msk.bf16.mxu0 %vm1710_vm0, %v1709_v0  ;;  %1311 = vmatprep.mubr.msk.bf16.mxu1 %vm1710_vm0, %v1709_v0 }
  0xcb   : > { %1304 = vmatpush3.bf16.msra.mxu0 %v649_v2  ;;  %1310 = vmatpush3.bf16.msra.mxu1 %v695_v4 }
  0xcc   : > { %1315 = vmatprep.subr.bf16.mxu0 %v1709_v0  ;;  %1321 = vmatprep.subr.bf16.mxu1 %v1709_v0 }
 0x194   : > { %v437_v16 = vpop.f32.mrb[0].mxu0  ;;  %v483_v17 = vpop.f32.mrb[0].mxu1 }
 0x195   : > { %v581_v18 = vmul.f32 0.35355338, %v437_v16  ;;  %v1283_v19 = vpop.f32.mrb[1].mxu0  ;;  %v582_v20 = vmul.f32 0.35355338, %v483_v17  ;;  %v1289_v21 = vpop.f32.mrb[1].mxu1 }
 0x196   : > { %v440_v22 = vpop.f32.mrb[2].mxu0  ;;  %v486_v23 = vpop.f32.mrb[2].mxu1 }
 0x197   : > { %v1284_v24 = vpop.f32.mrb[3].mxu0  ;;  %v1290_v25 = vpop.f32.mrb[3].mxu1  ;;  %v592_v26 = vsel %vm589_vm2, -1e+09, %v581_v18  ;;  %v593_v27 = vsel %vm589_vm2, -1e+09, %v582_v20 }
 0x198   : > { %v596_v28 = vsel %vm396_vm1, %v592_v26, -inf  ;;  %v599_v29 = vsel %vm396_vm1, %v593_v27, -inf  ;;  %v787_v18 = vsel %vm647_vm3, %v395_v15, 0  ;;  %v835_v20 = vld [vmem:[#allocation8 + $0x4] sm:$0xf] }
 0x199   : > { %597 = vmax.xlane.f32.xlu0 %v596_v28  ;;  %v840_v23 = vsel %vm647_vm3, %v835_v20, 0 }
 0x19c   : > { %v529_v30 = vpop.f32.mrb[4].mxu0  ;;  %v575_v31 = vpop.f32.mrb[4].mxu1 }
 0x19d   : > { %v583_v32 = vmul.f32 0.35355338, %v529_v30  ;;  %600 = vmax.xlane.f32.xlu0 %v599_v29  ;;  %v1295_v33 = vpop.f32.mrb[5].mxu0  ;;  %v584_v34 = vmul.f32 0.35355338, %v575_v31  ;;  %v1301_v35 = vpop.f32.mrb[5].mxu1 }
 0x19e   : > { %v532_v36 = vpop.f32.mrb[6].mxu0  ;;  %v578_v37 = vpop.f32.mrb[6].mxu1  ;;  %v978_v29 = vld [vmem:[#allocation8 + $0xc] sm:$0xf]  ;;  %v929_v35 = vld [vmem:[#allocation8 + $0x8] sm:$0xf] }
 0x19f   : > { %v1296_v38 = vpop.f32.mrb[7].mxu0  ;;  %v594_v39 = vsel %vm589_vm2, -1e+09, %v583_v32  ;;  %v1302_v40 = vpop.f32.mrb[7].mxu1  ;;  %v595_v41 = vsel %vm589_vm2, -1e+09, %v584_v34 }
 0x1a0   : > { %v602_v42 = vsel %vm396_vm1, %v594_v39, -inf  ;;  %v605_v43 = vsel %vm396_vm1, %v595_v41, -inf  ;;  %v983_v33 = vsel %vm647_vm3, %v978_v29, 0  ;;  %v934_v40 = vsel %vm647_vm3, %v929_v35, 0 }
 0x1a1   : > { %603 = vmax.xlane.f32.xlu1 %v602_v42 }
 0x1a5   : > { %606 = vmax.xlane.f32.xlu1 %v605_v43 }
 0x226   : > { %v598_v44 = vpop.xlane.xlu0 %597 }
 0x227   : > { %v608_v45 = vsub.f32 %v592_v26, %v598_v44 }
 0x229   : > { %v612_v46 = vmul.f32 1.442695, %v608_v45 }
 0x22a   : > { %v601_v47 = vpop.xlane.xlu0 %600 }
 0x22b   : > { %1448 = vpow2.f32 %v612_v46  ;;  %v609_v48 = vsub.f32 %v593_v27, %v601_v47  ;;  %v833_v27 = vld [vmem:[#allocation8] sm:$0xf] }
 0x22c   : > { %v886_v28 = vsel %vm647_vm3, %v833_v27, 0 }
 0x22d   : > { %v614_v49 = vmul.f32 1.442695, %v609_v48 }
 0x22e   : > { %v604_v50 = vpop.xlane.xlu1 %603 }
 0x22f   : > { %1450 = vpow2.f32 %v614_v49  ;;  %v610_v51 = vsub.f32 %v594_v39, %v604_v50 }
 0x231   : > { %v616_v52 = vmul.f32 1.442695, %v610_v51 }
 0x232   : > { %v607_v53 = vpop.xlane.xlu1 %606 }
 0x233   : > { %1452 = vpow2.f32 %v616_v52  ;;  %v611_v54 = vsub.f32 %v595_v41, %v607_v53 }
 0x235   : > { %v1449_v55 = vpop.eup %1448  ;;  %v618_v56 = vmul.f32 1.442695, %v611_v54 }
 0x236   : > { %v620_v57 = vsel %vm396_vm1, %v1449_v55, 0.0 }
 0x237   : > { %1454 = vpow2.f32 %v618_v56  ;;  %621 = vadd.xlane.f32.xlu0 %v620_v57 }
 0x239   : > { %v1451_v58 = vpop.eup %1450 }
 0x23a   : > { %v623_v59 = vsel %vm396_vm1, %v1451_v58, 0.0 }
 0x23b   : > { %624 = vadd.xlane.f32.xlu1 %v623_v59 }
 0x23d   : > { %v1453_v60 = vpop.eup %1452 }
 0x23e   : > { %v626_v61 = vsel %vm396_vm1, %v1453_v60, 0.0 }
 0x23f   : > { %627 = vadd.xlane.f32.xlu0 %v626_v61 }
 0x241   : > { %v1455_v62 = vpop.eup %1454 }
 0x242   : > { %v629_v63 = vsel %vm396_vm1, %v1455_v62, 0.0 }
 0x243   : > { %630 = vadd.xlane.f32.xlu1 %v629_v63 }
 0x2c4   : > { %v622_v5 = vpop.xlane.xlu0 %621 }
 0x2c5   : > { %1456 = vrcp.f32 %v622_v5 }
 0x2c8   : > { %v625_v6 = vpop.xlane.xlu1 %624 }
 0x2c9   : > { %1458 = vrcp.f32 %v625_v6 }
 0x2cc   : > { %v628_v7 = vpop.xlane.xlu0 %627 }
 0x2cd   : > { %1460 = vrcp.f32 %v628_v7 }
 0x2cf   : > { %v1457_v8 = vpop.eup %1456 }
 0x2d0   : > { %v636_v10 = vmul.f32 %v1457_v8, %v1449_v55  ;;  %v631_v11 = vpop.xlane.xlu1 %630 }
 0x2d1   : > { %1462 = vrcp.f32 %v631_v11 }
 0x2d2   : > { %v640_v12 = vpack.c.bf16 %v636_v10, %v636_v10 }
 0x2d3   : > { %v1459_v14 = vpop.eup %1458 }
 0x2d4   : > { %v637_v16 = vmul.f32 %v1459_v14, %v1451_v58  ;;  %1306 = vmatmul.mubr.msk.bf16.vlgmr.msra.gmra.mrb[8].mxu0 %vm396_vm1, %v640_v12 }
 0x2d5   : > { %1316 = vmatpush3.bf16.msra.mxu0 %v741_v13  ;;  %1317 = vmatprep.mubr.msk.bf16.mxu0 %vm1710_vm0, %v1709_v0 }
 0x2d6   : > { %v641_v17 = vpack.c.bf16 %v637_v16, %v637_v16  ;;  %1327 = vmatprep.subr.bf16.mxu0 %v1709_v0 }
 0x2d7   : > { %v1461_v19 = vpop.eup %1460 }
 0x2d8   : > { %v638_v21 = vmul.f32 %v1461_v19, %v1453_v60  ;;  %1312 = vmatmul.mubr.msk.bf16.vlgmr.msra.gmra.mrb[8].mxu1 %vm396_vm1, %v641_v17 }
 0x2d9   : > { %1322 = vmatpush3.bf16.msra.mxu1 %v787_v18  ;;  %1323 = vmatprep.mubr.msk.bf16.mxu1 %vm1710_vm0, %v1709_v0 }
 0x2da   : > { %v642_v22 = vpack.c.bf16 %v638_v21, %v638_v21  ;;  %1333 = vmatprep.subr.bf16.mxu1 %v1709_v0 }
 0x2db   : > { %v1463_v24 = vpop.eup %1462 }
 0x2dc   : > { %v639_v25 = vmul.f32 %v1463_v24, %v1455_v62  ;;  %1318 = vmatmul.mubr.msk.bf16.vlgmr.msra.gmra.mrb[12].mxu0 %vm396_vm1, %v642_v22 }
 0x2dd   : > { %1328 = vmatpush3.bf16.msra.mxu0 %v840_v23  ;;  %1329 = vmatprep.mubr.msk.bf16.mxu0 %vm1710_vm0, %v1709_v0 }
 0x2de   : > { %v643_v26 = vpack.c.bf16 %v639_v25, %v639_v25  ;;  %1339 = vmatprep.subr.bf16.mxu0 %v1709_v0 }
 0x2e0   : > { %1324 = vmatmul.mubr.msk.bf16.vlgmr.msra.gmra.mrb[12].mxu1 %vm396_vm1, %v643_v26 }
 0x2e1   : > { %1335 = vmatprep.mubr.msk.bf16.mxu1 %vm1710_vm0, %v1709_v0  ;;  %1334 = vmatpush3.bf16.msra.mxu1 %v886_v28 }
 0x2e2   : > { %1345 = vmatprep.subr.bf16.mxu1 %v1709_v0 }
 0x3a7   : > { %v685_v30 = vpop.f32.mrb[8].mxu0 }
 0x3a8   : > { %v829_v31 = vpack.c.bf16 %v685_v30, %v685_v30  ;;  %v1307_v32 = vpop.f32.mrb[9].mxu0 }
 0x3a9   : > { %v688_v34 = vpop.f32.mrb[10].mxu0 }
 0x3aa   : > { %v1308_v36 = vpop.f32.mrb[11].mxu0  ;;  %1336 = vmatmul.mubr.msk.bf16.vlgmr.msra.gmra.mrb[16].mxu1 %vm396_vm1, %v829_v31 }
 0x3ab   : > { %v731_v37 = vpop.f32.mrb[8].mxu1  ;;  %1346 = vmatpush3.bf16.msra.mxu1 %v983_v33  ;;  %1347 = vmatprep.mubr.msk.bf16.mxu1 %vm1710_vm0, %v1709_v0 }
 0x3ac   : > { %v830_v38 = vpack.c.bf16 %v731_v37, %v731_v37  ;;  %v1313_v39 = vpop.f32.mrb[9].mxu1 }
 0x3ad   : > { %v734_v41 = vpop.f32.mrb[10].mxu1 }
 0x3ae   : > { %v1314_v42 = vpop.f32.mrb[11].mxu1  ;;  %1330 = vmatmul.mubr.msk.bf16.vlgmr.msra.gmra.mrb[16].mxu0 %vm396_vm1, %v830_v38 }
 0x3af   : > { %1340 = vmatpush3.bf16.msra.mxu0 %v934_v40  ;;  %v777_v43 = vpop.f32.mrb[12].mxu0  ;;  %1341 = vmatprep.mubr.msk.bf16.mxu0 %vm1710_vm0, %v1709_v0 }
 0x3b0   : > { %v1319_v44 = vpop.f32.mrb[13].mxu0  ;;  %v831_v48 = vpack.c.bf16 %v777_v43, %v777_v43 }
 0x3b1   : > { %v780_v45 = vpop.f32.mrb[14].mxu0 }
 0x3b2   : > { %v1320_v46 = vpop.f32.mrb[15].mxu0 }
 0x3b3   : > { %v823_v47 = vpop.f32.mrb[12].mxu1 }
 0x3b4   : > { %v832_v49 = vpack.c.bf16 %v823_v47, %v823_v47  ;;  %v1325_v50 = vpop.f32.mrb[13].mxu1 }
 0x3b5   : > { %v826_v51 = vpop.f32.mrb[14].mxu1 }
 0x3b6   : > { %v1326_v52 = vpop.f32.mrb[15].mxu1  ;;  %1342 = vmatmul.mubr.msk.bf16.vlgmr.msra.gmra.mrb[20].mxu0 %vm396_vm1, %v831_v48  ;;  %1348 = vmatmul.mubr.msk.bf16.vlgmr.msra.gmra.mrb[20].mxu1 %vm396_vm1, %v832_v49 }
 0x47d   : > { %v922_v53 = vpop.f32.mrb[16].mxu1 }
 0x47e   : > { %v1337_v54 = vpop.f32.mrb[17].mxu1 }
 0x47f   : > { %v925_v55 = vpop.f32.mrb[18].mxu1 }
 0x480   : > { %v1338_v56 = vpop.f32.mrb[19].mxu1 }
 0x481   : > { %v876_v0 = vpop.f32.mrb[16].mxu0 }
 0x482   : > { %v923_v57 = vadd.f32 %v922_v53, %v876_v0  ;;  %v1331_v58 = vpop.f32.mrb[17].mxu0 }
 0x483   : > { %v879_v59 = vpop.f32.mrb[18].mxu0 }
 0x484   : > { %v1332_v60 = vpop.f32.mrb[19].mxu0 }
 0x489   : > { %v970_v61 = vpop.f32.mrb[20].mxu0  ;;  %v1019_v62 = vpop.f32.mrb[20].mxu1 }
 0x48a   : > { %v976_v63 = vadd.f32 %v970_v61, %v923_v57  ;;  %v1343_v1 = vpop.f32.mrb[21].mxu0  ;;  %v1349_v2 = vpop.f32.mrb[21].mxu1 }
 0x48b   : > { %v973_v4 = vpop.f32.mrb[22].mxu0  ;;  %v1022_v5 = vpop.f32.mrb[22].mxu1 }
 0x48c   : > { %v1025_v6 = vadd.f32 %v1019_v62, %v976_v63  ;;  %v1344_v7 = vpop.f32.mrb[23].mxu0  ;;  %v1350_v8 = vpop.f32.mrb[23].mxu1 }
 0x48e   : > { %v1037_v9 = vadd.f32 %v1247_v3, %v1025_v6 }
 0x490   : > { %1039 = vst.msk [vmem:[%s378_s11] sm:$0xff] %vm1038_vm4, %v1037_v9 }
 0x491   : > { %1623 = shalt.err (!%p1620_p9)
}
 0x492   : > { %s1624_s25 = scalar_lea.hbm %s2127_s23, 128  ;;  %s1628_s3 = scalar_lea.hbm %s2181_s5, 256 }
 0x493   : > { %p1625_p6 = scmp.ne.s32.totalorder %s2127_s23, %s1624_s25  ;;  %p1629_p3 = scmp.lt.u32.totalorder %s2127_s23, %s2181_s5 }
 0x494   : > { %p1630_p7 = scmp.lt.u32.totalorder %s1628_s3, %s1624_s25  ;;  %p1632_p2 = scmp.lt.u32.totalorder %s1624_s25, %s2127_s23 }
 0x495   : > { %p1626_p4 = pnand %p1625_p6, %p2236_p11 }
 0x496   : > { %p1631_p12 = por %p1630_p7, %p1629_p3 }
 0x497   : > { %p1627_p10 = pneg %p1626_p4 }
 0x498   : > { %p1633_p0 = por %p1632_p2, %p1631_p12 }
 0x49a   : > { %p1634_p8 = pnand %p1633_p0, %p1627_p10 }
 0x49c   : > { %1637 = shalt.err (!%p1634_p8)
}
 0x49d   : > { %1365 = dma.vmem_to_hbm [thread:$0]  (%p2236_p11), %s2129_s17, 128, %s2127_s23, %s1049_s15  }
 0x49e PF: > { %s2237_s29 = sld [smem:[#allocation18_spill]]  ;;  %s2238_s4 = sld [smem:[#allocation17_spill]] }
 0x49f   : > { %s1074_s9 = sand.u32 1, %s1680_s18  }
 0x4a0   : > { %s1075_s30 = scalar_lea.sflag [#allocation4], %s1074_s9 }
 0x4a4   : > { %p2239_p1 = scmp.ne.s32.totalorder %s2237_s29, 0  ;;  %p2240_p13 = scmp.ge.s32.totalorder %s2238_s4, 2 }
 0x4a6   : > { %p1385_p5 = pnand %p2240_p13, %p2239_p1 }
 0x4a8   : > { %1675 = dma.done.wait (!%p1385_p5), %s1075_s30, 128  }
 0x4a9   : > { %1677 = vsyncadd (!%p1385_p5), %s1075_s30, 4294967168  ;;  %s25_s23 = sadd.s32 1, %s2238_s4   ;;  %s2241_s28 = sld [smem:[#allocation20_spill]] }
 0x4aa   : > { %p22_p9 = scmp.ge.s32.totalorder %s25_s23, 4   ;;  %s2242_s21 = sld [smem:[#allocation16_spill]] }
 0x4ab   : > { %s2243_s22 = sld [smem:[#allocation19_spill]]  ;;  %s2244_s18 = smov %s1684_s19 }
 0x4ac   : > { %s2245_s19 = smov %s1688_s20  ;;  %24 = sbr.rel (!%p22_p9) target bundleno = 13 (0xd), region = 129 }
 0x4af   : > { %s2246_s20 = smov %s2241_s28 }
 0x4b3   :  { %1080 = vsyncpa [#allocation3], 1 }
 0x4b4   :  { %1082 = vsyncpa [#allocation3 + $0x1], 1 }
 0x4b5   :  { %1083 = vsyncpa [#allocation6], 1 }
 0x4b6   :  { %1085 = vsyncpa [#allocation6 + $0x1], 1 }
 0x4b7   :  { %1086 = vsyncpa [#allocation9], 1 }
 0x4b8   :  { %1087 = vsyncpa [#allocation4], 1 }
 0x4b9   :  { %1089 = vsyncpa [#allocation4 + $0x1], 1 }

// kernel: ykt_forward.32
= control target key start
LH: loop header
LB: loop body
LE: loop exit
PB: predicated region body
PF: predicated region fallthrough
CT: control target
= control target key end

     0   :  { %vm19_vm0 = vcmask 261120   ;;  %v177_v0 = vmov 0.0   ;;  %vm178_vm1 = vmmov 0   ;;  %vm63_vm2 = vcmask 523264   ;;  %s227_s1 = inlined_call_operand.vmem [shape: bf16[64,32], index: 1, kind: input, shape index: {}]   ;;  %s228_s0 = inlined_call_operand.vmem [shape: bf16[16,64], index: 0, kind: input, shape index: {}]   ;;  %s229_s2 = inlined_call_operand.vmem [shape: f32[1,32], index: 2, kind: input, shape index: {}]   ;;  %s230_s3 = inlined_call_operand.vmem [shape: bf16[16,32], index: 3, kind: output, shape index: {}]  }
   0x1   :  { %158 = vmatprep.subr.bf16.mxu0 %v177_v0  ;;  %v172_v1 = vld [vmem:[%s227_s1] sm:$0xff]   ;;  %166 = vmatprep.mubr.msk.bf16.mxu0 %vm178_vm1, %v177_v0  ;;  %20 = vst.msk [vmem:[#allocation2] sm:$0xff] %vm19_vm0, %v177_v0  ;;  %21 = vst.msk [vmem:[#allocation2 + $0x8] sm:$0xff] %vm19_vm0, %v177_v0  ;;  %v173_v2 = vld [vmem:[%s227_s1 + $0x8] sm:$0xff]   ;;  %vm135_vm3 = vcmask 257024  }
   0x2   :  { %159 = vmatpush3.bf16.msra.mxu0 %v172_v1  ;;  %v174_v3 = vld [vmem:[%s227_s1 + $0x10] sm:$0xff]   ;;  %v175_v4 = vld [vmem:[%s227_s1 + $0x18] sm:$0xff]   ;;  %v176_v5 = vld [vmem:[%s228_s0] sm:$0xff]  }
   0x3   :  { %160 = vmatprep.subr.bf16.mxu0 %v177_v0  ;;  %v148_v14 = vld [vmem:[%s229_s2] ss:$0 sm:$0xff] }
   0x6   :  { %161 = vmatpush3.bf16.msra.mxu0 %v173_v2 }
   0x7   :  { %162 = vmatprep.subr.bf16.mxu0 %v177_v0 }
   0x8   :  { %v22_v6 = vld [vmem:[#allocation2] sm:$0xff]  ;;  %v23_v8 = vld [vmem:[#allocation2 + $0x8] sm:$0xff] }
   0xa   :  { %163 = vmatpush3.bf16.msra.mxu0 %v174_v3 }
   0xb   :  { %164 = vmatprep.subr.bf16.mxu0 %v177_v0 }
   0xe   :  { %165 = vmatpush3.bf16.msra.mxu0 %v175_v4 }
  0x11   :  { %167 = vmatmul.mubr.msk.bf16.vlgmr.msra.gmra.mrb[0].mxu0 %vm63_vm2, %v176_v5 }
  0xe4   :  { %v101_v7 = vpop.f32.mrb[0].mxu0 }
  0xe5   :  { %v108_v9 = vadd.f32 %v101_v7, %v22_v6  ;;  %v168_v10 = vpop.f32.mrb[1].mxu0 }
  0xe6   :  { %v104_v11 = vpop.f32.mrb[2].mxu0 }
  0xe7   :  { %111 = vst.msk [vmem:[#allocation2] sm:$0xff] %vm19_vm0, %v108_v9  ;;  %v109_v12 = vadd.f32 %v104_v11, %v23_v8  ;;  %v169_v13 = vpop.f32.mrb[3].mxu0 }
  0xe9   :  { %112 = vst.msk [vmem:[#allocation2 + $0x8] sm:$0xff] %vm19_vm0, %v109_v12 }
  0xee   :  { %v116_v15 = vld [vmem:[#allocation2] sm:$0xff] }
  0xef   :  { %v125_v16 = vadd.f32 %v148_v14, %v116_v15 }
  0xf0   :  { %v117_v17 = vld [vmem:[#allocation2 + $0x8] sm:$0xff] }
  0xf1   :  { %v151_v18 = vpack.c.bf16 %v125_v16, %v125_v16  ;;  %v126_v19 = vadd.f32 %v148_v14, %v117_v17 }
  0xf3   :  { %136 = vst.msk [vmem:[%s230_s3] sm:$0xf] %vm135_vm3, %v151_v18  ;;  %v152_v20 = vpack.c.bf16 %v126_v19, %v126_v19 }
  0xf5   :  { %137 = vst.msk [vmem:[%s230_s3 + $0x4] sm:$0xf] %vm135_vm3, %v152_v20 }

// kernel: ykt_forward.34
= control target key start
LH: loop header
LB: loop body
LE: loop exit
PB: predicated region body
PF: predicated region fallthrough
CT: control target
= control target key end

     0   :  { %vm19_vm0 = vcmask 261120   ;;  %v150_v0 = vmov 0.0   ;;  %vm151_vm1 = vmmov 0   ;;  %vm118_vm2 = vcmask 257024   ;;  %s195_s1 = inlined_call_operand.vmem [shape: bf16[32,32], index: 1, kind: input, shape index: {}]   ;;  %s196_s0 = inlined_call_operand.vmem [shape: bf16[16,32], index: 0, kind: input, shape index: {}]   ;;  %s197_s2 = inlined_call_operand.vmem [shape: f32[1,32], index: 2, kind: input, shape index: {}]   ;;  %s198_s3 = inlined_call_operand.vmem [shape: bf16[16,32], index: 3, kind: output, shape index: {}]  }
   0x1   :  { %137 = vmatprep.subr.bf16.mxu0 %v150_v0  ;;  %v147_v1 = vld [vmem:[%s195_s1] sm:$0xff]   ;;  %141 = vmatprep.mubr.msk.bf16.mxu0 %vm151_vm1, %v150_v0  ;;  %20 = vst.msk [vmem:[#allocation2] sm:$0xff] %vm19_vm0, %v150_v0  ;;  %21 = vst.msk [vmem:[#allocation2 + $0x8] sm:$0xff] %vm19_vm0, %v150_v0  ;;  %v148_v2 = vld [vmem:[%s195_s1 + $0x8] sm:$0xff]  }
   0x2   :  { %138 = vmatpush3.bf16.msra.mxu0 %v147_v1  ;;  %v149_v3 = vld [vmem:[%s196_s0] sm:$0xff]  }
   0x3   :  { %139 = vmatprep.subr.bf16.mxu0 %v150_v0  ;;  %v129_v12 = vld [vmem:[%s197_s2] ss:$0 sm:$0xff] }
   0x6   :  { %140 = vmatpush3.bf16.msra.mxu0 %v148_v2 }
   0x8   :  { %v22_v4 = vld [vmem:[#allocation2] sm:$0xff]  ;;  %v23_v6 = vld [vmem:[#allocation2 + $0x8] sm:$0xff] }
   0x9   :  { %142 = vmatmul.mubr.msk.bf16.vlgmr.msra.gmra.mrb[0].mxu0 %vm19_vm0, %v149_v3 }
  0xdc   :  { %v85_v5 = vpop.f32.mrb[0].mxu0 }
  0xdd   :  { %v92_v7 = vadd.f32 %v85_v5, %v22_v4  ;;  %v143_v8 = vpop.f32.mrb[1].mxu0 }
  0xde   :  { %v88_v9 = vpop.f32.mrb[2].mxu0 }
  0xdf   :  { %94 = vst.msk [vmem:[#allocation2] sm:$0xff] %vm19_vm0, %v92_v7  ;;  %v93_v10 = vadd.f32 %v88_v9, %v23_v6  ;;  %v144_v11 = vpop.f32.mrb[3].mxu0 }
  0xe1   :  { %95 = vst.msk [vmem:[#allocation2 + $0x8] sm:$0xff] %vm19_vm0, %v93_v10 }
  0xe6   :  { %v99_v13 = vld [vmem:[#allocation2] sm:$0xff] }
  0xe7   :  { %v108_v14 = vadd.f32 %v129_v12, %v99_v13 }
  0xe8   :  { %v100_v15 = vld [vmem:[#allocation2 + $0x8] sm:$0xff] }
  0xe9   :  { %v132_v16 = vpack.c.bf16 %v108_v14, %v108_v14  ;;  %v109_v17 = vadd.f32 %v129_v12, %v100_v15 }
  0xeb   :  { %119 = vst.msk [vmem:[%s198_s3] sm:$0xf] %vm118_vm2, %v132_v16  ;;  %v133_v18 = vpack.c.bf16 %v109_v17, %v109_v17 }
  0xed   :  { %120 = vst.msk [vmem:[%s198_s3 + $0x4] sm:$0xf] %vm118_vm2, %v133_v18 }

// kernel: ykt_forward.40
= control target key start
LH: loop header
LB: loop body
LE: loop exit
PB: predicated region body
PF: predicated region fallthrough
CT: control target
= control target key end

     0   :  { %vm19_vm0 = vcmask 523264   ;;  %v153_v0 = vmov 0.0   ;;  %vm154_vm1 = vmmov 0   ;;  %vm47_vm2 = vcmask 261120   ;;  %s197_s1 = inlined_call_operand.vmem [shape: bf16[32,64], index: 1, kind: input, shape index: {}]   ;;  %s198_s0 = inlined_call_operand.vmem [shape: bf16[16,32], index: 0, kind: input, shape index: {}]   ;;  %s199_s2 = inlined_call_operand.vmem [shape: f32[1,64], index: 2, kind: input, shape index: {}]   ;;  %s200_s3 = inlined_call_operand.vmem [shape: bf16[16,64], index: 3, kind: output, shape index: {}]  }
   0x1   :  { %140 = vmatprep.subr.bf16.mxu0 %v153_v0  ;;  %v150_v1 = vld [vmem:[%s197_s1] sm:$0xff]   ;;  %144 = vmatprep.mubr.msk.bf16.mxu0 %vm154_vm1, %v153_v0  ;;  %20 = vst.msk [vmem:[#allocation2] sm:$0xff] %vm19_vm0, %v153_v0  ;;  %21 = vst.msk [vmem:[#allocation2 + $0x8] sm:$0xff] %vm19_vm0, %v153_v0  ;;  %v151_v2 = vld [vmem:[%s197_s1 + $0x8] sm:$0xff]   ;;  %vm121_vm3 = vcmask 519168  }
   0x2   :  { %141 = vmatpush3.bf16.msra.mxu0 %v150_v1  ;;  %v152_v3 = vld [vmem:[%s198_s0] sm:$0xff]  }
   0x3   :  { %142 = vmatprep.subr.bf16.mxu0 %v153_v0  ;;  %v132_v12 = vld [vmem:[%s199_s2] ss:$0 sm:$0xff] }
   0x6   :  { %143 = vmatpush3.bf16.msra.mxu0 %v151_v2 }
   0x8   :  { %v22_v4 = vld [vmem:[#allocation2] sm:$0xff]  ;;  %v23_v6 = vld [vmem:[#allocation2 + $0x8] sm:$0xff] }
   0x9   :  { %145 = vmatmul.mubr.msk.bf16.vlgmr.msra.gmra.mrb[0].mxu0 %vm47_vm2, %v152_v3 }
  0xdc   :  { %v85_v5 = vpop.f32.mrb[0].mxu0 }
  0xdd   :  { %v92_v7 = vadd.f32 %v85_v5, %v22_v4  ;;  %v146_v8 = vpop.f32.mrb[1].mxu0 }
  0xde   :  { %v88_v9 = vpop.f32.mrb[2].mxu0 }
  0xdf   :  { %95 = vst.msk [vmem:[#allocation2] sm:$0xff] %vm19_vm0, %v92_v7  ;;  %v93_v10 = vadd.f32 %v88_v9, %v23_v6  ;;  %v147_v11 = vpop.f32.mrb[3].mxu0 }
  0xe1   :  { %96 = vst.msk [vmem:[#allocation2 + $0x8] sm:$0xff] %vm19_vm0, %v93_v10 }
  0xe6   :  { %v100_v13 = vld [vmem:[#allocation2] sm:$0xff] }
  0xe7   :  { %v109_v14 = vadd.f32 %v132_v12, %v100_v13 }
  0xe8   :  { %v101_v15 = vld [vmem:[#allocation2 + $0x8] sm:$0xff] }
  0xe9   :  { %v111_v16 = vmax.f32 %v109_v14, 0.0  ;;  %v110_v17 = vadd.f32 %v132_v12, %v101_v15 }
  0xeb   :  { %v135_v18 = vpack.c.bf16 %v111_v16, %v111_v16  ;;  %v112_v19 = vmax.f32 %v110_v17, 0.0 }
  0xed   :  { %122 = vst.msk [vmem:[%s200_s3] sm:$0xf] %vm121_vm3, %v135_v18  ;;  %v136_v20 = vpack.c.bf16 %v112_v19, %v112_v19 }
  0xef   :  { %123 = vst.msk [vmem:[%s200_s3 + $0x4] sm:$0xf] %vm121_vm3, %v136_v20 }

// kernel: ykt_forward.41
= control target key start
LH: loop header
LB: loop body
LE: loop exit
PB: predicated region body
PF: predicated region fallthrough
CT: control target
= control target key end

     0   :  { %vm28_vm0 = vcmask 261120   ;;  %v228_v0 = vmov 0.0   ;;  %vm229_vm1 = vmmov 0   ;;  %vm72_vm2 = vcmask 523264   ;;  %s311_s2 = inlined_call_operand.vmem [shape: bf16[64,32], index: 2, kind: input, shape index: {}]   ;;  %s312_s0 = inlined_call_operand.vmem [shape: bf16[16,64], index: 0, kind: input, shape index: {}]   ;;  %s313_s1 = inlined_call_operand.vmem [shape: f32[16,32], index: 1, kind: input, shape index: {}]   ;;  %s314_s3 = inlined_call_operand.vmem [shape: f32[1,32], index: 3, kind: input, shape index: {}]   ;;  %s315_s4 = inlined_call_operand.vmem [shape: f32[1,32], index: 4, kind: input, shape index: {}]   ;;  %s316_s5 = inlined_call_operand.vmem [shape: f32[1,32], index: 5, kind: input, shape index: {}]   ;;  %s317_s6 = inlined_call_operand.vmem [shape: f32[16,32], index: 6, kind: output, shape index: {}]  }
   0x1   :  { %205 = vmatprep.subr.bf16.mxu0 %v228_v0  ;;  %v219_v1 = vld [vmem:[%s311_s2] sm:$0xff]   ;;  %213 = vmatprep.mubr.msk.bf16.mxu0 %vm229_vm1, %v228_v0  ;;  %29 = vst.msk [vmem:[#allocation2] sm:$0xff] %vm28_vm0, %v228_v0  ;;  %30 = vst.msk [vmem:[#allocation2 + $0x8] sm:$0xff] %vm28_vm0, %v228_v0  ;;  %v220_v2 = vld [vmem:[%s311_s2 + $0x8] sm:$0xff]  }
   0x2   :  { %206 = vmatpush3.bf16.msra.mxu0 %v219_v1  ;;  %v221_v3 = vld [vmem:[%s311_s2 + $0x10] sm:$0xff]   ;;  %v222_v4 = vld [vmem:[%s311_s2 + $0x18] sm:$0xff]   ;;  %v223_v5 = vld [vmem:[%s312_s0] sm:$0xff]  }
   0x3   :  { %207 = vmatprep.subr.bf16.mxu0 %v228_v0  ;;  %v125_v14 = vld [vmem:[%s313_s1] sm:$0xff]  ;;  %v126_v17 = vld [vmem:[%s313_s1 + $0x8] sm:$0xff] }
   0x4   :  { %v197_v16 = vld [vmem:[%s314_s3] ss:$0 sm:$0xff] }
   0x5   :  { %v198_v42 = vld [vmem:[%s315_s4] ss:$0 sm:$0xff] }
   0x6   :  { %208 = vmatpush3.bf16.msra.mxu0 %v220_v2  ;;  %v199_v44 = vld [vmem:[%s316_s5] ss:$0 sm:$0xff] }
   0x7   :  { %209 = vmatprep.subr.bf16.mxu0 %v228_v0 }
   0x8   :  { %v31_v6 = vld [vmem:[#allocation2] sm:$0xff]  ;;  %v32_v8 = vld [vmem:[#allocation2 + $0x8] sm:$0xff] }
   0xa   :  { %210 = vmatpush3.bf16.msra.mxu0 %v221_v3 }
   0xb   :  { %211 = vmatprep.subr.bf16.mxu0 %v228_v0 }
   0xe   :  { %212 = vmatpush3.bf16.msra.mxu0 %v222_v4 }
  0x11   :  { %214 = vmatmul.mubr.msk.bf16.vlgmr.msra.gmra.mrb[0].mxu0 %vm72_vm2, %v223_v5 }
  0xe4   :  { %v110_v7 = vpop.f32.mrb[0].mxu0 }
  0xe5   :  { %v117_v9 = vadd.f32 %v110_v7, %v31_v6  ;;  %v215_v10 = vpop.f32.mrb[1].mxu0 }
  0xe6   :  { %v113_v11 = vpop.f32.mrb[2].mxu0 }
  0xe7   :  { %120 = vst.msk [vmem:[#allocation2] sm:$0xff] %vm28_vm0, %v117_v9  ;;  %v118_v12 = vadd.f32 %v113_v11, %v32_v8  ;;  %v216_v13 = vpop.f32.mrb[3].mxu0 }
  0xe9   :  { %121 = vst.msk [vmem:[#allocation2 + $0x8] sm:$0xff] %vm28_vm0, %v118_v12 }
  0xee   :  { %v127_v15 = vld [vmem:[#allocation2] sm:$0xff] }
  0xef   :  { %v129_v18 = vadd.f32 %v127_v15, %v125_v14 }
  0xf0   :  { %v128_v19 = vld [vmem:[#allocation2 + $0x8] sm:$0xff] }
  0xf1   :  { %v138_v20 = vadd.f32 %v197_v16, %v129_v18  ;;  %v130_v21 = vadd.f32 %v128_v19, %v126_v17 }
  0xf3   :  { %v140_v22 = vsel %vm28_vm0, %v138_v20, 0.0  ;;  %v139_v23 = vadd.f32 %v197_v16, %v130_v21 }
  0xf4   :  { %141 = vadd.xlane.f32.xlu0 %v140_v22 }
  0xf5   :  { %v143_v24 = vsel %vm28_vm0, %v139_v23, 0.0 }
  0xf8   :  { %144 = vadd.xlane.f32.xlu0 %v143_v24 }
 0x181   :  { %v142_v25 = vpop.xlane.xlu0 %141 }
 0x182   :  { %v147_v26 = vmul.f32 0.03125, %v142_v25 }
 0x184   :  { %v149_v27 = vsub.f32 %v138_v20, %v147_v26 }
 0x185   :  { %v145_v28 = vpop.xlane.xlu0 %144 }
 0x186   :  { %v148_v29 = vmul.f32 0.03125, %v145_v28  ;;  %v151_v30 = vmul.f32 %v149_v27, %v149_v27 }
 0x188   :  { %v150_v31 = vsub.f32 %v139_v23, %v148_v29  ;;  %v153_v32 = vsel %vm28_vm0, %v151_v30, 0.0 }
 0x189   :  { %154 = vadd.xlane.f32.xlu1 %v153_v32 }
 0x18a   :  { %v152_v33 = vmul.f32 %v150_v31, %v150_v31 }
 0x18c   :  { %v156_v34 = vsel %vm28_vm0, %v152_v33, 0.0 }
 0x18d   :  { %157 = vadd.xlane.f32.xlu1 %v156_v34 }
 0x216   :  { %v155_v35 = vpop.xlane.xlu1 %154 }
 0x217   :  { %v159_v36 = vmul.f32 0.03125, %v155_v35 }
 0x219   :  { %v161_v37 = vadd.f32 1e-05, %v159_v36 }
 0x21a   :  { %v158_v38 = vpop.xlane.xlu1 %157 }
 0x21b   :  { %224 = vrsqrt.f32 %v161_v37  ;;  %v160_v39 = vmul.f32 0.03125, %v158_v38 }
 0x21d   :  { %v162_v40 = vadd.f32 1e-05, %v160_v39 }
 0x21f   :  { %226 = vrsqrt.f32 %v162_v40 }
 0x225   :  { %v225_v41 = vpop.eup %224 }
 0x226   :  { %v165_v43 = vmul.f32 %v225_v41, %v149_v27 }
 0x228   :  { %v174_v45 = vmul.f32 %v198_v42, %v165_v43 }
 0x229   :  { %v227_v46 = vpop.eup %226 }
 0x22a   :  { %v183_v47 = vadd.f32 %v199_v44, %v174_v45  ;;  %v166_v48 = vmul.f32 %v227_v46, %v150_v31 }
 0x22c   :  { %185 = vst.msk [vmem:[%s317_s6] sm:$0xff] %vm28_vm0, %v183_v47  ;;  %v175_v49 = vmul.f32 %v198_v42, %v166_v48 }
 0x22e   :  { %v184_v50 = vadd.f32 %v199_v44, %v175_v49 }
 0x230   :  { %186 = vst.msk [vmem:[%s317_s6 + $0x8] sm:$0xff] %vm28_vm0, %v184_v50 }

// kernel: ykt_forward.36
= control target key start
LH: loop header
LB: loop body
LE: loop exit
PB: predicated region body
PF: predicated region fallthrough
CT: control target
= control target key end

     0   :  { %s3375_s0 = inlined_call_operand.hbm [shape: bf16[2,4,8,8], index: 0, kind: input, shape index: {}]   ;;  %s3376_s1 = inlined_call_operand.hbm [shape: bf16[2,4,8,8], index: 1, kind: input, shape index: {}]   ;;  %s3377_s2 = inlined_call_operand.hbm [shape: bf16[2,4,8,8], index: 2, kind: input, shape index: {}]   ;;  %s3378_s3 = inlined_call_operand.hbm [shape: bf16[10,8], index: 3, kind: input, shape index: {}]   ;;  %s3379_s4 = inlined_call_operand.hbm [shape: f32[10,8], index: 4, kind: input, shape index: {}]   ;;  %s3380_s5 = inlined_call_operand.hbm [shape: bf16[4,8,32], index: 5, kind: input, shape index: {}]   ;;  %s3381_s6 = inlined_call_operand.hbm [shape: f32[1,32], index: 6, kind: input, shape index: {}]   ;;  %s3382_s7 = inlined_call_operand.hbm [shape: f32[2,8,32], index: 7, kind: output, shape index: {}]  }
   0x1   :  { %3413 = sst [smem:[#allocation30_spill]] %s3376_s1 }
   0x2   :  { %3414 = sst [smem:[#allocation31_spill]] %s3378_s3 }
   0x3   :  { %3415 = sst [smem:[#allocation32_spill]] %s3380_s5 }
   0x4   :  { %3416 = sst [smem:[#allocation33_spill]] %s3382_s7 }
   0x5   :  { %12 = vsyncpa [#allocation3], 0 }
   0x6   :  { %14 = vsyncpa [#allocation3 + $0x1], 0 }
   0x7   :  { %15 = vsyncpa [#allocation6], 0 }
   0x8   :  { %17 = vsyncpa [#allocation6 + $0x1], 0 }
   0x9   :  { %18 = vsyncpa [#allocation9], 0 }
   0xa   :  { %19 = vsyncpa [#allocation12], 0 }
   0xb   :  { %20 = vsyncpa [#allocation4], 0 }
   0xc   :  { %22 = vsyncpa [#allocation4 + $0x1], 0  ;;  %s2529_s24 = smov 0   ;;  %s2531_s25 = smov 0  }
   0xd   :  { %s2533_s26 = smov 0   ;;  %s2535_s27 = smov 0  }
   0xe   :  { %s2537_s28 = smov 0   ;;  %s2539_s29 = smov 0  }
   0xf LB: > { %3417 = sst [smem:[#allocation20_spill]] %s2445_s24  ;;  %s2560_s30 = sadd.s32 4294967295, %s2465_s29   ;;  %s2465_s29 = sphi %s2539_s29, %s28_s29   ;;  %s2461_s28 = sphi %s2537_s28, %s3465_s28   ;;  %s2457_s27 = sphi %s2535_s27, %s3464_s27   ;;  %s2453_s26 = sphi %s2533_s26, %s3468_s26   ;;  %s2449_s25 = sphi %s2531_s25, %s3467_s25   ;;  %s2445_s24 = sphi %s2529_s24, %s3466_s24  }
  0x10   : > { %3418 = sst [smem:[#allocation21_spill]] %s2457_s27  ;;  %s1837_s8 = sadd.s32 4294967294, %s2465_s29  }
  0x11   : > { %3419 = sst [smem:[#allocation22_spill]] %s2461_s28  ;;  %p62_p0 = scmp.ne.s32.totalorder %s2449_s25, %s2445_s24 }
  0x12   : > { %3420 = sst [smem:[#allocation23_spill]] %s2465_s29  ;;  %p3383_p1 = scmp.eq.s32.totalorder %s2560_s30, 0 }
  0x13   : > { %3421 = sst [smem:[#allocation24_spill]] %s2560_s30  ;;  %p237_p3 = scmp.eq.s32.totalorder %s1837_s8, 1 }
  0x14   : > { %p2569_p4 = por %p3383_p1, %p62_p0  ;;  %p1838_p5 = scmp.ge.s32.totalorder %s2465_s29, 1 }
  0x15   : > { %p2574_p6 = por %p237_p3, %p62_p0  ;;  %p244_p7 = scmp.lt.s32.totalorder %s2465_s29, 3 }
  0x16   : > { %s3422_s9 = scalar_select %p2569_p4, 1, 0 }
  0x17   : > { %s3424_s10 = scalar_select %p2574_p6, 1, 0 }
  0x18   : > { %3423 = sst [smem:[#allocation25_spill]] %s3422_s9  ;;  %p2579_p8 = pnand %p1838_p5, %p244_p7 }
  0x19   : > { %3425 = sst [smem:[#allocation26_spill]] %s3424_s10  ;;  %s2467_s12 = smov [#allocation8]  }
  0x1a   : > { %s3426_s11 = scalar_select %p2579_p8, 1, 0 }
  0x1b   : > { %s256_s13 = sshll.u32 %s2467_s12, 4  ;;  %p2017_p9 = pneg %p2579_p8  ;;  %s2583_s13 = int_to_ptr.vmem [resolvable:$true] %s256_s13 }
  0x1c   : > { %s2468_s15 = smov [#allocation11]   ;;  %s3428_s3 = sld [smem:[#allocation31_spill]] }
  0x1d   : > { %p2590_p11 = pnand %p2017_p9, %p3383_p1  ;;  %s285_s16 = sshll.u32 %s2468_s15, 4  ;;  %s2594_s16 = int_to_ptr.vmem [resolvable:$true] %s285_s16 }
  0x1f   : > { %s3427_s14 = scalar_select %p2590_p11, 1, 0 }
  0x20   : > { %p2604_p13 = pneg %p2590_p11 }
  0x22   : > { %s2169_s19 = scalar_lea.hbm %s3428_s3, 128 }
  0x23   : > { %p2170_p12 = scmp.ne.s32.totalorder %s3428_s3, %s2169_s19  ;;  %p2176_p5 = scmp.lt.u32.totalorder %s2169_s19, %s3428_s3 }
  0x24   : > { %s3429_s22 = scalar_select %p2604_p13, 1, 0 }
  0x25   : > { %p2172_p0 = pnand %p2604_p13, %p2170_p12 }
  0x27   : > { %p2173_p3 = pneg %p2172_p0 }
  0x29   : > { %p2178_p7 = pnand %p2176_p5, %p2173_p3 }
  0x2b   : > { %2181 = shalt.err (!%p2178_p7)
}
  0x2c   : > { %s2182_s12 = scalar_lea.vmem %s2583_s13, 128  ;;  %p2190_p2 = scmp.lt.s32.totalorder %s2583_s13, %s2583_s13 }
  0x2d   : > { %p2183_p9 = scmp.ne.s32.totalorder %s2583_s13, %s2182_s12  ;;  %p2191_p6 = scmp.lt.s32.totalorder %s2182_s12, %s2182_s12 }
  0x2f   : > { %p2185_p10 = pnand %p2183_p9, %p2604_p13  ;;  %p2192_p12 = por %p2191_p6, %p2190_p2 }
  0x31   : > { %p2186_p1 = pneg %p2185_p10 }
  0x33   : > { %p2193_p0 = pnand %p2192_p12, %p2186_p1 }
  0x35   : > { %2196 = shalt.err (!%p2193_p0)
}
  0x36   : > { %s3386_s15 = smov 64   ;;  %s3388_s17 = smov 4  }
  0x37   : > { %2020 = dma.hbm_to_vmem [thread:$0]  (!%p2590_p11), %s3428_s3, 128, %s2583_s13, [#allocation9], %s3386_s15, %s3386_s15, %s3388_s17  }
  0x38   : > { %s3430_s5 = sld [smem:[#allocation32_spill]] }
  0x3e   : > { %s2197_s23 = scalar_lea.hbm %s3430_s5, 256 }
  0x3f   : > { %p2198_p1 = scmp.ne.s32.totalorder %s3430_s5, %s2197_s23  ;;  %p2204_p10 = scmp.lt.u32.totalorder %s2197_s23, %s3430_s5 }
  0x41   : > { %p2200_p2 = pnand %p2198_p1, %p2604_p13 }
  0x43   : > { %p2201_p6 = pneg %p2200_p2 }
  0x45   : > { %p2206_p3 = pnand %p2204_p10, %p2201_p6 }
  0x47   : > { %2209 = shalt.err (!%p2206_p3)
}
  0x48   : > { %s2210_s13 = scalar_lea.vmem %s2594_s16, 256  ;;  %p2218_p12 = scmp.lt.s32.totalorder %s2594_s16, %s2594_s16 }
  0x49   : > { %p2211_p5 = scmp.ne.s32.totalorder %s2594_s16, %s2210_s13  ;;  %p2219_p0 = scmp.lt.s32.totalorder %s2210_s13, %s2210_s13 }
  0x4b   : > { %p2213_p7 = pnand %p2211_p5, %p2604_p13  ;;  %p2220_p1 = por %p2219_p0, %p2218_p12 }
  0x4d   : > { %p2214_p9 = pneg %p2213_p7 }
  0x4f   : > { %p2221_p2 = pnand %p2220_p1, %p2214_p9 }
  0x51   : > { %2224 = shalt.err (!%p2221_p2)
}
  0x52   : > { %2026 = dma.hbm_to_vmem [thread:$0]  (!%p2590_p11), %s3430_s5, 256, %s2594_s16, [#allocation12], %s3386_s15, %s3386_s15, %s3388_s17  }
  0x53   : > { %s40_s18 = sadd.s32 1, %s2461_s28  ;;  %s49_s19 = sadd.s32 1, %s2453_s26 }
  0x54   : > { %p42_p6 = scmp.ge.s32.totalorder %s40_s18, 2  ;;  %p56_p10 = scmp.ne.s32.totalorder %s2453_s26, %s2449_s25 }
  0x55   : > { %p57_p3 = scmp.eq.s32.totalorder %s2465_s29, 0  ;;  %p2048_p5 = scmp.lt.s32.totalorder %s2465_s29, 2 }
  0x56   : > { %s3470_s18 = smov (%p42_p6, %s40_s18), 0  ;;  %p3432_p9 = scmp.eq.s32.totalorder %s2560_s30, 1 }
  0x57   : > { %3431 = sst [smem:[#allocation27_spill]] %s3470_s18  ;;  %p58_p7 = por %p57_p3, %p56_p10 }
  0x58   : > { %p2664_p12 = por %p3432_p9, %p56_p10  ;;  %s44_s21 = ssub.s32 %s2461_s28, %s3470_s18 }
  0x59   : > { %s3390_s23 = sand.u32 1, %s2453_s26   ;;  %p47_p0 = scmp.eq.s32.totalorder %s44_s21, 0 }
  0x5a   : > { %s3433_s20 = scalar_select %p2664_p12, 1, 0 }
  0x5b   : > { %s2673_s16 = sshll.u32 %s3390_s23, 4  ;;  %s2676_s8 = sshll.u32 %s2461_s28, 8 }
  0x5c   : > { %3434 = sst [smem:[#allocation28_spill]] %s3433_s20  ;;  %p2678_p1 = pnand %p2048_p5, %p58_p7 }
  0x5d   : > { %s2683_s13 = scalar_select %p47_p0, %s2453_s26, %s49_s19  }
  0x5e   : > { %s3435_s12 = scalar_select %p2678_p1, 1, 0 }
  0x5f   : > { %3436 = sst [smem:[#allocation29_spill]] %s2683_s13  ;;  %s333_s24 = sand.u32 1, %s2465_s29  }
  0x60   : > { %s3437_s1 = sld [smem:[#allocation30_spill]]  ;;  %s337_s21 = scalar_lea.vmem [#allocation5], %s2673_s16 }
  0x61   : > { %s346_s23 = sshll.u32 %s337_s21, 4  ;;  %s2695_s3 = scalar_lea.sflag [#allocation6], %s333_s24  ;;  %s2693_s23 = int_to_ptr.vmem [resolvable:$true] %s346_s23 }
  0x62   : > { %p2701_p6 = pneg %p2678_p1 }
  0x64   : > { %s3438_s19 = scalar_select %p2701_p6, 1, 0 }
  0x66   : > { %s2690_s17 = scalar_lea.hbm %s3437_s1, %s2676_s8  ;;  %s2230_s18 = scalar_lea.hbm %s3437_s1, 512 }
  0x67   : > { %s2225_s5 = scalar_lea.hbm %s2690_s17, 256  ;;  %p2231_p5 = scmp.lt.u32.totalorder %s2690_s17, %s3437_s1 }
  0x68   : > { %p2226_p2 = scmp.ne.s32.totalorder %s2690_s17, %s2225_s5  ;;  %p2232_p7 = scmp.lt.u32.totalorder %s2230_s18, %s2225_s5 }
  0x69   : > { %p2234_p0 = scmp.lt.u32.totalorder %s2225_s5, %s2690_s17 }
  0x6a   : > { %p2228_p10 = pnand %p2701_p6, %p2226_p2  ;;  %p2233_p9 = por %p2232_p7, %p2231_p5 }
  0x6c   : > { %p2229_p3 = pneg %p2228_p10  ;;  %p2235_p12 = por %p2234_p0, %p2233_p9 }
  0x6e   : > { %p2236_p4 = pnand %p2235_p12, %p2229_p3 }
  0x70   : > { %2239 = shalt.err (!%p2236_p4)
}
  0x71   : > { %s2240_s24 = scalar_lea.vmem %s2693_s23, 256  ;;  %s2471_s15 = smov [#allocation5]  }
  0x72   : > { %p2241_p2 = scmp.ne.s32.totalorder %s2693_s23, %s2240_s24  ;;  %s2245_s10 = sshll.u32 %s2471_s15, 4  ;;  %s2246_s10 = int_to_ptr.vmem [resolvable:$false] %s2245_s10 }
  0x73   : > { %s2247_s28 = scalar_lea.vmem %s2246_s10, 512  ;;  %p2248_p11 = scmp.lt.s32.totalorder %s2693_s23, %s2246_s10 }
  0x74   : > { %p2243_p10 = pnand %p2241_p2, %p2701_p6  ;;  %p2249_p13 = scmp.lt.s32.totalorder %s2247_s28, %s2240_s24 }
  0x76   : > { %p2244_p8 = pneg %p2243_p10  ;;  %p2250_p5 = por %p2249_p13, %p2248_p11 }
  0x78   : > { %p2251_p7 = pnand %p2250_p5, %p2244_p8 }
  0x7a   : > { %2254 = shalt.err (!%p2251_p7)
}
  0x7b   : > { %s3439_s5 = smov 4   ;;  %s3440_s18 = smov 64  }
  0x7c   : > { %2036 = dma.hbm_to_vmem [thread:$0]  (!%p2678_p1), %s2690_s17, 256, %s2693_s23, %s2695_s3, %s3440_s18, %s3440_s18, %s3439_s5  }
  0x7d   : > { %s2472_s21 = smov [#allocation10]   ;;  %s2255_s24 = scalar_lea.hbm %s3379_s4, 256 }
  0x7e   : > { %s269_s1 = sshll.u32 %s2472_s21, 4  ;;  %p2256_p4 = scmp.ne.s32.totalorder %s3379_s4, %s2255_s24  ;;  %s270_s1 = int_to_ptr.vmem [resolvable:$true] %s269_s1 }
  0x7f   : > { %p3441_p8 = scmp.ne.s32.totalorder %s3429_s22, 0  ;;  %p2262_p12 = scmp.lt.u32.totalorder %s2255_s24, %s3379_s4 }
  0x81   : > { %p2258_p11 = pnand %p2256_p4, %p3441_p8 }
  0x83   : > { %p2259_p13 = pneg %p2258_p11 }
  0x85   : > { %p2264_p3 = pnand %p2262_p12, %p2259_p13 }
  0x87   : > { %2267 = shalt.err (!%p2264_p3)
}
  0x88   : > { %s2268_s17 = scalar_lea.vmem %s270_s1, 256  ;;  %p2276_p10 = scmp.lt.s32.totalorder %s270_s1, %s270_s1 }
  0x89   : > { %p2269_p9 = scmp.ne.s32.totalorder %s270_s1, %s2268_s17  ;;  %p2277_p5 = scmp.lt.s32.totalorder %s2268_s17, %s2268_s17 }
  0x8b   : > { %p2271_p0 = pnand %p2269_p9, %p3441_p8  ;;  %p2278_p7 = por %p2277_p5, %p2276_p10 }
  0x8d   : > { %p2272_p2 = pneg %p2271_p0 }
  0x8f   : > { %p2279_p1 = pnand %p2278_p7, %p2272_p2 }
  0x91   : > { %2282 = shalt.err (!%p2279_p1)
}
  0x92   : > { %s2473_s23 = smov 128   ;;  %s2474_s13 = smov 8  }
  0x93   : > { %p3442_p4 = scmp.ne.s32.totalorder %s3427_s14, 0  ;;  %s2475_s21 = smov [#allocation13]  }
  0x94   : > { %s299_s15 = sshll.u32 %s2475_s21, 4  ;;  %s2750_s28 = scalar_lea.hbm %s3375_s0, %s2676_s8  ;;  %s300_s15 = int_to_ptr.vmem [resolvable:$true] %s299_s15 }
  0x95   : > { %2023 = dma.hbm_to_vmem [thread:$0]  (!%p3442_p4), %s3379_s4, 256, %s270_s1, [#allocation9], %s2473_s23, %s2473_s23, %s2474_s13  }
  0x96   : > { %s2283_s27 = scalar_lea.hbm %s3381_s6, 16 }
  0x97   : > { %p2284_p1 = scmp.ne.s32.totalorder %s3381_s6, %s2283_s27  ;;  %p2290_p12 = scmp.lt.u32.totalorder %s2283_s27, %s3381_s6 }
  0x99   : > { %p2286_p11 = pnand %p2284_p1, %p3441_p8 }
  0x9b   : > { %p2287_p13 = pneg %p2286_p11 }
  0x9d   : > { %p2292_p3 = pnand %p2290_p12, %p2287_p13 }
  0x9f   : > { %2295 = shalt.err (!%p2292_p3)
}
  0xa0   : > { %s2296_s13 = scalar_lea.vmem %s300_s15, 16  ;;  %s2303_s20 = scalar_lea.vmem %s300_s15, 32 }
  0xa1   : > { %p2297_p9 = scmp.ne.s32.totalorder %s300_s15, %s2296_s13  ;;  %p2304_p10 = scmp.lt.s32.totalorder %s300_s15, %s300_s15 }
  0xa2   : > { %p2305_p5 = scmp.lt.s32.totalorder %s2303_s20, %s2296_s13 }
  0xa3   : > { %p2299_p0 = pnand %p2297_p9, %p3441_p8 }
  0xa4   : > { %p2306_p7 = por %p2305_p5, %p2304_p10 }
  0xa5   : > { %p2300_p2 = pneg %p2299_p0 }
  0xa7   : > { %p2307_p6 = pnand %p2306_p7, %p2300_p2 }
  0xa9   : > { %2310 = shalt.err (!%p2307_p6)
}
  0xaa   : > { %2029 = dma.hbm_to_vmem [thread:$0]  (!%p3442_p4), %s3381_s6, 16, %s300_s15, [#allocation12]  }
  0xab   : > { %s314_s27 = scalar_lea.vmem [#allocation2], %s2673_s16  ;;  %s2777_s14 = scalar_lea.hbm %s3377_s2, %s2676_s8 }
  0xac   : > { %s323_s22 = sshll.u32 %s314_s27, 4  ;;  %s3443_s21 = sand.u32 1, %s2453_s26   ;;  %s2771_s22 = int_to_ptr.vmem [resolvable:$true] %s323_s22 }
  0xad   : > { %s2781_s24 = scalar_lea.sflag [#allocation3], %s3443_s21  ;;  %s2311_s10 = scalar_lea.hbm %s2750_s28, 256 }
  0xae   : > { %p2312_p6 = scmp.ne.s32.totalorder %s2750_s28, %s2311_s10  ;;  %p3444_p8 = scmp.ne.s32.totalorder %s3438_s19, 0 }
  0xaf   : > { %s2316_s15 = scalar_lea.hbm %s3375_s0, 512  ;;  %p2317_p4 = scmp.lt.u32.totalorder %s2750_s28, %s3375_s0 }
  0xb0   : > { %p2314_p1 = pnand %p2312_p6, %p3444_p8  ;;  %p2318_p13 = scmp.lt.u32.totalorder %s2316_s15, %s2311_s10 }
  0xb1   : > { %p2320_p3 = scmp.lt.u32.totalorder %s2311_s10, %s2750_s28 }
  0xb2   : > { %p2315_p11 = pneg %p2314_p1  ;;  %p2319_p12 = por %p2318_p13, %p2317_p4 }
  0xb4   : > { %p2321_p9 = por %p2320_p3, %p2319_p12 }
  0xb6   : > { %p2322_p0 = pnand %p2321_p9, %p2315_p11 }
  0xb8   : > { %2325 = shalt.err (!%p2322_p0)
}
  0xb9   : > { %s2326_s8 = scalar_lea.vmem %s2771_s22, 256  ;;  %s2476_s20 = smov [#allocation2]  }
  0xba   : > { %p2327_p2 = scmp.ne.s32.totalorder %s2771_s22, %s2326_s8  ;;  %s2331_s30 = sshll.u32 %s2476_s20, 4  ;;  %s2332_s30 = int_to_ptr.vmem [resolvable:$false] %s2331_s30 }
  0xbb   : > { %s2333_s9 = scalar_lea.vmem %s2332_s30, 512  ;;  %p2334_p7 = scmp.lt.s32.totalorder %s2771_s22, %s2332_s30 }
  0xbc   : > { %p2329_p10 = pnand %p2327_p2, %p3444_p8  ;;  %p2335_p6 = scmp.lt.s32.totalorder %s2333_s9, %s2326_s8 }
  0xbe   : > { %p2330_p5 = pneg %p2329_p10  ;;  %p2336_p1 = por %p2335_p6, %p2334_p7 }
  0xc0   : > { %p2337_p4 = pnand %p2336_p1, %p2330_p5 }
  0xc2   : > { %2340 = shalt.err (!%p2337_p4)
}
  0xc3   : > { %p3445_p11 = scmp.ne.s32.totalorder %s3435_s12, 0  ;;  %s360_s27 = scalar_lea.vmem [#allocation7], %s2673_s16 }
  0xc4   : > { %s369_s7 = sshll.u32 %s360_s27, 4  ;;  %s2341_s29 = scalar_lea.hbm %s2777_s14, 256  ;;  %s2809_s7 = int_to_ptr.vmem [resolvable:$true] %s369_s7 }
  0xc5   : > { %2033 = dma.hbm_to_vmem [thread:$0]  (!%p3445_p11), %s2750_s28, 256, %s2771_s22, %s2781_s24, %s3440_s18, %s3440_s18, %s3439_s5  }
  0xc6   : > { %p2342_p13 = scmp.ne.s32.totalorder %s2777_s14, %s2341_s29  ;;  %s2346_s17 = scalar_lea.hbm %s3377_s2, 512 }
  0xc7   : > { %p2347_p9 = scmp.lt.u32.totalorder %s2777_s14, %s3377_s2  ;;  %p2348_p0 = scmp.lt.u32.totalorder %s2346_s17, %s2341_s29 }
  0xc8   : > { %p2344_p12 = pnand %p2342_p13, %p3444_p8  ;;  %p2350_p10 = scmp.lt.u32.totalorder %s2341_s29, %s2777_s14 }
  0xc9   : > { %p2349_p2 = por %p2348_p0, %p2347_p9 }
  0xca   : > { %p2345_p3 = pneg %p2344_p12 }
  0xcb   : > { %p2351_p5 = por %p2350_p10, %p2349_p2 }
  0xcd   : > { %p2352_p7 = pnand %p2351_p5, %p2345_p3 }
  0xcf   : > { %2355 = shalt.err (!%p2352_p7)
}
  0xd0   : > { %s2356_s16 = scalar_lea.vmem %s2809_s7, 256  ;;  %s2477_s28 = smov [#allocation7]  }
  0xd1   : > { %p2357_p6 = scmp.ne.s32.totalorder %s2809_s7, %s2356_s16  ;;  %s2361_s22 = sshll.u32 %s2477_s28, 4  ;;  %s2362_s22 = int_to_ptr.vmem [resolvable:$false] %s2361_s22 }
  0xd2   : > { %s2363_s24 = scalar_lea.vmem %s2362_s22, 512  ;;  %p2364_p13 = scmp.lt.s32.totalorder %s2809_s7, %s2362_s22 }
  0xd3   : > { %p2359_p1 = pnand %p2357_p6, %p3444_p8  ;;  %p2365_p12 = scmp.lt.s32.totalorder %s2363_s24, %s2356_s16 }
  0xd5   : > { %p2360_p4 = pneg %p2359_p1  ;;  %p2366_p9 = por %p2365_p12, %p2364_p13 }
  0xd7   : > { %p2367_p0 = pnand %p2366_p9, %p2360_p4 }
  0xd9   : > { %2370 = shalt.err (!%p2367_p0)
}
  0xda   : > { %2039 = dma.hbm_to_vmem [thread:$0]  (!%p3445_p11), %s2777_s14, 256, %s2809_s7, %s2695_s3, %s3440_s18, %s3440_s18, %s3439_s5  }
  0xdb   : > { %p3446_p8 = scmp.ne.s32.totalorder %s3426_s11, 0 }
  0xdc   : > { %s3447_s19 = sld [smem:[#allocation25_spill]] (!%p3446_p8)  ;;  %s2839_s23 = sand.u32 (!%p3446_p8), 1, %s2449_s25  }
  0xdd   : > { %381 = sbr.rel (%p3446_p8) target bundleno = 1474 (0x5c2), region = 48  ;;  %s1854_s13 = sshll.u32 (!%p3446_p8), %s2839_s23, 4 }
  0xde   : > { %s384_s8 = scalar_lea.sflag (!%p3446_p8), [#allocation3], %s2839_s23  ;;  %s2843_s20 = scalar_lea.vmem (!%p3446_p8), [#allocation2], %s1854_s13 }
  0xe2   : > { %p3448_p3 = scmp.ne.s32.totalorder (!%p3446_p8), %s3447_s19, 0 }
  0xe4   : > { %2424 = dma.done.wait (%p3448_p3), %s384_s8, 256  }
  0xe5   : > { %2426 = vsyncadd (%p3448_p3), %s384_s8, 4294967040  ;;  %s3449_s12 = sld [smem:[#allocation24_spill]]  ;;  %s2850_s5 = scalar_lea.vmem [#allocation5], %s1854_s13 }
  0xeb   : > { %s392_s3 = sand.u32 1, %s3449_s12  }
  0xec   : > { %s393_s11 = scalar_lea.sflag [#allocation6], %s392_s3 }
  0xed   : > { %2428 = dma.done.wait (%p3448_p3), %s393_s11, 512  }
  0xee   : > { %2430 = vsyncadd (%p3448_p3), %s393_s11, 4294966784  ;;  %s2856_s18 = scalar_lea.vmem [#allocation7], %s1854_s13  ;;  %p3450_p11 = scmp.eq.s32.totalorder %s3449_s12, 0 }
  0xf0   : > { %2432 = dma.done.wait (%p3450_p11), [#allocation9], 384   ;;  %p3451_p2 = pmov %p3450_p11 }
  0xf2   : > { %2434 = vsyncadd (%p3451_p2), [#allocation9], 4294966912  ;;  %p3452_p10 = pmov %p3451_p2 }
  0xf3   : > { %p3453_p5 = pmov %p3451_p2 }
  0xf4   : > { %2436 = dma.done.wait (%p3452_p10), [#allocation12], 272  }
  0xf5   : > { %2438 = vsyncadd (%p3453_p5), [#allocation12], 4294967024  ;;  %v2478_v0 = vmov 0.0   ;;  %vm2479_vm0 = vmmov 0   ;;  %v2480_v1 = vmov 1   ;;  %v2481_v2 = vmov 0  }
  0xf6   : > { %1920 = vmatprep.subr.bf16.mxu1 %v2478_v0  ;;  %1922 = vmatprep.mubr.msk.bf16.mxu1 %vm2479_vm0, %v2478_v0  ;;  %vm505_vm1 = vcmask 64512   ;;  %v2150_v3 = vld [vmem:[#allocation8] sm:$0x1f]   ;;  %v469_v9 = vld [vmem:[%s2843_s20 + $0x8] sm:$0xf]  ;;  %v2482_v23 = vmov 3   ;;  %v479_v45 = vlaneseq }
  0xf7   : > { %2121 = vset.pattern.permute.xlu1 %v2480_v1  ;;  %2120 = vset.pattern.permute.xlu0 %v2481_v2  ;;  %v467_v4 = vld [vmem:[%s2843_s20] sm:$0xf]  ;;  %v468_v5 = vld [vmem:[%s2843_s20 + $0x4] sm:$0xf]  ;;  %v513_v6 = vsel %vm505_vm1, %v2150_v3, 0  ;;  %v2483_v24 = vmov 2  }
  0xf8   : > { %1992 = vmatprep.subr.msk.bf16.mxu0 %vm505_vm1, %v2150_v3  ;;  %v1862_v7 = vcombine.low %v467_v4, %v468_v5  ;;  %v471_v8 = vld [vmem:[%s2850_s5] sm:$0xf]  ;;  %v470_v10 = vld [vmem:[%s2843_s20 + $0xc] sm:$0xf]  ;;  %v472_v12 = vld [vmem:[%s2850_s5 + $0x4] sm:$0xf] }
  0xf9   : > { %1915 = vmatpush3.bf16.xpose.msra.mxu0 %v513_v6  ;;  %v788_v11 = vsel %vm505_vm1, %v471_v8, 0  ;;  %v1863_v13 = vcombine.low %v469_v9, %v470_v10  ;;  %v834_v14 = vsel %vm505_vm1, %v472_v12, 0  ;;  %v473_v15 = vld [vmem:[%s2850_s5 + $0x8] sm:$0xf]  ;;  %v474_v17 = vld [vmem:[%s2850_s5 + $0xc] sm:$0xf] }
  0xfa   : > { %1916 = vmatprep.mubr.msk.bf16.mxu0 %vm505_vm1, %v1862_v7  ;;  %1921 = vmatpush3.bf16.xpose.msra.mxu1 %v788_v11  ;;  %v880_v16 = vsel %vm505_vm1, %v473_v15, 0  ;;  %v926_v18 = vsel %vm505_vm1, %v474_v17, 0  ;;  %v2484_v25 = vmov 5   ;;  %v2485_v26 = vmov 4   ;;  %s3454_s14 = sld [smem:[#allocation21_spill]]  ;;  %s1861_s30 = sshll.u32 %s2839_s23, 3 }
  0xfb   : > { %1926 = vmatprep.subr.bf16.mxu0 %v2478_v0  ;;  %1932 = vmatprep.subr.bf16.mxu1 %v2478_v0  ;;  %v2486_v27 = vmov 7   ;;  %v2487_v28 = vmov 6   ;;  %v2940_v46 = vshrl.u32 %v479_v45, 7  ;;  %v2942_v47 = vand.u32 127, %v479_v45  ;;  %s3455_s9 = sld [smem:[#allocation28_spill]]  ;;  %s461_s7 = scalar_lea.vmem [#allocation14], %s1861_s30 }
  0xfc   : > { %vm1055_vm12 = vcmask 1043456   ;;  %s1666_s29 = sshll.u32 %s461_s7, 4  ;;  %vm1642_vm13 = vcmask 261120   ;;  %s3456_s17 = sld [smem:[#allocation33_spill]]  ;;  %s3328_s29 = int_to_ptr.vmem [resolvable:$true] %s1666_s29 }
  0xfd   : > { %v483_v48 = vsub.s32 %v2940_v46, %v2942_v47  ;;  %vm972_vm11 = vcmp.gt.s32.totalorder %v2942_v47, %v2940_v46  ;;  %s1653_s15 = scalar_lea.sflag [#allocation4], %s2839_s23  ;;  %s2371_s16 = scalar_lea.vmem %s3328_s29, 128 }
  0xfe   : > { %p2372_p7 = scmp.ne.s32.totalorder %s3328_s29, %s2371_s16  ;;  %s2488_s28 = smov [#allocation14]  }
  0xff   : > { %vm484_vm2 = vcmp.gt.s32.totalorder %v483_v48, 0  ;;  %s2375_s22 = sshll.u32 %s2488_s28, 4  ;;  %s2376_s22 = int_to_ptr.vmem [resolvable:$false] %s2375_s22 }
 0x100   : > { %1917 = vmatmul.mubr.msk.bf16.vlgmr.msra.gmra.mrb[0].mxu0 %vm505_vm1, %v1863_v13  ;;  %v2946_v49 = vsel %vm484_vm2, %v483_v48, 0  ;;  %s1881_s27 = sshll.u32 %s3454_s14, 7  ;;  %s2377_s24 = scalar_lea.vmem %s2376_s22, 256 }
 0x101   : > { %1923 = vmatmul.mubr.msk.bf16.vlgmr.msra.gmra.mrb[0].mxu1 %vm505_vm1, %v467_v4  ;;  %1927 = vmatpush3.bf16.xpose.msra.mxu0 %v834_v14  ;;  %vm595_vm3 = vcmp.eq.s32.totalorder %v2946_v49, 1  ;;  %vm564_vm4 = vcmp.eq.s32.totalorder %v2946_v49, 0  ;;  %vm622_vm5 = vcmp.eq.s32.totalorder %v2946_v49, 2  ;;  %vm649_vm6 = vcmp.eq.s32.totalorder %v2946_v49, 3  ;;  %p3457_p6 = scmp.ne.s32.totalorder %s3455_s9, 0  ;;  %p2378_p13 = scmp.lt.s32.totalorder %s3328_s29, %s2376_s22 }
 0x102   : > { %1928 = vmatprep.mubr.msk.bf16.mxu0 %vm2479_vm0, %v2478_v0  ;;  %1938 = vmatprep.subr.bf16.mxu0 %v2478_v0  ;;  %vm676_vm7 = vcmp.eq.s32.totalorder %v2946_v49, 4  ;;  %vm703_vm8 = vcmp.eq.s32.totalorder %v2946_v49, 5  ;;  %vm730_vm9 = vcmp.eq.s32.totalorder %v2946_v49, 6  ;;  %vm757_vm10 = vcmp.eq.s32.totalorder %v2946_v49, 7  ;;  %s3326_s1 = scalar_lea.hbm %s3456_s17, %s1881_s27  ;;  %p2379_p12 = scmp.lt.s32.totalorder %s2377_s24, %s2371_s16 }
 0x103   : > { %1934 = vmatprep.mubr.msk.bf16.mxu1 %vm2479_vm0, %v2478_v0  ;;  %1933 = vmatpush3.bf16.xpose.msra.mxu1 %v880_v16  ;;  %p2373_p1 = pnand %p2372_p7, %p3457_p6 }
 0x104   : > { %1944 = vmatprep.subr.bf16.mxu1 %v2478_v0  ;;  %p2380_p9 = por %p2379_p12, %p2378_p13 }
 0x105   : > { %p2374_p4 = pneg %p2373_p1 }
 0x107   : > { %p2381_p0 = pnand %p2380_p9, %p2374_p4 }
 0x108   : > { %1929 = vmatmul.mubr.msk.bf16.vlgmr.msra.gmra.mrb[4].mxu0 %vm505_vm1, %v468_v5 }
 0x109   : > { %1940 = vmatprep.mubr.msk.bf16.mxu0 %vm2479_vm0, %v2478_v0  ;;  %1939 = vmatpush3.bf16.xpose.msra.mxu0 %v926_v18 }
 0x10a   : > { %1950 = vmatprep.subr.bf16.mxu0 %v2478_v0  ;;  %1935 = vmatmul.mubr.msk.bf16.vlgmr.msra.gmra.mrb[4].mxu1 %vm505_vm1, %v469_v9 }
 0x10b   : > { %1946 = vmatprep.mubr.msk.bf16.mxu1 %vm2479_vm0, %v2478_v0 }
 0x110   : > { %1941 = vmatmul.mubr.msk.bf16.vlgmr.msra.gmra.mrb[8].mxu0 %vm505_vm1, %v470_v10 }
 0x111   : > { %1952 = vmatprep.mubr.msk.bf16.mxu0 %vm2479_vm0, %v2478_v0 }
 0x1d3   : > { %v2906_v19 = vpop.f32.mrb[0].mxu0 }
 0x1d4   : > { %607 = vperm.xlu1 %2121, %v2906_v19   ;;  %579 = vperm.xlu0 %2120, %v2906_v19   ;;  %v549_v20 = vpop.f32.mrb[1].mxu0  ;;  %v2920_v29 = vpop.f32.mrb[0].mxu1 }
 0x1d5   : > { %v2910_v21 = vpop.f32.mrb[2].mxu0  ;;  %v1924_v30 = vpop.f32.mrb[1].mxu1 }
 0x1d6   : > { %v552_v22 = vpop.f32.mrb[3].mxu0  ;;  %v827_v31 = vpop.f32.mrb[2].mxu1 }
 0x1d7   : > { %v1925_v32 = vpop.f32.mrb[3].mxu1 }
 0x1d8   : > { %2123 = vset.pattern.permute.xlu1 %v2482_v23  ;;  %2122 = vset.pattern.permute.xlu0 %v2483_v24 }
 0x1d9   : > { %661 = vperm.xlu1 %2123, %v2906_v19   ;;  %634 = vperm.xlu0 %2122, %v2906_v19  }
 0x1db   : > { %v2931_v33 = vpop.f32.mrb[4].mxu0 }
 0x1dc   : > { %v1930_v34 = vpop.f32.mrb[5].mxu0 }
 0x1dd   : > { %2125 = vset.pattern.permute.xlu1 %v2484_v25  ;;  %2124 = vset.pattern.permute.xlu0 %v2485_v26  ;;  %v873_v35 = vpop.f32.mrb[6].mxu0  ;;  %v2935_v37 = vpop.f32.mrb[4].mxu1 }
 0x1de   : > { %715 = vperm.xlu1 %2125, %v2906_v19   ;;  %688 = vperm.xlu0 %2124, %v2906_v19   ;;  %v1931_v36 = vpop.f32.mrb[7].mxu0  ;;  %v1936_v38 = vpop.f32.mrb[5].mxu1 }
 0x1df   : > { %v919_v39 = vpop.f32.mrb[6].mxu1 }
 0x1e0   : > { %v1937_v40 = vpop.f32.mrb[7].mxu1 }
 0x1e2   : > { %2127 = vset.pattern.permute.xlu1 %v2480_v1  ;;  %2126 = vset.pattern.permute.xlu0 %v2481_v2 }
 0x1e3   : > { %599 = vperm.xlu1 %2127, %v549_v20   ;;  %569 = vperm.xlu0 %2126, %v549_v20   ;;  %v2937_v41 = vpop.f32.mrb[8].mxu0 }
 0x1e4   : > { %v1942_v42 = vpop.f32.mrb[9].mxu0 }
 0x1e5   : > { %v965_v43 = vpop.f32.mrb[10].mxu0 }
 0x1e6   : > { %v1943_v44 = vpop.f32.mrb[11].mxu0 }
 0x1e7   : > { %2129 = vset.pattern.permute.xlu1 %v2482_v23  ;;  %2128 = vset.pattern.permute.xlu0 %v2483_v24 }
 0x1e8   : > { %653 = vperm.xlu1 %2129, %v549_v20   ;;  %626 = vperm.xlu0 %2128, %v549_v20  }
 0x1ec   : > { %2130 = vset.pattern.permute.xlu1 %v2485_v26  ;;  %2133 = vset.pattern.permute.xlu0 %v2486_v27 }
 0x1ed   : > { %680 = vperm.xlu1 %2130, %v549_v20   ;;  %761 = vperm.xlu0 %2133, %v549_v20  }
 0x1f1   : > { %2131 = vset.pattern.permute.xlu1 %v2484_v25  ;;  %2136 = vset.pattern.permute.xlu0 %v2483_v24 }
 0x1f2   : > { %707 = vperm.xlu1 %2131, %v549_v20   ;;  %638 = vperm.xlu0 %2136, %v2910_v21  }
 0x1f6   : > { %2132 = vset.pattern.permute.xlu1 %v2487_v28  ;;  %2139 = vset.pattern.permute.xlu0 %v2481_v2 }
 0x1f7   : > { %734 = vperm.xlu1 %2132, %v549_v20   ;;  %574 = vperm.xlu0 %2139, %v552_v22  }
 0x1fb   : > { %2134 = vset.pattern.permute.xlu1 %v2481_v2  ;;  %2142 = vset.pattern.permute.xlu0 %v2482_v23 }
 0x1fc   : > { %584 = vperm.xlu1 %2134, %v2910_v21   ;;  %657 = vperm.xlu0 %2142, %v552_v22  }
 0x200   : > { %2135 = vset.pattern.permute.xlu1 %v2480_v1  ;;  %2144 = vset.pattern.permute.xlu0 %v2484_v25 }
 0x201   : > { %611 = vperm.xlu1 %2135, %v2910_v21   ;;  %711 = vperm.xlu0 %2144, %v552_v22  }
 0x205   : > { %2137 = vset.pattern.permute.xlu1 %v2482_v23  ;;  %719 = vperm.xlu0 %2144, %v2910_v21  }
 0x206   : > { %665 = vperm.xlu1 %2137, %v2910_v21  }
 0x209   : > { %2148 = vset.pattern.permute.xlu0 %v2486_v27 }
 0x20a   : > { %2138 = vset.pattern.permute.xlu1 %v2485_v26  ;;  %769 = vperm.xlu0 %2148, %v2906_v19  }
 0x20b   : > { %692 = vperm.xlu1 %2138, %v2910_v21  }
 0x20f   : > { %2140 = vset.pattern.permute.xlu1 %v2480_v1 }
 0x210   : > { %603 = vperm.xlu1 %2140, %v552_v22  }
 0x214   : > { %2141 = vset.pattern.permute.xlu1 %v2483_v24 }
 0x215   : > { %630 = vperm.xlu1 %2141, %v552_v22  }
 0x219   : > { %2143 = vset.pattern.permute.xlu1 %v2485_v26 }
 0x21a   : > { %684 = vperm.xlu1 %2143, %v552_v22  }
 0x21e   : > { %2145 = vset.pattern.permute.xlu1 %v2487_v28 }
 0x21f   : > { %738 = vperm.xlu1 %2145, %v552_v22  }
 0x223   : > { %2146 = vset.pattern.permute.xlu1 %v2486_v27 }
 0x224   : > { %765 = vperm.xlu1 %2146, %v552_v22  }
 0x228   : > { %2147 = vset.pattern.permute.xlu1 %v2487_v28 }
 0x229   : > { %742 = vperm.xlu1 %2147, %v2906_v19  }
 0x22d   : > { %746 = vperm.xlu1 %2147, %v2910_v21  }
 0x231   : > { %2149 = vset.pattern.permute.xlu1 %v2486_v27 }
 0x232   : > { %773 = vperm.xlu1 %2149, %v2910_v21  }
 0x253   : > { %v608_v50 = vpop.permute.xlu1 %607  ;;  %v580_v51 = vpop.permute.xlu0 %579 }
 0x254   : > { %v616_v52 = vsel %vm595_vm3, %v608_v50, 0.0  ;;  %v589_v53 = vsel %vm564_vm4, %v580_v51, 0.0 }
 0x255   : > { %v620_v54 = vadd.f32 %v616_v52, %v589_v53 }
 0x258   : > { %v662_v55 = vpop.permute.xlu1 %661  ;;  %v635_v56 = vpop.permute.xlu0 %634 }
 0x259   : > { %v643_v57 = vsel %vm622_vm5, %v635_v56, 0.0  ;;  %v670_v59 = vsel %vm649_vm6, %v662_v55, 0.0 }
 0x25a   : > { %v647_v58 = vadd.f32 %v643_v57, %v620_v54 }
 0x25c   : > { %v674_v60 = vadd.f32 %v670_v59, %v647_v58 }
 0x25d   : > { %v716_v61 = vpop.permute.xlu1 %715  ;;  %v689_v62 = vpop.permute.xlu0 %688 }
 0x25e   : > { %v697_v63 = vsel %vm676_vm7, %v689_v62, 0.0  ;;  %v724_v2 = vsel %vm703_vm8, %v716_v61, 0.0 }
 0x25f   : > { %v701_v1 = vadd.f32 %v697_v63, %v674_v60 }
 0x261   : > { %v2966_v3 = vadd.f32 %v724_v2, %v701_v1 }
 0x262   : > { %v600_v4 = vpop.permute.xlu1 %599  ;;  %v570_v5 = vpop.permute.xlu0 %569 }
 0x263   : > { %v614_v6 = vsel %vm595_vm3, %v600_v4, 0.0  ;;  %v587_v7 = vsel %vm564_vm4, %v570_v5, 0.0 }
 0x264   : > { %v618_v11 = vadd.f32 %v614_v6, %v587_v7 }
 0x267   : > { %v654_v8 = vpop.permute.xlu1 %653  ;;  %v627_v9 = vpop.permute.xlu0 %626 }
 0x268   : > { %v641_v10 = vsel %vm622_vm5, %v627_v9, 0.0  ;;  %v668_v14 = vsel %vm649_vm6, %v654_v8, 0.0 }
 0x269   : > { %v645_v12 = vadd.f32 %v641_v10, %v618_v11 }
 0x26b   : > { %v672_v15 = vadd.f32 %v668_v14, %v645_v12 }
 0x26c   : > { %v681_v13 = vpop.permute.xlu1 %680  ;;  %v762_v20 = vpop.permute.xlu0 %761 }
 0x26d   : > { %v695_v16 = vsel %vm676_vm7, %v681_v13, 0.0  ;;  %v776_v25 = vsel %vm757_vm10, %v762_v20, 0.0 }
 0x26e   : > { %v699_v19 = vadd.f32 %v695_v16, %v672_v15 }
 0x271   : > { %v708_v17 = vpop.permute.xlu1 %707  ;;  %v639_v36 = vpop.permute.xlu0 %638 }
 0x272   : > { %v722_v18 = vsel %vm703_vm8, %v708_v17, 0.0  ;;  %v644_v5 = vsel %vm622_vm5, %v639_v36, 0.0 }
 0x273   : > { %v726_v21 = vadd.f32 %v722_v18, %v699_v19 }
 0x276   : > { %v735_v22 = vpop.permute.xlu1 %734  ;;  %v575_v39 = vpop.permute.xlu0 %574 }
 0x277   : > { %v749_v23 = vsel %vm730_vm9, %v735_v22, 0.0  ;;  %v588_v42 = vsel %vm564_vm4, %v575_v39, 0.0 }
 0x278   : > { %v753_v24 = vadd.f32 %v749_v23, %v726_v21 }
 0x27a   : > { %v780_v26 = vadd.f32 %v776_v25, %v753_v24 }
 0x27b   : > { %v585_v27 = vpop.permute.xlu1 %584  ;;  %v658_v43 = vpop.permute.xlu0 %657 }
 0x27c   : > { %v825_v28 = vadd.f32 %v2920_v29, %v780_v26  ;;  %v669_v51 = vsel %vm649_vm6, %v658_v43, 0.0  ;;  %v590_v61 = vsel %vm564_vm4, %v585_v27, 0.0 }
 0x27e   : > { %v968_v30 = vmul.f32 0.35355338, %v825_v28 }
 0x280   : > { %v612_v31 = vpop.permute.xlu1 %611  ;;  %v2992_v32 = vsel %vm972_vm11, -1e+09, %v968_v30  ;;  %v712_v55 = vpop.permute.xlu0 %711 }
 0x281   : > { %v979_v34 = vsel %vm505_vm1, %v2992_v32, -inf  ;;  %v617_v57 = vsel %vm595_vm3, %v612_v31, 0.0  ;;  %v723_v58 = vsel %vm703_vm8, %v712_v55, 0.0 }
 0x282   : > { %980 = vmax.xlane.f32.xlu1 %v979_v34  ;;  %v621_v63 = vadd.f32 %v617_v57, %v590_v61 }
 0x284   : > { %v720_v1 = vpop.permute.xlu0 %719  ;;  %v648_v7 = vadd.f32 %v644_v5, %v621_v63 }
 0x285   : > { %v666_v35 = vpop.permute.xlu1 %665  ;;  %v725_v23 = vsel %vm703_vm8, %v720_v1, 0.0 }
 0x286   : > { %v671_v9 = vsel %vm649_vm6, %v666_v35, 0.0 }
 0x287   : > { %v675_v14 = vadd.f32 %v671_v9, %v648_v7 }
 0x289   : > { %v770_v11 = vpop.permute.xlu0 %769 }
 0x28a   : > { %v693_v38 = vpop.permute.xlu1 %692  ;;  %v778_v18 = vsel %vm757_vm10, %v770_v11, 0.0 }
 0x28b   : > { %v698_v12 = vsel %vm676_vm7, %v693_v38, 0.0 }
 0x28c   : > { %v702_v19 = vadd.f32 %v698_v12, %v675_v14 }
 0x28e   : > { %v729_v25 = vadd.f32 %v725_v23, %v702_v19  ;;  %v478_v19 = vld [vmem:[%s2856_s18 + $0xc] sm:$0xf] }
 0x28f   : > { %v604_v40 = vpop.permute.xlu1 %603 }
 0x290   : > { %v615_v29 = vsel %vm595_vm3, %v604_v40, 0.0 }
 0x291   : > { %v619_v44 = vadd.f32 %v615_v29, %v588_v42 }
 0x294   : > { %v631_v45 = vpop.permute.xlu1 %630 }
 0x295   : > { %v642_v48 = vsel %vm622_vm5, %v631_v45, 0.0  ;;  %v475_v45 = vld [vmem:[%s2856_s18] sm:$0xf] }
 0x296   : > { %v646_v50 = vadd.f32 %v642_v48, %v619_v44 }
 0x298   : > { %v673_v52 = vadd.f32 %v669_v51, %v646_v50 }
 0x299   : > { %v685_v53 = vpop.permute.xlu1 %684 }
 0x29a   : > { %v696_v54 = vsel %vm676_vm7, %v685_v53, 0.0 }
 0x29b   : > { %v700_v56 = vadd.f32 %v696_v54, %v673_v52 }
 0x29d   : > { %v727_v60 = vadd.f32 %v723_v58, %v700_v56 }
 0x29e   : > { %v739_v59 = vpop.permute.xlu1 %738 }
 0x29f   : > { %v750_v62 = vsel %vm730_vm9, %v739_v59, 0.0 }
 0x2a0   : > { %v754_v2 = vadd.f32 %v750_v62, %v727_v60  ;;  %v476_v62 = vld [vmem:[%s2856_s18 + $0x4] sm:$0xf] }
 0x2a1   : > { %v1103_v63 = vsel %vm1055_vm12, %v476_v62, 0 }
 0x2a2   : > { %1951 = vmatpush3.bf16.msra.mxu0 %v1103_v63 }
 0x2a3   : > { %v766_v4 = vpop.permute.xlu1 %765  ;;  %1962 = vmatprep.subr.bf16.mxu0 %v2478_v0 }
 0x2a4   : > { %v777_v6 = vsel %vm757_vm10, %v766_v4, 0.0  ;;  %v477_v4 = vld [vmem:[%s2856_s18 + $0x8] sm:$0xf] }
 0x2a5   : > { %v781_v8 = vadd.f32 %v777_v6, %v754_v2 }
 0x2a7   : > { %v871_v10 = vadd.f32 %v2931_v33, %v781_v8  ;;  %v1149_v8 = vsel %vm1055_vm12, %v477_v4, 0 }
 0x2a8   : > { %v743_v13 = vpop.permute.xlu1 %742 }
 0x2a9   : > { %v969_v15 = vmul.f32 0.35355338, %v871_v10  ;;  %v751_v16 = vsel %vm730_vm9, %v743_v13, 0.0 }
 0x2aa   : > { %v755_v17 = vadd.f32 %v751_v16, %v2966_v3 }
 0x2ab   : > { %v976_v33 = vsel %vm972_vm11, -1e+09, %v969_v15 }
 0x2ac   : > { %v747_v20 = vpop.permute.xlu1 %746  ;;  %v782_v21 = vadd.f32 %v778_v18, %v755_v17  ;;  %v982_v22 = vsel %vm505_vm1, %v976_v33, -inf }
 0x2ad   : > { %983 = vmax.xlane.f32.xlu0 %v982_v22  ;;  %v752_v24 = vsel %vm730_vm9, %v747_v20, 0.0  ;;  %v1195_v22 = vsel %vm1055_vm12, %v478_v19, 0 }
 0x2ae   : > { %v917_v3 = vadd.f32 %v2935_v37, %v782_v21  ;;  %v756_v27 = vadd.f32 %v752_v24, %v729_v25 }
 0x2b0   : > { %v970_v26 = vmul.f32 0.35355338, %v917_v3 }
 0x2b1   : > { %v774_v28 = vpop.permute.xlu1 %773 }
 0x2b2   : > { %v779_v30 = vsel %vm757_vm10, %v774_v28, 0.0  ;;  %v977_v31 = vsel %vm972_vm11, -1e+09, %v970_v26 }
 0x2b3   : > { %v783_v34 = vadd.f32 %v779_v30, %v756_v27  ;;  %v985_v35 = vsel %vm505_vm1, %v977_v31, -inf }
 0x2b4   : > { %986 = vmax.xlane.f32.xlu0 %v985_v35 }
 0x2b5   : > { %v963_v36 = vadd.f32 %v2937_v41, %v783_v34  ;;  %v1057_v41 = vsel %vm1055_vm12, %v475_v45, 0 }
 0x2b6   : > { %1945 = vmatpush3.bf16.msra.mxu1 %v1057_v41 }
 0x2b7   : > { %v971_v38 = vmul.f32 0.35355338, %v963_v36  ;;  %1956 = vmatprep.subr.bf16.mxu1 %v2478_v0 }
 0x2b9   : > { %v978_v37 = vsel %vm972_vm11, -1e+09, %v971_v38 }
 0x2ba   : > { %v988_v39 = vsel %vm505_vm1, %v978_v37, -inf }
 0x2bb   : > { %989 = vmax.xlane.f32.xlu1 %v988_v39 }
 0x30f   : > { %v981_v40 = vpop.xlane.xlu1 %980 }
 0x310   : > { %v991_v29 = vsub.f32 %v2992_v32, %v981_v40 }
 0x312   : > { %v995_v42 = vmul.f32 1.442695, %v991_v29 }
 0x314   : > { %2153 = vpow2.f32 %v995_v42 }
 0x31e   : > { %v2154_v43 = vpop.eup %2153 }
 0x31f   : > { %v1003_v44 = vsel %vm505_vm1, %v2154_v43, 0.0 }
 0x320   : > { %1004 = vadd.xlane.f32.xlu0 %v1003_v44 }
 0x33a   : > { %v984_v48 = vpop.xlane.xlu0 %983 }
 0x33b   : > { %v992_v47 = vsub.f32 %v976_v33, %v984_v48 }
 0x33d   : > { %v997_v50 = vmul.f32 1.442695, %v992_v47 }
 0x33f   : > { %2155 = vpow2.f32 %v997_v50 }
 0x341   : > { %v987_v51 = vpop.xlane.xlu0 %986 }
 0x342   : > { %v993_v52 = vsub.f32 %v977_v31, %v987_v51 }
 0x344   : > { %v999_v32 = vmul.f32 1.442695, %v993_v52 }
 0x346   : > { %2157 = vpow2.f32 %v999_v32 }
 0x348   : > { %v990_v53 = vpop.xlane.xlu1 %989 }
 0x349   : > { %v2156_v54 = vpop.eup %2155  ;;  %v994_v55 = vsub.f32 %v978_v37, %v990_v53 }
 0x34a   : > { %v1006_v56 = vsel %vm505_vm1, %v2156_v54, 0.0 }
 0x34b   : > { %v1001_v57 = vmul.f32 1.442695, %v994_v55  ;;  %1007 = vadd.xlane.f32.xlu1 %v1006_v56 }
 0x34d   : > { %2159 = vpow2.f32 %v1001_v57 }
 0x350   : > { %v2158_v58 = vpop.eup %2157 }
 0x351   : > { %v1009_v59 = vsel %vm505_vm1, %v2158_v58, 0.0 }
 0x352   : > { %1010 = vadd.xlane.f32.xlu0 %v1009_v59 }
 0x357   : > { %v2160_v60 = vpop.eup %2159 }
 0x358   : > { %v1012_v61 = vsel %vm505_vm1, %v2160_v60, 0.0 }
 0x359   : > { %1013 = vadd.xlane.f32.xlu1 %v1012_v61 }
 0x3ad   : > { %v1005_v1 = vpop.xlane.xlu0 %1004 }
 0x3ae   : > { %2161 = vrcp.f32 %v1005_v1 }
 0x3b8   : > { %v2162_v2 = vpop.eup %2161 }
 0x3b9   : > { %v3060_v5 = vmul.f32 %v2162_v2, %v2154_v43 }
 0x3bb   : > { %v1293_v6 = vsel %vm649_vm6, %v3060_v5, 0.0  ;;  %v1023_v7 = vpack.c.bf16 %v3060_v5, %v3060_v5  ;;  %v1321_v10 = vsel %vm676_vm7, %v3060_v5, 0.0  ;;  %v1349_v12 = vsel %vm703_vm8, %v3060_v5, 0.0 }
 0x3bc   : > { %v1297_v9 = vsel %vm505_vm1, %v1293_v6, 0.0  ;;  %v1325_v11 = vsel %vm505_vm1, %v1321_v10, 0.0  ;;  %v1353_v13 = vsel %vm505_vm1, %v1349_v12, 0.0  ;;  %v1377_v14 = vsel %vm730_vm9, %v3060_v5, 0.0 }
 0x3bd   : > { %1298 = vadd.xlane.f32.xlu0 %v1297_v9  ;;  %1947 = vmatmul.mubr.msk.bf16.vlgmr.msra.gmra.mrb[8].mxu1 %vm505_vm1, %v1023_v7  ;;  %v1381_v15 = vsel %vm505_vm1, %v1377_v14, 0.0  ;;  %v1028_v47 = vsel %vm564_vm4, %v3060_v5, 0.0  ;;  %v1237_v32 = vsel %vm595_vm3, %v3060_v5, 0.0  ;;  %v1265_v56 = vsel %vm622_vm5, %v3060_v5, 0.0 }
 0x3be   : > { %1957 = vmatpush3.bf16.msra.mxu1 %v1149_v8  ;;  %1958 = vmatprep.mubr.msk.bf16.mxu1 %vm2479_vm0, %v2478_v0  ;;  %v1032_v51 = vsel %vm505_vm1, %v1028_v47, 0.0  ;;  %v1405_v6 = vsel %vm757_vm10, %v3060_v5, 0.0 }
 0x3bf   : > { %1968 = vmatprep.subr.bf16.mxu1 %v2478_v0  ;;  %v1409_v8 = vsel %vm505_vm1, %v1405_v6, 0.0 }
 0x3c1   : > { %1326 = vadd.xlane.f32.xlu0 %v1325_v11 }
 0x3c5   : > { %1354 = vadd.xlane.f32.xlu0 %v1353_v13 }
 0x3c9   : > { %1382 = vadd.xlane.f32.xlu0 %v1381_v15 }
 0x3d8   : > { %v1008_v16 = vpop.xlane.xlu1 %1007 }
 0x3d9   : > { %2163 = vrcp.f32 %v1008_v16 }
 0x3df   : > { %v1011_v17 = vpop.xlane.xlu0 %1010 }
 0x3e0   : > { %2165 = vrcp.f32 %v1011_v17 }
 0x3e3   : > { %v2164_v18 = vpop.eup %2163 }
 0x3e4   : > { %v3086_v33 = vmul.f32 %v2164_v18, %v2156_v54  ;;  %v1241_v54 = vsel %vm505_vm1, %v1237_v32, 0.0  ;;  %v1283_v32 = vsub.s32 2, %v2940_v46 }
 0x3e6   : > { %v1014_v20 = vpop.xlane.xlu1 %1013  ;;  %v1024_v21 = vpack.c.bf16 %v3086_v33, %v3086_v33  ;;  %v1029_v52 = vsel %vm564_vm4, %v3086_v33, 0.0  ;;  %v1238_v55 = vsel %vm595_vm3, %v3086_v33, 0.0  ;;  %v1266_v59 = vsel %vm622_vm5, %v3086_v33, 0.0 }
 0x3e7   : > { %2167 = vrcp.f32 %v1014_v20  ;;  %v1035_v53 = vsel %vm505_vm1, %v1029_v52, 0.0  ;;  %v1244_v57 = vsel %vm505_vm1, %v1238_v55, 0.0  ;;  %v1272_v61 = vsel %vm505_vm1, %v1266_v59, 0.0 }
 0x3e8   : > { %1953 = vmatmul.mubr.msk.bf16.vlgmr.msra.gmra.mrb[12].mxu0 %vm505_vm1, %v1024_v21  ;;  %v1294_v63 = vsel %vm649_vm6, %v3086_v33, 0.0  ;;  %v1322_v1 = vsel %vm676_vm7, %v3086_v33, 0.0  ;;  %v1350_v7 = vsel %vm703_vm8, %v3086_v33, 0.0  ;;  %v1378_v11 = vsel %vm730_vm9, %v3086_v33, 0.0 }
 0x3e9   : > { %1963 = vmatpush3.bf16.msra.mxu0 %v1195_v22  ;;  %1964 = vmatprep.mubr.msk.bf16.mxu0 %vm2479_vm0, %v2478_v0  ;;  %v1300_v2 = vsel %vm505_vm1, %v1294_v63, 0.0  ;;  %v1328_v4 = vsel %vm505_vm1, %v1322_v1, 0.0  ;;  %v1356_v9 = vsel %vm505_vm1, %v1350_v7, 0.0  ;;  %v1384_v12 = vsel %vm505_vm1, %v1378_v11, 0.0 }
 0x3ea   : > { %v2166_v23 = vpop.eup %2165  ;;  %1974 = vmatprep.subr.bf16.mxu0 %v2478_v0  ;;  %v1406_v14 = vsel %vm757_vm10, %v3086_v33, 0.0 }
 0x3eb   : > { %v3095_v24 = vmul.f32 %v2166_v23, %v2158_v58  ;;  %v1269_v58 = vsel %vm505_vm1, %v1265_v56, 0.0  ;;  %v1412_v16 = vsel %vm505_vm1, %v1406_v14, 0.0  ;;  %v1437_v23 = vld [vmem:[#allocation11] sm:$0xf] }
 0x3ed   : > { %v1025_v3 = vpack.c.bf16 %v3095_v24, %v3095_v24  ;;  %v1030_v25 = vsel %vm564_vm4, %v3095_v24, 0.0  ;;  %v1239_v27 = vsel %vm595_vm3, %v3095_v24, 0.0  ;;  %v1267_v34 = vsel %vm622_vm5, %v3095_v24, 0.0 }
 0x3ee   : > { %v1038_v26 = vsel %vm505_vm1, %v1030_v25, 0.0  ;;  %v1247_v31 = vsel %vm505_vm1, %v1239_v27, 0.0  ;;  %v1275_v37 = vsel %vm505_vm1, %v1267_v34, 0.0  ;;  %v1295_v40 = vsel %vm649_vm6, %v3095_v24, 0.0  ;;  %v1439_v25 = vld [vmem:[#allocation11 + $0x4] sm:$0xf] }
 0x3ef   : > { %1959 = vmatmul.mubr.msk.bf16.vlgmr.msra.gmra.mrb[12].mxu1 %vm505_vm1, %v1025_v3  ;;  %1039 = vadd.xlane.f32.xlu1 %v1038_v26  ;;  %v1303_v42 = vsel %vm505_vm1, %v1295_v40, 0.0  ;;  %v1323_v44 = vsel %vm676_vm7, %v3095_v24, 0.0  ;;  %v1351_v10 = vsel %vm703_vm8, %v3095_v24, 0.0  ;;  %v1379_v13 = vsel %vm730_vm9, %v3095_v24, 0.0 }
 0x3f0   : > { %1970 = vmatprep.mubr.msk.bf16.mxu1 %vm2479_vm0, %v2478_v0  ;;  %v1331_v41 = vsel %vm505_vm1, %v1323_v44, 0.0  ;;  %v1359_v5 = vsel %vm505_vm1, %v1351_v10, 0.0  ;;  %v1387_v15 = vsel %vm505_vm1, %v1379_v13, 0.0  ;;  %v1407_v17 = vsel %vm757_vm10, %v3095_v24, 0.0  ;;  %v1027_v44 = vld [vmem:[#allocation10] sm:$0xff] }
 0x3f1   : > { %v2168_v28 = vpop.eup %2167  ;;  %v1415_v19 = vsel %vm505_vm1, %v1407_v17, 0.0  ;;  %v1490_v24 = vsel %vm1055_vm12, %v1437_v23, 0  ;;  %v1444_v26 = vsel %vm1055_vm12, %v1439_v25, 0  ;;  %v1582_v23 = vld [vmem:[#allocation11 + $0xc] sm:$0xf] }
 0x3f2   : > { %v3109_v30 = vmul.f32 %v2168_v28, %v2160_v60  ;;  %1969 = vmatpush3.bf16.msra.mxu1 %v1444_v26 }
 0x3f3   : > { %1248 = vadd.xlane.f32.xlu1 %v1247_v31  ;;  %1980 = vmatprep.subr.bf16.mxu1 %v2478_v0 }
 0x3f4   : > { %v1031_v35 = vsel %vm564_vm4, %v3109_v30, 0.0  ;;  %v1026_v36 = vpack.c.bf16 %v3109_v30, %v3109_v30  ;;  %v1240_v39 = vsel %vm595_vm3, %v3109_v30, 0.0  ;;  %v1268_v43 = vsel %vm622_vm5, %v3109_v30, 0.0 }
 0x3f5   : > { %v1041_v38 = vsel %vm505_vm1, %v1031_v35, 0.0  ;;  %v1250_v29 = vsel %vm505_vm1, %v1240_v39, 0.0  ;;  %v1278_v45 = vsel %vm505_vm1, %v1268_v43, 0.0  ;;  %v1296_v48 = vsel %vm649_vm6, %v3109_v30, 0.0 }
 0x3f6   : > { %1042 = vadd.xlane.f32.xlu0 %v1041_v38  ;;  %1965 = vmatmul.mubr.msk.bf16.vlgmr.msra.gmra.mrb[16].mxu0 %vm505_vm1, %v1026_v36  ;;  %v1306_v50 = vsel %vm505_vm1, %v1296_v48, 0.0  ;;  %v1324_v60 = vsel %vm676_vm7, %v3109_v30, 0.0  ;;  %v1352_v18 = vsel %vm703_vm8, %v3109_v30, 0.0  ;;  %v1380_v33 = vsel %vm730_vm9, %v3109_v30, 0.0 }
 0x3f7   : > { %1276 = vadd.xlane.f32.xlu1 %v1275_v37  ;;  %1976 = vmatprep.mubr.msk.bf16.mxu0 %vm2479_vm0, %v2478_v0  ;;  %v1334_v62 = vsel %vm505_vm1, %v1324_v60, 0.0  ;;  %v1362_v20 = vsel %vm505_vm1, %v1352_v18, 0.0  ;;  %v1390_v21 = vsel %vm505_vm1, %v1380_v33, 0.0  ;;  %v1408_v22 = vsel %vm757_vm10, %v3109_v30, 0.0 }
 0x3f8   : > { %v1418_v3 = vsel %vm505_vm1, %v1408_v22, 0.0  ;;  %1975 = vmatpush3.bf16.msra.mxu0 %v1490_v24  ;;  %v1367_v60 = vsub.s32 5, %v2940_v46 }
 0x3f9   : > { %1986 = vmatprep.subr.bf16.mxu0 %v2478_v0 }
 0x3fa   : > { %1251 = vadd.xlane.f32.xlu0 %v1250_v29  ;;  %v1046_v29 = vsub.s32 0, %v2940_v46 }
 0x3fb   : > { %1304 = vadd.xlane.f32.xlu1 %v1303_v42  ;;  %v1255_v42 = vsub.s32 1, %v2940_v46 }
 0x3fc   : > { %v3245_v48 = vrot.slane %v1027_v44, %v1046_v29 }
 0x3fd   : > { %v3248_v52 = vrot.slane %v1027_v44, %v1255_v42 }
 0x3fe   : > { %1279 = vadd.xlane.f32.xlu0 %v1278_v45 }
 0x3ff   : > { %1332 = vadd.xlane.f32.xlu1 %v1331_v41 }
 0x402   : > { %1307 = vadd.xlane.f32.xlu0 %v1306_v50 }
 0x403   : > { %1033 = vadd.xlane.f32.xlu1 %v1032_v51  ;;  %v1311_v51 = vsub.s32 3, %v2940_v46 }
 0x405   : > { %v3254_v59 = vrot.slane %v1027_v44, %v1311_v51 }
 0x406   : > { %1036 = vadd.xlane.f32.xlu0 %v1035_v53 }
 0x407   : > { %1242 = vadd.xlane.f32.xlu1 %v1241_v54 }
 0x40a   : > { %1245 = vadd.xlane.f32.xlu0 %v1244_v57  ;;  %v1339_v57 = vsub.s32 4, %v2940_v46 }
 0x40b   : > { %1270 = vadd.xlane.f32.xlu1 %v1269_v58 }
 0x40e   : > { %1273 = vadd.xlane.f32.xlu0 %v1272_v61  ;;  %v3257_v61 = vrot.slane %v1027_v44, %v1283_v32 }
 0x40f   : > { %1335 = vadd.xlane.f32.xlu1 %v1334_v62 }
 0x412   : > { %1301 = vadd.xlane.f32.xlu0 %v1300_v2  ;;  %v3259_v2 = vrot.slane %v1027_v44, %v1339_v57 }
 0x413   : > { %1329 = vadd.xlane.f32.xlu1 %v1328_v4  ;;  %v1395_v4 = vsub.s32 6, %v2940_v46 }
 0x415   : > { %v3268_v13 = vrot.slane %v1027_v44, %v1395_v4 }
 0x416   : > { %1410 = vadd.xlane.f32.xlu0 %v1409_v8 }
 0x417   : > { %1357 = vadd.xlane.f32.xlu1 %v1356_v9  ;;  %v3264_v9 = vrot.slane %v1027_v44, %v1367_v60 }
 0x41a   : > { %1360 = vadd.xlane.f32.xlu0 %v1359_v5  ;;  %v1423_v5 = vsub.s32 7, %v2940_v46 }
 0x41b   : > { %1385 = vadd.xlane.f32.xlu1 %v1384_v12 }
 0x41c   : > { %v3271_v18 = vrot.slane %v1027_v44, %v1423_v5 }
 0x41e   : > { %1388 = vadd.xlane.f32.xlu0 %v1387_v15 }
 0x41f   : > { %1413 = vadd.xlane.f32.xlu1 %v1412_v16 }
 0x422   : > { %1416 = vadd.xlane.f32.xlu0 %v1415_v19 }
 0x423   : > { %1363 = vadd.xlane.f32.xlu1 %v1362_v20 }
 0x427   : > { %1391 = vadd.xlane.f32.xlu1 %v1390_v21 }
 0x42b   : > { %1419 = vadd.xlane.f32.xlu1 %v1418_v3  ;;  %v1587_v3 = vsel %vm1055_vm12, %v1582_v23, 0 }
 0x44a   : > { %v1299_v27 = vpop.xlane.xlu0 %1298 }
 0x44b   : > { %v1313_v8 = vmul.f32 %v3254_v59, %v1299_v27 }
 0x44e   : > { %v1327_v28 = vpop.xlane.xlu0 %1326 }
 0x44f   : > { %v1341_v12 = vmul.f32 %v3259_v2, %v1327_v28 }
 0x452   : > { %v1355_v31 = vpop.xlane.xlu0 %1354 }
 0x453   : > { %v1369_v15 = vmul.f32 %v3264_v9, %v1355_v31 }
 0x456   : > { %v1383_v30 = vpop.xlane.xlu0 %1382 }
 0x457   : > { %v1397_v19 = vmul.f32 %v3268_v13, %v1383_v30 }
 0x47c   : > { %v3225_v49 = vpop.xlane.xlu1 %1039 }
 0x480   : > { %v3227_v34 = vpop.xlane.xlu1 %1248 }
 0x481   : > { %v1259_v60 = vmul.f32 %v3248_v52, %v3227_v34 }
 0x483   : > { %v3229_v35 = vpop.xlane.xlu0 %1042 }
 0x484   : > { %v3231_v36 = vpop.xlane.xlu1 %1276 }
 0x487   : > { %v3233_v38 = vpop.xlane.xlu0 %1251 }
 0x488   : > { %v3235_v37 = vpop.xlane.xlu1 %1304 }
 0x48b   : > { %v3237_v39 = vpop.xlane.xlu0 %1279 }
 0x48c   : > { %v3239_v40 = vpop.xlane.xlu1 %1332 }
 0x48f   : > { %v3243_v43 = vpop.xlane.xlu0 %1307 }
 0x490   : > { %v1093_v45 = vpop.f32.mrb[8].mxu1  ;;  %v1034_v41 = vpop.xlane.xlu1 %1033 }
 0x491   : > { %v1948_v47 = vpop.f32.mrb[9].mxu1  ;;  %v1048_v53 = vmul.f32 %v3245_v48, %v1034_v41 }
 0x492   : > { %v1096_v50 = vpop.f32.mrb[10].mxu1 }
 0x493   : > { %v1949_v54 = vpop.f32.mrb[11].mxu1  ;;  %v1037_v55 = vpop.xlane.xlu0 %1036  ;;  %v1094_v62 = vadd.f32 %v1093_v45, %v1048_v53 }
 0x494   : > { %v1243_v56 = vpop.xlane.xlu1 %1242  ;;  %v1049_v28 = vmul.f32 %v3245_v48, %v1037_v55  ;;  %v1050_v54 = vmul.f32 %v3245_v48, %v3225_v49 }
 0x495   : > { %v1257_v58 = vmul.f32 %v3248_v52, %v1243_v56 }
 0x497   : > { %v1246_v63 = vpop.xlane.xlu0 %1245  ;;  %v1261_v6 = vadd.f32 %v1257_v58, %v1094_v62 }
 0x498   : > { %v1271_v1 = vpop.xlane.xlu1 %1270  ;;  %v1258_v29 = vmul.f32 %v3248_v52, %v1246_v63 }
 0x499   : > { %v1285_v7 = vmul.f32 %v3257_v61, %v1271_v1 }
 0x49b   : > { %v1289_v10 = vadd.f32 %v1285_v7, %v1261_v6  ;;  %v1274_v11 = vpop.xlane.xlu0 %1273  ;;  %v1287_v7 = vmul.f32 %v3257_v61, %v3231_v36  ;;  %v1343_v36 = vmul.f32 %v3259_v2, %v3239_v40 }
 0x49c   : > { %v3276_v25 = vpop.xlane.xlu1 %1335  ;;  %v1286_v41 = vmul.f32 %v3257_v61, %v1274_v11 }
 0x49d   : > { %v1317_v14 = vadd.f32 %v1313_v8, %v1289_v10 }
 0x49f   : > { %v1345_v16 = vadd.f32 %v1341_v12, %v1317_v14  ;;  %v1302_v17 = vpop.xlane.xlu0 %1301  ;;  %v1315_v12 = vmul.f32 %v3254_v59, %v3235_v37 }
 0x4a0   : > { %v1330_v26 = vpop.xlane.xlu1 %1329  ;;  %v1314_v51 = vmul.f32 %v3254_v59, %v1302_v17 }
 0x4a1   : > { %v1373_v20 = vadd.f32 %v1369_v15, %v1345_v16  ;;  %v1342_v55 = vmul.f32 %v3259_v2, %v1330_v26  ;;  %v1051_v15 = vmul.f32 %v3245_v48, %v3229_v35  ;;  %v1288_v35 = vmul.f32 %v3257_v61, %v3237_v39 }
 0x4a2   : > { %v1344_v39 = vmul.f32 %v3259_v2, %v3276_v25 }
 0x4a3   : > { %v1411_v33 = vpop.xlane.xlu0 %1410  ;;  %v1401_v21 = vadd.f32 %v1397_v19, %v1373_v20 }
 0x4a4   : > { %v1425_v22 = vmul.f32 %v3271_v18, %v1411_v33  ;;  %v1358_v27 = vpop.xlane.xlu1 %1357  ;;  %v1533_v33 = vld [vmem:[#allocation11 + $0x8] sm:$0xf] }
 0x4a5   : > { %v1370_v1 = vmul.f32 %v3264_v9, %v1358_v27 }
 0x4a6   : > { %v1429_v46 = vadd.f32 %v1425_v22, %v1401_v21  ;;  %v1260_v21 = vmul.f32 %v3248_v52, %v3233_v38  ;;  %v1316_v52 = vmul.f32 %v3254_v59, %v3243_v43 }
 0x4a7   : > { %v1361_v32 = vpop.xlane.xlu0 %1360 }
 0x4a8   : > { %v1433_v24 = vpack.c.bf16 %v1429_v46, %v1429_v46  ;;  %v1386_v31 = vpop.xlane.xlu1 %1385  ;;  %v1371_v46 = vmul.f32 %v3264_v9, %v1361_v32 }
 0x4a9   : > { %v1398_v49 = vmul.f32 %v3268_v13, %v1386_v31 }
 0x4aa   : > { %1977 = vmatmul.mubr.msk.bf16.vlgmr.msra.gmra.mrb[20].mxu0 %vm505_vm1, %v1433_v24 }
 0x4ab   : > { %1987 = vmatpush3.bf16.msra.mxu0 %v1587_v3  ;;  %1988 = vmatprep.mubr.msk.bf16.mxu0 %vm2479_vm0, %v2478_v0  ;;  %v1389_v11 = vpop.xlane.xlu0 %1388 }
 0x4ac   : > { %v1414_v56 = vpop.xlane.xlu1 %1413  ;;  %v1399_v31 = vmul.f32 %v3268_v13, %v1389_v11 }
 0x4ad   : > { %v1426_v16 = vmul.f32 %v3271_v18, %v1414_v56 }
 0x4af   : > { %v1417_v48 = vpop.xlane.xlu0 %1416 }
 0x4b0   : > { %v1364_v14 = vpop.xlane.xlu1 %1363 }
 0x4bb   : > { %v1139_v30 = vpop.f32.mrb[12].mxu0 }
 0x4bc   : > { %v1140_v42 = vadd.f32 %v1139_v30, %v1049_v28  ;;  %v1954_v44 = vpop.f32.mrb[13].mxu0  ;;  %v1538_v28 = vsel %vm1055_vm12, %v1533_v33, 0  ;;  %v1392_v30 = vpop.xlane.xlu1 %1391 }
 0x4bd   : > { %v1142_v45 = vpop.f32.mrb[14].mxu0  ;;  %v1400_v59 = vmul.f32 %v3268_v13, %v1392_v30 }
 0x4be   : > { %v1262_v47 = vadd.f32 %v1258_v29, %v1140_v42  ;;  %v1955_v50 = vpop.f32.mrb[15].mxu0  ;;  %v1427_v42 = vmul.f32 %v3271_v18, %v1417_v48 }
 0x4c0   : > { %v1290_v53 = vadd.f32 %v1286_v41, %v1262_v47  ;;  %v1372_v41 = vmul.f32 %v3264_v9, %v1364_v14  ;;  %v1420_v50 = vpop.xlane.xlu1 %1419 }
 0x4c1   : > { %v1428_v32 = vmul.f32 %v3271_v18, %v1420_v50 }
 0x4c2   : > { %v1318_v57 = vadd.f32 %v1314_v51, %v1290_v53  ;;  %v1185_v58 = vpop.f32.mrb[12].mxu1 }
 0x4c3   : > { %v1186_v62 = vadd.f32 %v1185_v58, %v1050_v54  ;;  %v1960_v63 = vpop.f32.mrb[13].mxu1 }
 0x4c4   : > { %v1346_v4 = vadd.f32 %v1342_v55, %v1318_v57  ;;  %v1188_v6 = vpop.f32.mrb[14].mxu1 }
 0x4c5   : > { %v1263_v8 = vadd.f32 %v1259_v60, %v1186_v62  ;;  %v1961_v10 = vpop.f32.mrb[15].mxu1 }
 0x4c6   : > { %v1374_v5 = vadd.f32 %v1370_v1, %v1346_v4 }
 0x4c7   : > { %v1291_v34 = vadd.f32 %v1287_v7, %v1263_v8  ;;  %v1879_v7 = vld [vmem:[#allocation13] ss:$0 sm:$0xff] }
 0x4c8   : > { %v1402_v17 = vadd.f32 %v1398_v49, %v1374_v5 }
 0x4c9   : > { %v1319_v19 = vadd.f32 %v1315_v12, %v1291_v34  ;;  %v1231_v20 = vpop.f32.mrb[16].mxu0 }
 0x4ca   : > { %v1232_v22 = vadd.f32 %v1231_v20, %v1051_v15  ;;  %v1966_v23 = vpop.f32.mrb[17].mxu0  ;;  %v1430_v37 = vadd.f32 %v1426_v16, %v1402_v17 }
 0x4cb   : > { %v1347_v24 = vadd.f32 %v1343_v36, %v1319_v19  ;;  %v1234_v3 = vpop.f32.mrb[18].mxu0 }
 0x4cc   : > { %v1264_v26 = vadd.f32 %v1260_v21, %v1232_v22  ;;  %v1967_v27 = vpop.f32.mrb[19].mxu0  ;;  %v1434_v40 = vpack.c.bf16 %v1430_v37, %v1430_v37 }
 0x4cd   : > { %v1375_v38 = vadd.f32 %v1371_v46, %v1347_v24 }
 0x4ce   : > { %v1292_v29 = vadd.f32 %v1288_v35, %v1264_v26  ;;  %1971 = vmatmul.mubr.msk.bf16.vlgmr.msra.gmra.mrb[16].mxu1 %vm505_vm1, %v1434_v40 }
 0x4cf   : > { %v1403_v44 = vadd.f32 %v1399_v31, %v1375_v38  ;;  %1981 = vmatpush3.bf16.msra.mxu1 %v1538_v28  ;;  %1982 = vmatprep.mubr.msk.bf16.mxu1 %vm2479_vm0, %v2478_v0 }
 0x4d0   : > { %v1320_v61 = vadd.f32 %v1316_v52, %v1292_v29 }
 0x4d1   : > { %v1431_v45 = vadd.f32 %v1427_v42, %v1403_v44 }
 0x4d2   : > { %v1348_v47 = vadd.f32 %v1344_v39, %v1320_v61 }
 0x4d3   : > { %v1435_v43 = vpack.c.bf16 %v1431_v45, %v1431_v45 }
 0x4d4   : > { %v1376_v51 = vadd.f32 %v1372_v41, %v1348_v47 }
 0x4d6   : > { %v1404_v53 = vadd.f32 %v1400_v59, %v1376_v51  ;;  %1983 = vmatmul.mubr.msk.bf16.vlgmr.msra.gmra.mrb[20].mxu1 %vm505_vm1, %v1435_v43 }
 0x4d8   : > { %v1432_v0 = vadd.f32 %v1428_v32, %v1404_v53 }
 0x4da   : > { %v1436_v54 = vpack.c.bf16 %v1432_v0, %v1432_v0 }
 0x4dc   : > { %1989 = vmatmul.mubr.msk.bf16.vlgmr.msra.gmra.mrb[24].mxu0 %vm505_vm1, %v1436_v54 }
 0x57d   : > { %v1526_v2 = vpop.f32.mrb[20].mxu0 }
 0x57e   : > { %v1978_v25 = vpop.f32.mrb[21].mxu0 }
 0x57f   : > { %v1529_v9 = vpop.f32.mrb[22].mxu0 }
 0x580   : > { %v1979_v56 = vpop.f32.mrb[23].mxu0 }
 0x5a1   : > { %v1480_v55 = vpop.f32.mrb[16].mxu1 }
 0x5a2   : > { %v1527_v57 = vadd.f32 %v1526_v2, %v1480_v55  ;;  %v1972_v58 = vpop.f32.mrb[17].mxu1 }
 0x5a3   : > { %v1483_v13 = vpop.f32.mrb[18].mxu1 }
 0x5a4   : > { %v1973_v60 = vpop.f32.mrb[19].mxu1 }
 0x5a9   : > { %v1574_v62 = vpop.f32.mrb[20].mxu1 }
 0x5aa   : > { %v1580_v18 = vadd.f32 %v1574_v62, %v1527_v57  ;;  %v1984_v63 = vpop.f32.mrb[21].mxu1 }
 0x5ab   : > { %v1577_v1 = vpop.f32.mrb[22].mxu1 }
 0x5ac   : > { %v1985_v4 = vpop.f32.mrb[23].mxu1 }
 0x5af   : > { %v1623_v6 = vpop.f32.mrb[24].mxu0 }
 0x5b0   : > { %v1629_v8 = vadd.f32 %v1623_v6, %v1580_v18  ;;  %v1990_v10 = vpop.f32.mrb[25].mxu0 }
 0x5b1   : > { %v1626_v49 = vpop.f32.mrb[26].mxu0 }
 0x5b2   : > { %v1641_v11 = vadd.f32 %v1879_v7, %v1629_v8  ;;  %v1991_v5 = vpop.f32.mrb[27].mxu0 }
 0x5b4   : > { %1643 = vst.msk [vmem:[%s461_s7] sm:$0xff] %vm1642_vm13, %v1641_v11 }
 0x5b5   : > { %2384 = shalt.err (!%p2381_p0)
}
 0x5b6   : > { %s2385_s19 = scalar_lea.hbm %s3326_s1, 128  ;;  %s2389_s8 = scalar_lea.hbm %s3456_s17, 256 }
 0x5b7   : > { %p2386_p8 = scmp.ne.s32.totalorder %s3326_s1, %s2385_s19  ;;  %p2390_p2 = scmp.lt.u32.totalorder %s3326_s1, %s3456_s17 }
 0x5b8   : > { %p2391_p10 = scmp.lt.u32.totalorder %s2389_s8, %s2385_s19  ;;  %p2393_p7 = scmp.lt.u32.totalorder %s2385_s19, %s3326_s1 }
 0x5b9   : > { %p2387_p3 = pnand %p2386_p8, %p3457_p6 }
 0x5ba   : > { %p2392_p5 = por %p2391_p10, %p2390_p2 }
 0x5bb   : > { %p2388_p11 = pneg %p2387_p3 }
 0x5bc   : > { %p2394_p1 = por %p2393_p7, %p2392_p5 }
 0x5be   : > { %p2395_p4 = pnand %p2394_p1, %p2388_p11 }
 0x5c0   : > { %2398 = shalt.err (!%p2395_p4)
}
 0x5c1   : > { %2015 = dma.vmem_to_hbm [thread:$0]  (%p3457_p6), %s3328_s29, 128, %s3326_s1, %s1653_s15  }
 0x5c2 PF: > { %s3458_s3 = sld [smem:[#allocation20_spill]]  ;;  %s3459_s11 = sld [smem:[#allocation26_spill]] }
 0x5c3   : > { %s3460_s5 = sld [smem:[#allocation23_spill]] }
 0x5c8   : > { %s1678_s18 = sand.u32 1, %s3458_s3   ;;  %p3461_p13 = scmp.ne.s32.totalorder %s3459_s11, 0 }
 0x5c9   : > { %p3462_p12 = scmp.ge.s32.totalorder %s3460_s5, 2  ;;  %s1679_s14 = scalar_lea.sflag [#allocation4], %s1678_s18 }
 0x5cb   : > { %p2041_p9 = pnand %p3462_p12, %p3461_p13 }
 0x5cd   : > { %2440 = dma.done.wait (!%p2041_p9), %s1679_s14, 128  }
 0x5ce   : > { %2442 = vsyncadd (!%p2041_p9), %s1679_s14, 4294967168  ;;  %s28_s29 = sadd.s32 1, %s3460_s5   ;;  %s3463_s30 = sld [smem:[#allocation29_spill]] }
 0x5cf   : > { %p25_p0 = scmp.ge.s32.totalorder %s28_s29, 4   ;;  %s3464_s27 = sld [smem:[#allocation22_spill]] }
 0x5d0   : > { %s3465_s28 = sld [smem:[#allocation27_spill]]  ;;  %s3466_s24 = smov %s2449_s25 }
 0x5d1   : > { %s3467_s25 = smov %s2453_s26  ;;  %27 = sbr.rel (!%p25_p0) target bundleno = 15 (0xf), region = 145 }
 0x5d4   : > { %s3468_s26 = smov %s3463_s30 }
 0x5d8   :  { %1684 = vsyncpa [#allocation3], 1 }
 0x5d9   :  { %1686 = vsyncpa [#allocation3 + $0x1], 1 }
 0x5da   :  { %1687 = vsyncpa [#allocation6], 1 }
 0x5db   :  { %1689 = vsyncpa [#allocation6 + $0x1], 1 }
 0x5dc   :  { %1690 = vsyncpa [#allocation9], 1 }
 0x5dd   :  { %1691 = vsyncpa [#allocation12], 1 }
 0x5de   :  { %1692 = vsyncpa [#allocation4], 1 }
 0x5df   :  { %1694 = vsyncpa [#allocation4 + $0x1], 1 }

// kernel: ykt_forward.39
= control target key start
LH: loop header
LB: loop body
LE: loop exit
PB: predicated region body
PF: predicated region fallthrough
CT: control target
= control target key end

     0   :  { %s3578_s0 = inlined_call_operand.hbm [shape: bf16[2,4,8,8], index: 0, kind: input, shape index: {}]   ;;  %s3579_s1 = inlined_call_operand.hbm [shape: bf16[2,4,8,8], index: 1, kind: input, shape index: {}]   ;;  %s3580_s2 = inlined_call_operand.hbm [shape: bf16[2,4,8,8], index: 2, kind: input, shape index: {}]   ;;  %s3581_s3 = inlined_call_operand.hbm [shape: bf16[10,8], index: 3, kind: input, shape index: {}]   ;;  %s3582_s4 = inlined_call_operand.hbm [shape: f32[10,8], index: 4, kind: input, shape index: {}]   ;;  %s3583_s5 = inlined_call_operand.hbm [shape: bf16[4,8,32], index: 5, kind: input, shape index: {}]   ;;  %s3584_s6 = inlined_call_operand.hbm [shape: f32[1,32], index: 6, kind: input, shape index: {}]   ;;  %s3585_s7 = inlined_call_operand.hbm [shape: f32[2,8,32], index: 7, kind: output, shape index: {0}]   ;;  %s3586_s8 = inlined_call_operand.hbm [shape: f32[2,4,8,8], index: 8, kind: output, shape index: {1}]  }
   0x1   :  { %3619 = sst [smem:[#allocation33_spill]] %s3579_s1 }
   0x2   :  { %3620 = sst [smem:[#allocation34_spill]] %s3581_s3 }
   0x3   :  { %3621 = sst [smem:[#allocation35_spill]] %s3583_s5 }
   0x4   :  { %3622 = sst [smem:[#allocation36_spill]] %s3585_s7 }
   0x5   :  { %3623 = sst [smem:[#allocation37_spill]] %s3586_s8 }
   0x6   :  { %14 = vsyncpa [#allocation3], 0 }
   0x7   :  { %16 = vsyncpa [#allocation3 + $0x1], 0 }
   0x8   :  { %17 = vsyncpa [#allocation6], 0 }
   0x9   :  { %19 = vsyncpa [#allocation6 + $0x1], 0 }
   0xa   :  { %20 = vsyncpa [#allocation9], 0 }
   0xb   :  { %21 = vsyncpa [#allocation12], 0 }
   0xc   :  { %22 = vsyncpa [#allocation4], 0 }
   0xd   :  { %24 = vsyncpa [#allocation4 + $0x1], 0 }
   0xe   :  { %25 = vsyncpa [#allocation16], 0 }
   0xf   :  { %27 = vsyncpa [#allocation16 + $0x1], 0  ;;  %s2684_s27 = smov 0   ;;  %s2686_s28 = smov 0  }
  0x10   :  { %s2688_s29 = smov 0   ;;  %s2690_s30 = smov 0  }
  0x11   :  { %s2692_s9 = smov 0   ;;  %s2694_s10 = smov 0  }
  0x12 LB: > { %3624 = sst [smem:[#allocation23_spill]] %s2592_s27  ;;  %s2715_s11 = sadd.s32 4294967295, %s2612_s10   ;;  %s2612_s10 = sphi %s2694_s10, %s33_s10   ;;  %s2608_s9 = sphi %s2692_s9, %s3674_s9   ;;  %s2604_s30 = sphi %s2690_s30, %s3678_s30   ;;  %s2600_s29 = sphi %s2688_s29, %s3677_s29   ;;  %s2596_s28 = sphi %s2686_s28, %s3676_s28   ;;  %s2592_s27 = sphi %s2684_s27, %s3675_s27  }
  0x13   : > { %3625 = sst [smem:[#allocation24_spill]] %s2604_s30  ;;  %s1940_s12 = sadd.s32 4294967294, %s2612_s10  }
  0x14   : > { %3626 = sst [smem:[#allocation25_spill]] %s2608_s9  ;;  %p67_p0 = scmp.ne.s32.totalorder %s2596_s28, %s2592_s27 }
  0x15   : > { %3627 = sst [smem:[#allocation26_spill]] %s2612_s10  ;;  %p3587_p1 = scmp.eq.s32.totalorder %s2715_s11, 0 }
  0x16   : > { %3628 = sst [smem:[#allocation27_spill]] %s2715_s11  ;;  %p242_p3 = scmp.eq.s32.totalorder %s1940_s12, 1 }
  0x17   : > { %p2724_p4 = por %p3587_p1, %p67_p0  ;;  %p1941_p5 = scmp.ge.s32.totalorder %s2612_s10, 1 }
  0x18   : > { %p2729_p6 = por %p242_p3, %p67_p0  ;;  %p277_p7 = scmp.lt.s32.totalorder %s2612_s10, 3 }
  0x19   : > { %s3629_s13 = scalar_select %p2724_p4, 1, 0 }
  0x1a   : > { %s3631_s14 = scalar_select %p2729_p6, 1, 0 }
  0x1b   : > { %3630 = sst [smem:[#allocation28_spill]] %s3629_s13  ;;  %p2734_p8 = pnand %p1941_p5, %p277_p7 }
  0x1c   : > { %3632 = sst [smem:[#allocation29_spill]] %s3631_s14  ;;  %s2614_s16 = smov [#allocation8]  }
  0x1d   : > { %s3633_s15 = scalar_select %p2734_p8, 1, 0 }
  0x1e   : > { %s289_s17 = sshll.u32 %s2614_s16, 4  ;;  %p2127_p9 = pneg %p2734_p8  ;;  %s2738_s17 = int_to_ptr.vmem [resolvable:$true] %s289_s17 }
  0x1f   : > { %s2615_s19 = smov [#allocation11]   ;;  %s3635_s3 = sld [smem:[#allocation34_spill]] }
  0x20   : > { %p2745_p11 = pnand %p2127_p9, %p3587_p1  ;;  %s318_s20 = sshll.u32 %s2615_s19, 4  ;;  %s2749_s20 = int_to_ptr.vmem [resolvable:$true] %s318_s20 }
  0x22   : > { %s3634_s18 = scalar_select %p2745_p11, 1, 0 }
  0x23   : > { %p2759_p13 = pneg %p2745_p11 }
  0x25   : > { %s2284_s23 = scalar_lea.hbm %s3635_s3, 128 }
  0x26   : > { %p2285_p12 = scmp.ne.s32.totalorder %s3635_s3, %s2284_s23  ;;  %p2291_p5 = scmp.lt.u32.totalorder %s2284_s23, %s3635_s3 }
  0x27   : > { %s3636_s26 = scalar_select %p2759_p13, 1, 0 }
  0x28   : > { %p2287_p0 = pnand %p2759_p13, %p2285_p12 }
  0x2a   : > { %p2288_p3 = pneg %p2287_p0 }
  0x2c   : > { %p2293_p7 = pnand %p2291_p5, %p2288_p3 }
  0x2e   : > { %2296 = shalt.err (!%p2293_p7)
}
  0x2f   : > { %s2297_s19 = scalar_lea.vmem %s2738_s17, 128  ;;  %p2305_p2 = scmp.lt.s32.totalorder %s2738_s17, %s2738_s17 }
  0x30   : > { %p2298_p9 = scmp.ne.s32.totalorder %s2738_s17, %s2297_s19  ;;  %p2306_p6 = scmp.lt.s32.totalorder %s2297_s19, %s2297_s19 }
  0x32   : > { %p2300_p10 = pnand %p2298_p9, %p2759_p13  ;;  %p2307_p12 = por %p2306_p6, %p2305_p2 }
  0x34   : > { %p2301_p1 = pneg %p2300_p10 }
  0x36   : > { %p2308_p0 = pnand %p2307_p12, %p2301_p1 }
  0x38   : > { %2311 = shalt.err (!%p2308_p0)
}
  0x39   : > { %s3591_s21 = smov 64   ;;  %s3593_s22 = smov 4  }
  0x3a   : > { %2130 = dma.hbm_to_vmem [thread:$0]  (!%p2745_p11), %s3635_s3, 128, %s2738_s17, [#allocation9], %s3591_s21, %s3591_s21, %s3593_s22  }
  0x3b   : > { %s3637_s5 = sld [smem:[#allocation35_spill]] }
  0x41   : > { %s2312_s16 = scalar_lea.hbm %s3637_s5, 256 }
  0x42   : > { %p2313_p1 = scmp.ne.s32.totalorder %s3637_s5, %s2312_s16  ;;  %p2319_p10 = scmp.lt.u32.totalorder %s2312_s16, %s3637_s5 }
  0x44   : > { %p2315_p2 = pnand %p2313_p1, %p2759_p13 }
  0x46   : > { %p2316_p6 = pneg %p2315_p2 }
  0x48   : > { %p2321_p3 = pnand %p2319_p10, %p2316_p6 }
  0x4a   : > { %2324 = shalt.err (!%p2321_p3)
}
  0x4b   : > { %s2325_s17 = scalar_lea.vmem %s2749_s20, 256  ;;  %p2333_p12 = scmp.lt.s32.totalorder %s2749_s20, %s2749_s20 }
  0x4c   : > { %p2326_p5 = scmp.ne.s32.totalorder %s2749_s20, %s2325_s17  ;;  %p2334_p0 = scmp.lt.s32.totalorder %s2325_s17, %s2325_s17 }
  0x4e   : > { %p2328_p7 = pnand %p2326_p5, %p2759_p13  ;;  %p2335_p1 = por %p2334_p0, %p2333_p12 }
  0x50   : > { %p2329_p9 = pneg %p2328_p7 }
  0x52   : > { %p2336_p2 = pnand %p2335_p1, %p2329_p9 }
  0x54   : > { %2339 = shalt.err (!%p2336_p2)
}
  0x55   : > { %2136 = dma.hbm_to_vmem [thread:$0]  (!%p2745_p11), %s3637_s5, 256, %s2749_s20, [#allocation12], %s3591_s21, %s3591_s21, %s3593_s22  }
  0x56   : > { %s45_s14 = sadd.s32 1, %s2608_s9  ;;  %s54_s23 = sadd.s32 1, %s2600_s29 }
  0x57   : > { %p47_p6 = scmp.ge.s32.totalorder %s45_s14, 2  ;;  %p61_p10 = scmp.ne.s32.totalorder %s2600_s29, %s2596_s28 }
  0x58   : > { %p62_p3 = scmp.eq.s32.totalorder %s2612_s10, 0  ;;  %p2161_p5 = scmp.lt.s32.totalorder %s2612_s10, 2 }
  0x59   : > { %s3680_s14 = smov (%p47_p6, %s45_s14), 0  ;;  %p3639_p9 = scmp.eq.s32.totalorder %s2715_s11, 1 }
  0x5a   : > { %3638 = sst [smem:[#allocation30_spill]] %s3680_s14  ;;  %p63_p7 = por %p62_p3, %p61_p10 }
  0x5b   : > { %p2819_p12 = por %p3639_p9, %p61_p10  ;;  %s49_s25 = ssub.s32 %s2608_s9, %s3680_s14 }
  0x5c   : > { %s3595_s12 = sand.u32 1, %s2600_s29   ;;  %p52_p0 = scmp.eq.s32.totalorder %s49_s25, 0 }
  0x5d   : > { %s3640_s24 = scalar_select %p2819_p12, 1, 0 }
  0x5e   : > { %s2828_s20 = sshll.u32 %s3595_s12, 4  ;;  %s2831_s16 = sshll.u32 %s2608_s9, 8 }
  0x5f   : > { %3641 = sst [smem:[#allocation31_spill]] %s3640_s24  ;;  %p2833_p1 = pnand %p2161_p5, %p63_p7 }
  0x60   : > { %s2838_s17 = scalar_select %p52_p0, %s2600_s29, %s54_s23  }
  0x61   : > { %s3642_s19 = scalar_select %p2833_p1, 1, 0 }
  0x62   : > { %3643 = sst [smem:[#allocation32_spill]] %s2838_s17  ;;  %s366_s7 = sand.u32 1, %s2612_s10  }
  0x63   : > { %s3644_s1 = sld [smem:[#allocation33_spill]]  ;;  %s370_s25 = scalar_lea.vmem [#allocation5], %s2828_s20 }
  0x64   : > { %s379_s12 = sshll.u32 %s370_s25, 4  ;;  %s2850_s3 = scalar_lea.sflag [#allocation6], %s366_s7  ;;  %s2848_s12 = int_to_ptr.vmem [resolvable:$true] %s379_s12 }
  0x65   : > { %p2856_p6 = pneg %p2833_p1 }
  0x67   : > { %s3645_s23 = scalar_select %p2856_p6, 1, 0 }
  0x69   : > { %s2845_s22 = scalar_lea.hbm %s3644_s1, %s2831_s16  ;;  %s2345_s14 = scalar_lea.hbm %s3644_s1, 512 }
  0x6a   : > { %s2340_s5 = scalar_lea.hbm %s2845_s22, 256  ;;  %p2346_p5 = scmp.lt.u32.totalorder %s2845_s22, %s3644_s1 }
  0x6b   : > { %p2341_p2 = scmp.ne.s32.totalorder %s2845_s22, %s2340_s5  ;;  %p2347_p7 = scmp.lt.u32.totalorder %s2345_s14, %s2340_s5 }
  0x6c   : > { %p2349_p0 = scmp.lt.u32.totalorder %s2340_s5, %s2845_s22 }
  0x6d   : > { %p2343_p10 = pnand %p2856_p6, %p2341_p2  ;;  %p2348_p9 = por %p2347_p7, %p2346_p5 }
  0x6f   : > { %p2344_p3 = pneg %p2343_p10  ;;  %p2350_p12 = por %p2349_p0, %p2348_p9 }
  0x71   : > { %p2351_p4 = pnand %p2350_p12, %p2344_p3 }
  0x73   : > { %2354 = shalt.err (!%p2351_p4)
}
  0x74   : > { %s2355_s7 = scalar_lea.vmem %s2848_s12, 256  ;;  %s2618_s21 = smov [#allocation5]  }
  0x75   : > { %p2356_p2 = scmp.ne.s32.totalorder %s2848_s12, %s2355_s7  ;;  %s2360_s27 = sshll.u32 %s2618_s21, 4  ;;  %s2361_s27 = int_to_ptr.vmem [resolvable:$false] %s2360_s27 }
  0x76   : > { %s2362_s9 = scalar_lea.vmem %s2361_s27, 512  ;;  %p2363_p11 = scmp.lt.s32.totalorder %s2848_s12, %s2361_s27 }
  0x77   : > { %p2358_p10 = pnand %p2356_p2, %p2856_p6  ;;  %p2364_p13 = scmp.lt.s32.totalorder %s2362_s9, %s2355_s7 }
  0x79   : > { %p2359_p8 = pneg %p2358_p10  ;;  %p2365_p5 = por %p2364_p13, %p2363_p11 }
  0x7b   : > { %p2366_p7 = pnand %p2365_p5, %p2359_p8 }
  0x7d   : > { %2369 = shalt.err (!%p2366_p7)
}
  0x7e   : > { %s3646_s5 = smov 4   ;;  %s3647_s14 = smov 64  }
  0x7f   : > { %2146 = dma.hbm_to_vmem [thread:$0]  (!%p2833_p1), %s2845_s22, 256, %s2848_s12, %s2850_s3, %s3647_s14, %s3647_s14, %s3646_s5  }
  0x80   : > { %s2619_s25 = smov [#allocation10]   ;;  %s2370_s7 = scalar_lea.hbm %s3582_s4, 256 }
  0x81   : > { %s302_s1 = sshll.u32 %s2619_s25, 4  ;;  %p2371_p4 = scmp.ne.s32.totalorder %s3582_s4, %s2370_s7  ;;  %s303_s1 = int_to_ptr.vmem [resolvable:$true] %s302_s1 }
  0x82   : > { %p3648_p8 = scmp.ne.s32.totalorder %s3636_s26, 0  ;;  %p2377_p12 = scmp.lt.u32.totalorder %s2370_s7, %s3582_s4 }
  0x84   : > { %p2373_p11 = pnand %p2371_p4, %p3648_p8 }
  0x86   : > { %p2374_p13 = pneg %p2373_p11 }
  0x88   : > { %p2379_p3 = pnand %p2377_p12, %p2374_p13 }
  0x8a   : > { %2382 = shalt.err (!%p2379_p3)
}
  0x8b   : > { %s2383_s22 = scalar_lea.vmem %s303_s1, 256  ;;  %p2391_p10 = scmp.lt.s32.totalorder %s303_s1, %s303_s1 }
  0x8c   : > { %p2384_p9 = scmp.ne.s32.totalorder %s303_s1, %s2383_s22  ;;  %p2392_p5 = scmp.lt.s32.totalorder %s2383_s22, %s2383_s22 }
  0x8e   : > { %p2386_p0 = pnand %p2384_p9, %p3648_p8  ;;  %p2393_p7 = por %p2392_p5, %p2391_p10 }
  0x90   : > { %p2387_p2 = pneg %p2386_p0 }
  0x92   : > { %p2394_p1 = pnand %p2393_p7, %p2387_p2 }
  0x94   : > { %2397 = shalt.err (!%p2394_p1)
}
  0x95   : > { %s2620_s12 = smov 128   ;;  %s2621_s17 = smov 8  }
  0x96   : > { %p3649_p4 = scmp.ne.s32.totalorder %s3634_s18, 0  ;;  %s2622_s25 = smov [#allocation13]  }
  0x97   : > { %s332_s21 = sshll.u32 %s2622_s25, 4  ;;  %s2905_s9 = scalar_lea.hbm %s3578_s0, %s2831_s16  ;;  %s333_s21 = int_to_ptr.vmem [resolvable:$true] %s332_s21 }
  0x98   : > { %2133 = dma.hbm_to_vmem [thread:$0]  (!%p3649_p4), %s3582_s4, 256, %s303_s1, [#allocation9], %s2620_s12, %s2620_s12, %s2621_s17  }
  0x99   : > { %s2398_s30 = scalar_lea.hbm %s3584_s6, 16 }
  0x9a   : > { %p2399_p1 = scmp.ne.s32.totalorder %s3584_s6, %s2398_s30  ;;  %p2405_p12 = scmp.lt.u32.totalorder %s2398_s30, %s3584_s6 }
  0x9c   : > { %p2401_p11 = pnand %p2399_p1, %p3648_p8 }
  0x9e   : > { %p2402_p13 = pneg %p2401_p11 }
  0xa0   : > { %p2407_p3 = pnand %p2405_p12, %p2402_p13 }
  0xa2   : > { %2410 = shalt.err (!%p2407_p3)
}
  0xa3   : > { %s2411_s17 = scalar_lea.vmem %s333_s21, 16  ;;  %s2418_s24 = scalar_lea.vmem %s333_s21, 32 }
  0xa4   : > { %p2412_p9 = scmp.ne.s32.totalorder %s333_s21, %s2411_s17  ;;  %p2419_p10 = scmp.lt.s32.totalorder %s333_s21, %s333_s21 }
  0xa5   : > { %p2420_p5 = scmp.lt.s32.totalorder %s2418_s24, %s2411_s17 }
  0xa6   : > { %p2414_p0 = pnand %p2412_p9, %p3648_p8 }
  0xa7   : > { %p2421_p7 = por %p2420_p5, %p2419_p10 }
  0xa8   : > { %p2415_p2 = pneg %p2414_p0 }
  0xaa   : > { %p2422_p6 = pnand %p2421_p7, %p2415_p2 }
  0xac   : > { %2425 = shalt.err (!%p2422_p6)
}
  0xad   : > { %2139 = dma.hbm_to_vmem [thread:$0]  (!%p3649_p4), %s3584_s6, 16, %s333_s21, [#allocation12]  }
  0xae   : > { %s347_s30 = scalar_lea.vmem [#allocation2], %s2828_s20  ;;  %s2932_s18 = scalar_lea.hbm %s3580_s2, %s2831_s16 }
  0xaf   : > { %s356_s26 = sshll.u32 %s347_s30, 4  ;;  %s3650_s25 = sand.u32 1, %s2600_s29   ;;  %s2926_s26 = int_to_ptr.vmem [resolvable:$true] %s356_s26 }
  0xb0   : > { %s2936_s7 = scalar_lea.sflag [#allocation3], %s3650_s25  ;;  %s2426_s27 = scalar_lea.hbm %s2905_s9, 256 }
  0xb1   : > { %p2427_p6 = scmp.ne.s32.totalorder %s2905_s9, %s2426_s27  ;;  %p3651_p8 = scmp.ne.s32.totalorder %s3645_s23, 0 }
  0xb2   : > { %s2431_s21 = scalar_lea.hbm %s3578_s0, 512  ;;  %p2432_p4 = scmp.lt.u32.totalorder %s2905_s9, %s3578_s0 }
  0xb3   : > { %p2429_p1 = pnand %p2427_p6, %p3651_p8  ;;  %p2433_p13 = scmp.lt.u32.totalorder %s2431_s21, %s2426_s27 }
  0xb4   : > { %p2435_p3 = scmp.lt.u32.totalorder %s2426_s27, %s2905_s9 }
  0xb5   : > { %p2430_p11 = pneg %p2429_p1  ;;  %p2434_p12 = por %p2433_p13, %p2432_p4 }
  0xb7   : > { %p2436_p9 = por %p2435_p3, %p2434_p12 }
  0xb9   : > { %p2437_p0 = pnand %p2436_p9, %p2430_p11 }
  0xbb   : > { %2440 = shalt.err (!%p2437_p0)
}
  0xbc   : > { %s2441_s16 = scalar_lea.vmem %s2926_s26, 256  ;;  %s2623_s24 = smov [#allocation2]  }
  0xbd   : > { %p2442_p2 = scmp.ne.s32.totalorder %s2926_s26, %s2441_s16  ;;  %s2446_s11 = sshll.u32 %s2623_s24, 4  ;;  %s2447_s11 = int_to_ptr.vmem [resolvable:$false] %s2446_s11 }
  0xbe   : > { %s2448_s13 = scalar_lea.vmem %s2447_s11, 512  ;;  %p2449_p7 = scmp.lt.s32.totalorder %s2926_s26, %s2447_s11 }
  0xbf   : > { %p2444_p10 = pnand %p2442_p2, %p3651_p8  ;;  %p2450_p6 = scmp.lt.s32.totalorder %s2448_s13, %s2441_s16 }
  0xc1   : > { %p2445_p5 = pneg %p2444_p10  ;;  %p2451_p1 = por %p2450_p6, %p2449_p7 }
  0xc3   : > { %p2452_p4 = pnand %p2451_p1, %p2445_p5 }
  0xc5   : > { %2455 = shalt.err (!%p2452_p4)
}
  0xc6   : > { %p3652_p11 = scmp.ne.s32.totalorder %s3642_s19, 0  ;;  %s393_s30 = scalar_lea.vmem [#allocation7], %s2828_s20 }
  0xc7   : > { %s402_s8 = sshll.u32 %s393_s30, 4  ;;  %s2456_s10 = scalar_lea.hbm %s2932_s18, 256  ;;  %s2964_s8 = int_to_ptr.vmem [resolvable:$true] %s402_s8 }
  0xc8   : > { %2143 = dma.hbm_to_vmem [thread:$0]  (!%p3652_p11), %s2905_s9, 256, %s2926_s26, %s2936_s7, %s3647_s14, %s3647_s14, %s3646_s5  }
  0xc9   : > { %p2457_p13 = scmp.ne.s32.totalorder %s2932_s18, %s2456_s10  ;;  %s2461_s22 = scalar_lea.hbm %s3580_s2, 512 }
  0xca   : > { %p2462_p9 = scmp.lt.u32.totalorder %s2932_s18, %s3580_s2  ;;  %p2463_p0 = scmp.lt.u32.totalorder %s2461_s22, %s2456_s10 }
  0xcb   : > { %p2459_p12 = pnand %p2457_p13, %p3651_p8  ;;  %p2465_p10 = scmp.lt.u32.totalorder %s2456_s10, %s2932_s18 }
  0xcc   : > { %p2464_p2 = por %p2463_p0, %p2462_p9 }
  0xcd   : > { %p2460_p3 = pneg %p2459_p12 }
  0xce   : > { %p2466_p5 = por %p2465_p10, %p2464_p2 }
  0xd0   : > { %p2467_p7 = pnand %p2466_p5, %p2460_p3 }
  0xd2   : > { %2470 = shalt.err (!%p2467_p7)
}
  0xd3   : > { %s2471_s20 = scalar_lea.vmem %s2964_s8, 256  ;;  %s2624_s9 = smov [#allocation7]  }
  0xd4   : > { %p2472_p6 = scmp.ne.s32.totalorder %s2964_s8, %s2471_s20  ;;  %s2476_s26 = sshll.u32 %s2624_s9, 4  ;;  %s2477_s26 = int_to_ptr.vmem [resolvable:$false] %s2476_s26 }
  0xd5   : > { %s2478_s7 = scalar_lea.vmem %s2477_s26, 512  ;;  %p2479_p13 = scmp.lt.s32.totalorder %s2964_s8, %s2477_s26 }
  0xd6   : > { %p2474_p1 = pnand %p2472_p6, %p3651_p8  ;;  %p2480_p12 = scmp.lt.s32.totalorder %s2478_s7, %s2471_s20 }
  0xd8   : > { %p2475_p4 = pneg %p2474_p1  ;;  %p2481_p9 = por %p2480_p12, %p2479_p13 }
  0xda   : > { %p2482_p0 = pnand %p2481_p9, %p2475_p4 }
  0xdc   : > { %2485 = shalt.err (!%p2482_p0)
}
  0xdd   : > { %2149 = dma.hbm_to_vmem [thread:$0]  (!%p3652_p11), %s2932_s18, 256, %s2964_s8, %s2850_s3, %s3647_s14, %s3647_s14, %s3646_s5  }
  0xde   : > { %p3653_p8 = scmp.ne.s32.totalorder %s3633_s15, 0 }
  0xdf   : > { %s3654_s23 = sld [smem:[#allocation28_spill]] (!%p3653_p8)  ;;  %s2994_s12 = sand.u32 (!%p3653_p8), 1, %s2596_s28  }
  0xe0   : > { %414 = sbr.rel (%p3653_p8) target bundleno = 1477 (0x5c5), region = 48  ;;  %s1957_s17 = sshll.u32 (!%p3653_p8), %s2994_s12, 4 }
  0xe1   : > { %s417_s16 = scalar_lea.sflag (!%p3653_p8), [#allocation3], %s2994_s12  ;;  %s2998_s24 = scalar_lea.vmem (!%p3653_p8), [#allocation2], %s1957_s17 }
  0xe5   : > { %p3655_p3 = scmp.ne.s32.totalorder (!%p3653_p8), %s3654_s23, 0 }
  0xe7   : > { %2567 = dma.done.wait (%p3655_p3), %s417_s16, 256  }
  0xe8   : > { %2569 = vsyncadd (%p3655_p3), %s417_s16, 4294967040  ;;  %s3656_s19 = sld [smem:[#allocation27_spill]]  ;;  %s3005_s5 = scalar_lea.vmem [#allocation5], %s1957_s17 }
  0xee   : > { %s425_s3 = sand.u32 1, %s3656_s19  }
  0xef   : > { %s426_s15 = scalar_lea.sflag [#allocation6], %s425_s3 }
  0xf0   : > { %2571 = dma.done.wait (%p3655_p3), %s426_s15, 512  }
  0xf1   : > { %2573 = vsyncadd (%p3655_p3), %s426_s15, 4294966784  ;;  %s3011_s14 = scalar_lea.vmem [#allocation7], %s1957_s17  ;;  %p3657_p11 = scmp.eq.s32.totalorder %s3656_s19, 0 }
  0xf3   : > { %2575 = dma.done.wait (%p3657_p11), [#allocation9], 384   ;;  %p3658_p2 = pmov %p3657_p11 }
  0xf5   : > { %2577 = vsyncadd (%p3658_p2), [#allocation9], 4294966912  ;;  %p3659_p10 = pmov %p3658_p2 }
  0xf6   : > { %p3660_p5 = pmov %p3658_p2 }
  0xf7   : > { %2579 = dma.done.wait (%p3659_p10), [#allocation12], 272  }
  0xf8   : > { %2581 = vsyncadd (%p3660_p5), [#allocation12], 4294967024  ;;  %v2625_v0 = vmov 0.0   ;;  %vm2626_vm0 = vmmov 0   ;;  %v2627_v1 = vmov 1   ;;  %v2628_v2 = vmov 0  }
  0xf9   : > { %2028 = vmatprep.subr.bf16.mxu1 %v2625_v0  ;;  %2030 = vmatprep.mubr.msk.bf16.mxu1 %vm2626_vm0, %v2625_v0  ;;  %vm546_vm1 = vcmask 64512   ;;  %v2265_v3 = vld [vmem:[#allocation8] sm:$0x1f]   ;;  %v510_v9 = vld [vmem:[%s2998_s24 + $0x8] sm:$0xf]  ;;  %v2629_v23 = vmov 3   ;;  %v520_v45 = vlaneseq }
  0xfa   : > { %2236 = vset.pattern.permute.xlu1 %v2627_v1  ;;  %2235 = vset.pattern.permute.xlu0 %v2628_v2  ;;  %v508_v4 = vld [vmem:[%s2998_s24] sm:$0xf]  ;;  %v509_v5 = vld [vmem:[%s2998_s24 + $0x4] sm:$0xf]  ;;  %v554_v6 = vsel %vm546_vm1, %v2265_v3, 0  ;;  %v2630_v24 = vmov 2  }
  0xfb   : > { %2100 = vmatprep.subr.msk.bf16.mxu0 %vm546_vm1, %v2265_v3  ;;  %v1966_v7 = vcombine.low %v508_v4, %v509_v5  ;;  %v512_v8 = vld [vmem:[%s3005_s5] sm:$0xf]  ;;  %v511_v10 = vld [vmem:[%s2998_s24 + $0xc] sm:$0xf]  ;;  %v513_v12 = vld [vmem:[%s3005_s5 + $0x4] sm:$0xf] }
  0xfc   : > { %2023 = vmatpush3.bf16.xpose.msra.mxu0 %v554_v6  ;;  %v829_v11 = vsel %vm546_vm1, %v512_v8, 0  ;;  %v1967_v13 = vcombine.low %v510_v9, %v511_v10  ;;  %v875_v14 = vsel %vm546_vm1, %v513_v12, 0  ;;  %v514_v15 = vld [vmem:[%s3005_s5 + $0x8] sm:$0xf]  ;;  %v515_v17 = vld [vmem:[%s3005_s5 + $0xc] sm:$0xf] }
  0xfd   : > { %2024 = vmatprep.mubr.msk.bf16.mxu0 %vm546_vm1, %v1966_v7  ;;  %2029 = vmatpush3.bf16.xpose.msra.mxu1 %v829_v11  ;;  %v921_v16 = vsel %vm546_vm1, %v514_v15, 0  ;;  %v967_v18 = vsel %vm546_vm1, %v515_v17, 0  ;;  %v2631_v25 = vmov 5   ;;  %v2632_v26 = vmov 4   ;;  %s1965_s18 = sshll.u32 %s2994_s12, 5  ;;  %s3661_s13 = sld [smem:[#allocation24_spill]] }
  0xfe   : > { %2034 = vmatprep.subr.bf16.mxu0 %v2625_v0  ;;  %2040 = vmatprep.subr.bf16.mxu1 %v2625_v0  ;;  %v2633_v27 = vmov 7   ;;  %v2634_v28 = vmov 6   ;;  %v3095_v46 = vshrl.u32 %v520_v45, 7  ;;  %v3097_v47 = vand.u32 127, %v520_v45  ;;  %s3224_s11 = scalar_lea.vmem [#allocation15], %s1965_s18  ;;  %s3662_s30 = sld [smem:[#allocation31_spill]] }
  0xff   : > { %vm1096_vm12 = vcmask 1043456   ;;  %s1731_s10 = sshll.u32 %s3224_s11, 4  ;;  %s3663_s22 = sld [smem:[#allocation37_spill]]  ;;  %s3498_s10 = int_to_ptr.vmem [resolvable:$true] %s1731_s10 }
 0x100   : > { %v524_v48 = vsub.s32 %v3095_v46, %v3097_v47  ;;  %vm1013_vm11 = vcmp.gt.s32.totalorder %v3097_v47, %v3095_v46  ;;  %s1703_s21 = scalar_lea.sflag [#allocation16], %s2994_s12  ;;  %s2486_s20 = scalar_lea.vmem %s3498_s10, 512 }
 0x101   : > { %p2487_p7 = scmp.ne.s32.totalorder %s3498_s10, %s2486_s20  ;;  %s2635_s9 = smov [#allocation15]  }
 0x102   : > { %vm525_vm2 = vcmp.gt.s32.totalorder %v524_v48, 0  ;;  %s2490_s26 = sshll.u32 %s2635_s9, 4  ;;  %s2491_s26 = int_to_ptr.vmem [resolvable:$false] %s2490_s26 }
 0x103   : > { %2025 = vmatmul.mubr.msk.bf16.vlgmr.msra.gmra.mrb[0].mxu0 %vm546_vm1, %v1967_v13  ;;  %v3101_v49 = vsel %vm525_vm2, %v524_v48, 0  ;;  %s1994_s8 = sshll.u32 %s3661_s13, 9  ;;  %s2492_s7 = scalar_lea.vmem %s2491_s26, 1024 }
 0x104   : > { %2031 = vmatmul.mubr.msk.bf16.vlgmr.msra.gmra.mrb[0].mxu1 %vm546_vm1, %v508_v4  ;;  %2035 = vmatpush3.bf16.xpose.msra.mxu0 %v875_v14  ;;  %vm636_vm3 = vcmp.eq.s32.totalorder %v3101_v49, 1  ;;  %vm605_vm4 = vcmp.eq.s32.totalorder %v3101_v49, 0  ;;  %vm663_vm5 = vcmp.eq.s32.totalorder %v3101_v49, 2  ;;  %vm690_vm6 = vcmp.eq.s32.totalorder %v3101_v49, 3  ;;  %p3664_p6 = scmp.ne.s32.totalorder %s3662_s30, 0  ;;  %p2493_p13 = scmp.lt.s32.totalorder %s3498_s10, %s2491_s26 }
 0x105   : > { %2036 = vmatprep.mubr.msk.bf16.mxu0 %vm2626_vm0, %v2625_v0  ;;  %2046 = vmatprep.subr.bf16.mxu0 %v2625_v0  ;;  %vm717_vm7 = vcmp.eq.s32.totalorder %v3101_v49, 4  ;;  %vm744_vm8 = vcmp.eq.s32.totalorder %v3101_v49, 5  ;;  %vm771_vm9 = vcmp.eq.s32.totalorder %v3101_v49, 6  ;;  %vm798_vm10 = vcmp.eq.s32.totalorder %v3101_v49, 7  ;;  %s3496_s1 = scalar_lea.hbm %s3663_s22, %s1994_s8  ;;  %p2494_p12 = scmp.lt.s32.totalorder %s2492_s7, %s2486_s20 }
 0x106   : > { %2042 = vmatprep.mubr.msk.bf16.mxu1 %vm2626_vm0, %v2625_v0  ;;  %2041 = vmatpush3.bf16.xpose.msra.mxu1 %v921_v16  ;;  %p2488_p1 = pnand %p2487_p7, %p3664_p6 }
 0x107   : > { %2052 = vmatprep.subr.bf16.mxu1 %v2625_v0  ;;  %p2495_p9 = por %p2494_p12, %p2493_p13 }
 0x108   : > { %p2489_p4 = pneg %p2488_p1 }
 0x10a   : > { %p2496_p0 = pnand %p2495_p9, %p2489_p4 }
 0x10b   : > { %2037 = vmatmul.mubr.msk.bf16.vlgmr.msra.gmra.mrb[4].mxu0 %vm546_vm1, %v509_v5 }
 0x10c   : > { %2048 = vmatprep.mubr.msk.bf16.mxu0 %vm2626_vm0, %v2625_v0  ;;  %2047 = vmatpush3.bf16.xpose.msra.mxu0 %v967_v18 }
 0x10d   : > { %2058 = vmatprep.subr.bf16.mxu0 %v2625_v0  ;;  %2043 = vmatmul.mubr.msk.bf16.vlgmr.msra.gmra.mrb[4].mxu1 %vm546_vm1, %v510_v9 }
 0x10e   : > { %2054 = vmatprep.mubr.msk.bf16.mxu1 %vm2626_vm0, %v2625_v0 }
 0x113   : > { %2049 = vmatmul.mubr.msk.bf16.vlgmr.msra.gmra.mrb[8].mxu0 %vm546_vm1, %v511_v10 }
 0x114   : > { %2060 = vmatprep.mubr.msk.bf16.mxu0 %vm2626_vm0, %v2625_v0 }
 0x1d6   : > { %v3061_v19 = vpop.f32.mrb[0].mxu0 }
 0x1d7   : > { %648 = vperm.xlu1 %2236, %v3061_v19   ;;  %620 = vperm.xlu0 %2235, %v3061_v19   ;;  %v590_v20 = vpop.f32.mrb[1].mxu0  ;;  %v3075_v29 = vpop.f32.mrb[0].mxu1 }
 0x1d8   : > { %v3065_v21 = vpop.f32.mrb[2].mxu0  ;;  %v2032_v30 = vpop.f32.mrb[1].mxu1 }
 0x1d9   : > { %v593_v22 = vpop.f32.mrb[3].mxu0  ;;  %v868_v31 = vpop.f32.mrb[2].mxu1 }
 0x1da   : > { %v2033_v32 = vpop.f32.mrb[3].mxu1 }
 0x1db   : > { %2238 = vset.pattern.permute.xlu1 %v2629_v23  ;;  %2237 = vset.pattern.permute.xlu0 %v2630_v24 }
 0x1dc   : > { %702 = vperm.xlu1 %2238, %v3061_v19   ;;  %675 = vperm.xlu0 %2237, %v3061_v19  }
 0x1de   : > { %v3086_v33 = vpop.f32.mrb[4].mxu0 }
 0x1df   : > { %v2038_v34 = vpop.f32.mrb[5].mxu0 }
 0x1e0   : > { %2240 = vset.pattern.permute.xlu1 %v2631_v25  ;;  %2239 = vset.pattern.permute.xlu0 %v2632_v26  ;;  %v914_v35 = vpop.f32.mrb[6].mxu0  ;;  %v3090_v37 = vpop.f32.mrb[4].mxu1 }
 0x1e1   : > { %756 = vperm.xlu1 %2240, %v3061_v19   ;;  %729 = vperm.xlu0 %2239, %v3061_v19   ;;  %v2039_v36 = vpop.f32.mrb[7].mxu0  ;;  %v2044_v38 = vpop.f32.mrb[5].mxu1 }
 0x1e2   : > { %v960_v39 = vpop.f32.mrb[6].mxu1 }
 0x1e3   : > { %v2045_v40 = vpop.f32.mrb[7].mxu1 }
 0x1e5   : > { %2242 = vset.pattern.permute.xlu1 %v2627_v1  ;;  %2241 = vset.pattern.permute.xlu0 %v2628_v2 }
 0x1e6   : > { %640 = vperm.xlu1 %2242, %v590_v20   ;;  %610 = vperm.xlu0 %2241, %v590_v20   ;;  %v3092_v41 = vpop.f32.mrb[8].mxu0 }
 0x1e7   : > { %v2050_v42 = vpop.f32.mrb[9].mxu0 }
 0x1e8   : > { %v1006_v43 = vpop.f32.mrb[10].mxu0 }
 0x1e9   : > { %v2051_v44 = vpop.f32.mrb[11].mxu0 }
 0x1ea   : > { %2244 = vset.pattern.permute.xlu1 %v2629_v23  ;;  %2243 = vset.pattern.permute.xlu0 %v2630_v24 }
 0x1eb   : > { %694 = vperm.xlu1 %2244, %v590_v20   ;;  %667 = vperm.xlu0 %2243, %v590_v20  }
 0x1ef   : > { %2245 = vset.pattern.permute.xlu1 %v2632_v26  ;;  %2248 = vset.pattern.permute.xlu0 %v2633_v27 }
 0x1f0   : > { %721 = vperm.xlu1 %2245, %v590_v20   ;;  %802 = vperm.xlu0 %2248, %v590_v20  }
 0x1f4   : > { %2246 = vset.pattern.permute.xlu1 %v2631_v25  ;;  %2251 = vset.pattern.permute.xlu0 %v2630_v24 }
 0x1f5   : > { %748 = vperm.xlu1 %2246, %v590_v20   ;;  %679 = vperm.xlu0 %2251, %v3065_v21  }
 0x1f9   : > { %2247 = vset.pattern.permute.xlu1 %v2634_v28  ;;  %2254 = vset.pattern.permute.xlu0 %v2628_v2 }
 0x1fa   : > { %775 = vperm.xlu1 %2247, %v590_v20   ;;  %615 = vperm.xlu0 %2254, %v593_v22  }
 0x1fe   : > { %2249 = vset.pattern.permute.xlu1 %v2628_v2  ;;  %2257 = vset.pattern.permute.xlu0 %v2629_v23 }
 0x1ff   : > { %625 = vperm.xlu1 %2249, %v3065_v21   ;;  %698 = vperm.xlu0 %2257, %v593_v22  }
 0x203   : > { %2250 = vset.pattern.permute.xlu1 %v2627_v1  ;;  %2259 = vset.pattern.permute.xlu0 %v2631_v25 }
 0x204   : > { %652 = vperm.xlu1 %2250, %v3065_v21   ;;  %752 = vperm.xlu0 %2259, %v593_v22  }
 0x208   : > { %2252 = vset.pattern.permute.xlu1 %v2629_v23  ;;  %760 = vperm.xlu0 %2259, %v3065_v21  }
 0x209   : > { %706 = vperm.xlu1 %2252, %v3065_v21  }
 0x20c   : > { %2263 = vset.pattern.permute.xlu0 %v2633_v27 }
 0x20d   : > { %2253 = vset.pattern.permute.xlu1 %v2632_v26  ;;  %810 = vperm.xlu0 %2263, %v3061_v19  }
 0x20e   : > { %733 = vperm.xlu1 %2253, %v3065_v21  }
 0x212   : > { %2255 = vset.pattern.permute.xlu1 %v2627_v1 }
 0x213   : > { %644 = vperm.xlu1 %2255, %v593_v22  }
 0x217   : > { %2256 = vset.pattern.permute.xlu1 %v2630_v24 }
 0x218   : > { %671 = vperm.xlu1 %2256, %v593_v22  }
 0x21c   : > { %2258 = vset.pattern.permute.xlu1 %v2632_v26 }
 0x21d   : > { %725 = vperm.xlu1 %2258, %v593_v22  }
 0x221   : > { %2260 = vset.pattern.permute.xlu1 %v2634_v28 }
 0x222   : > { %779 = vperm.xlu1 %2260, %v593_v22  }
 0x226   : > { %2261 = vset.pattern.permute.xlu1 %v2633_v27 }
 0x227   : > { %806 = vperm.xlu1 %2261, %v593_v22  }
 0x22b   : > { %2262 = vset.pattern.permute.xlu1 %v2634_v28 }
 0x22c   : > { %783 = vperm.xlu1 %2262, %v3061_v19  }
 0x230   : > { %787 = vperm.xlu1 %2262, %v3065_v21  }
 0x234   : > { %2264 = vset.pattern.permute.xlu1 %v2633_v27 }
 0x235   : > { %814 = vperm.xlu1 %2264, %v3065_v21  }
 0x256   : > { %v649_v50 = vpop.permute.xlu1 %648  ;;  %v621_v51 = vpop.permute.xlu0 %620 }
 0x257   : > { %v657_v52 = vsel %vm636_vm3, %v649_v50, 0.0  ;;  %v630_v53 = vsel %vm605_vm4, %v621_v51, 0.0 }
 0x258   : > { %v661_v54 = vadd.f32 %v657_v52, %v630_v53 }
 0x25b   : > { %v703_v55 = vpop.permute.xlu1 %702  ;;  %v676_v56 = vpop.permute.xlu0 %675 }
 0x25c   : > { %v684_v57 = vsel %vm663_vm5, %v676_v56, 0.0  ;;  %v711_v59 = vsel %vm690_vm6, %v703_v55, 0.0 }
 0x25d   : > { %v688_v58 = vadd.f32 %v684_v57, %v661_v54 }
 0x25f   : > { %v715_v60 = vadd.f32 %v711_v59, %v688_v58 }
 0x260   : > { %v757_v61 = vpop.permute.xlu1 %756  ;;  %v730_v62 = vpop.permute.xlu0 %729 }
 0x261   : > { %v738_v63 = vsel %vm717_vm7, %v730_v62, 0.0  ;;  %v765_v2 = vsel %vm744_vm8, %v757_v61, 0.0 }
 0x262   : > { %v742_v1 = vadd.f32 %v738_v63, %v715_v60 }
 0x264   : > { %v3121_v3 = vadd.f32 %v765_v2, %v742_v1 }
 0x265   : > { %v641_v4 = vpop.permute.xlu1 %640  ;;  %v611_v5 = vpop.permute.xlu0 %610 }
 0x266   : > { %v655_v6 = vsel %vm636_vm3, %v641_v4, 0.0  ;;  %v628_v7 = vsel %vm605_vm4, %v611_v5, 0.0 }
 0x267   : > { %v659_v11 = vadd.f32 %v655_v6, %v628_v7 }
 0x26a   : > { %v695_v8 = vpop.permute.xlu1 %694  ;;  %v668_v9 = vpop.permute.xlu0 %667 }
 0x26b   : > { %v682_v10 = vsel %vm663_vm5, %v668_v9, 0.0  ;;  %v709_v14 = vsel %vm690_vm6, %v695_v8, 0.0 }
 0x26c   : > { %v686_v12 = vadd.f32 %v682_v10, %v659_v11 }
 0x26e   : > { %v713_v15 = vadd.f32 %v709_v14, %v686_v12 }
 0x26f   : > { %v722_v13 = vpop.permute.xlu1 %721  ;;  %v803_v20 = vpop.permute.xlu0 %802 }
 0x270   : > { %v736_v16 = vsel %vm717_vm7, %v722_v13, 0.0  ;;  %v817_v25 = vsel %vm798_vm10, %v803_v20, 0.0 }
 0x271   : > { %v740_v19 = vadd.f32 %v736_v16, %v713_v15 }
 0x274   : > { %v749_v17 = vpop.permute.xlu1 %748  ;;  %v680_v36 = vpop.permute.xlu0 %679 }
 0x275   : > { %v763_v18 = vsel %vm744_vm8, %v749_v17, 0.0  ;;  %v685_v5 = vsel %vm663_vm5, %v680_v36, 0.0 }
 0x276   : > { %v767_v21 = vadd.f32 %v763_v18, %v740_v19 }
 0x279   : > { %v776_v22 = vpop.permute.xlu1 %775  ;;  %v616_v39 = vpop.permute.xlu0 %615 }
 0x27a   : > { %v790_v23 = vsel %vm771_vm9, %v776_v22, 0.0  ;;  %v629_v42 = vsel %vm605_vm4, %v616_v39, 0.0 }
 0x27b   : > { %v794_v24 = vadd.f32 %v790_v23, %v767_v21 }
 0x27d   : > { %v821_v26 = vadd.f32 %v817_v25, %v794_v24 }
 0x27e   : > { %v626_v27 = vpop.permute.xlu1 %625  ;;  %v699_v43 = vpop.permute.xlu0 %698 }
 0x27f   : > { %v866_v28 = vadd.f32 %v3075_v29, %v821_v26  ;;  %v710_v51 = vsel %vm690_vm6, %v699_v43, 0.0  ;;  %v631_v61 = vsel %vm605_vm4, %v626_v27, 0.0 }
 0x281   : > { %v1009_v30 = vmul.f32 0.35355338, %v866_v28 }
 0x283   : > { %v653_v31 = vpop.permute.xlu1 %652  ;;  %v3147_v32 = vsel %vm1013_vm11, -1e+09, %v1009_v30  ;;  %v753_v55 = vpop.permute.xlu0 %752 }
 0x284   : > { %v1020_v34 = vsel %vm546_vm1, %v3147_v32, -inf  ;;  %v658_v57 = vsel %vm636_vm3, %v653_v31, 0.0  ;;  %v764_v58 = vsel %vm744_vm8, %v753_v55, 0.0 }
 0x285   : > { %1021 = vmax.xlane.f32.xlu1 %v1020_v34  ;;  %v662_v63 = vadd.f32 %v658_v57, %v631_v61 }
 0x287   : > { %v761_v1 = vpop.permute.xlu0 %760  ;;  %v689_v7 = vadd.f32 %v685_v5, %v662_v63 }
 0x288   : > { %v707_v35 = vpop.permute.xlu1 %706  ;;  %v766_v23 = vsel %vm744_vm8, %v761_v1, 0.0 }
 0x289   : > { %v712_v9 = vsel %vm690_vm6, %v707_v35, 0.0 }
 0x28a   : > { %v716_v14 = vadd.f32 %v712_v9, %v689_v7 }
 0x28c   : > { %v811_v11 = vpop.permute.xlu0 %810 }
 0x28d   : > { %v734_v38 = vpop.permute.xlu1 %733  ;;  %v819_v18 = vsel %vm798_vm10, %v811_v11, 0.0 }
 0x28e   : > { %v739_v12 = vsel %vm717_vm7, %v734_v38, 0.0 }
 0x28f   : > { %v743_v19 = vadd.f32 %v739_v12, %v716_v14 }
 0x291   : > { %v770_v25 = vadd.f32 %v766_v23, %v743_v19  ;;  %v519_v19 = vld [vmem:[%s3011_s14 + $0xc] sm:$0xf] }
 0x292   : > { %v645_v40 = vpop.permute.xlu1 %644 }
 0x293   : > { %v656_v29 = vsel %vm636_vm3, %v645_v40, 0.0 }
 0x294   : > { %v660_v44 = vadd.f32 %v656_v29, %v629_v42 }
 0x297   : > { %v672_v45 = vpop.permute.xlu1 %671 }
 0x298   : > { %v683_v48 = vsel %vm663_vm5, %v672_v45, 0.0  ;;  %v516_v45 = vld [vmem:[%s3011_s14] sm:$0xf] }
 0x299   : > { %v687_v50 = vadd.f32 %v683_v48, %v660_v44 }
 0x29b   : > { %v714_v52 = vadd.f32 %v710_v51, %v687_v50 }
 0x29c   : > { %v726_v53 = vpop.permute.xlu1 %725 }
 0x29d   : > { %v737_v54 = vsel %vm717_vm7, %v726_v53, 0.0 }
 0x29e   : > { %v741_v56 = vadd.f32 %v737_v54, %v714_v52 }
 0x2a0   : > { %v768_v60 = vadd.f32 %v764_v58, %v741_v56 }
 0x2a1   : > { %v780_v59 = vpop.permute.xlu1 %779 }
 0x2a2   : > { %v791_v62 = vsel %vm771_vm9, %v780_v59, 0.0 }
 0x2a3   : > { %v795_v2 = vadd.f32 %v791_v62, %v768_v60  ;;  %v517_v62 = vld [vmem:[%s3011_s14 + $0x4] sm:$0xf] }
 0x2a4   : > { %v1144_v63 = vsel %vm1096_vm12, %v517_v62, 0 }
 0x2a5   : > { %2059 = vmatpush3.bf16.msra.mxu0 %v1144_v63 }
 0x2a6   : > { %v807_v4 = vpop.permute.xlu1 %806  ;;  %2070 = vmatprep.subr.bf16.mxu0 %v2625_v0 }
 0x2a7   : > { %v818_v6 = vsel %vm798_vm10, %v807_v4, 0.0  ;;  %v518_v4 = vld [vmem:[%s3011_s14 + $0x8] sm:$0xf] }
 0x2a8   : > { %v822_v8 = vadd.f32 %v818_v6, %v795_v2 }
 0x2aa   : > { %v912_v10 = vadd.f32 %v3086_v33, %v822_v8  ;;  %v1190_v8 = vsel %vm1096_vm12, %v518_v4, 0 }
 0x2ab   : > { %v784_v13 = vpop.permute.xlu1 %783 }
 0x2ac   : > { %v1010_v15 = vmul.f32 0.35355338, %v912_v10  ;;  %v792_v16 = vsel %vm771_vm9, %v784_v13, 0.0 }
 0x2ad   : > { %v796_v17 = vadd.f32 %v792_v16, %v3121_v3 }
 0x2ae   : > { %v1017_v33 = vsel %vm1013_vm11, -1e+09, %v1010_v15 }
 0x2af   : > { %v788_v20 = vpop.permute.xlu1 %787  ;;  %v823_v21 = vadd.f32 %v819_v18, %v796_v17  ;;  %v1023_v22 = vsel %vm546_vm1, %v1017_v33, -inf }
 0x2b0   : > { %1024 = vmax.xlane.f32.xlu0 %v1023_v22  ;;  %v793_v24 = vsel %vm771_vm9, %v788_v20, 0.0  ;;  %v1236_v22 = vsel %vm1096_vm12, %v519_v19, 0 }
 0x2b1   : > { %v958_v3 = vadd.f32 %v3090_v37, %v823_v21  ;;  %v797_v27 = vadd.f32 %v793_v24, %v770_v25 }
 0x2b3   : > { %v1011_v26 = vmul.f32 0.35355338, %v958_v3 }
 0x2b4   : > { %v815_v28 = vpop.permute.xlu1 %814 }
 0x2b5   : > { %v820_v30 = vsel %vm798_vm10, %v815_v28, 0.0  ;;  %v1018_v31 = vsel %vm1013_vm11, -1e+09, %v1011_v26 }
 0x2b6   : > { %v824_v34 = vadd.f32 %v820_v30, %v797_v27  ;;  %v1026_v35 = vsel %vm546_vm1, %v1018_v31, -inf }
 0x2b7   : > { %1027 = vmax.xlane.f32.xlu0 %v1026_v35 }
 0x2b8   : > { %v1004_v36 = vadd.f32 %v3092_v41, %v824_v34  ;;  %v1098_v41 = vsel %vm1096_vm12, %v516_v45, 0 }
 0x2b9   : > { %2053 = vmatpush3.bf16.msra.mxu1 %v1098_v41 }
 0x2ba   : > { %v1012_v38 = vmul.f32 0.35355338, %v1004_v36  ;;  %2064 = vmatprep.subr.bf16.mxu1 %v2625_v0 }
 0x2bc   : > { %v1019_v37 = vsel %vm1013_vm11, -1e+09, %v1012_v38 }
 0x2bd   : > { %v1029_v39 = vsel %vm546_vm1, %v1019_v37, -inf }
 0x2be   : > { %1030 = vmax.xlane.f32.xlu1 %v1029_v39 }
 0x312   : > { %v1022_v40 = vpop.xlane.xlu1 %1021 }
 0x313   : > { %v1032_v29 = vsub.f32 %v3147_v32, %v1022_v40 }
 0x315   : > { %v1036_v42 = vmul.f32 1.442695, %v1032_v29 }
 0x317   : > { %2268 = vpow2.f32 %v1036_v42 }
 0x321   : > { %v2269_v43 = vpop.eup %2268 }
 0x322   : > { %v1044_v44 = vsel %vm546_vm1, %v2269_v43, 0.0 }
 0x323   : > { %1045 = vadd.xlane.f32.xlu0 %v1044_v44 }
 0x33d   : > { %v1025_v48 = vpop.xlane.xlu0 %1024 }
 0x33e   : > { %v1033_v47 = vsub.f32 %v1017_v33, %v1025_v48 }
 0x340   : > { %v1038_v50 = vmul.f32 1.442695, %v1033_v47 }
 0x342   : > { %2270 = vpow2.f32 %v1038_v50 }
 0x344   : > { %v1028_v51 = vpop.xlane.xlu0 %1027 }
 0x345   : > { %v1034_v52 = vsub.f32 %v1018_v31, %v1028_v51 }
 0x347   : > { %v1040_v32 = vmul.f32 1.442695, %v1034_v52 }
 0x349   : > { %2272 = vpow2.f32 %v1040_v32 }
 0x34b   : > { %v1031_v53 = vpop.xlane.xlu1 %1030 }
 0x34c   : > { %v2271_v54 = vpop.eup %2270  ;;  %v1035_v55 = vsub.f32 %v1019_v37, %v1031_v53 }
 0x34d   : > { %v1047_v56 = vsel %vm546_vm1, %v2271_v54, 0.0 }
 0x34e   : > { %v1042_v57 = vmul.f32 1.442695, %v1035_v55  ;;  %1048 = vadd.xlane.f32.xlu1 %v1047_v56 }
 0x350   : > { %2274 = vpow2.f32 %v1042_v57 }
 0x353   : > { %v2273_v58 = vpop.eup %2272 }
 0x354   : > { %v1050_v59 = vsel %vm546_vm1, %v2273_v58, 0.0 }
 0x355   : > { %1051 = vadd.xlane.f32.xlu0 %v1050_v59 }
 0x35a   : > { %v2275_v60 = vpop.eup %2274 }
 0x35b   : > { %v1053_v61 = vsel %vm546_vm1, %v2275_v60, 0.0 }
 0x35c   : > { %1054 = vadd.xlane.f32.xlu1 %v1053_v61 }
 0x3b0   : > { %v1046_v1 = vpop.xlane.xlu0 %1045 }
 0x3b1   : > { %2276 = vrcp.f32 %v1046_v1 }
 0x3bb   : > { %v2277_v2 = vpop.eup %2276 }
 0x3bc   : > { %v3216_v5 = vmul.f32 %v2277_v2, %v2269_v43 }
 0x3be   : > { %v1334_v6 = vsel %vm690_vm6, %v3216_v5, 0.0  ;;  %v1064_v7 = vpack.c.bf16 %v3216_v5, %v3216_v5  ;;  %1693 = vst.msk [vmem:[%s3224_s11] sm:$0xff] %vm546_vm1, %v3216_v5  ;;  %v1362_v10 = vsel %vm717_vm7, %v3216_v5, 0.0  ;;  %v1390_v12 = vsel %vm744_vm8, %v3216_v5, 0.0 }
 0x3bf   : > { %v1338_v9 = vsel %vm546_vm1, %v1334_v6, 0.0  ;;  %v1366_v11 = vsel %vm546_vm1, %v1362_v10, 0.0  ;;  %v1394_v13 = vsel %vm546_vm1, %v1390_v12, 0.0  ;;  %v1418_v14 = vsel %vm771_vm9, %v3216_v5, 0.0 }
 0x3c0   : > { %1339 = vadd.xlane.f32.xlu0 %v1338_v9  ;;  %2055 = vmatmul.mubr.msk.bf16.vlgmr.msra.gmra.mrb[8].mxu1 %vm546_vm1, %v1064_v7  ;;  %v1422_v15 = vsel %vm546_vm1, %v1418_v14, 0.0  ;;  %v1069_v47 = vsel %vm605_vm4, %v3216_v5, 0.0  ;;  %v1278_v32 = vsel %vm636_vm3, %v3216_v5, 0.0  ;;  %v1306_v56 = vsel %vm663_vm5, %v3216_v5, 0.0 }
 0x3c1   : > { %2065 = vmatpush3.bf16.msra.mxu1 %v1190_v8  ;;  %2066 = vmatprep.mubr.msk.bf16.mxu1 %vm2626_vm0, %v2625_v0  ;;  %v1073_v51 = vsel %vm546_vm1, %v1069_v47, 0.0  ;;  %v1446_v6 = vsel %vm798_vm10, %v3216_v5, 0.0 }
 0x3c2   : > { %2076 = vmatprep.subr.bf16.mxu1 %v2625_v0  ;;  %v1450_v8 = vsel %vm546_vm1, %v1446_v6, 0.0 }
 0x3c4   : > { %1367 = vadd.xlane.f32.xlu0 %v1366_v11 }
 0x3c8   : > { %1395 = vadd.xlane.f32.xlu0 %v1394_v13 }
 0x3cc   : > { %1423 = vadd.xlane.f32.xlu0 %v1422_v15 }
 0x3db   : > { %v1049_v16 = vpop.xlane.xlu1 %1048 }
 0x3dc   : > { %2278 = vrcp.f32 %v1049_v16 }
 0x3e2   : > { %v1052_v17 = vpop.xlane.xlu0 %1051 }
 0x3e3   : > { %2280 = vrcp.f32 %v1052_v17 }
 0x3e6   : > { %v2279_v18 = vpop.eup %2278 }
 0x3e7   : > { %v3247_v33 = vmul.f32 %v2279_v18, %v2271_v54  ;;  %v1282_v54 = vsel %vm546_vm1, %v1278_v32, 0.0  ;;  %v1324_v32 = vsub.s32 2, %v3095_v46 }
 0x3e9   : > { %v1055_v20 = vpop.xlane.xlu1 %1054  ;;  %v1065_v21 = vpack.c.bf16 %v3247_v33, %v3247_v33  ;;  %1694 = vst.msk [vmem:[%s3224_s11 + $0x8] sm:$0xff] %vm546_vm1, %v3247_v33  ;;  %v1070_v52 = vsel %vm605_vm4, %v3247_v33, 0.0  ;;  %v1279_v55 = vsel %vm636_vm3, %v3247_v33, 0.0  ;;  %v1307_v59 = vsel %vm663_vm5, %v3247_v33, 0.0 }
 0x3ea   : > { %2282 = vrcp.f32 %v1055_v20  ;;  %v1076_v53 = vsel %vm546_vm1, %v1070_v52, 0.0  ;;  %v1285_v57 = vsel %vm546_vm1, %v1279_v55, 0.0  ;;  %v1313_v61 = vsel %vm546_vm1, %v1307_v59, 0.0 }
 0x3eb   : > { %2061 = vmatmul.mubr.msk.bf16.vlgmr.msra.gmra.mrb[12].mxu0 %vm546_vm1, %v1065_v21  ;;  %v1335_v63 = vsel %vm690_vm6, %v3247_v33, 0.0  ;;  %v1363_v1 = vsel %vm717_vm7, %v3247_v33, 0.0  ;;  %v1391_v7 = vsel %vm744_vm8, %v3247_v33, 0.0  ;;  %v1419_v11 = vsel %vm771_vm9, %v3247_v33, 0.0 }
 0x3ec   : > { %2071 = vmatpush3.bf16.msra.mxu0 %v1236_v22  ;;  %2072 = vmatprep.mubr.msk.bf16.mxu0 %vm2626_vm0, %v2625_v0  ;;  %v1341_v2 = vsel %vm546_vm1, %v1335_v63, 0.0  ;;  %v1369_v4 = vsel %vm546_vm1, %v1363_v1, 0.0  ;;  %v1397_v9 = vsel %vm546_vm1, %v1391_v7, 0.0  ;;  %v1425_v12 = vsel %vm546_vm1, %v1419_v11, 0.0 }
 0x3ed   : > { %v2281_v23 = vpop.eup %2280  ;;  %2082 = vmatprep.subr.bf16.mxu0 %v2625_v0  ;;  %v1447_v14 = vsel %vm798_vm10, %v3247_v33, 0.0 }
 0x3ee   : > { %v3259_v24 = vmul.f32 %v2281_v23, %v2273_v58  ;;  %v1310_v58 = vsel %vm546_vm1, %v1306_v56, 0.0  ;;  %v1453_v16 = vsel %vm546_vm1, %v1447_v14, 0.0  ;;  %v1478_v23 = vld [vmem:[#allocation11] sm:$0xf] }
 0x3f0   : > { %v1066_v3 = vpack.c.bf16 %v3259_v24, %v3259_v24  ;;  %v1071_v25 = vsel %vm605_vm4, %v3259_v24, 0.0  ;;  %1695 = vst.msk [vmem:[%s3224_s11 + $0x10] sm:$0xff] %vm546_vm1, %v3259_v24  ;;  %v1280_v27 = vsel %vm636_vm3, %v3259_v24, 0.0  ;;  %v1308_v34 = vsel %vm663_vm5, %v3259_v24, 0.0 }
 0x3f1   : > { %v1079_v26 = vsel %vm546_vm1, %v1071_v25, 0.0  ;;  %v1288_v31 = vsel %vm546_vm1, %v1280_v27, 0.0  ;;  %v1316_v37 = vsel %vm546_vm1, %v1308_v34, 0.0  ;;  %v1336_v40 = vsel %vm690_vm6, %v3259_v24, 0.0  ;;  %v1480_v25 = vld [vmem:[#allocation11 + $0x4] sm:$0xf] }
 0x3f2   : > { %2067 = vmatmul.mubr.msk.bf16.vlgmr.msra.gmra.mrb[12].mxu1 %vm546_vm1, %v1066_v3  ;;  %1080 = vadd.xlane.f32.xlu1 %v1079_v26  ;;  %v1344_v42 = vsel %vm546_vm1, %v1336_v40, 0.0  ;;  %v1364_v44 = vsel %vm717_vm7, %v3259_v24, 0.0  ;;  %v1392_v10 = vsel %vm744_vm8, %v3259_v24, 0.0  ;;  %v1420_v13 = vsel %vm771_vm9, %v3259_v24, 0.0 }
 0x3f3   : > { %2078 = vmatprep.mubr.msk.bf16.mxu1 %vm2626_vm0, %v2625_v0  ;;  %v1372_v41 = vsel %vm546_vm1, %v1364_v44, 0.0  ;;  %v1400_v5 = vsel %vm546_vm1, %v1392_v10, 0.0  ;;  %v1428_v15 = vsel %vm546_vm1, %v1420_v13, 0.0  ;;  %v1448_v17 = vsel %vm798_vm10, %v3259_v24, 0.0  ;;  %v1068_v44 = vld [vmem:[#allocation10] sm:$0xff] }
 0x3f4   : > { %v2283_v28 = vpop.eup %2282  ;;  %v1456_v19 = vsel %vm546_vm1, %v1448_v17, 0.0  ;;  %v1531_v24 = vsel %vm1096_vm12, %v1478_v23, 0  ;;  %v1485_v26 = vsel %vm1096_vm12, %v1480_v25, 0  ;;  %v1623_v23 = vld [vmem:[#allocation11 + $0xc] sm:$0xf] }
 0x3f5   : > { %v3276_v30 = vmul.f32 %v2283_v28, %v2275_v60  ;;  %2077 = vmatpush3.bf16.msra.mxu1 %v1485_v26 }
 0x3f6   : > { %1289 = vadd.xlane.f32.xlu1 %v1288_v31  ;;  %2088 = vmatprep.subr.bf16.mxu1 %v2625_v0 }
 0x3f7   : > { %v1072_v35 = vsel %vm605_vm4, %v3276_v30, 0.0  ;;  %v1067_v36 = vpack.c.bf16 %v3276_v30, %v3276_v30  ;;  %1696 = vst.msk [vmem:[%s3224_s11 + $0x18] sm:$0xff] %vm546_vm1, %v3276_v30  ;;  %v1281_v39 = vsel %vm636_vm3, %v3276_v30, 0.0  ;;  %v1309_v43 = vsel %vm663_vm5, %v3276_v30, 0.0 }
 0x3f8   : > { %v1082_v38 = vsel %vm546_vm1, %v1072_v35, 0.0  ;;  %v1291_v29 = vsel %vm546_vm1, %v1281_v39, 0.0  ;;  %v1319_v45 = vsel %vm546_vm1, %v1309_v43, 0.0  ;;  %v1337_v48 = vsel %vm690_vm6, %v3276_v30, 0.0 }
 0x3f9   : > { %1083 = vadd.xlane.f32.xlu0 %v1082_v38  ;;  %2073 = vmatmul.mubr.msk.bf16.vlgmr.msra.gmra.mrb[16].mxu0 %vm546_vm1, %v1067_v36  ;;  %v1347_v50 = vsel %vm546_vm1, %v1337_v48, 0.0  ;;  %v1365_v60 = vsel %vm717_vm7, %v3276_v30, 0.0  ;;  %v1393_v18 = vsel %vm744_vm8, %v3276_v30, 0.0  ;;  %v1421_v33 = vsel %vm771_vm9, %v3276_v30, 0.0 }
 0x3fa   : > { %1317 = vadd.xlane.f32.xlu1 %v1316_v37  ;;  %2084 = vmatprep.mubr.msk.bf16.mxu0 %vm2626_vm0, %v2625_v0  ;;  %v1375_v62 = vsel %vm546_vm1, %v1365_v60, 0.0  ;;  %v1403_v20 = vsel %vm546_vm1, %v1393_v18, 0.0  ;;  %v1431_v21 = vsel %vm546_vm1, %v1421_v33, 0.0  ;;  %v1449_v22 = vsel %vm798_vm10, %v3276_v30, 0.0 }
 0x3fb   : > { %v1459_v3 = vsel %vm546_vm1, %v1449_v22, 0.0  ;;  %2083 = vmatpush3.bf16.msra.mxu0 %v1531_v24  ;;  %v1408_v60 = vsub.s32 5, %v3095_v46 }
 0x3fc   : > { %2094 = vmatprep.subr.bf16.mxu0 %v2625_v0 }
 0x3fd   : > { %1292 = vadd.xlane.f32.xlu0 %v1291_v29  ;;  %v1087_v29 = vsub.s32 0, %v3095_v46 }
 0x3fe   : > { %1345 = vadd.xlane.f32.xlu1 %v1344_v42  ;;  %v1296_v42 = vsub.s32 1, %v3095_v46 }
 0x3ff   : > { %v3415_v48 = vrot.slane %v1068_v44, %v1087_v29 }
 0x400   : > { %v3418_v52 = vrot.slane %v1068_v44, %v1296_v42 }
 0x401   : > { %1320 = vadd.xlane.f32.xlu0 %v1319_v45 }
 0x402   : > { %1373 = vadd.xlane.f32.xlu1 %v1372_v41 }
 0x405   : > { %1348 = vadd.xlane.f32.xlu0 %v1347_v50 }
 0x406   : > { %1074 = vadd.xlane.f32.xlu1 %v1073_v51  ;;  %v1352_v51 = vsub.s32 3, %v3095_v46 }
 0x408   : > { %v3424_v59 = vrot.slane %v1068_v44, %v1352_v51 }
 0x409   : > { %1077 = vadd.xlane.f32.xlu0 %v1076_v53 }
 0x40a   : > { %1283 = vadd.xlane.f32.xlu1 %v1282_v54 }
 0x40d   : > { %1286 = vadd.xlane.f32.xlu0 %v1285_v57  ;;  %v1380_v57 = vsub.s32 4, %v3095_v46 }
 0x40e   : > { %1311 = vadd.xlane.f32.xlu1 %v1310_v58 }
 0x411   : > { %1314 = vadd.xlane.f32.xlu0 %v1313_v61  ;;  %v3427_v61 = vrot.slane %v1068_v44, %v1324_v32 }
 0x412   : > { %1376 = vadd.xlane.f32.xlu1 %v1375_v62 }
 0x415   : > { %1342 = vadd.xlane.f32.xlu0 %v1341_v2  ;;  %v3429_v2 = vrot.slane %v1068_v44, %v1380_v57 }
 0x416   : > { %1370 = vadd.xlane.f32.xlu1 %v1369_v4  ;;  %v1436_v4 = vsub.s32 6, %v3095_v46 }
 0x418   : > { %v3438_v13 = vrot.slane %v1068_v44, %v1436_v4 }
 0x419   : > { %1451 = vadd.xlane.f32.xlu0 %v1450_v8 }
 0x41a   : > { %1398 = vadd.xlane.f32.xlu1 %v1397_v9  ;;  %v3434_v9 = vrot.slane %v1068_v44, %v1408_v60 }
 0x41d   : > { %1401 = vadd.xlane.f32.xlu0 %v1400_v5  ;;  %v1464_v5 = vsub.s32 7, %v3095_v46 }
 0x41e   : > { %1426 = vadd.xlane.f32.xlu1 %v1425_v12 }
 0x41f   : > { %v3441_v18 = vrot.slane %v1068_v44, %v1464_v5 }
 0x421   : > { %1429 = vadd.xlane.f32.xlu0 %v1428_v15 }
 0x422   : > { %1454 = vadd.xlane.f32.xlu1 %v1453_v16 }
 0x425   : > { %1457 = vadd.xlane.f32.xlu0 %v1456_v19 }
 0x426   : > { %1404 = vadd.xlane.f32.xlu1 %v1403_v20 }
 0x42a   : > { %1432 = vadd.xlane.f32.xlu1 %v1431_v21 }
 0x42e   : > { %1460 = vadd.xlane.f32.xlu1 %v1459_v3  ;;  %v1628_v3 = vsel %vm1096_vm12, %v1623_v23, 0 }
 0x44d   : > { %v1340_v27 = vpop.xlane.xlu0 %1339 }
 0x44e   : > { %v1354_v8 = vmul.f32 %v3424_v59, %v1340_v27 }
 0x451   : > { %v1368_v28 = vpop.xlane.xlu0 %1367 }
 0x452   : > { %v1382_v12 = vmul.f32 %v3429_v2, %v1368_v28 }
 0x455   : > { %v1396_v31 = vpop.xlane.xlu0 %1395 }
 0x456   : > { %v1410_v15 = vmul.f32 %v3434_v9, %v1396_v31 }
 0x459   : > { %v1424_v30 = vpop.xlane.xlu0 %1423 }
 0x45a   : > { %v1438_v19 = vmul.f32 %v3438_v13, %v1424_v30 }
 0x47f   : > { %v3395_v49 = vpop.xlane.xlu1 %1080 }
 0x483   : > { %v3397_v34 = vpop.xlane.xlu1 %1289 }
 0x484   : > { %v1300_v60 = vmul.f32 %v3418_v52, %v3397_v34 }
 0x486   : > { %v3399_v35 = vpop.xlane.xlu0 %1083 }
 0x487   : > { %v3401_v36 = vpop.xlane.xlu1 %1317 }
 0x48a   : > { %v3403_v38 = vpop.xlane.xlu0 %1292 }
 0x48b   : > { %v3405_v37 = vpop.xlane.xlu1 %1345 }
 0x48e   : > { %v3407_v39 = vpop.xlane.xlu0 %1320 }
 0x48f   : > { %v3409_v40 = vpop.xlane.xlu1 %1373 }
 0x492   : > { %v3413_v43 = vpop.xlane.xlu0 %1348 }
 0x493   : > { %v1134_v45 = vpop.f32.mrb[8].mxu1  ;;  %v1075_v41 = vpop.xlane.xlu1 %1074 }
 0x494   : > { %v2056_v47 = vpop.f32.mrb[9].mxu1  ;;  %v1089_v53 = vmul.f32 %v3415_v48, %v1075_v41 }
 0x495   : > { %v1137_v50 = vpop.f32.mrb[10].mxu1 }
 0x496   : > { %v2057_v54 = vpop.f32.mrb[11].mxu1  ;;  %v1078_v55 = vpop.xlane.xlu0 %1077  ;;  %v1135_v62 = vadd.f32 %v1134_v45, %v1089_v53 }
 0x497   : > { %v1284_v56 = vpop.xlane.xlu1 %1283  ;;  %v1090_v28 = vmul.f32 %v3415_v48, %v1078_v55  ;;  %v1091_v54 = vmul.f32 %v3415_v48, %v3395_v49 }
 0x498   : > { %v1298_v58 = vmul.f32 %v3418_v52, %v1284_v56 }
 0x49a   : > { %v1287_v63 = vpop.xlane.xlu0 %1286  ;;  %v1302_v6 = vadd.f32 %v1298_v58, %v1135_v62 }
 0x49b   : > { %v1312_v1 = vpop.xlane.xlu1 %1311  ;;  %v1299_v29 = vmul.f32 %v3418_v52, %v1287_v63 }
 0x49c   : > { %v1326_v7 = vmul.f32 %v3427_v61, %v1312_v1 }
 0x49e   : > { %v1330_v10 = vadd.f32 %v1326_v7, %v1302_v6  ;;  %v1315_v11 = vpop.xlane.xlu0 %1314  ;;  %v1328_v7 = vmul.f32 %v3427_v61, %v3401_v36  ;;  %v1384_v36 = vmul.f32 %v3429_v2, %v3409_v40 }
 0x49f   : > { %v3446_v25 = vpop.xlane.xlu1 %1376  ;;  %v1327_v41 = vmul.f32 %v3427_v61, %v1315_v11 }
 0x4a0   : > { %v1358_v14 = vadd.f32 %v1354_v8, %v1330_v10 }
 0x4a2   : > { %v1386_v16 = vadd.f32 %v1382_v12, %v1358_v14  ;;  %v1343_v17 = vpop.xlane.xlu0 %1342  ;;  %v1356_v12 = vmul.f32 %v3424_v59, %v3405_v37 }
 0x4a3   : > { %v1371_v26 = vpop.xlane.xlu1 %1370  ;;  %v1355_v51 = vmul.f32 %v3424_v59, %v1343_v17 }
 0x4a4   : > { %v1414_v20 = vadd.f32 %v1410_v15, %v1386_v16  ;;  %v1383_v55 = vmul.f32 %v3429_v2, %v1371_v26  ;;  %v1092_v15 = vmul.f32 %v3415_v48, %v3399_v35  ;;  %v1329_v35 = vmul.f32 %v3427_v61, %v3407_v39 }
 0x4a5   : > { %v1385_v39 = vmul.f32 %v3429_v2, %v3446_v25 }
 0x4a6   : > { %v1452_v33 = vpop.xlane.xlu0 %1451  ;;  %v1442_v21 = vadd.f32 %v1438_v19, %v1414_v20 }
 0x4a7   : > { %v1466_v22 = vmul.f32 %v3441_v18, %v1452_v33  ;;  %v1399_v27 = vpop.xlane.xlu1 %1398  ;;  %v1574_v33 = vld [vmem:[#allocation11 + $0x8] sm:$0xf] }
 0x4a8   : > { %v1411_v1 = vmul.f32 %v3434_v9, %v1399_v27 }
 0x4a9   : > { %v1470_v46 = vadd.f32 %v1466_v22, %v1442_v21  ;;  %v1301_v21 = vmul.f32 %v3418_v52, %v3403_v38  ;;  %v1357_v52 = vmul.f32 %v3424_v59, %v3413_v43 }
 0x4aa   : > { %v1402_v32 = vpop.xlane.xlu0 %1401 }
 0x4ab   : > { %v1474_v24 = vpack.c.bf16 %v1470_v46, %v1470_v46  ;;  %v1427_v31 = vpop.xlane.xlu1 %1426  ;;  %v1412_v46 = vmul.f32 %v3434_v9, %v1402_v32 }
 0x4ac   : > { %v1439_v49 = vmul.f32 %v3438_v13, %v1427_v31 }
 0x4ad   : > { %2085 = vmatmul.mubr.msk.bf16.vlgmr.msra.gmra.mrb[20].mxu0 %vm546_vm1, %v1474_v24 }
 0x4ae   : > { %2095 = vmatpush3.bf16.msra.mxu0 %v1628_v3  ;;  %2096 = vmatprep.mubr.msk.bf16.mxu0 %vm2626_vm0, %v2625_v0  ;;  %v1430_v11 = vpop.xlane.xlu0 %1429 }
 0x4af   : > { %v1455_v56 = vpop.xlane.xlu1 %1454  ;;  %v1440_v31 = vmul.f32 %v3438_v13, %v1430_v11 }
 0x4b0   : > { %v1467_v16 = vmul.f32 %v3441_v18, %v1455_v56 }
 0x4b2   : > { %v1458_v48 = vpop.xlane.xlu0 %1457 }
 0x4b3   : > { %v1405_v14 = vpop.xlane.xlu1 %1404 }
 0x4be   : > { %v1180_v30 = vpop.f32.mrb[12].mxu0 }
 0x4bf   : > { %v1181_v42 = vadd.f32 %v1180_v30, %v1090_v28  ;;  %v2062_v44 = vpop.f32.mrb[13].mxu0  ;;  %v1579_v28 = vsel %vm1096_vm12, %v1574_v33, 0  ;;  %v1433_v30 = vpop.xlane.xlu1 %1432 }
 0x4c0   : > { %v1183_v45 = vpop.f32.mrb[14].mxu0 }
 0x4c1   : > { %v1303_v47 = vadd.f32 %v1299_v29, %v1181_v42  ;;  %v2063_v50 = vpop.f32.mrb[15].mxu0  ;;  %v1468_v42 = vmul.f32 %v3441_v18, %v1458_v48 }
 0x4c2   : > { %v1441_v50 = vmul.f32 %v3438_v13, %v1433_v30 }
 0x4c3   : > { %v1331_v53 = vadd.f32 %v1327_v41, %v1303_v47  ;;  %v1413_v41 = vmul.f32 %v3434_v9, %v1405_v14  ;;  %v1461_v59 = vpop.xlane.xlu1 %1460 }
 0x4c4   : > { %v1469_v32 = vmul.f32 %v3441_v18, %v1461_v59 }
 0x4c5   : > { %v1359_v57 = vadd.f32 %v1355_v51, %v1331_v53  ;;  %v1226_v58 = vpop.f32.mrb[12].mxu1 }
 0x4c6   : > { %v1227_v62 = vadd.f32 %v1226_v58, %v1091_v54  ;;  %v2068_v63 = vpop.f32.mrb[13].mxu1 }
 0x4c7   : > { %v1387_v4 = vadd.f32 %v1383_v55, %v1359_v57  ;;  %v1229_v6 = vpop.f32.mrb[14].mxu1 }
 0x4c8   : > { %v1304_v8 = vadd.f32 %v1300_v60, %v1227_v62  ;;  %v2069_v10 = vpop.f32.mrb[15].mxu1 }
 0x4c9   : > { %v1415_v5 = vadd.f32 %v1411_v1, %v1387_v4 }
 0x4ca   : > { %v1332_v34 = vadd.f32 %v1328_v7, %v1304_v8 }
 0x4cb   : > { %v1443_v17 = vadd.f32 %v1439_v49, %v1415_v5 }
 0x4cc   : > { %v1360_v19 = vadd.f32 %v1356_v12, %v1332_v34  ;;  %v1272_v20 = vpop.f32.mrb[16].mxu0 }
 0x4cd   : > { %v1273_v22 = vadd.f32 %v1272_v20, %v1092_v15  ;;  %v2074_v23 = vpop.f32.mrb[17].mxu0  ;;  %v1471_v37 = vadd.f32 %v1467_v16, %v1443_v17 }
 0x4ce   : > { %v1388_v24 = vadd.f32 %v1384_v36, %v1360_v19  ;;  %v1275_v3 = vpop.f32.mrb[18].mxu0 }
 0x4cf   : > { %v1305_v26 = vadd.f32 %v1301_v21, %v1273_v22  ;;  %v2075_v27 = vpop.f32.mrb[19].mxu0  ;;  %v1475_v40 = vpack.c.bf16 %v1471_v37, %v1471_v37 }
 0x4d0   : > { %v1416_v38 = vadd.f32 %v1412_v46, %v1388_v24 }
 0x4d1   : > { %v1333_v29 = vadd.f32 %v1329_v35, %v1305_v26  ;;  %2079 = vmatmul.mubr.msk.bf16.vlgmr.msra.gmra.mrb[16].mxu1 %vm546_vm1, %v1475_v40 }
 0x4d2   : > { %v1444_v44 = vadd.f32 %v1440_v31, %v1416_v38  ;;  %2089 = vmatpush3.bf16.msra.mxu1 %v1579_v28  ;;  %2090 = vmatprep.mubr.msk.bf16.mxu1 %vm2626_vm0, %v2625_v0 }
 0x4d3   : > { %v1361_v61 = vadd.f32 %v1357_v52, %v1333_v29 }
 0x4d4   : > { %v1472_v45 = vadd.f32 %v1468_v42, %v1444_v44 }
 0x4d5   : > { %v1389_v43 = vadd.f32 %v1385_v39, %v1361_v61 }
 0x4d6   : > { %v1476_v47 = vpack.c.bf16 %v1472_v45, %v1472_v45 }
 0x4d7   : > { %v1417_v51 = vadd.f32 %v1413_v41, %v1389_v43 }
 0x4d9   : > { %v1445_v0 = vadd.f32 %v1441_v50, %v1417_v51  ;;  %2091 = vmatmul.mubr.msk.bf16.vlgmr.msra.gmra.mrb[20].mxu1 %vm546_vm1, %v1476_v47 }
 0x4db   : > { %v1473_v53 = vadd.f32 %v1469_v32, %v1445_v0 }
 0x4dd   : > { %v1477_v2 = vpack.c.bf16 %v1473_v53, %v1473_v53 }
 0x4df   : > { %2097 = vmatmul.mubr.msk.bf16.vlgmr.msra.gmra.mrb[24].mxu0 %vm546_vm1, %v1477_v2 }
 0x4e0   : > { %2499 = shalt.err (!%p2496_p0)
}
 0x4e1   : > { %s2500_s23 = scalar_lea.hbm %s3496_s1, 512  ;;  %s2504_s24 = scalar_lea.hbm %s3663_s22, 1024 }
 0x4e2   : > { %p2501_p8 = scmp.ne.s32.totalorder %s3496_s1, %s2500_s23  ;;  %p2505_p2 = scmp.lt.u32.totalorder %s3496_s1, %s3663_s22 }
 0x4e3   : > { %p2506_p10 = scmp.lt.u32.totalorder %s2504_s24, %s2500_s23  ;;  %p2508_p7 = scmp.lt.u32.totalorder %s2500_s23, %s3496_s1 }
 0x4e4   : > { %p2502_p3 = pnand %p2501_p8, %p3664_p6 }
 0x4e5   : > { %p2507_p5 = por %p2506_p10, %p2505_p2 }
 0x4e6   : > { %p2503_p11 = pneg %p2502_p3 }
 0x4e7   : > { %p2509_p1 = por %p2508_p7, %p2507_p5 }
 0x4e9   : > { %p2510_p4 = pnand %p2509_p1, %p2503_p11 }
 0x4eb   : > { %2513 = shalt.err (!%p2510_p4)
}
 0x4ec   : > { %s2636_s15 = smov 128   ;;  %s2637_s5 = smov 8   ;;  %v1983_v7 = vld [vmem:[#allocation13] ss:$0 sm:$0xff]  ;;  %vm1683_vm13 = vcmask 261120  }
 0x4ed   : > { %2124 = dma.vmem_to_hbm [thread:$0]  (%p3664_p6), %s3498_s10, 512, %s3496_s1, %s1703_s21, %s2636_s15, %s2636_s15, %s2637_s5  }
 0x4ee   : > { %s1964_s14 = sshll.u32 %s2994_s12, 3  ;;  %s1986_s18 = sshll.u32 %s3661_s13, 7 }
 0x4ef   : > { %s494_s11 = scalar_lea.vmem [#allocation14], %s1964_s14  ;;  %s3665_s27 = sld [smem:[#allocation36_spill]] }
 0x4f0   : > { %s1716_s8 = sshll.u32 %s494_s11, 4  ;;  %s1698_s13 = scalar_lea.sflag [#allocation4], %s2994_s12  ;;  %s3531_s8 = int_to_ptr.vmem [resolvable:$true] %s1716_s8 }
 0x4f1   : > { %s2514_s20 = scalar_lea.vmem %s3531_s8, 128  ;;  %s2638_s9 = smov [#allocation14]  }
 0x4f2   : > { %p2515_p13 = scmp.ne.s32.totalorder %s3531_s8, %s2514_s20  ;;  %s2518_s26 = sshll.u32 %s2638_s9, 4  ;;  %s2519_s26 = int_to_ptr.vmem [resolvable:$false] %s2518_s26 }
 0x4f3   : > { %s2520_s7 = scalar_lea.vmem %s2519_s26, 256  ;;  %p2521_p0 = scmp.lt.s32.totalorder %s3531_s8, %s2519_s26 }
 0x4f4   : > { %p2516_p12 = pnand %p2515_p13, %p3664_p6  ;;  %p2522_p8 = scmp.lt.s32.totalorder %s2520_s7, %s2514_s20 }
 0x4f5   : > { %s3666_s1 = smov %s3665_s27  ;;  %s3529_s21 = scalar_lea.hbm %s3665_s27, %s1986_s18 }
 0x4f6   : > { %p2517_p9 = pneg %p2516_p12  ;;  %p2523_p3 = por %p2522_p8, %p2521_p0 }
 0x4f8   : > { %p2524_p11 = pnand %p2523_p3, %p2517_p9 }
 0x580   : > { %v1567_v9 = vpop.f32.mrb[20].mxu0 }
 0x581   : > { %v2086_v13 = vpop.f32.mrb[21].mxu0 }
 0x582   : > { %v1570_v18 = vpop.f32.mrb[22].mxu0 }
 0x583   : > { %v2087_v25 = vpop.f32.mrb[23].mxu0 }
 0x5a4   : > { %v1521_v54 = vpop.f32.mrb[16].mxu1 }
 0x5a5   : > { %v1568_v56 = vadd.f32 %v1567_v9, %v1521_v54  ;;  %v2080_v55 = vpop.f32.mrb[17].mxu1 }
 0x5a6   : > { %v1524_v57 = vpop.f32.mrb[18].mxu1 }
 0x5a7   : > { %v2081_v58 = vpop.f32.mrb[19].mxu1 }
 0x5ac   : > { %v1615_v60 = vpop.f32.mrb[20].mxu1 }
 0x5ad   : > { %v1621_v62 = vadd.f32 %v1615_v60, %v1568_v56  ;;  %v2092_v63 = vpop.f32.mrb[21].mxu1 }
 0x5ae   : > { %v1618_v1 = vpop.f32.mrb[22].mxu1 }
 0x5af   : > { %v2093_v4 = vpop.f32.mrb[23].mxu1 }
 0x5b2   : > { %v1664_v6 = vpop.f32.mrb[24].mxu0 }
 0x5b3   : > { %v1670_v8 = vadd.f32 %v1664_v6, %v1621_v62  ;;  %v2098_v10 = vpop.f32.mrb[25].mxu0 }
 0x5b4   : > { %v1667_v49 = vpop.f32.mrb[26].mxu0 }
 0x5b5   : > { %v1682_v11 = vadd.f32 %v1983_v7, %v1670_v8  ;;  %v2099_v5 = vpop.f32.mrb[27].mxu0 }
 0x5b7   : > { %1684 = vst.msk [vmem:[%s494_s11] sm:$0xff] %vm1683_vm13, %v1682_v11 }
 0x5b8   : > { %2527 = shalt.err (!%p2524_p11)
}
 0x5b9   : > { %s2528_s12 = scalar_lea.hbm %s3529_s21, 128  ;;  %s2532_s16 = scalar_lea.hbm %s3666_s1, 256 }
 0x5ba   : > { %p2529_p2 = scmp.ne.s32.totalorder %s3529_s21, %s2528_s12  ;;  %p2533_p7 = scmp.lt.u32.totalorder %s3529_s21, %s3666_s1 }
 0x5bb   : > { %p2534_p1 = scmp.lt.u32.totalorder %s2532_s16, %s2528_s12  ;;  %p2536_p13 = scmp.lt.u32.totalorder %s2528_s12, %s3529_s21 }
 0x5bc   : > { %p2530_p10 = pnand %p2529_p2, %p3664_p6 }
 0x5bd   : > { %p2535_p4 = por %p2534_p1, %p2533_p7 }
 0x5be   : > { %p2531_p5 = pneg %p2530_p10 }
 0x5bf   : > { %p2537_p12 = por %p2536_p13, %p2535_p4 }
 0x5c1   : > { %p2538_p9 = pnand %p2537_p12, %p2531_p5 }
 0x5c3   : > { %2541 = shalt.err (!%p2538_p9)
}
 0x5c4   : > { %2123 = dma.vmem_to_hbm [thread:$0]  (%p3664_p6), %s3531_s8, 128, %s3529_s21, %s1698_s13  }
 0x5c5 PF: > { %s3667_s3 = sld [smem:[#allocation23_spill]]  ;;  %s3668_s15 = sld [smem:[#allocation29_spill]] }
 0x5c6   : > { %s3669_s5 = sld [smem:[#allocation26_spill]] }
 0x5cb   : > { %s1746_s14 = sand.u32 1, %s3667_s3   ;;  %p3670_p0 = scmp.ne.s32.totalorder %s3668_s15, 0 }
 0x5cc   : > { %p3671_p8 = scmp.ge.s32.totalorder %s3669_s5, 2  ;;  %s1747_s18 = scalar_lea.sflag [#allocation4], %s1746_s14 }
 0x5ce   : > { %p2151_p3 = pnand %p3671_p8, %p3670_p0 }
 0x5d0   : > { %2583 = dma.done.wait (!%p2151_p3), %s1747_s18, 128  }
 0x5d1   : > { %2585 = vsyncadd (!%p2151_p3), %s1747_s18, 4294967168  ;;  %s1756_s11 = scalar_lea.sflag [#allocation16], %s1746_s14 }
 0x5d2   : > { %2587 = dma.done.wait (!%p2151_p3), %s1756_s11, 512  }
 0x5d3   : > { %2589 = vsyncadd (!%p2151_p3), %s1756_s11, 4294966784  ;;  %s33_s10 = sadd.s32 1, %s3669_s5   ;;  %s3672_s30 = sld [smem:[#allocation32_spill]] }
 0x5d4   : > { %p30_p11 = scmp.ge.s32.totalorder %s33_s10, 4   ;;  %s3673_s8 = sld [smem:[#allocation25_spill]] }
 0x5d5   : > { %s3674_s9 = sld [smem:[#allocation30_spill]]  ;;  %s3675_s27 = smov %s2596_s28 }
 0x5d6   : > { %s3676_s28 = smov %s2600_s29  ;;  %32 = sbr.rel (!%p30_p11) target bundleno = 18 (0x12), region = 162 }
 0x5d9   : > { %s3677_s29 = smov %s3672_s30 }
 0x5da   : > { %s3678_s30 = smov %s3673_s8 }
 0x5dd   :  { %1761 = vsyncpa [#allocation3], 1 }
 0x5de   :  { %1763 = vsyncpa [#allocation3 + $0x1], 1 }
 0x5df   :  { %1764 = vsyncpa [#allocation6], 1 }
 0x5e0   :  { %1766 = vsyncpa [#allocation6 + $0x1], 1 }
 0x5e1   :  { %1767 = vsyncpa [#allocation9], 1 }
 0x5e2   :  { %1768 = vsyncpa [#allocation12], 1 }
 0x5e3   :  { %1769 = vsyncpa [#allocation4], 1 }
 0x5e4   :  { %1771 = vsyncpa [#allocation4 + $0x1], 1 }
 0x5e5   :  { %1772 = vsyncpa [#allocation16], 1 }
 0x5e6   :  { %1774 = vsyncpa [#allocation16 + $0x1], 1 }

</bundles_post_ra>
